<compile_context>
chip_gen: v6e
topology: v6e:2x2x1
jax: 0.10.0
libtpu: 0.0.40
codegen_flags: <defaults>
</compile_context>

<pallas_src>
import functools

import jax
import jax.numpy as jnp
from jax import lax
from jax.experimental import pallas as pl
from jax.experimental.pallas import tpu as pltpu

LN_EPS = 1e-12          # BertConfig.layer_norm_eps and explicit video_norm eps
NEG_INF = -1e9

_VMEM_LIMIT_CACHE = None


def _vmem_limit():
    """Generation-aware scoped-VMEM budget: 3/4 of physical, capped at 96 MiB."""
    global _VMEM_LIMIT_CACHE
    if _VMEM_LIMIT_CACHE is None:
        try:
            cap = int(pltpu.get_tpu_info().vmem_capacity_bytes)
        except Exception:
            cap = 64 * 1024 * 1024
        _VMEM_LIMIT_CACHE = max(32 * 1024 * 1024,
                                min(96 * 1024 * 1024, (cap * 3) // 4))
    return _VMEM_LIMIT_CACHE


# ----------------------------------------------------------------------------
# small helpers
# ----------------------------------------------------------------------------

def _lane_tile(dim, cap):
    """Largest lane-aligned chunk <= cap dividing dim (or dim itself if small)."""
    if dim <= cap:
        return dim
    t = (cap // 128) * 128
    while t >= 128:
        if dim % t == 0:
            return t
        t -= 128
    return dim


def _gelu(x):
    # TODO(synk): tanh-approx GELU; HF BERT's "gelu" is exact erf (~1e-3 diff).
    return 0.5 * x * (1.0 + jnp.tanh(0.7978845608028654 * (x + 0.044715 * x * x * x)))


def _layernorm(x, g, b, eps):
    mu = jnp.mean(x, axis=-1, keepdims=True)
    var = jnp.mean(jnp.square(x - mu), axis=-1, keepdims=True)
    return (x - mu) * lax.rsqrt(var + eps) * g + b


def _mha_proj(q, k, v, wo, bias, heads, scale):
    """Multi-head attention + fused output projection.

    q: (Sq,H) f32, k/v: (Sk,H) f32, wo: (H,H) bf16, bias: (Sq,Sk) f32 or None.
    Returns (Sq,H) f32 = concat_h(softmax(q_h k_h^T * scale + bias) v_h) @ wo,
    accumulated per head (ctx_h @ wo[h-rows]) so no lane-unaligned concatenate.
    All matmuls use bf16 MXU operands with f32 accumulation.
    """
    Sq, H = q.shape
    Dh = H // heads
    out = jnp.zeros((Sq, H), jnp.float32)
    for h in range(heads):
        sl = slice(h * Dh, (h + 1) * Dh)
        s = lax.dot_general(q[:, sl].astype(jnp.bfloat16),
                            k[:, sl].astype(jnp.bfloat16),
                            (((1,), (1,)), ((), ())),
                            preferred_element_type=jnp.float32) * scale
        if bias is not None:
            s = s + bias
        s = s - jnp.max(s, axis=-1, keepdims=True)
        p = jnp.exp(s)
        p = p * pl.reciprocal(jnp.sum(p, axis=-1, keepdims=True), approx=True)
        ctx = jnp.dot(p.astype(jnp.bfloat16), v[:, sl].astype(jnp.bfloat16),
                      preferred_element_type=jnp.float32)
        out = out + jnp.dot(ctx.astype(jnp.bfloat16), wo[sl, :],
                            preferred_element_type=jnp.float32)
    return out


def _bmm(x_f32, w_bf16, b_f32):
    """bf16 MXU matmul with f32 accumulation + bias add."""
    return jnp.dot(x_f32.astype(jnp.bfloat16), w_bf16,
                   preferred_element_type=jnp.float32) + b_f32


# ----------------------------------------------------------------------------
# Kernel 1: FrameEncoder layer (patch proj + pos + self-attn + FFN + video LN)
# ----------------------------------------------------------------------------

def _encoder_layer_kernel(xraw_ref, pos_ref, pw_ref, pb_ref,
                          wqkv_ref, bqkv_ref, wos_ref, bos_ref, ln1g_ref, ln1b_ref,
                          w1_ref, b1_ref, w2_ref, b2_ref, ln2g_ref, ln2b_ref,
                          vg_ref, vb_ref, o_ref, *, heads, eps):
    # patch embedding + positional embedding
    x = jnp.dot(xraw_ref[0], pw_ref[...],
                preferred_element_type=jnp.float32) + pb_ref[...] + pos_ref[0]
    Sv, H = x.shape
    scale = float(H // heads) ** -0.5

    # self attention (no mask) + Add & LN
    qkv = _bmm(x, wqkv_ref[...], bqkv_ref[...])
    q, k, v = qkv[:, :H], qkv[:, H:2 * H], qkv[:, 2 * H:]
    attn = _mha_proj(q, k, v, wos_ref[...], None, heads, scale) + bos_ref[...]
    x = _layernorm(x + attn, ln1g_ref[...], ln1b_ref[...], eps)

    # FFN + Add & LN
    h = _gelu(_bmm(x, w1_ref[...], b1_ref[...]))
    y = _bmm(h, w2_ref[...], b2_ref[...])
    x = _layernorm(x + y, ln2g_ref[...], ln2b_ref[...], eps)

    # fused video_norm (LayerNorm applied to the FrameEncoder output)
    x = _layernorm(x, vg_ref[...], vb_ref[...], eps)
    o_ref[0] = x.astype(o_ref.dtype)


def pallas_encoder_layer(patches, pos, vp, video_ln_g, video_ln_b, *, heads,
                         eps=LN_EPS):
    B, Sv, PD = patches.shape
    H = vp["patch_w"].shape[1]
    lp = vp["enc_layer"]
    I = lp["ffn_w1"].shape[1]

    def cspec(shape):
        nd = len(shape)
        return pl.BlockSpec(shape, lambda i, _n=nd: (0,) * _n)

    def bspec(shape):
        return pl.BlockSpec(shape, lambda i: (i, 0, 0))

    def w(a):
        return a.astype(jnp.bfloat16)

    def rowv(a, n):
        return a.reshape(1, n).astype(jnp.float32)

    args, specs = [], []

    def add(arr, spec):
        args.append(arr)
        specs.append(spec)

    sp = lp["self"]
    add(patches.astype(jnp.bfloat16), bspec((1, Sv, PD)))
    add(pos.astype(jnp.float32), cspec((1, Sv, H)))
    add(w(vp["patch_w"]), cspec((PD, H)))
    add(rowv(vp["patch_b"], H), cspec((1, H)))
    add(w(sp["w_qkv"]), cspec((H, 3 * H)))
    add(rowv(sp["b_qkv"], 3 * H), cspec((1, 3 * H)))
    add(w(sp["wo"]), cspec((H, H)))
    add(rowv(sp["bo"], H), cspec((1, H)))
    add(rowv(lp["self_ln_g"], H), cspec((1, H)))
    add(rowv(lp["self_ln_b"], H), cspec((1, H)))
    add(w(lp["ffn_w1"]), cspec((H, I)))
    add(rowv(lp["ffn_b1"], I), cspec((1, I)))
    add(w(lp["ffn_w2"]), cspec((I, H)))
    add(rowv(lp["ffn_b2"], H), cspec((1, H)))
    add(rowv(lp["ffn_ln_g"], H), cspec((1, H)))
    add(rowv(lp["ffn_ln_b"], H), cspec((1, H)))
    add(rowv(video_ln_g, H), cspec((1, H)))
    add(rowv(video_ln_b, H), cspec((1, H)))

    kernel = functools.partial(_encoder_layer_kernel, heads=heads, eps=eps)
    return pl.pallas_call(
        kernel,
        grid=(B,),
        out_shape=jax.ShapeDtypeStruct((B, Sv, H), jnp.bfloat16),
        in_specs=specs,
        out_specs=pl.BlockSpec((1, Sv, H), lambda i: (i, 0, 0)),
        compiler_params=pltpu.CompilerParams(
            dimension_semantics=("parallel",), vmem_limit_bytes=_vmem_limit()),
    )(*args)


# ----------------------------------------------------------------------------
# Kernel 2: full decoder layer (opt. embedding-LN + self-attn + cross-attn + FFN)
# ----------------------------------------------------------------------------

def _decoder_layer_kernel(*refs, heads, eps, pre_ln):
    if pre_ln:
        (x_ref, enc_ref, pad_ref, pln_g, pln_b,
         wqkv, bqkv, wos, bos, ln1g, ln1b,
         wq, bq, wkv, bkv, woc, boc, ln2g, ln2b,
         w1, b1, w2, b2, ln3g, ln3b, o_ref) = refs
    else:
        (x_ref, enc_ref, pad_ref,
         wqkv, bqkv, wos, bos, ln1g, ln1b,
         wq, bq, wkv, bkv, woc, boc, ln2g, ln2b,
         w1, b1, w2, b2, ln3g, ln3b, o_ref) = refs
        pln_g = pln_b = None

    x = x_ref[0].astype(jnp.float32)         # (S, H)
    enc = enc_ref[0]                          # (Sv, H) bf16
    S, H = x.shape
    scale = float(H // heads) ** -0.5

    if pre_ln:
        # fused BERT embedding LayerNorm (layer 0 only)
        x = _layernorm(x, pln_g[...], pln_b[...], eps)

    # additive causal x padding mask built in-kernel (no (B,S,S) HBM traffic)
    pad = pad_ref[0]                          # (1, S) f32 of 0/1 over keys
    row = lax.broadcasted_iota(jnp.int32, (S, S), 0)
    col = lax.broadcasted_iota(jnp.int32, (S, S), 1)
    allowed = jnp.where(row >= col, pad, 0.0)            # (S, S)
    bias = (allowed - 1.0) * (-NEG_INF)                   # 0 or -1e9
    bias = bias * -1.0  # (allowed-1)*1e9 -> 0 where allowed, -1e9 where masked
    # NOTE: above two lines equivalent to (allowed - 1.0) * 1e9; kept explicit.

    # --- causal self attention + Add & LN ---
    qkv = _bmm(x, wqkv[...], bqkv[...])
    q, k, v = qkv[:, :H], qkv[:, H:2 * H], qkv[:, 2 * H:]
    attn = _mha_proj(q, k, v, wos[...], bias, heads, scale) + bos[...]
    x = _layernorm(x + attn, ln1g[...], ln1b[...], eps)

    # --- cross attention to video states (all-ones encoder mask) + Add & LN ---
    qc = _bmm(x, wq[...], bq[...])
    kv = jnp.dot(enc, wkv[...], preferred_element_type=jnp.float32) + bkv[...]
    kc, vc = kv[:, :H], kv[:, H:]
    attn_c = _mha_proj(qc, kc, vc, woc[...], None, heads, scale) + boc[...]
    x = _layernorm(x + attn_c, ln2g[...], ln2b[...], eps)

    # --- FFN + Add & LN ---
    h = _gelu(_bmm(x, w1[...], b1[...]))
    y = _bmm(h, w2[...], b2[...])
    x = _layernorm(x + y, ln3g[...], ln3b[...], eps)

    o_ref[0] = x.astype(o_ref.dtype)


def pallas_decoder_layer(x, enc, pad, lp, emb_ln=None, *, heads, eps=LN_EPS):
    B, S, H = x.shape
    Sv = enc.shape[1]
    I = lp["ffn_w1"].shape[1]

    def cspec(shape):
        nd = len(shape)
        return pl.BlockSpec(shape, lambda i, _n=nd: (0,) * _n)

    def bspec(shape):
        return pl.BlockSpec(shape, lambda i: (i, 0, 0))

    def w(a):
        return a.astype(jnp.bfloat16)

    def rowv(a, n):
        return a.reshape(1, n).astype(jnp.float32)

    args, specs = [], []

    def add(arr, spec):
        args.append(arr)
        specs.append(spec)

    add(x.astype(jnp.bfloat16), bspec((1, S, H)))
    add(enc.astype(jnp.bfloat16), bspec((1, Sv, H)))
    add(pad.astype(jnp.float32), bspec((1, 1, S)))
    if emb_ln is not None:
        add(rowv(emb_ln[0], H), cspec((1, H)))
        add(rowv(emb_ln[1], H), cspec((1, H)))
    sp = lp["self"]
    add(w(sp["w_qkv"]), cspec((H, 3 * H)))
    add(rowv(sp["b_qkv"], 3 * H), cspec((1, 3 * H)))
    add(w(sp["wo"]), cspec((H, H)))
    add(rowv(sp["bo"], H), cspec((1, H)))
    add(rowv(lp["self_ln_g"], H), cspec((1, H)))
    add(rowv(lp["self_ln_b"], H), cspec((1, H)))
    cp = lp["cross"]
    add(w(cp["wq"]), cspec((H, H)))
    add(rowv(cp["bq"], H), cspec((1, H)))
    add(w(cp["w_kv"]), cspec((H, 2 * H)))
    add(rowv(cp["b_kv"], 2 * H), cspec((1, 2 * H)))
    add(w(cp["wo"]), cspec((H, H)))
    add(rowv(cp["bo"], H), cspec((1, H)))
    add(rowv(lp["cross_ln_g"], H), cspec((1, H)))
    add(rowv(lp["cross_ln_b"], H), cspec((1, H)))
    add(w(lp["ffn_w1"]), cspec((H, I)))
    add(rowv(lp["ffn_b1"], I), cspec((1, I)))
    add(w(lp["ffn_w2"]), cspec((I, H)))
    add(rowv(lp["ffn_b2"], H), cspec((1, H)))
    add(rowv(lp["ffn_ln_g"], H), cspec((1, H)))
    add(rowv(lp["ffn_ln_b"], H), cspec((1, H)))

    kernel = functools.partial(_decoder_layer_kernel, heads=heads, eps=eps,
                               pre_ln=emb_ln is not None)
    return pl.pallas_call(
        kernel,
        grid=(B,),
        out_shape=jax.ShapeDtypeStruct((B, S, H), jnp.bfloat16),
        in_specs=specs,
        out_specs=pl.BlockSpec((1, S, H), lambda i: (i, 0, 0)),
        compiler_params=pltpu.CompilerParams(
            dimension_semantics=("parallel",), vmem_limit_bytes=_vmem_limit()),
    )(*args)


# ----------------------------------------------------------------------------
# Kernel 3: LM head transform + vocab projection + streaming cross-entropy
# ----------------------------------------------------------------------------

def _lm_head_kernel(labels_ref, x_ref, hw_ref, hb_ref, hg_ref, hbb_ref,
                    lmw_ref, lmb_ref, logits_ref, loss_ref,
                    hn_sc, m_sc, l_sc, p_sc, *, v_chunk, n_chunks, eps):
    j = pl.program_id(0)

    @pl.when(j == 0)
    def _():
        # head transform computed once, kept VMEM-resident across vocab chunks
        h = jnp.dot(x_ref[...], hw_ref[...],
                    preferred_element_type=jnp.float32) + hb_ref[...]
        h = _gelu(h)
        hn_sc[...] = _layernorm(h, hg_ref[...], hbb_ref[...], eps).astype(hn_sc.dtype)
        m_sc[...] = jnp.full_like(m_sc, -1e30)
        l_sc[...] = jnp.zeros_like(l_sc)
        p_sc[...] = jnp.zeros_like(p_sc)

    # vocab-chunk logits (bf16 MXU operands, f32 accumulation) -> write + CE
    logits = jnp.dot(hn_sc[...], lmw_ref[...],
                     preferred_element_type=jnp.float32) + lmb_ref[...]
    logits_ref[...] = logits

    labels = labels_ref[...]                                   # (T, 1) int32
    col = j * v_chunk + lax.broadcasted_iota(jnp.int32, logits.shape, 1)
    m_prev = m_sc[...]
    m_new = jnp.maximum(m_prev, jnp.max(logits, axis=-1, keepdims=True))
    l_sc[...] = (l_sc[...] * jnp.exp(m_prev - m_new)
                 + jnp.sum(jnp.exp(logits - m_new), axis=-1, keepdims=True))
    m_sc[...] = m_new
    p_sc[...] += jnp.sum(jnp.where(col == labels, logits, 0.0),
                         axis=-1, keepdims=True)

    @pl.when(j == n_chunks - 1)
    def _():
        valid = (labels != -100).astype(jnp.float32)
        nll = (m_sc[...] + jnp.log(l_sc[...]) - p_sc[...]) * valid
        total = jnp.sum(nll)
        count = jnp.maximum(jnp.sum(valid), 1.0)
        loss_ref[...] = (total / count)[None, None]


def pallas_lm_head_loss(x2d, dec, shift_labels, *, eps=LN_EPS):
    """x2d: (T,H) hidden states; returns (loss scalar, logits (T,V) f32)."""
    T, H = x2d.shape
    V = dec["lm_w"].shape[1]
    v_chunk = _lane_tile(V, 1024)          # stream vocab; VMEM-safe on v7x too
    n_chunks = V // v_chunk
    kernel = functools.partial(_lm_head_kernel, v_chunk=v_chunk,
                               n_chunks=n_chunks, eps=eps)
    logits, loss = pl.pallas_call(
        kernel,
        grid=(n_chunks,),
        out_shape=(jax.ShapeDtypeStruct((T, V), jnp.float32),
                   jax.ShapeDtypeStruct((1, 1), jnp.float32)),
        in_specs=[
            pl.BlockSpec((T, 1), lambda j: (0, 0)),
            pl.BlockSpec((T, H), lambda j: (0, 0)),
            pl.BlockSpec((H, H), lambda j: (0, 0)),
            pl.BlockSpec((1, H), lambda j: (0, 0)),
            pl.BlockSpec((1, H), lambda j: (0, 0)),
            pl.BlockSpec((1, H), lambda j: (0, 0)),
            pl.BlockSpec((H, v_chunk), lambda j: (0, j)),
            pl.BlockSpec((1, v_chunk), lambda j: (0, j)),
        ],
        out_specs=[pl.BlockSpec((T, v_chunk), lambda j: (0, j)),
                   pl.BlockSpec((1, 1), lambda j: (0, 0))],
        scratch_shapes=[pltpu.VMEM((T, H), jnp.bfloat16),
                        pltpu.VMEM((T, 1), jnp.float32),
                        pltpu.VMEM((T, 1), jnp.float32),
                        pltpu.VMEM((T, 1), jnp.float32)],
        compiler_params=pltpu.CompilerParams(
            dimension_semantics=("arbitrary",), vmem_limit_bytes=_vmem_limit()),
    )(shift_labels.reshape(T, 1).astype(jnp.int32),
      x2d.astype(jnp.bfloat16),
      dec["head_w"].astype(jnp.bfloat16),
      dec["head_b"].reshape(1, H).astype(jnp.float32),
      dec["head_ln_g"].reshape(1, H).astype(jnp.float32),
      dec["head_ln_b"].reshape(1, H).astype(jnp.float32),
      dec["lm_w"].astype(jnp.bfloat16),
      dec["lm_b"].reshape(1, V).astype(jnp.float32))
    return loss[0, 0], logits


# ----------------------------------------------------------------------------
# Model glue (patchify, embedding gathers, shifted labels)
# ----------------------------------------------------------------------------

def _patchify(pixel_values, P):
    B, F, C, Hh, Ww = pixel_values.shape
    nh, nw = Hh // P, Ww // P
    x = pixel_values.reshape(B, F, C, nh, P, nw, P)
    x = x.transpose(0, 1, 3, 5, 2, 4, 6).reshape(B, F * nh * nw, C * P * P)
    return x


def full_model_vision_forward(params, cfg, pixel_values, decoder_input_ids,
                              decoder_attention_mask, labels):
    """Mirrors FullModelVision.forward: returns (loss, logits)."""
    B, S = decoder_input_ids.shape
    H, V, heads = cfg["hidden"], cfg["vocab"], cfg["heads"]

    # ---- FrameEncoder + video_norm (one fused kernel over the batch grid) ----
    patches = _patchify(pixel_values, cfg["patch"])            # (B, Sv, C*P*P)
    Sv = patches.shape[1]
    pos = params["video"]["vid_pos"][None, :Sv, :]
    video = pallas_encoder_layer(patches, pos, params["video"],
                                 params["video_ln_g"], params["video_ln_b"],
                                 heads=heads)                  # (B, Sv, H) bf16

    # ---- decoder embeddings (gathers in glue); embedding LN fused in layer 0 ----
    word = params["dec"]["word_emb"][decoder_input_ids]        # (B, S, H)
    pos_t = params["dec"]["pos_emb"][:S][None, :, :]
    typ = params["dec"]["type_emb"][0][None, None, :]
    emb = word + pos_t + typ

    pad = decoder_attention_mask.astype(jnp.float32).reshape(B, 1, S)

    # ---- 3 fused decoder layers (self-attn -> cross-attn -> FFN) ----
    x = emb
    for li, lp in enumerate(params["dec"]["layers"]):
        emb_ln = ((params["dec"]["emb_ln_g"], params["dec"]["emb_ln_b"])
                  if li == 0 else None)
        x = pallas_decoder_layer(x, video, pad, lp, emb_ln, heads=heads)

    # ---- fused LM head + vocab projection + shifted CE (ignore_index=-100) ----
    T = B * S
    shift_labels = jnp.concatenate(
        [labels[:, 1:], jnp.full((B, 1), -100, labels.dtype)], axis=1).reshape(T)
    loss, logits2d = pallas_lm_head_loss(x.reshape(T, H), params["dec"],
                                         shift_labels)
    return loss, logits2d.reshape(B, S, V)


# ----------------------------------------------------------------------------
# Deterministic parameter init (synthetic; no checkpoint load)
# ----------------------------------------------------------------------------

class _KeyGen:
    def __init__(self, key):
        self._key = key

    def __call__(self):
        self._key, sub = jax.random.split(self._key)
        return sub


def _dense(kg, d_in, d_out):
    return (0.02 * jax.random.normal(kg(), (d_in, d_out), jnp.float32),
            jnp.zeros((d_out,), jnp.float32))


def _self_attn_params(kg, H):
    w_qkv, b_qkv = _dense(kg, H, 3 * H)        # fused Q|K|V projection
    wo, bo = _dense(kg, H, H)
    return dict(w_qkv=w_qkv, b_qkv=b_qkv, wo=wo, bo=bo)


def _cross_attn_params(kg, H):
    wq, bq = _dense(kg, H, H)
    w_kv, b_kv = _dense(kg, H, 2 * H)          # fused K|V projection
    wo, bo = _dense(kg, H, H)
    return dict(wq=wq, bq=bq, w_kv=w_kv, b_kv=b_kv, wo=wo, bo=bo)


def _layer_params(kg, H, I, with_cross):
    p = dict(
        self=_self_attn_params(kg, H),
        self_ln_g=jnp.ones((H,), jnp.float32), self_ln_b=jnp.zeros((H,), jnp.float32),
        ffn_ln_g=jnp.ones((H,), jnp.float32), ffn_ln_b=jnp.zeros((H,), jnp.float32),
    )
    p["ffn_w1"], p["ffn_b1"] = _dense(kg, H, I)
    p["ffn_w2"], p["ffn_b2"] = _dense(kg, I, H)
    if with_cross:
        p["cross"] = _cross_attn_params(kg, H)
        p["cross_ln_g"] = jnp.ones((H,), jnp.float32)
        p["cross_ln_b"] = jnp.zeros((H,), jnp.float32)
    return p


def init_params(key, cfg):
    kg = _KeyGen(key)
    H, I, V = cfg["hidden"], cfg["intermediate"], cfg["vocab"]
    patch_dim = cfg["channels"] * cfg["patch"] * cfg["patch"]

    video = dict(enc_layer=_layer_params(kg, H, I, with_cross=False))
    video["patch_w"], video["patch_b"] = _dense(kg, patch_dim, H)
    video["vid_pos"] = 0.02 * jax.random.normal(
        kg(), (cfg["max_video_tokens"], H), jnp.float32)

    dec = dict(
        word_emb=0.02 * jax.random.normal(kg(), (V, H), jnp.float32),
        pos_emb=0.02 * jax.random.normal(kg(), (cfg["max_pos"], H), jnp.float32),
        type_emb=0.02 * jax.random.normal(kg(), (2, H), jnp.float32),
        emb_ln_g=jnp.ones((H,), jnp.float32), emb_ln_b=jnp.zeros((H,), jnp.float32),
        head_ln_g=jnp.ones((H,), jnp.float32), head_ln_b=jnp.zeros((H,), jnp.float32),
        layers=[_layer_params(kg, H, I, with_cross=True)
                for _ in range(cfg["num_layers"])],
    )
    dec["head_w"], dec["head_b"] = _dense(kg, H, H)
    dec["lm_w"], dec["lm_b"] = _dense(kg, H, V)

    return dict(
        video=video,
        video_ln_g=jnp.ones((H,), jnp.float32), video_ln_b=jnp.zeros((H,), jnp.float32),
        dec=dec,
    )


# ----------------------------------------------------------------------------
# Main
# ----------------------------------------------------------------------------

if __name__ == "__main__":
    # TODO(synk): tokenizer init, pretrained-checkpoint loading (_init_weights /
    # torch.load), the unused AggModule, and HF .generate() beam search are not
    # part of forward() and have no Pallas equivalent; they are omitted.
    cfg = dict(
        hidden=128, heads=4, intermediate=256, vocab=512, num_layers=3,
        n_frame=2, channels=3, image=16, patch=8,
        max_pos=64, max_video_tokens=64,
    )

    key = jax.random.PRNGKey(0)
    k_params, k_pix, k_ids = jax.random.split(key, 3)

    params = init_params(k_params, cfg)

    B, S = 2, 8
    pixel_values = jax.random.normal(
        k_pix, (B, cfg["n_frame"], cfg["channels"], cfg["image"], cfg["image"]),
        jnp.float32)
    decoder_input_ids = jax.random.randint(k_ids, (B, S), 1, cfg["vocab"],
                                           dtype=jnp.int32)
    decoder_attention_mask = jnp.ones((B, S), jnp.int32).at[1, -2:].set(0)
    labels = jnp.where(decoder_attention_mask == 1, decoder_input_ids, -100)

    fwd = jax.jit(lambda p, pv, ids, am, lb:
                  full_model_vision_forward(p, cfg, pv, ids, am, lb))
    loss, logits = fwd(params, pixel_values, decoder_input_ids,
                       decoder_attention_mask, labels)
    jax.block_until_ready((loss, logits))

    assert logits.shape == (B, S, cfg["vocab"]), logits.shape
    assert bool(jnp.isfinite(loss)), loss
    print("KERNEL_OK")
</pallas_src>

<mosaic_0001>
module attributes {stable_mosaic.version = 11 : i64} {
  func.func @_decoder_layer_kernel(%arg0: i32, %arg1: memref<1x8x128xbf16, #tpu.memory_space<vmem>>, %arg2: memref<1x8x128xbf16, #tpu.memory_space<vmem>>, %arg3: memref<1x1x8xf32, #tpu.memory_space<vmem>>, %arg4: memref<128x384xbf16, #tpu.memory_space<vmem>>, %arg5: memref<1x384xf32, #tpu.memory_space<vmem>>, %arg6: memref<128x128xbf16, #tpu.memory_space<vmem>>, %arg7: memref<1x128xf32, #tpu.memory_space<vmem>>, %arg8: memref<1x128xf32, #tpu.memory_space<vmem>>, %arg9: memref<1x128xf32, #tpu.memory_space<vmem>>, %arg10: memref<128x128xbf16, #tpu.memory_space<vmem>>, %arg11: memref<1x128xf32, #tpu.memory_space<vmem>>, %arg12: memref<128x256xbf16, #tpu.memory_space<vmem>>, %arg13: memref<1x256xf32, #tpu.memory_space<vmem>>, %arg14: memref<128x128xbf16, #tpu.memory_space<vmem>>, %arg15: memref<1x128xf32, #tpu.memory_space<vmem>>, %arg16: memref<1x128xf32, #tpu.memory_space<vmem>>, %arg17: memref<1x128xf32, #tpu.memory_space<vmem>>, %arg18: memref<128x256xbf16, #tpu.memory_space<vmem>>, %arg19: memref<1x256xf32, #tpu.memory_space<vmem>>, %arg20: memref<256x128xbf16, #tpu.memory_space<vmem>>, %arg21: memref<1x128xf32, #tpu.memory_space<vmem>>, %arg22: memref<1x128xf32, #tpu.memory_space<vmem>>, %arg23: memref<1x128xf32, #tpu.memory_space<vmem>>, %arg24: memref<1x8x128xbf16, #tpu.memory_space<vmem>>) attributes {dimension_semantics = [#tpu.dimension_semantics<parallel>], iteration_bounds = array<i64: 2>, scalar_prefetch = 0 : i64, scratch_operands = 0 : i64, tpu.core_type = #tpu.core_type<tc>, window_params = [{transform_indices = @transform_0, window_bounds = array<i64: 1, 8, 128>}, {transform_indices = @transform_1, window_bounds = array<i64: 1, 8, 128>}, {transform_indices = @transform_2, window_bounds = array<i64: 1, 1, 8>}, {pipeline_mode = #tpu.pipeline_mode<synchronous>, transform_indices = @transform_3, window_bounds = array<i64: 128, 384>}, {pipeline_mode = #tpu.pipeline_mode<synchronous>, transform_indices = @transform_4, window_bounds = array<i64: 1, 384>}, {pipeline_mode = #tpu.pipeline_mode<synchronous>, transform_indices = @transform_5, window_bounds = array<i64: 128, 128>}, {pipeline_mode = #tpu.pipeline_mode<synchronous>, transform_indices = @transform_6, window_bounds = array<i64: 1, 128>}, {pipeline_mode = #tpu.pipeline_mode<synchronous>, transform_indices = @transform_7, window_bounds = array<i64: 1, 128>}, {pipeline_mode = #tpu.pipeline_mode<synchronous>, transform_indices = @transform_8, window_bounds = array<i64: 1, 128>}, {pipeline_mode = #tpu.pipeline_mode<synchronous>, transform_indices = @transform_9, window_bounds = array<i64: 128, 128>}, {pipeline_mode = #tpu.pipeline_mode<synchronous>, transform_indices = @transform_10, window_bounds = array<i64: 1, 128>}, {pipeline_mode = #tpu.pipeline_mode<synchronous>, transform_indices = @transform_11, window_bounds = array<i64: 128, 256>}, {pipeline_mode = #tpu.pipeline_mode<synchronous>, transform_indices = @transform_12, window_bounds = array<i64: 1, 256>}, {pipeline_mode = #tpu.pipeline_mode<synchronous>, transform_indices = @transform_13, window_bounds = array<i64: 128, 128>}, {pipeline_mode = #tpu.pipeline_mode<synchronous>, transform_indices = @transform_14, window_bounds = array<i64: 1, 128>}, {pipeline_mode = #tpu.pipeline_mode<synchronous>, transform_indices = @transform_15, window_bounds = array<i64: 1, 128>}, {pipeline_mode = #tpu.pipeline_mode<synchronous>, transform_indices = @transform_16, window_bounds = array<i64: 1, 128>}, {pipeline_mode = #tpu.pipeline_mode<synchronous>, transform_indices = @transform_17, window_bounds = array<i64: 128, 256>}, {pipeline_mode = #tpu.pipeline_mode<synchronous>, transform_indices = @transform_18, window_bounds = array<i64: 1, 256>}, {pipeline_mode = #tpu.pipeline_mode<synchronous>, transform_indices = @transform_19, window_bounds = array<i64: 256, 128>}, {pipeline_mode = #tpu.pipeline_mode<synchronous>, transform_indices = @transform_20, window_bounds = array<i64: 1, 128>}, {pipeline_mode = #tpu.pipeline_mode<synchronous>, transform_indices = @transform_21, window_bounds = array<i64: 1, 128>}, {pipeline_mode = #tpu.pipeline_mode<synchronous>, transform_indices = @transform_22, window_bounds = array<i64: 1, 128>}, {transform_indices = @transform_23, window_bounds = array<i64: 1, 8, 128>}]} {
    %c0 = arith.constant 0 : index
    %c0_0 = arith.constant 0 : index
    %c0_1 = arith.constant 0 : index
    %0 = vector.load %arg1[%c0, %c0_0, %c0_1] : memref<1x8x128xbf16, #tpu.memory_space<vmem>>, vector<1x8x128xbf16>
    %1 = vector.shape_cast %0 : vector<1x8x128xbf16> to vector<8x128xbf16>
    %2 = arith.extf %1 : vector<8x128xbf16> to vector<8x128xf32>
    %c0_2 = arith.constant 0 : index
    %c0_3 = arith.constant 0 : index
    %c0_4 = arith.constant 0 : index
    %3 = vector.load %arg2[%c0_2, %c0_3, %c0_4] : memref<1x8x128xbf16, #tpu.memory_space<vmem>>, vector<1x8x128xbf16>
    %4 = vector.shape_cast %3 : vector<1x8x128xbf16> to vector<8x128xbf16>
    %c0_5 = arith.constant 0 : index
    %c0_6 = arith.constant 0 : index
    %c0_7 = arith.constant 0 : index
    %5 = vector.load %arg3[%c0_5, %c0_6, %c0_7] : memref<1x1x8xf32, #tpu.memory_space<vmem>>, vector<1x1x8xf32>
    %6 = vector.shape_cast %5 : vector<1x1x8xf32> to vector<1x8xf32>
    %7 = tpu.iota {dimensions = array<i32: 0>} : vector<8x8xi32>
    %8 = tpu.iota {dimensions = array<i32: 1>} : vector<8x8xi32>
    %9 = arith.cmpi sge, %7, %8 : vector<8x8xi32>
    %cst = arith.constant 0.000000e+00 : f32
    %10 = vector.shape_cast %6 : vector<1x8xf32> to vector<1x8xf32>
    %11 = vector.broadcast %10 : vector<1x8xf32> to vector<8x8xf32>
    %12 = vector.broadcast %cst : f32 to vector<8x8xf32>
    %13 = arith.select %9, %11, %12 : vector<8x8xi1>, vector<8x8xf32>
    %cst_8 = arith.constant 1.000000e+00 : f32
    %14 = vector.broadcast %cst_8 : f32 to vector<8x8xf32>
    %15 = arith.subf %13, %14 : vector<8x8xf32>
    %cst_9 = arith.constant 1.000000e+09 : f32
    %16 = vector.broadcast %cst_9 : f32 to vector<8x8xf32>
    %17 = arith.mulf %15, %16 : vector<8x8xf32>
    %cst_10 = arith.constant -1.000000e+00 : f32
    %18 = vector.broadcast %cst_10 : f32 to vector<8x8xf32>
    %19 = arith.mulf %17, %18 : vector<8x8xf32>
    %c0_11 = arith.constant 0 : index
    %c0_12 = arith.constant 0 : index
    %20 = vector.load %arg4[%c0_11, %c0_12] : memref<128x384xbf16, #tpu.memory_space<vmem>>, vector<128x384xbf16>
    %c0_13 = arith.constant 0 : index
    %c0_14 = arith.constant 0 : index
    %21 = vector.load %arg5[%c0_13, %c0_14] : memref<1x384xf32, #tpu.memory_space<vmem>>, vector<1x384xf32>
    %22 = arith.truncf %2 : vector<8x128xf32> to vector<8x128xbf16>
    %cst_15 = arith.constant dense<0.000000e+00> : vector<8x384xf32>
    %23 = tpu.matmul %22, %20, %cst_15 {dimension_numbers = #tpu.dot_dimension_numbers<[1], [0], [0], [1], [0, 0, 1, 1], [], []>} : vector<8x128xbf16>, vector<128x384xbf16>, vector<8x384xf32> -> vector<8x384xf32>
    %24 = vector.broadcast %21 : vector<1x384xf32> to vector<8x384xf32>
    %25 = arith.addf %23, %24 : vector<8x384xf32>
    %26 = vector.extract_strided_slice %25 {offsets = [0, 0], sizes = [8, 128], strides = [1, 1]} : vector<8x384xf32> to vector<8x128xf32>
    %27 = vector.extract_strided_slice %25 {offsets = [0, 128], sizes = [8, 128], strides = [1, 1]} : vector<8x384xf32> to vector<8x128xf32>
    %28 = vector.extract_strided_slice %25 {offsets = [0, 256], sizes = [8, 128], strides = [1, 1]} : vector<8x384xf32> to vector<8x128xf32>
    %c0_16 = arith.constant 0 : index
    %c0_17 = arith.constant 0 : index
    %29 = vector.load %arg6[%c0_16, %c0_17] : memref<128x128xbf16, #tpu.memory_space<vmem>>, vector<128x128xbf16>
    %cst_18 = arith.constant 0.000000e+00 : f32
    %30 = vector.broadcast %cst_18 : f32 to vector<8x128xf32>
    %31 = vector.extract_strided_slice %26 {offsets = [0, 0], sizes = [8, 32], strides = [1, 1]} : vector<8x128xf32> to vector<8x32xf32>
    %32 = arith.truncf %31 : vector<8x32xf32> to vector<8x32xbf16>
    %33 = vector.extract_strided_slice %27 {offsets = [0, 0], sizes = [8, 32], strides = [1, 1]} : vector<8x128xf32> to vector<8x32xf32>
    %34 = arith.truncf %33 : vector<8x32xf32> to vector<8x32xbf16>
    %cst_19 = arith.constant dense<0.000000e+00> : vector<8x8xf32>
    %35 = tpu.matmul %32, %34, %cst_19 {dimension_numbers = #tpu.dot_dimension_numbers<[1], [1], [0], [0], [0, 0, 1, 0], [], []>} : vector<8x32xbf16>, vector<8x32xbf16>, vector<8x8xf32> -> vector<8x8xf32>
    %cst_20 = arith.constant 0.176776692 : f32
    %36 = vector.broadcast %cst_20 : f32 to vector<8x8xf32>
    %37 = arith.mulf %35, %36 : vector<8x8xf32>
    %38 = arith.addf %37, %19 : vector<8x8xf32>
    %cst_21 = arith.constant dense<0xFF800000> : vector<8xf32>
    %39 = vector.multi_reduction <maximumf>, %38, %cst_21 [1] : vector<8x8xf32> to vector<8xf32>
    %40 = vector.shape_cast %39 : vector<8xf32> to vector<8x1xf32>
    %41 = vector.broadcast %40 : vector<8x1xf32> to vector<8x8xf32>
    %42 = arith.subf %38, %41 : vector<8x8xf32>
    %43 = math.exp %42 : vector<8x8xf32>
    %cst_22 = arith.constant dense<0.000000e+00> : vector<8xf32>
    %44 = vector.multi_reduction <add>, %43, %cst_22 [1] : vector<8x8xf32> to vector<8xf32>
    %45 = vector.shape_cast %44 : vector<8xf32> to vector<8x1xf32>
    %46 = tpu.reciprocal %45 {approx = true} : vector<8x1xf32> -> vector<8x1xf32>
    %47 = vector.broadcast %46 : vector<8x1xf32> to vector<8x8xf32>
    %48 = arith.mulf %43, %47 : vector<8x8xf32>
    %49 = arith.truncf %48 : vector<8x8xf32> to vector<8x8xbf16>
    %50 = vector.extract_strided_slice %28 {offsets = [0, 0], sizes = [8, 32], strides = [1, 1]} : vector<8x128xf32> to vector<8x32xf32>
    %51 = arith.truncf %50 : vector<8x32xf32> to vector<8x32xbf16>
    %cst_23 = arith.constant dense<0.000000e+00> : vector<8x32xf32>
    %52 = tpu.matmul %49, %51, %cst_23 {dimension_numbers = #tpu.dot_dimension_numbers<[1], [0], [0], [1], [0, 0, 1, 1], [], []>} : vector<8x8xbf16>, vector<8x32xbf16>, vector<8x32xf32> -> vector<8x32xf32>
    %53 = arith.truncf %52 : vector<8x32xf32> to vector<8x32xbf16>
    %54 = vector.extract_strided_slice %29 {offsets = [0, 0], sizes = [32, 128], strides = [1, 1]} : vector<128x128xbf16> to vector<32x128xbf16>
    %cst_24 = arith.constant dense<0.000000e+00> : vector<8x128xf32>
    %55 = tpu.matmul %53, %54, %cst_24 {dimension_numbers = #tpu.dot_dimension_numbers<[1], [0], [0], [1], [0, 0, 1, 1], [], []>} : vector<8x32xbf16>, vector<32x128xbf16>, vector<8x128xf32> -> vector<8x128xf32>
    %56 = arith.addf %30, %55 : vector<8x128xf32>
    %57 = vector.extract_strided_slice %26 {offsets = [0, 32], sizes = [8, 32], strides = [1, 1]} : vector<8x128xf32> to vector<8x32xf32>
    %58 = arith.truncf %57 : vector<8x32xf32> to vector<8x32xbf16>
    %59 = vector.extract_strided_slice %27 {offsets = [0, 32], sizes = [8, 32], strides = [1, 1]} : vector<8x128xf32> to vector<8x32xf32>
    %60 = arith.truncf %59 : vector<8x32xf32> to vector<8x32xbf16>
    %cst_25 = arith.constant dense<0.000000e+00> : vector<8x8xf32>
    %61 = tpu.matmul %58, %60, %cst_25 {dimension_numbers = #tpu.dot_dimension_numbers<[1], [1], [0], [0], [0, 0, 1, 0], [], []>} : vector<8x32xbf16>, vector<8x32xbf16>, vector<8x8xf32> -> vector<8x8xf32>
    %cst_26 = arith.constant 0.176776692 : f32
    %62 = vector.broadcast %cst_26 : f32 to vector<8x8xf32>
    %63 = arith.mulf %61, %62 : vector<8x8xf32>
    %64 = arith.addf %63, %19 : vector<8x8xf32>
    %cst_27 = arith.constant dense<0xFF800000> : vector<8xf32>
    %65 = vector.multi_reduction <maximumf>, %64, %cst_27 [1] : vector<8x8xf32> to vector<8xf32>
    %66 = vector.shape_cast %65 : vector<8xf32> to vector<8x1xf32>
    %67 = vector.broadcast %66 : vector<8x1xf32> to vector<8x8xf32>
    %68 = arith.subf %64, %67 : vector<8x8xf32>
    %69 = math.exp %68 : vector<8x8xf32>
    %cst_28 = arith.constant dense<0.000000e+00> : vector<8xf32>
    %70 = vector.multi_reduction <add>, %69, %cst_28 [1] : vector<8x8xf32> to vector<8xf32>
    %71 = vector.shape_cast %70 : vector<8xf32> to vector<8x1xf32>
    %72 = tpu.reciprocal %71 {approx = true} : vector<8x1xf32> -> vector<8x1xf32>
    %73 = vector.broadcast %72 : vector<8x1xf32> to vector<8x8xf32>
    %74 = arith.mulf %69, %73 : vector<8x8xf32>
    %75 = arith.truncf %74 : vector<8x8xf32> to vector<8x8xbf16>
    %76 = vector.extract_strided_slice %28 {offsets = [0, 32], sizes = [8, 32], strides = [1, 1]} : vector<8x128xf32> to vector<8x32xf32>
    %77 = arith.truncf %76 : vector<8x32xf32> to vector<8x32xbf16>
    %cst_29 = arith.constant dense<0.000000e+00> : vector<8x32xf32>
    %78 = tpu.matmul %75, %77, %cst_29 {dimension_numbers = #tpu.dot_dimension_numbers<[1], [0], [0], [1], [0, 0, 1, 1], [], []>} : vector<8x8xbf16>, vector<8x32xbf16>, vector<8x32xf32> -> vector<8x32xf32>
    %79 = arith.truncf %78 : vector<8x32xf32> to vector<8x32xbf16>
    %80 = vector.extract_strided_slice %29 {offsets = [32, 0], sizes = [32, 128], strides = [1, 1]} : vector<128x128xbf16> to vector<32x128xbf16>
    %cst_30 = arith.constant dense<0.000000e+00> : vector<8x128xf32>
    %81 = tpu.matmul %79, %80, %cst_30 {dimension_numbers = #tpu.dot_dimension_numbers<[1], [0], [0], [1], [0, 0, 1, 1], [], []>} : vector<8x32xbf16>, vector<32x128xbf16>, vector<8x128xf32> -> vector<8x128xf32>
    %82 = arith.addf %56, %81 : vector<8x128xf32>
    %83 = vector.extract_strided_slice %26 {offsets = [0, 64], sizes = [8, 32], strides = [1, 1]} : vector<8x128xf32> to vector<8x32xf32>
    %84 = arith.truncf %83 : vector<8x32xf32> to vector<8x32xbf16>
    %85 = vector.extract_strided_slice %27 {offsets = [0, 64], sizes = [8, 32], strides = [1, 1]} : vector<8x128xf32> to vector<8x32xf32>
    %86 = arith.truncf %85 : vector<8x32xf32> to vector<8x32xbf16>
    %cst_31 = arith.constant dense<0.000000e+00> : vector<8x8xf32>
    %87 = tpu.matmul %84, %86, %cst_31 {dimension_numbers = #tpu.dot_dimension_numbers<[1], [1], [0], [0], [0, 0, 1, 0], [], []>} : vector<8x32xbf16>, vector<8x32xbf16>, vector<8x8xf32> -> vector<8x8xf32>
    %cst_32 = arith.constant 0.176776692 : f32
    %88 = vector.broadcast %cst_32 : f32 to vector<8x8xf32>
    %89 = arith.mulf %87, %88 : vector<8x8xf32>
    %90 = arith.addf %89, %19 : vector<8x8xf32>
    %cst_33 = arith.constant dense<0xFF800000> : vector<8xf32>
    %91 = vector.multi_reduction <maximumf>, %90, %cst_33 [1] : vector<8x8xf32> to vector<8xf32>
    %92 = vector.shape_cast %91 : vector<8xf32> to vector<8x1xf32>
    %93 = vector.broadcast %92 : vector<8x1xf32> to vector<8x8xf32>
    %94 = arith.subf %90, %93 : vector<8x8xf32>
    %95 = math.exp %94 : vector<8x8xf32>
    %cst_34 = arith.constant dense<0.000000e+00> : vector<8xf32>
    %96 = vector.multi_reduction <add>, %95, %cst_34 [1] : vector<8x8xf32> to vector<8xf32>
    %97 = vector.shape_cast %96 : vector<8xf32> to vector<8x1xf32>
    %98 = tpu.reciprocal %97 {approx = true} : vector<8x1xf32> -> vector<8x1xf32>
    %99 = vector.broadcast %98 : vector<8x1xf32> to vector<8x8xf32>
    %100 = arith.mulf %95, %99 : vector<8x8xf32>
    %101 = arith.truncf %100 : vector<8x8xf32> to vector<8x8xbf16>
    %102 = vector.extract_strided_slice %28 {offsets = [0, 64], sizes = [8, 32], strides = [1, 1]} : vector<8x128xf32> to vector<8x32xf32>
    %103 = arith.truncf %102 : vector<8x32xf32> to vector<8x32xbf16>
    %cst_35 = arith.constant dense<0.000000e+00> : vector<8x32xf32>
    %104 = tpu.matmul %101, %103, %cst_35 {dimension_numbers = #tpu.dot_dimension_numbers<[1], [0], [0], [1], [0, 0, 1, 1], [], []>} : vector<8x8xbf16>, vector<8x32xbf16>, vector<8x32xf32> -> vector<8x32xf32>
    %105 = arith.truncf %104 : vector<8x32xf32> to vector<8x32xbf16>
    %106 = vector.extract_strided_slice %29 {offsets = [64, 0], sizes = [32, 128], strides = [1, 1]} : vector<128x128xbf16> to vector<32x128xbf16>
    %cst_36 = arith.constant dense<0.000000e+00> : vector<8x128xf32>
    %107 = tpu.matmul %105, %106, %cst_36 {dimension_numbers = #tpu.dot_dimension_numbers<[1], [0], [0], [1], [0, 0, 1, 1], [], []>} : vector<8x32xbf16>, vector<32x128xbf16>, vector<8x128xf32> -> vector<8x128xf32>
    %108 = arith.addf %82, %107 : vector<8x128xf32>
    %109 = vector.extract_strided_slice %26 {offsets = [0, 96], sizes = [8, 32], strides = [1, 1]} : vector<8x128xf32> to vector<8x32xf32>
    %110 = arith.truncf %109 : vector<8x32xf32> to vector<8x32xbf16>
    %111 = vector.extract_strided_slice %27 {offsets = [0, 96], sizes = [8, 32], strides = [1, 1]} : vector<8x128xf32> to vector<8x32xf32>
    %112 = arith.truncf %111 : vector<8x32xf32> to vector<8x32xbf16>
    %cst_37 = arith.constant dense<0.000000e+00> : vector<8x8xf32>
    %113 = tpu.matmul %110, %112, %cst_37 {dimension_numbers = #tpu.dot_dimension_numbers<[1], [1], [0], [0], [0, 0, 1, 0], [], []>} : vector<8x32xbf16>, vector<8x32xbf16>, vector<8x8xf32> -> vector<8x8xf32>
    %cst_38 = arith.constant 0.176776692 : f32
    %114 = vector.broadcast %cst_38 : f32 to vector<8x8xf32>
    %115 = arith.mulf %113, %114 : vector<8x8xf32>
    %116 = arith.addf %115, %19 : vector<8x8xf32>
    %cst_39 = arith.constant dense<0xFF800000> : vector<8xf32>
    %117 = vector.multi_reduction <maximumf>, %116, %cst_39 [1] : vector<8x8xf32> to vector<8xf32>
    %118 = vector.shape_cast %117 : vector<8xf32> to vector<8x1xf32>
    %119 = vector.broadcast %118 : vector<8x1xf32> to vector<8x8xf32>
    %120 = arith.subf %116, %119 : vector<8x8xf32>
    %121 = math.exp %120 : vector<8x8xf32>
    %cst_40 = arith.constant dense<0.000000e+00> : vector<8xf32>
    %122 = vector.multi_reduction <add>, %121, %cst_40 [1] : vector<8x8xf32> to vector<8xf32>
    %123 = vector.shape_cast %122 : vector<8xf32> to vector<8x1xf32>
    %124 = tpu.reciprocal %123 {approx = true} : vector<8x1xf32> -> vector<8x1xf32>
    %125 = vector.broadcast %124 : vector<8x1xf32> to vector<8x8xf32>
    %126 = arith.mulf %121, %125 : vector<8x8xf32>
    %127 = arith.truncf %126 : vector<8x8xf32> to vector<8x8xbf16>
    %128 = vector.extract_strided_slice %28 {offsets = [0, 96], sizes = [8, 32], strides = [1, 1]} : vector<8x128xf32> to vector<8x32xf32>
    %129 = arith.truncf %128 : vector<8x32xf32> to vector<8x32xbf16>
    %cst_41 = arith.constant dense<0.000000e+00> : vector<8x32xf32>
    %130 = tpu.matmul %127, %129, %cst_41 {dimension_numbers = #tpu.dot_dimension_numbers<[1], [0], [0], [1], [0, 0, 1, 1], [], []>} : vector<8x8xbf16>, vector<8x32xbf16>, vector<8x32xf32> -> vector<8x32xf32>
    %131 = arith.truncf %130 : vector<8x32xf32> to vector<8x32xbf16>
    %132 = vector.extract_strided_slice %29 {offsets = [96, 0], sizes = [32, 128], strides = [1, 1]} : vector<128x128xbf16> to vector<32x128xbf16>
    %cst_42 = arith.constant dense<0.000000e+00> : vector<8x128xf32>
    %133 = tpu.matmul %131, %132, %cst_42 {dimension_numbers = #tpu.dot_dimension_numbers<[1], [0], [0], [1], [0, 0, 1, 1], [], []>} : vector<8x32xbf16>, vector<32x128xbf16>, vector<8x128xf32> -> vector<8x128xf32>
    %134 = arith.addf %108, %133 : vector<8x128xf32>
    %c0_43 = arith.constant 0 : index
    %c0_44 = arith.constant 0 : index
    %135 = vector.load %arg7[%c0_43, %c0_44] : memref<1x128xf32, #tpu.memory_space<vmem>>, vector<1x128xf32>
    %136 = vector.broadcast %135 : vector<1x128xf32> to vector<8x128xf32>
    %137 = arith.addf %134, %136 : vector<8x128xf32>
    %138 = arith.addf %2, %137 : vector<8x128xf32>
    %c0_45 = arith.constant 0 : index
    %c0_46 = arith.constant 0 : index
    %139 = vector.load %arg8[%c0_45, %c0_46] : memref<1x128xf32, #tpu.memory_space<vmem>>, vector<1x128xf32>
    %c0_47 = arith.constant 0 : index
    %c0_48 = arith.constant 0 : index
    %140 = vector.load %arg9[%c0_47, %c0_48] : memref<1x128xf32, #tpu.memory_space<vmem>>, vector<1x128xf32>
    %cst_49 = arith.constant dense<0.000000e+00> : vector<8xf32>
    %141 = vector.multi_reduction <add>, %138, %cst_49 [1] : vector<8x128xf32> to vector<8xf32>
    %142 = vector.shape_cast %141 : vector<8xf32> to vector<8x1xf32>
    %cst_50 = arith.constant 1.280000e+02 : f32
    %143 = vector.broadcast %cst_50 : f32 to vector<8x1xf32>
    %144 = arith.divf %142, %143 : vector<8x1xf32>
    %145 = vector.broadcast %144 : vector<8x1xf32> to vector<8x128xf32>
    %146 = arith.subf %138, %145 : vector<8x128xf32>
    %147 = arith.mulf %146, %146 : vector<8x128xf32>
    %cst_51 = arith.constant dense<0.000000e+00> : vector<8xf32>
    %148 = vector.multi_reduction <add>, %147, %cst_51 [1] : vector<8x128xf32> to vector<8xf32>
    %149 = vector.shape_cast %148 : vector<8xf32> to vector<8x1xf32>
    %cst_52 = arith.constant 1.280000e+02 : f32
    %150 = vector.broadcast %cst_52 : f32 to vector<8x1xf32>
    %151 = arith.divf %149, %150 : vector<8x1xf32>
    %152 = vector.broadcast %144 : vector<8x1xf32> to vector<8x128xf32>
    %153 = arith.subf %138, %152 : vector<8x128xf32>
    %cst_53 = arith.constant 9.99999996E-13 : f32
    %154 = vector.broadcast %cst_53 : f32 to vector<8x1xf32>
    %155 = arith.addf %151, %154 : vector<8x1xf32>
    %156 = math.rsqrt %155 : vector<8x1xf32>
    %157 = vector.broadcast %156 : vector<8x1xf32> to vector<8x128xf32>
    %158 = arith.mulf %153, %157 : vector<8x128xf32>
    %159 = vector.broadcast %139 : vector<1x128xf32> to vector<8x128xf32>
    %160 = arith.mulf %158, %159 : vector<8x128xf32>
    %161 = vector.broadcast %140 : vector<1x128xf32> to vector<8x128xf32>
    %162 = arith.addf %160, %161 : vector<8x128xf32>
    %c0_54 = arith.constant 0 : index
    %c0_55 = arith.constant 0 : index
    %163 = vector.load %arg10[%c0_54, %c0_55] : memref<128x128xbf16, #tpu.memory_space<vmem>>, vector<128x128xbf16>
    %c0_56 = arith.constant 0 : index
    %c0_57 = arith.constant 0 : index
    %164 = vector.load %arg11[%c0_56, %c0_57] : memref<1x128xf32, #tpu.memory_space<vmem>>, vector<1x128xf32>
    %165 = arith.truncf %162 : vector<8x128xf32> to vector<8x128xbf16>
    %cst_58 = arith.constant dense<0.000000e+00> : vector<8x128xf32>
    %166 = tpu.matmul %165, %163, %cst_58 {dimension_numbers = #tpu.dot_dimension_numbers<[1], [0], [0], [1], [0, 0, 1, 1], [], []>} : vector<8x128xbf16>, vector<128x128xbf16>, vector<8x128xf32> -> vector<8x128xf32>
    %167 = vector.broadcast %164 : vector<1x128xf32> to vector<8x128xf32>
    %168 = arith.addf %166, %167 : vector<8x128xf32>
    %c0_59 = arith.constant 0 : index
    %c0_60 = arith.constant 0 : index
    %169 = vector.load %arg12[%c0_59, %c0_60] : memref<128x256xbf16, #tpu.memory_space<vmem>>, vector<128x256xbf16>
    %cst_61 = arith.constant dense<0.000000e+00> : vector<8x256xf32>
    %170 = tpu.matmul %4, %169, %cst_61 {dimension_numbers = #tpu.dot_dimension_numbers<[1], [0], [0], [1], [0, 0, 1, 1], [], []>} : vector<8x128xbf16>, vector<128x256xbf16>, vector<8x256xf32> -> vector<8x256xf32>
    %c0_62 = arith.constant 0 : index
    %c0_63 = arith.constant 0 : index
    %171 = vector.load %arg13[%c0_62, %c0_63] : memref<1x256xf32, #tpu.memory_space<vmem>>, vector<1x256xf32>
    %172 = vector.broadcast %171 : vector<1x256xf32> to vector<8x256xf32>
    %173 = arith.addf %170, %172 : vector<8x256xf32>
    %174 = vector.extract_strided_slice %173 {offsets = [0, 0], sizes = [8, 128], strides = [1, 1]} : vector<8x256xf32> to vector<8x128xf32>
    %175 = vector.extract_strided_slice %173 {offsets = [0, 128], sizes = [8, 128], strides = [1, 1]} : vector<8x256xf32> to vector<8x128xf32>
    %c0_64 = arith.constant 0 : index
    %c0_65 = arith.constant 0 : index
    %176 = vector.load %arg14[%c0_64, %c0_65] : memref<128x128xbf16, #tpu.memory_space<vmem>>, vector<128x128xbf16>
    %cst_66 = arith.constant 0.000000e+00 : f32
    %177 = vector.broadcast %cst_66 : f32 to vector<8x128xf32>
    %178 = vector.extract_strided_slice %168 {offsets = [0, 0], sizes = [8, 32], strides = [1, 1]} : vector<8x128xf32> to vector<8x32xf32>
    %179 = arith.truncf %178 : vector<8x32xf32> to vector<8x32xbf16>
    %180 = vector.extract_strided_slice %174 {offsets = [0, 0], sizes = [8, 32], strides = [1, 1]} : vector<8x128xf32> to vector<8x32xf32>
    %181 = arith.truncf %180 : vector<8x32xf32> to vector<8x32xbf16>
    %cst_67 = arith.constant dense<0.000000e+00> : vector<8x8xf32>
    %182 = tpu.matmul %179, %181, %cst_67 {dimension_numbers = #tpu.dot_dimension_numbers<[1], [1], [0], [0], [0, 0, 1, 0], [], []>} : vector<8x32xbf16>, vector<8x32xbf16>, vector<8x8xf32> -> vector<8x8xf32>
    %cst_68 = arith.constant 0.176776692 : f32
    %183 = vector.broadcast %cst_68 : f32 to vector<8x8xf32>
    %184 = arith.mulf %182, %183 : vector<8x8xf32>
    %cst_69 = arith.constant dense<0xFF800000> : vector<8xf32>
    %185 = vector.multi_reduction <maximumf>, %184, %cst_69 [1] : vector<8x8xf32> to vector<8xf32>
    %186 = vector.shape_cast %185 : vector<8xf32> to vector<8x1xf32>
    %187 = vector.broadcast %186 : vector<8x1xf32> to vector<8x8xf32>
    %188 = arith.subf %184, %187 : vector<8x8xf32>
    %189 = math.exp %188 : vector<8x8xf32>
    %cst_70 = arith.constant dense<0.000000e+00> : vector<8xf32>
    %190 = vector.multi_reduction <add>, %189, %cst_70 [1] : vector<8x8xf32> to vector<8xf32>
    %191 = vector.shape_cast %190 : vector<8xf32> to vector<8x1xf32>
    %192 = tpu.reciprocal %191 {approx = true} : vector<8x1xf32> -> vector<8x1xf32>
    %193 = vector.broadcast %192 : vector<8x1xf32> to vector<8x8xf32>
    %194 = arith.mulf %189, %193 : vector<8x8xf32>
    %195 = arith.truncf %194 : vector<8x8xf32> to vector<8x8xbf16>
    %196 = vector.extract_strided_slice %175 {offsets = [0, 0], sizes = [8, 32], strides = [1, 1]} : vector<8x128xf32> to vector<8x32xf32>
    %197 = arith.truncf %196 : vector<8x32xf32> to vector<8x32xbf16>
    %cst_71 = arith.constant dense<0.000000e+00> : vector<8x32xf32>
    %198 = tpu.matmul %195, %197, %cst_71 {dimension_numbers = #tpu.dot_dimension_numbers<[1], [0], [0], [1], [0, 0, 1, 1], [], []>} : vector<8x8xbf16>, vector<8x32xbf16>, vector<8x32xf32> -> vector<8x32xf32>
    %199 = arith.truncf %198 : vector<8x32xf32> to vector<8x32xbf16>
    %200 = vector.extract_strided_slice %176 {offsets = [0, 0], sizes = [32, 128], strides = [1, 1]} : vector<128x128xbf16> to vector<32x128xbf16>
    %cst_72 = arith.constant dense<0.000000e+00> : vector<8x128xf32>
    %201 = tpu.matmul %199, %200, %cst_72 {dimension_numbers = #tpu.dot_dimension_numbers<[1], [0], [0], [1], [0, 0, 1, 1], [], []>} : vector<8x32xbf16>, vector<32x128xbf16>, vector<8x128xf32> -> vector<8x128xf32>
    %202 = arith.addf %177, %201 : vector<8x128xf32>
    %203 = vector.extract_strided_slice %168 {offsets = [0, 32], sizes = [8, 32], strides = [1, 1]} : vector<8x128xf32> to vector<8x32xf32>
    %204 = arith.truncf %203 : vector<8x32xf32> to vector<8x32xbf16>
    %205 = vector.extract_strided_slice %174 {offsets = [0, 32], sizes = [8, 32], strides = [1, 1]} : vector<8x128xf32> to vector<8x32xf32>
    %206 = arith.truncf %205 : vector<8x32xf32> to vector<8x32xbf16>
    %cst_73 = arith.constant dense<0.000000e+00> : vector<8x8xf32>
    %207 = tpu.matmul %204, %206, %cst_73 {dimension_numbers = #tpu.dot_dimension_numbers<[1], [1], [0], [0], [0, 0, 1, 0], [], []>} : vector<8x32xbf16>, vector<8x32xbf16>, vector<8x8xf32> -> vector<8x8xf32>
    %cst_74 = arith.constant 0.176776692 : f32
    %208 = vector.broadcast %cst_74 : f32 to vector<8x8xf32>
    %209 = arith.mulf %207, %208 : vector<8x8xf32>
    %cst_75 = arith.constant dense<0xFF800000> : vector<8xf32>
    %210 = vector.multi_reduction <maximumf>, %209, %cst_75 [1] : vector<8x8xf32> to vector<8xf32>
    %211 = vector.shape_cast %210 : vector<8xf32> to vector<8x1xf32>
    %212 = vector.broadcast %211 : vector<8x1xf32> to vector<8x8xf32>
    %213 = arith.subf %209, %212 : vector<8x8xf32>
    %214 = math.exp %213 : vector<8x8xf32>
    %cst_76 = arith.constant dense<0.000000e+00> : vector<8xf32>
    %215 = vector.multi_reduction <add>, %214, %cst_76 [1] : vector<8x8xf32> to vector<8xf32>
    %216 = vector.shape_cast %215 : vector<8xf32> to vector<8x1xf32>
    %217 = tpu.reciprocal %216 {approx = true} : vector<8x1xf32> -> vector<8x1xf32>
    %218 = vector.broadcast %217 : vector<8x1xf32> to vector<8x8xf32>
    %219 = arith.mulf %214, %218 : vector<8x8xf32>
    %220 = arith.truncf %219 : vector<8x8xf32> to vector<8x8xbf16>
    %221 = vector.extract_strided_slice %175 {offsets = [0, 32], sizes = [8, 32], strides = [1, 1]} : vector<8x128xf32> to vector<8x32xf32>
    %222 = arith.truncf %221 : vector<8x32xf32> to vector<8x32xbf16>
    %cst_77 = arith.constant dense<0.000000e+00> : vector<8x32xf32>
    %223 = tpu.matmul %220, %222, %cst_77 {dimension_numbers = #tpu.dot_dimension_numbers<[1], [0], [0], [1], [0, 0, 1, 1], [], []>} : vector<8x8xbf16>, vector<8x32xbf16>, vector<8x32xf32> -> vector<8x32xf32>
    %224 = arith.truncf %223 : vector<8x32xf32> to vector<8x32xbf16>
    %225 = vector.extract_strided_slice %176 {offsets = [32, 0], sizes = [32, 128], strides = [1, 1]} : vector<128x128xbf16> to vector<32x128xbf16>
    %cst_78 = arith.constant dense<0.000000e+00> : vector<8x128xf32>
    %226 = tpu.matmul %224, %225, %cst_78 {dimension_numbers = #tpu.dot_dimension_numbers<[1], [0], [0], [1], [0, 0, 1, 1], [], []>} : vector<8x32xbf16>, vector<32x128xbf16>, vector<8x128xf32> -> vector<8x128xf32>
    %227 = arith.addf %202, %226 : vector<8x128xf32>
    %228 = vector.extract_strided_slice %168 {offsets = [0, 64], sizes = [8, 32], strides = [1, 1]} : vector<8x128xf32> to vector<8x32xf32>
    %229 = arith.truncf %228 : vector<8x32xf32> to vector<8x32xbf16>
    %230 = vector.extract_strided_slice %174 {offsets = [0, 64], sizes = [8, 32], strides = [1, 1]} : vector<8x128xf32> to vector<8x32xf32>
    %231 = arith.truncf %230 : vector<8x32xf32> to vector<8x32xbf16>
    %cst_79 = arith.constant dense<0.000000e+00> : vector<8x8xf32>
    %232 = tpu.matmul %229, %231, %cst_79 {dimension_numbers = #tpu.dot_dimension_numbers<[1], [1], [0], [0], [0, 0, 1, 0], [], []>} : vector<8x32xbf16>, vector<8x32xbf16>, vector<8x8xf32> -> vector<8x8xf32>
    %cst_80 = arith.constant 0.176776692 : f32
    %233 = vector.broadcast %cst_80 : f32 to vector<8x8xf32>
    %234 = arith.mulf %232, %233 : vector<8x8xf32>
    %cst_81 = arith.constant dense<0xFF800000> : vector<8xf32>
    %235 = vector.multi_reduction <maximumf>, %234, %cst_81 [1] : vector<8x8xf32> to vector<8xf32>
    %236 = vector.shape_cast %235 : vector<8xf32> to vector<8x1xf32>
    %237 = vector.broadcast %236 : vector<8x1xf32> to vector<8x8xf32>
    %238 = arith.subf %234, %237 : vector<8x8xf32>
    %239 = math.exp %238 : vector<8x8xf32>
    %cst_82 = arith.constant dense<0.000000e+00> : vector<8xf32>
    %240 = vector.multi_reduction <add>, %239, %cst_82 [1] : vector<8x8xf32> to vector<8xf32>
    %241 = vector.shape_cast %240 : vector<8xf32> to vector<8x1xf32>
    %242 = tpu.reciprocal %241 {approx = true} : vector<8x1xf32> -> vector<8x1xf32>
    %243 = vector.broadcast %242 : vector<8x1xf32> to vector<8x8xf32>
    %244 = arith.mulf %239, %243 : vector<8x8xf32>
    %245 = arith.truncf %244 : vector<8x8xf32> to vector<8x8xbf16>
    %246 = vector.extract_strided_slice %175 {offsets = [0, 64], sizes = [8, 32], strides = [1, 1]} : vector<8x128xf32> to vector<8x32xf32>
    %247 = arith.truncf %246 : vector<8x32xf32> to vector<8x32xbf16>
    %cst_83 = arith.constant dense<0.000000e+00> : vector<8x32xf32>
    %248 = tpu.matmul %245, %247, %cst_83 {dimension_numbers = #tpu.dot_dimension_numbers<[1], [0], [0], [1], [0, 0, 1, 1], [], []>} : vector<8x8xbf16>, vector<8x32xbf16>, vector<8x32xf32> -> vector<8x32xf32>
    %249 = arith.truncf %248 : vector<8x32xf32> to vector<8x32xbf16>
    %250 = vector.extract_strided_slice %176 {offsets = [64, 0], sizes = [32, 128], strides = [1, 1]} : vector<128x128xbf16> to vector<32x128xbf16>
    %cst_84 = arith.constant dense<0.000000e+00> : vector<8x128xf32>
    %251 = tpu.matmul %249, %250, %cst_84 {dimension_numbers = #tpu.dot_dimension_numbers<[1], [0], [0], [1], [0, 0, 1, 1], [], []>} : vector<8x32xbf16>, vector<32x128xbf16>, vector<8x128xf32> -> vector<8x128xf32>
    %252 = arith.addf %227, %251 : vector<8x128xf32>
    %253 = vector.extract_strided_slice %168 {offsets = [0, 96], sizes = [8, 32], strides = [1, 1]} : vector<8x128xf32> to vector<8x32xf32>
    %254 = arith.truncf %253 : vector<8x32xf32> to vector<8x32xbf16>
    %255 = vector.extract_strided_slice %174 {offsets = [0, 96], sizes = [8, 32], strides = [1, 1]} : vector<8x128xf32> to vector<8x32xf32>
    %256 = arith.truncf %255 : vector<8x32xf32> to vector<8x32xbf16>
    %cst_85 = arith.constant dense<0.000000e+00> : vector<8x8xf32>
    %257 = tpu.matmul %254, %256, %cst_85 {dimension_numbers = #tpu.dot_dimension_numbers<[1], [1], [0], [0], [0, 0, 1, 0], [], []>} : vector<8x32xbf16>, vector<8x32xbf16>, vector<8x8xf32> -> vector<8x8xf32>
    %cst_86 = arith.constant 0.176776692 : f32
    %258 = vector.broadcast %cst_86 : f32 to vector<8x8xf32>
    %259 = arith.mulf %257, %258 : vector<8x8xf32>
    %cst_87 = arith.constant dense<0xFF800000> : vector<8xf32>
    %260 = vector.multi_reduction <maximumf>, %259, %cst_87 [1] : vector<8x8xf32> to vector<8xf32>
    %261 = vector.shape_cast %260 : vector<8xf32> to vector<8x1xf32>
    %262 = vector.broadcast %261 : vector<8x1xf32> to vector<8x8xf32>
    %263 = arith.subf %259, %262 : vector<8x8xf32>
    %264 = math.exp %263 : vector<8x8xf32>
    %cst_88 = arith.constant dense<0.000000e+00> : vector<8xf32>
    %265 = vector.multi_reduction <add>, %264, %cst_88 [1] : vector<8x8xf32> to vector<8xf32>
    %266 = vector.shape_cast %265 : vector<8xf32> to vector<8x1xf32>
    %267 = tpu.reciprocal %266 {approx = true} : vector<8x1xf32> -> vector<8x1xf32>
    %268 = vector.broadcast %267 : vector<8x1xf32> to vector<8x8xf32>
    %269 = arith.mulf %264, %268 : vector<8x8xf32>
    %270 = arith.truncf %269 : vector<8x8xf32> to vector<8x8xbf16>
    %271 = vector.extract_strided_slice %175 {offsets = [0, 96], sizes = [8, 32], strides = [1, 1]} : vector<8x128xf32> to vector<8x32xf32>
    %272 = arith.truncf %271 : vector<8x32xf32> to vector<8x32xbf16>
    %cst_89 = arith.constant dense<0.000000e+00> : vector<8x32xf32>
    %273 = tpu.matmul %270, %272, %cst_89 {dimension_numbers = #tpu.dot_dimension_numbers<[1], [0], [0], [1], [0, 0, 1, 1], [], []>} : vector<8x8xbf16>, vector<8x32xbf16>, vector<8x32xf32> -> vector<8x32xf32>
    %274 = arith.truncf %273 : vector<8x32xf32> to vector<8x32xbf16>
    %275 = vector.extract_strided_slice %176 {offsets = [96, 0], sizes = [32, 128], strides = [1, 1]} : vector<128x128xbf16> to vector<32x128xbf16>
    %cst_90 = arith.constant dense<0.000000e+00> : vector<8x128xf32>
    %276 = tpu.matmul %274, %275, %cst_90 {dimension_numbers = #tpu.dot_dimension_numbers<[1], [0], [0], [1], [0, 0, 1, 1], [], []>} : vector<8x32xbf16>, vector<32x128xbf16>, vector<8x128xf32> -> vector<8x128xf32>
    %277 = arith.addf %252, %276 : vector<8x128xf32>
    %c0_91 = arith.constant 0 : index
    %c0_92 = arith.constant 0 : index
    %278 = vector.load %arg15[%c0_91, %c0_92] : memref<1x128xf32, #tpu.memory_space<vmem>>, vector<1x128xf32>
    %279 = vector.broadcast %278 : vector<1x128xf32> to vector<8x128xf32>
    %280 = arith.addf %277, %279 : vector<8x128xf32>
    %281 = arith.addf %162, %280 : vector<8x128xf32>
    %c0_93 = arith.constant 0 : index
    %c0_94 = arith.constant 0 : index
    %282 = vector.load %arg16[%c0_93, %c0_94] : memref<1x128xf32, #tpu.memory_space<vmem>>, vector<1x128xf32>
    %c0_95 = arith.constant 0 : index
    %c0_96 = arith.constant 0 : index
    %283 = vector.load %arg17[%c0_95, %c0_96] : memref<1x128xf32, #tpu.memory_space<vmem>>, vector<1x128xf32>
    %cst_97 = arith.constant dense<0.000000e+00> : vector<8xf32>
    %284 = vector.multi_reduction <add>, %281, %cst_97 [1] : vector<8x128xf32> to vector<8xf32>
    %285 = vector.shape_cast %284 : vector<8xf32> to vector<8x1xf32>
    %cst_98 = arith.constant 1.280000e+02 : f32
    %286 = vector.broadcast %cst_98 : f32 to vector<8x1xf32>
    %287 = arith.divf %285, %286 : vector<8x1xf32>
    %288 = vector.broadcast %287 : vector<8x1xf32> to vector<8x128xf32>
    %289 = arith.subf %281, %288 : vector<8x128xf32>
    %290 = arith.mulf %289, %289 : vector<8x128xf32>
    %cst_99 = arith.constant dense<0.000000e+00> : vector<8xf32>
    %291 = vector.multi_reduction <add>, %290, %cst_99 [1] : vector<8x128xf32> to vector<8xf32>
    %292 = vector.shape_cast %291 : vector<8xf32> to vector<8x1xf32>
    %cst_100 = arith.constant 1.280000e+02 : f32
    %293 = vector.broadcast %cst_100 : f32 to vector<8x1xf32>
    %294 = arith.divf %292, %293 : vector<8x1xf32>
    %295 = vector.broadcast %287 : vector<8x1xf32> to vector<8x128xf32>
    %296 = arith.subf %281, %295 : vector<8x128xf32>
    %cst_101 = arith.constant 9.99999996E-13 : f32
    %297 = vector.broadcast %cst_101 : f32 to vector<8x1xf32>
    %298 = arith.addf %294, %297 : vector<8x1xf32>
    %299 = math.rsqrt %298 : vector<8x1xf32>
    %300 = vector.broadcast %299 : vector<8x1xf32> to vector<8x128xf32>
    %301 = arith.mulf %296, %300 : vector<8x128xf32>
    %302 = vector.broadcast %282 : vector<1x128xf32> to vector<8x128xf32>
    %303 = arith.mulf %301, %302 : vector<8x128xf32>
    %304 = vector.broadcast %283 : vector<1x128xf32> to vector<8x128xf32>
    %305 = arith.addf %303, %304 : vector<8x128xf32>
    %c0_102 = arith.constant 0 : index
    %c0_103 = arith.constant 0 : index
    %306 = vector.load %arg18[%c0_102, %c0_103] : memref<128x256xbf16, #tpu.memory_space<vmem>>, vector<128x256xbf16>
    %c0_104 = arith.constant 0 : index
    %c0_105 = arith.constant 0 : index
    %307 = vector.load %arg19[%c0_104, %c0_105] : memref<1x256xf32, #tpu.memory_space<vmem>>, vector<1x256xf32>
    %308 = arith.truncf %305 : vector<8x128xf32> to vector<8x128xbf16>
    %cst_106 = arith.constant dense<0.000000e+00> : vector<8x256xf32>
    %309 = tpu.matmul %308, %306, %cst_106 {dimension_numbers = #tpu.dot_dimension_numbers<[1], [0], [0], [1], [0, 0, 1, 1], [], []>} : vector<8x128xbf16>, vector<128x256xbf16>, vector<8x256xf32> -> vector<8x256xf32>
    %310 = vector.broadcast %307 : vector<1x256xf32> to vector<8x256xf32>
    %311 = arith.addf %309, %310 : vector<8x256xf32>
    %cst_107 = arith.constant 5.000000e-01 : f32
    %312 = vector.broadcast %cst_107 : f32 to vector<8x256xf32>
    %313 = arith.mulf %312, %311 : vector<8x256xf32>
    %cst_108 = arith.constant 4.471500e-02 : f32
    %314 = vector.broadcast %cst_108 : f32 to vector<8x256xf32>
    %315 = arith.mulf %314, %311 : vector<8x256xf32>
    %316 = arith.mulf %315, %311 : vector<8x256xf32>
    %317 = arith.mulf %316, %311 : vector<8x256xf32>
    %318 = arith.addf %311, %317 : vector<8x256xf32>
    %cst_109 = arith.constant 0.797884583 : f32
    %319 = vector.broadcast %cst_109 : f32 to vector<8x256xf32>
    %320 = arith.mulf %319, %318 : vector<8x256xf32>
    %321 = math.tanh %320 : vector<8x256xf32>
    %cst_110 = arith.constant 1.000000e+00 : f32
    %322 = vector.broadcast %cst_110 : f32 to vector<8x256xf32>
    %323 = arith.addf %322, %321 : vector<8x256xf32>
    %324 = arith.mulf %313, %323 : vector<8x256xf32>
    %c0_111 = arith.constant 0 : index
    %c0_112 = arith.constant 0 : index
    %325 = vector.load %arg20[%c0_111, %c0_112] : memref<256x128xbf16, #tpu.memory_space<vmem>>, vector<256x128xbf16>
    %c0_113 = arith.constant 0 : index
    %c0_114 = arith.constant 0 : index
    %326 = vector.load %arg21[%c0_113, %c0_114] : memref<1x128xf32, #tpu.memory_space<vmem>>, vector<1x128xf32>
    %327 = arith.truncf %324 : vector<8x256xf32> to vector<8x256xbf16>
    %cst_115 = arith.constant dense<0.000000e+00> : vector<8x128xf32>
    %328 = tpu.matmul %327, %325, %cst_115 {dimension_numbers = #tpu.dot_dimension_numbers<[1], [0], [0], [1], [0, 0, 1, 1], [], []>} : vector<8x256xbf16>, vector<256x128xbf16>, vector<8x128xf32> -> vector<8x128xf32>
    %329 = vector.broadcast %326 : vector<1x128xf32> to vector<8x128xf32>
    %330 = arith.addf %328, %329 : vector<8x128xf32>
    %331 = arith.addf %305, %330 : vector<8x128xf32>
    %c0_116 = arith.constant 0 : index
    %c0_117 = arith.constant 0 : index
    %332 = vector.load %arg22[%c0_116, %c0_117] : memref<1x128xf32, #tpu.memory_space<vmem>>, vector<1x128xf32>
    %c0_118 = arith.constant 0 : index
    %c0_119 = arith.constant 0 : index
    %333 = vector.load %arg23[%c0_118, %c0_119] : memref<1x128xf32, #tpu.memory_space<vmem>>, vector<1x128xf32>
    %cst_120 = arith.constant dense<0.000000e+00> : vector<8xf32>
    %334 = vector.multi_reduction <add>, %331, %cst_120 [1] : vector<8x128xf32> to vector<8xf32>
    %335 = vector.shape_cast %334 : vector<8xf32> to vector<8x1xf32>
    %cst_121 = arith.constant 1.280000e+02 : f32
    %336 = vector.broadcast %cst_121 : f32 to vector<8x1xf32>
    %337 = arith.divf %335, %336 : vector<8x1xf32>
    %338 = vector.broadcast %337 : vector<8x1xf32> to vector<8x128xf32>
    %339 = arith.subf %331, %338 : vector<8x128xf32>
    %340 = arith.mulf %339, %339 : vector<8x128xf32>
    %cst_122 = arith.constant dense<0.000000e+00> : vector<8xf32>
    %341 = vector.multi_reduction <add>, %340, %cst_122 [1] : vector<8x128xf32> to vector<8xf32>
    %342 = vector.shape_cast %341 : vector<8xf32> to vector<8x1xf32>
    %cst_123 = arith.constant 1.280000e+02 : f32
    %343 = vector.broadcast %cst_123 : f32 to vector<8x1xf32>
    %344 = arith.divf %342, %343 : vector<8x1xf32>
    %345 = vector.broadcast %337 : vector<8x1xf32> to vector<8x128xf32>
    %346 = arith.subf %331, %345 : vector<8x128xf32>
    %cst_124 = arith.constant 9.99999996E-13 : f32
    %347 = vector.broadcast %cst_124 : f32 to vector<8x1xf32>
    %348 = arith.addf %344, %347 : vector<8x1xf32>
    %349 = math.rsqrt %348 : vector<8x1xf32>
    %350 = vector.broadcast %349 : vector<8x1xf32> to vector<8x128xf32>
    %351 = arith.mulf %346, %350 : vector<8x128xf32>
    %352 = vector.broadcast %332 : vector<1x128xf32> to vector<8x128xf32>
    %353 = arith.mulf %351, %352 : vector<8x128xf32>
    %354 = vector.broadcast %333 : vector<1x128xf32> to vector<8x128xf32>
    %355 = arith.addf %353, %354 : vector<8x128xf32>
    %356 = arith.truncf %355 : vector<8x128xf32> to vector<8x128xbf16>
    %c0_125 = arith.constant 0 : index
    %c0_126 = arith.constant 0 : index
    %c0_127 = arith.constant 0 : index
    %357 = vector.load %arg24[%c0_125, %c0_126, %c0_127] : memref<1x8x128xbf16, #tpu.memory_space<vmem>>, vector<1x8x128xbf16>
    %358 = vector.shape_cast %357 : vector<1x8x128xbf16> to vector<8x128xbf16>
    %359 = vector.shape_cast %356 : vector<8x128xbf16> to vector<1x8x128xbf16>
    tpu.vector_store %arg24[%c0_125, %c0_126, %c0_127], %359 {strides = array<i32>} : memref<1x8x128xbf16, #tpu.memory_space<vmem>>, vector<1x8x128xbf16>,
    return
  }
  func.func @transform_0(%arg0: i32) -> (i32, i32, i32) {
    %c0_i32 = arith.constant 0 : i32
    %c0_i32_0 = arith.constant 0 : i32
    %c0_i32_1 = arith.constant 0 : i32
    return %arg0, %c0_i32, %c0_i32_0 : i32, i32, i32
  }
  func.func @transform_1(%arg0: i32) -> (i32, i32, i32) {
    %c0_i32 = arith.constant 0 : i32
    %c0_i32_0 = arith.constant 0 : i32
    %c0_i32_1 = arith.constant 0 : i32
    return %arg0, %c0_i32, %c0_i32_0 : i32, i32, i32
  }
  func.func @transform_2(%arg0: i32) -> (i32, i32, i32) {
    %c0_i32 = arith.constant 0 : i32
    %c0_i32_0 = arith.constant 0 : i32
    %c0_i32_1 = arith.constant 0 : i32
    return %arg0, %c0_i32, %c0_i32_0 : i32, i32, i32
  }
  func.func @transform_3(%arg0: i32) -> (i32, i32) {
    %c0_i32 = arith.constant 0 : i32
    %c0_i32_0 = arith.constant 0 : i32
    %c0_i32_1 = arith.constant 0 : i32
    return %c0_i32, %c0_i32_0 : i32, i32
  }
  func.func @transform_4(%arg0: i32) -> (i32, i32) {
    %c0_i32 = arith.constant 0 : i32
    %c0_i32_0 = arith.constant 0 : i32
    %c0_i32_1 = arith.constant 0 : i32
    return %c0_i32, %c0_i32_0 : i32, i32
  }
  func.func @transform_5(%arg0: i32) -> (i32, i32) {
    %c0_i32 = arith.constant 0 : i32
    %c0_i32_0 = arith.constant 0 : i32
    %c0_i32_1 = arith.constant 0 : i32
    return %c0_i32, %c0_i32_0 : i32, i32
  }
  func.func @transform_6(%arg0: i32) -> (i32, i32) {
    %c0_i32 = arith.constant 0 : i32
    %c0_i32_0 = arith.constant 0 : i32
    %c0_i32_1 = arith.constant 0 : i32
    return %c0_i32, %c0_i32_0 : i32, i32
  }
  func.func @transform_7(%arg0: i32) -> (i32, i32) {
    %c0_i32 = arith.constant 0 : i32
    %c0_i32_0 = arith.constant 0 : i32
    %c0_i32_1 = arith.constant 0 : i32
    return %c0_i32, %c0_i32_0 : i32, i32
  }
  func.func @transform_8(%arg0: i32) -> (i32, i32) {
    %c0_i32 = arith.constant 0 : i32
    %c0_i32_0 = arith.constant 0 : i32
    %c0_i32_1 = arith.constant 0 : i32
    return %c0_i32, %c0_i32_0 : i32, i32
  }
  func.func @transform_9(%arg0: i32) -> (i32, i32) {
    %c0_i32 = arith.constant 0 : i32
    %c0_i32_0 = arith.constant 0 : i32
    %c0_i32_1 = arith.constant 0 : i32
    return %c0_i32, %c0_i32_0 : i32, i32
  }
  func.func @transform_10(%arg0: i32) -> (i32, i32) {
    %c0_i32 = arith.constant 0 : i32
    %c0_i32_0 = arith.constant 0 : i32
    %c0_i32_1 = arith.constant 0 : i32
    return %c0_i32, %c0_i32_0 : i32, i32
  }
  func.func @transform_11(%arg0: i32) -> (i32, i32) {
    %c0_i32 = arith.constant 0 : i32
    %c0_i32_0 = arith.constant 0 : i32
    %c0_i32_1 = arith.constant 0 : i32
    return %c0_i32, %c0_i32_0 : i32, i32
  }
  func.func @transform_12(%arg0: i32) -> (i32, i32) {
    %c0_i32 = arith.constant 0 : i32
    %c0_i32_0 = arith.constant 0 : i32
    %c0_i32_1 = arith.constant 0 : i32
    return %c0_i32, %c0_i32_0 : i32, i32
  }
  func.func @transform_13(%arg0: i32) -> (i32, i32) {
    %c0_i32 = arith.constant 0 : i32
    %c0_i32_0 = arith.constant 0 : i32
    %c0_i32_1 = arith.constant 0 : i32
    return %c0_i32, %c0_i32_0 : i32, i32
  }
  func.func @transform_14(%arg0: i32) -> (i32, i32) {
    %c0_i32 = arith.constant 0 : i32
    %c0_i32_0 = arith.constant 0 : i32
    %c0_i32_1 = arith.constant 0 : i32
    return %c0_i32, %c0_i32_0 : i32, i32
  }
  func.func @transform_15(%arg0: i32) -> (i32, i32) {
    %c0_i32 = arith.constant 0 : i32
    %c0_i32_0 = arith.constant 0 : i32
    %c0_i32_1 = arith.constant 0 : i32
    return %c0_i32, %c0_i32_0 : i32, i32
  }
  func.func @transform_16(%arg0: i32) -> (i32, i32) {
    %c0_i32 = arith.constant 0 : i32
    %c0_i32_0 = arith.constant 0 : i32
    %c0_i32_1 = arith.constant 0 : i32
    return %c0_i32, %c0_i32_0 : i32, i32
  }
  func.func @transform_17(%arg0: i32) -> (i32, i32) {
    %c0_i32 = arith.constant 0 : i32
    %c0_i32_0 = arith.constant 0 : i32
    %c0_i32_1 = arith.constant 0 : i32
    return %c0_i32, %c0_i32_0 : i32, i32
  }
  func.func @transform_18(%arg0: i32) -> (i32, i32) {
    %c0_i32 = arith.constant 0 : i32
    %c0_i32_0 = arith.constant 0 : i32
    %c0_i32_1 = arith.constant 0 : i32
    return %c0_i32, %c0_i32_0 : i32, i32
  }
  func.func @transform_19(%arg0: i32) -> (i32, i32) {
    %c0_i32 = arith.constant 0 : i32
    %c0_i32_0 = arith.constant 0 : i32
    %c0_i32_1 = arith.constant 0 : i32
    return %c0_i32, %c0_i32_0 : i32, i32
  }
  func.func @transform_20(%arg0: i32) -> (i32, i32) {
    %c0_i32 = arith.constant 0 : i32
    %c0_i32_0 = arith.constant 0 : i32
    %c0_i32_1 = arith.constant 0 : i32
    return %c0_i32, %c0_i32_0 : i32, i32
  }
  func.func @transform_21(%arg0: i32) -> (i32, i32) {
    %c0_i32 = arith.constant 0 : i32
    %c0_i32_0 = arith.constant 0 : i32
    %c0_i32_1 = arith.constant 0 : i32
    return %c0_i32, %c0_i32_0 : i32, i32
  }
  func.func @transform_22(%arg0: i32) -> (i32, i32) {
    %c0_i32 = arith.constant 0 : i32
    %c0_i32_0 = arith.constant 0 : i32
    %c0_i32_1 = arith.constant 0 : i32
    return %c0_i32, %c0_i32_0 : i32, i32
  }
  func.func @transform_23(%arg0: i32) -> (i32, i32, i32) {
    %c0_i32 = arith.constant 0 : i32
    %c0_i32_0 = arith.constant 0 : i32
    %c0_i32_1 = arith.constant 0 : i32
    return %arg0, %c0_i32, %c0_i32_0 : i32, i32, i32
  }
}

module attributes {stable_mosaic.version = 11 : i64} {
  func.func @_encoder_layer_kernel(%arg0: i32, %arg1: memref<1x8x192xbf16, #tpu.memory_space<vmem>>, %arg2: memref<1x8x128xf32, #tpu.memory_space<vmem>>, %arg3: memref<192x128xbf16, #tpu.memory_space<vmem>>, %arg4: memref<1x128xf32, #tpu.memory_space<vmem>>, %arg5: memref<128x384xbf16, #tpu.memory_space<vmem>>, %arg6: memref<1x384xf32, #tpu.memory_space<vmem>>, %arg7: memref<128x128xbf16, #tpu.memory_space<vmem>>, %arg8: memref<1x128xf32, #tpu.memory_space<vmem>>, %arg9: memref<1x128xf32, #tpu.memory_space<vmem>>, %arg10: memref<1x128xf32, #tpu.memory_space<vmem>>, %arg11: memref<128x256xbf16, #tpu.memory_space<vmem>>, %arg12: memref<1x256xf32, #tpu.memory_space<vmem>>, %arg13: memref<256x128xbf16, #tpu.memory_space<vmem>>, %arg14: memref<1x128xf32, #tpu.memory_space<vmem>>, %arg15: memref<1x128xf32, #tpu.memory_space<vmem>>, %arg16: memref<1x128xf32, #tpu.memory_space<vmem>>, %arg17: memref<1x128xf32, #tpu.memory_space<vmem>>, %arg18: memref<1x128xf32, #tpu.memory_space<vmem>>, %arg19: memref<1x8x128xbf16, #tpu.memory_space<vmem>>) attributes {dimension_semantics = [#tpu.dimension_semantics<parallel>], iteration_bounds = array<i64: 2>, scalar_prefetch = 0 : i64, scratch_operands = 0 : i64, tpu.core_type = #tpu.core_type<tc>, window_params = [{transform_indices = @transform_0, window_bounds = array<i64: 1, 8, 192>}, {pipeline_mode = #tpu.pipeline_mode<synchronous>, transform_indices = @transform_1, window_bounds = array<i64: 1, 8, 128>}, {pipeline_mode = #tpu.pipeline_mode<synchronous>, transform_indices = @transform_2, window_bounds = array<i64: 192, 128>}, {pipeline_mode = #tpu.pipeline_mode<synchronous>, transform_indices = @transform_3, window_bounds = array<i64: 1, 128>}, {pipeline_mode = #tpu.pipeline_mode<synchronous>, transform_indices = @transform_4, window_bounds = array<i64: 128, 384>}, {pipeline_mode = #tpu.pipeline_mode<synchronous>, transform_indices = @transform_5, window_bounds = array<i64: 1, 384>}, {pipeline_mode = #tpu.pipeline_mode<synchronous>, transform_indices = @transform_6, window_bounds = array<i64: 128, 128>}, {pipeline_mode = #tpu.pipeline_mode<synchronous>, transform_indices = @transform_7, window_bounds = array<i64: 1, 128>}, {pipeline_mode = #tpu.pipeline_mode<synchronous>, transform_indices = @transform_8, window_bounds = array<i64: 1, 128>}, {pipeline_mode = #tpu.pipeline_mode<synchronous>, transform_indices = @transform_9, window_bounds = array<i64: 1, 128>}, {pipeline_mode = #tpu.pipeline_mode<synchronous>, transform_indices = @transform_10, window_bounds = array<i64: 128, 256>}, {pipeline_mode = #tpu.pipeline_mode<synchronous>, transform_indices = @transform_11, window_bounds = array<i64: 1, 256>}, {pipeline_mode = #tpu.pipeline_mode<synchronous>, transform_indices = @transform_12, window_bounds = array<i64: 256, 128>}, {pipeline_mode = #tpu.pipeline_mode<synchronous>, transform_indices = @transform_13, window_bounds = array<i64: 1, 128>}, {pipeline_mode = #tpu.pipeline_mode<synchronous>, transform_indices = @transform_14, window_bounds = array<i64: 1, 128>}, {pipeline_mode = #tpu.pipeline_mode<synchronous>, transform_indices = @transform_15, window_bounds = array<i64: 1, 128>}, {pipeline_mode = #tpu.pipeline_mode<synchronous>, transform_indices = @transform_16, window_bounds = array<i64: 1, 128>}, {pipeline_mode = #tpu.pipeline_mode<synchronous>, transform_indices = @transform_17, window_bounds = array<i64: 1, 128>}, {transform_indices = @transform_18, window_bounds = array<i64: 1, 8, 128>}]} {
    %c0 = arith.constant 0 : index
    %c0_0 = arith.constant 0 : index
    %c0_1 = arith.constant 0 : index
    %0 = vector.load %arg1[%c0, %c0_0, %c0_1] : memref<1x8x192xbf16, #tpu.memory_space<vmem>>, vector<1x8x192xbf16>
    %1 = vector.shape_cast %0 : vector<1x8x192xbf16> to vector<8x192xbf16>
    %c0_2 = arith.constant 0 : index
    %c0_3 = arith.constant 0 : index
    %2 = vector.load %arg3[%c0_2, %c0_3] : memref<192x128xbf16, #tpu.memory_space<vmem>>, vector<192x128xbf16>
    %cst = arith.constant dense<0.000000e+00> : vector<8x128xf32>
    %3 = tpu.matmul %1, %2, %cst {dimension_numbers = #tpu.dot_dimension_numbers<[1], [0], [0], [1], [0, 0, 1, 1], [], []>} : vector<8x192xbf16>, vector<192x128xbf16>, vector<8x128xf32> -> vector<8x128xf32>
    %c0_4 = arith.constant 0 : index
    %c0_5 = arith.constant 0 : index
    %4 = vector.load %arg4[%c0_4, %c0_5] : memref<1x128xf32, #tpu.memory_space<vmem>>, vector<1x128xf32>
    %5 = vector.broadcast %4 : vector<1x128xf32> to vector<8x128xf32>
    %6 = arith.addf %3, %5 : vector<8x128xf32>
    %c0_6 = arith.constant 0 : index
    %c0_7 = arith.constant 0 : index
    %c0_8 = arith.constant 0 : index
    %7 = vector.load %arg2[%c0_6, %c0_7, %c0_8] : memref<1x8x128xf32, #tpu.memory_space<vmem>>, vector<1x8x128xf32>
    %8 = vector.shape_cast %7 : vector<1x8x128xf32> to vector<8x128xf32>
    %9 = arith.addf %6, %8 : vector<8x128xf32>
    %c0_9 = arith.constant 0 : index
    %c0_10 = arith.constant 0 : index
    %10 = vector.load %arg5[%c0_9, %c0_10] : memref<128x384xbf16, #tpu.memory_space<vmem>>, vector<128x384xbf16>
    %c0_11 = arith.constant 0 : index
    %c0_12 = arith.constant 0 : index
    %11 = vector.load %arg6[%c0_11, %c0_12] : memref<1x384xf32, #tpu.memory_space<vmem>>, vector<1x384xf32>
    %12 = arith.truncf %9 : vector<8x128xf32> to vector<8x128xbf16>
    %cst_13 = arith.constant dense<0.000000e+00> : vector<8x384xf32>
    %13 = tpu.matmul %12, %10, %cst_13 {dimension_numbers = #tpu.dot_dimension_numbers<[1], [0], [0], [1], [0, 0, 1, 1], [], []>} : vector<8x128xbf16>, vector<128x384xbf16>, vector<8x384xf32> -> vector<8x384xf32>
    %14 = vector.broadcast %11 : vector<1x384xf32> to vector<8x384xf32>
    %15 = arith.addf %13, %14 : vector<8x384xf32>
    %16 = vector.extract_strided_slice %15 {offsets = [0, 0], sizes = [8, 128], strides = [1, 1]} : vector<8x384xf32> to vector<8x128xf32>
    %17 = vector.extract_strided_slice %15 {offsets = [0, 128], sizes = [8, 128], strides = [1, 1]} : vector<8x384xf32> to vector<8x128xf32>
    %18 = vector.extract_strided_slice %15 {offsets = [0, 256], sizes = [8, 128], strides = [1, 1]} : vector<8x384xf32> to vector<8x128xf32>
    %c0_14 = arith.constant 0 : index
    %c0_15 = arith.constant 0 : index
    %19 = vector.load %arg7[%c0_14, %c0_15] : memref<128x128xbf16, #tpu.memory_space<vmem>>, vector<128x128xbf16>
    %cst_16 = arith.constant 0.000000e+00 : f32
    %20 = vector.broadcast %cst_16 : f32 to vector<8x128xf32>
    %21 = vector.extract_strided_slice %16 {offsets = [0, 0], sizes = [8, 32], strides = [1, 1]} : vector<8x128xf32> to vector<8x32xf32>
    %22 = arith.truncf %21 : vector<8x32xf32> to vector<8x32xbf16>
    %23 = vector.extract_strided_slice %17 {offsets = [0, 0], sizes = [8, 32], strides = [1, 1]} : vector<8x128xf32> to vector<8x32xf32>
    %24 = arith.truncf %23 : vector<8x32xf32> to vector<8x32xbf16>
    %cst_17 = arith.constant dense<0.000000e+00> : vector<8x8xf32>
    %25 = tpu.matmul %22, %24, %cst_17 {dimension_numbers = #tpu.dot_dimension_numbers<[1], [1], [0], [0], [0, 0, 1, 0], [], []>} : vector<8x32xbf16>, vector<8x32xbf16>, vector<8x8xf32> -> vector<8x8xf32>
    %cst_18 = arith.constant 0.176776692 : f32
    %26 = vector.broadcast %cst_18 : f32 to vector<8x8xf32>
    %27 = arith.mulf %25, %26 : vector<8x8xf32>
    %cst_19 = arith.constant dense<0xFF800000> : vector<8xf32>
    %28 = vector.multi_reduction <maximumf>, %27, %cst_19 [1] : vector<8x8xf32> to vector<8xf32>
    %29 = vector.shape_cast %28 : vector<8xf32> to vector<8x1xf32>
    %30 = vector.broadcast %29 : vector<8x1xf32> to vector<8x8xf32>
    %31 = arith.subf %27, %30 : vector<8x8xf32>
    %32 = math.exp %31 : vector<8x8xf32>
    %cst_20 = arith.constant dense<0.000000e+00> : vector<8xf32>
    %33 = vector.multi_reduction <add>, %32, %cst_20 [1] : vector<8x8xf32> to vector<8xf32>
    %34 = vector.shape_cast %33 : vector<8xf32> to vector<8x1xf32>
    %35 = tpu.reciprocal %34 {approx = true} : vector<8x1xf32> -> vector<8x1xf32>
    %36 = vector.broadcast %35 : vector<8x1xf32> to vector<8x8xf32>
    %37 = arith.mulf %32, %36 : vector<8x8xf32>
    %38 = arith.truncf %37 : vector<8x8xf32> to vector<8x8xbf16>
    %39 = vector.extract_strided_slice %18 {offsets = [0, 0], sizes = [8, 32], strides = [1, 1]} : vector<8x128xf32> to vector<8x32xf32>
    %40 = arith.truncf %39 : vector<8x32xf32> to vector<8x32xbf16>
    %cst_21 = arith.constant dense<0.000000e+00> : vector<8x32xf32>
    %41 = tpu.matmul %38, %40, %cst_21 {dimension_numbers = #tpu.dot_dimension_numbers<[1], [0], [0], [1], [0, 0, 1, 1], [], []>} : vector<8x8xbf16>, vector<8x32xbf16>, vector<8x32xf32> -> vector<8x32xf32>
    %42 = arith.truncf %41 : vector<8x32xf32> to vector<8x32xbf16>
    %43 = vector.extract_strided_slice %19 {offsets = [0, 0], sizes = [32, 128], strides = [1, 1]} : vector<128x128xbf16> to vector<32x128xbf16>
    %cst_22 = arith.constant dense<0.000000e+00> : vector<8x128xf32>
    %44 = tpu.matmul %42, %43, %cst_22 {dimension_numbers = #tpu.dot_dimension_numbers<[1], [0], [0], [1], [0, 0, 1, 1], [], []>} : vector<8x32xbf16>, vector<32x128xbf16>, vector<8x128xf32> -> vector<8x128xf32>
    %45 = arith.addf %20, %44 : vector<8x128xf32>
    %46 = vector.extract_strided_slice %16 {offsets = [0, 32], sizes = [8, 32], strides = [1, 1]} : vector<8x128xf32> to vector<8x32xf32>
    %47 = arith.truncf %46 : vector<8x32xf32> to vector<8x32xbf16>
    %48 = vector.extract_strided_slice %17 {offsets = [0, 32], sizes = [8, 32], strides = [1, 1]} : vector<8x128xf32> to vector<8x32xf32>
    %49 = arith.truncf %48 : vector<8x32xf32> to vector<8x32xbf16>
    %cst_23 = arith.constant dense<0.000000e+00> : vector<8x8xf32>
    %50 = tpu.matmul %47, %49, %cst_23 {dimension_numbers = #tpu.dot_dimension_numbers<[1], [1], [0], [0], [0, 0, 1, 0], [], []>} : vector<8x32xbf16>, vector<8x32xbf16>, vector<8x8xf32> -> vector<8x8xf32>
    %cst_24 = arith.constant 0.176776692 : f32
    %51 = vector.broadcast %cst_24 : f32 to vector<8x8xf32>
    %52 = arith.mulf %50, %51 : vector<8x8xf32>
    %cst_25 = arith.constant dense<0xFF800000> : vector<8xf32>
    %53 = vector.multi_reduction <maximumf>, %52, %cst_25 [1] : vector<8x8xf32> to vector<8xf32>
    %54 = vector.shape_cast %53 : vector<8xf32> to vector<8x1xf32>
    %55 = vector.broadcast %54 : vector<8x1xf32> to vector<8x8xf32>
    %56 = arith.subf %52, %55 : vector<8x8xf32>
    %57 = math.exp %56 : vector<8x8xf32>
    %cst_26 = arith.constant dense<0.000000e+00> : vector<8xf32>
    %58 = vector.multi_reduction <add>, %57, %cst_26 [1] : vector<8x8xf32> to vector<8xf32>
    %59 = vector.shape_cast %58 : vector<8xf32> to vector<8x1xf32>
    %60 = tpu.reciprocal %59 {approx = true} : vector<8x1xf32> -> vector<8x1xf32>
    %61 = vector.broadcast %60 : vector<8x1xf32> to vector<8x8xf32>
    %62 = arith.mulf %57, %61 : vector<8x8xf32>
    %63 = arith.truncf %62 : vector<8x8xf32> to vector<8x8xbf16>
    %64 = vector.extract_strided_slice %18 {offsets = [0, 32], sizes = [8, 32], strides = [1, 1]} : vector<8x128xf32> to vector<8x32xf32>
    %65 = arith.truncf %64 : vector<8x32xf32> to vector<8x32xbf16>
    %cst_27 = arith.constant dense<0.000000e+00> : vector<8x32xf32>
    %66 = tpu.matmul %63, %65, %cst_27 {dimension_numbers = #tpu.dot_dimension_numbers<[1], [0], [0], [1], [0, 0, 1, 1], [], []>} : vector<8x8xbf16>, vector<8x32xbf16>, vector<8x32xf32> -> vector<8x32xf32>
    %67 = arith.truncf %66 : vector<8x32xf32> to vector<8x32xbf16>
    %68 = vector.extract_strided_slice %19 {offsets = [32, 0], sizes = [32, 128], strides = [1, 1]} : vector<128x128xbf16> to vector<32x128xbf16>
    %cst_28 = arith.constant dense<0.000000e+00> : vector<8x128xf32>
    %69 = tpu.matmul %67, %68, %cst_28 {dimension_numbers = #tpu.dot_dimension_numbers<[1], [0], [0], [1], [0, 0, 1, 1], [], []>} : vector<8x32xbf16>, vector<32x128xbf16>, vector<8x128xf32> -> vector<8x128xf32>
    %70 = arith.addf %45, %69 : vector<8x128xf32>
    %71 = vector.extract_strided_slice %16 {offsets = [0, 64], sizes = [8, 32], strides = [1, 1]} : vector<8x128xf32> to vector<8x32xf32>
    %72 = arith.truncf %71 : vector<8x32xf32> to vector<8x32xbf16>
    %73 = vector.extract_strided_slice %17 {offsets = [0, 64], sizes = [8, 32], strides = [1, 1]} : vector<8x128xf32> to vector<8x32xf32>
    %74 = arith.truncf %73 : vector<8x32xf32> to vector<8x32xbf16>
    %cst_29 = arith.constant dense<0.000000e+00> : vector<8x8xf32>
    %75 = tpu.matmul %72, %74, %cst_29 {dimension_numbers = #tpu.dot_dimension_numbers<[1], [1], [0], [0], [0, 0, 1, 0], [], []>} : vector<8x32xbf16>, vector<8x32xbf16>, vector<8x8xf32> -> vector<8x8xf32>
    %cst_30 = arith.constant 0.176776692 : f32
    %76 = vector.broadcast %cst_30 : f32 to vector<8x8xf32>
    %77 = arith.mulf %75, %76 : vector<8x8xf32>
    %cst_31 = arith.constant dense<0xFF800000> : vector<8xf32>
    %78 = vector.multi_reduction <maximumf>, %77, %cst_31 [1] : vector<8x8xf32> to vector<8xf32>
    %79 = vector.shape_cast %78 : vector<8xf32> to vector<8x1xf32>
    %80 = vector.broadcast %79 : vector<8x1xf32> to vector<8x8xf32>
    %81 = arith.subf %77, %80 : vector<8x8xf32>
    %82 = math.exp %81 : vector<8x8xf32>
    %cst_32 = arith.constant dense<0.000000e+00> : vector<8xf32>
    %83 = vector.multi_reduction <add>, %82, %cst_32 [1] : vector<8x8xf32> to vector<8xf32>
    %84 = vector.shape_cast %83 : vector<8xf32> to vector<8x1xf32>
    %85 = tpu.reciprocal %84 {approx = true} : vector<8x1xf32> -> vector<8x1xf32>
    %86 = vector.broadcast %85 : vector<8x1xf32> to vector<8x8xf32>
    %87 = arith.mulf %82, %86 : vector<8x8xf32>
    %88 = arith.truncf %87 : vector<8x8xf32> to vector<8x8xbf16>
    %89 = vector.extract_strided_slice %18 {offsets = [0, 64], sizes = [8, 32], strides = [1, 1]} : vector<8x128xf32> to vector<8x32xf32>
    %90 = arith.truncf %89 : vector<8x32xf32> to vector<8x32xbf16>
    %cst_33 = arith.constant dense<0.000000e+00> : vector<8x32xf32>
    %91 = tpu.matmul %88, %90, %cst_33 {dimension_numbers = #tpu.dot_dimension_numbers<[1], [0], [0], [1], [0, 0, 1, 1], [], []>} : vector<8x8xbf16>, vector<8x32xbf16>, vector<8x32xf32> -> vector<8x32xf32>
    %92 = arith.truncf %91 : vector<8x32xf32> to vector<8x32xbf16>
    %93 = vector.extract_strided_slice %19 {offsets = [64, 0], sizes = [32, 128], strides = [1, 1]} : vector<128x128xbf16> to vector<32x128xbf16>
    %cst_34 = arith.constant dense<0.000000e+00> : vector<8x128xf32>
    %94 = tpu.matmul %92, %93, %cst_34 {dimension_numbers = #tpu.dot_dimension_numbers<[1], [0], [0], [1], [0, 0, 1, 1], [], []>} : vector<8x32xbf16>, vector<32x128xbf16>, vector<8x128xf32> -> vector<8x128xf32>
    %95 = arith.addf %70, %94 : vector<8x128xf32>
    %96 = vector.extract_strided_slice %16 {offsets = [0, 96], sizes = [8, 32], strides = [1, 1]} : vector<8x128xf32> to vector<8x32xf32>
    %97 = arith.truncf %96 : vector<8x32xf32> to vector<8x32xbf16>
    %98 = vector.extract_strided_slice %17 {offsets = [0, 96], sizes = [8, 32], strides = [1, 1]} : vector<8x128xf32> to vector<8x32xf32>
    %99 = arith.truncf %98 : vector<8x32xf32> to vector<8x32xbf16>
    %cst_35 = arith.constant dense<0.000000e+00> : vector<8x8xf32>
    %100 = tpu.matmul %97, %99, %cst_35 {dimension_numbers = #tpu.dot_dimension_numbers<[1], [1], [0], [0], [0, 0, 1, 0], [], []>} : vector<8x32xbf16>, vector<8x32xbf16>, vector<8x8xf32> -> vector<8x8xf32>
    %cst_36 = arith.constant 0.176776692 : f32
    %101 = vector.broadcast %cst_36 : f32 to vector<8x8xf32>
    %102 = arith.mulf %100, %101 : vector<8x8xf32>
    %cst_37 = arith.constant dense<0xFF800000> : vector<8xf32>
    %103 = vector.multi_reduction <maximumf>, %102, %cst_37 [1] : vector<8x8xf32> to vector<8xf32>
    %104 = vector.shape_cast %103 : vector<8xf32> to vector<8x1xf32>
    %105 = vector.broadcast %104 : vector<8x1xf32> to vector<8x8xf32>
    %106 = arith.subf %102, %105 : vector<8x8xf32>
    %107 = math.exp %106 : vector<8x8xf32>
    %cst_38 = arith.constant dense<0.000000e+00> : vector<8xf32>
    %108 = vector.multi_reduction <add>, %107, %cst_38 [1] : vector<8x8xf32> to vector<8xf32>
    %109 = vector.shape_cast %108 : vector<8xf32> to vector<8x1xf32>
    %110 = tpu.reciprocal %109 {approx = true} : vector<8x1xf32> -> vector<8x1xf32>
    %111 = vector.broadcast %110 : vector<8x1xf32> to vector<8x8xf32>
    %112 = arith.mulf %107, %111 : vector<8x8xf32>
    %113 = arith.truncf %112 : vector<8x8xf32> to vector<8x8xbf16>
    %114 = vector.extract_strided_slice %18 {offsets = [0, 96], sizes = [8, 32], strides = [1, 1]} : vector<8x128xf32> to vector<8x32xf32>
    %115 = arith.truncf %114 : vector<8x32xf32> to vector<8x32xbf16>
    %cst_39 = arith.constant dense<0.000000e+00> : vector<8x32xf32>
    %116 = tpu.matmul %113, %115, %cst_39 {dimension_numbers = #tpu.dot_dimension_numbers<[1], [0], [0], [1], [0, 0, 1, 1], [], []>} : vector<8x8xbf16>, vector<8x32xbf16>, vector<8x32xf32> -> vector<8x32xf32>
    %117 = arith.truncf %116 : vector<8x32xf32> to vector<8x32xbf16>
    %118 = vector.extract_strided_slice %19 {offsets = [96, 0], sizes = [32, 128], strides = [1, 1]} : vector<128x128xbf16> to vector<32x128xbf16>
    %cst_40 = arith.constant dense<0.000000e+00> : vector<8x128xf32>
    %119 = tpu.matmul %117, %118, %cst_40 {dimension_numbers = #tpu.dot_dimension_numbers<[1], [0], [0], [1], [0, 0, 1, 1], [], []>} : vector<8x32xbf16>, vector<32x128xbf16>, vector<8x128xf32> -> vector<8x128xf32>
    %120 = arith.addf %95, %119 : vector<8x128xf32>
    %c0_41 = arith.constant 0 : index
    %c0_42 = arith.constant 0 : index
    %121 = vector.load %arg8[%c0_41, %c0_42] : memref<1x128xf32, #tpu.memory_space<vmem>>, vector<1x128xf32>
    %122 = vector.broadcast %121 : vector<1x128xf32> to vector<8x128xf32>
    %123 = arith.addf %120, %122 : vector<8x128xf32>
    %124 = arith.addf %9, %123 : vector<8x128xf32>
    %c0_43 = arith.constant 0 : index
    %c0_44 = arith.constant 0 : index
    %125 = vector.load %arg9[%c0_43, %c0_44] : memref<1x128xf32, #tpu.memory_space<vmem>>, vector<1x128xf32>
    %c0_45 = arith.constant 0 : index
    %c0_46 = arith.constant 0 : index
    %126 = vector.load %arg10[%c0_45, %c0_46] : memref<1x128xf32, #tpu.memory_space<vmem>>, vector<1x128xf32>
    %cst_47 = arith.constant dense<0.000000e+00> : vector<8xf32>
    %127 = vector.multi_reduction <add>, %124, %cst_47 [1] : vector<8x128xf32> to vector<8xf32>
    %128 = vector.shape_cast %127 : vector<8xf32> to vector<8x1xf32>
    %cst_48 = arith.constant 1.280000e+02 : f32
    %129 = vector.broadcast %cst_48 : f32 to vector<8x1xf32>
    %130 = arith.divf %128, %129 : vector<8x1xf32>
    %131 = vector.broadcast %130 : vector<8x1xf32> to vector<8x128xf32>
    %132 = arith.subf %124, %131 : vector<8x128xf32>
    %133 = arith.mulf %132, %132 : vector<8x128xf32>
    %cst_49 = arith.constant dense<0.000000e+00> : vector<8xf32>
    %134 = vector.multi_reduction <add>, %133, %cst_49 [1] : vector<8x128xf32> to vector<8xf32>
    %135 = vector.shape_cast %134 : vector<8xf32> to vector<8x1xf32>
    %cst_50 = arith.constant 1.280000e+02 : f32
    %136 = vector.broadcast %cst_50 : f32 to vector<8x1xf32>
    %137 = arith.divf %135, %136 : vector<8x1xf32>
    %138 = vector.broadcast %130 : vector<8x1xf32> to vector<8x128xf32>
    %139 = arith.subf %124, %138 : vector<8x128xf32>
    %cst_51 = arith.constant 9.99999996E-13 : f32
    %140 = vector.broadcast %cst_51 : f32 to vector<8x1xf32>
    %141 = arith.addf %137, %140 : vector<8x1xf32>
    %142 = math.rsqrt %141 : vector<8x1xf32>
    %143 = vector.broadcast %142 : vector<8x1xf32> to vector<8x128xf32>
    %144 = arith.mulf %139, %143 : vector<8x128xf32>
    %145 = vector.broadcast %125 : vector<1x128xf32> to vector<8x128xf32>
    %146 = arith.mulf %144, %145 : vector<8x128xf32>
    %147 = vector.broadcast %126 : vector<1x128xf32> to vector<8x128xf32>
    %148 = arith.addf %146, %147 : vector<8x128xf32>
    %c0_52 = arith.constant 0 : index
    %c0_53 = arith.constant 0 : index
    %149 = vector.load %arg11[%c0_52, %c0_53] : memref<128x256xbf16, #tpu.memory_space<vmem>>, vector<128x256xbf16>
    %c0_54 = arith.constant 0 : index
    %c0_55 = arith.constant 0 : index
    %150 = vector.load %arg12[%c0_54, %c0_55] : memref<1x256xf32, #tpu.memory_space<vmem>>, vector<1x256xf32>
    %151 = arith.truncf %148 : vector<8x128xf32> to vector<8x128xbf16>
    %cst_56 = arith.constant dense<0.000000e+00> : vector<8x256xf32>
    %152 = tpu.matmul %151, %149, %cst_56 {dimension_numbers = #tpu.dot_dimension_numbers<[1], [0], [0], [1], [0, 0, 1, 1], [], []>} : vector<8x128xbf16>, vector<128x256xbf16>, vector<8x256xf32> -> vector<8x256xf32>
    %153 = vector.broadcast %150 : vector<1x256xf32> to vector<8x256xf32>
    %154 = arith.addf %152, %153 : vector<8x256xf32>
    %cst_57 = arith.constant 5.000000e-01 : f32
    %155 = vector.broadcast %cst_57 : f32 to vector<8x256xf32>
    %156 = arith.mulf %155, %154 : vector<8x256xf32>
    %cst_58 = arith.constant 4.471500e-02 : f32
    %157 = vector.broadcast %cst_58 : f32 to vector<8x256xf32>
    %158 = arith.mulf %157, %154 : vector<8x256xf32>
    %159 = arith.mulf %158, %154 : vector<8x256xf32>
    %160 = arith.mulf %159, %154 : vector<8x256xf32>
    %161 = arith.addf %154, %160 : vector<8x256xf32>
    %cst_59 = arith.constant 0.797884583 : f32
    %162 = vector.broadcast %cst_59 : f32 to vector<8x256xf32>
    %163 = arith.mulf %162, %161 : vector<8x256xf32>
    %164 = math.tanh %163 : vector<8x256xf32>
    %cst_60 = arith.constant 1.000000e+00 : f32
    %165 = vector.broadcast %cst_60 : f32 to vector<8x256xf32>
    %166 = arith.addf %165, %164 : vector<8x256xf32>
    %167 = arith.mulf %156, %166 : vector<8x256xf32>
    %c0_61 = arith.constant 0 : index
    %c0_62 = arith.constant 0 : index
    %168 = vector.load %arg13[%c0_61, %c0_62] : memref<256x128xbf16, #tpu.memory_space<vmem>>, vector<256x128xbf16>
    %c0_63 = arith.constant 0 : index
    %c0_64 = arith.constant 0 : index
    %169 = vector.load %arg14[%c0_63, %c0_64] : memref<1x128xf32, #tpu.memory_space<vmem>>, vector<1x128xf32>
    %170 = arith.truncf %167 : vector<8x256xf32> to vector<8x256xbf16>
    %cst_65 = arith.constant dense<0.000000e+00> : vector<8x128xf32>
    %171 = tpu.matmul %170, %168, %cst_65 {dimension_numbers = #tpu.dot_dimension_numbers<[1], [0], [0], [1], [0, 0, 1, 1], [], []>} : vector<8x256xbf16>, vector<256x128xbf16>, vector<8x128xf32> -> vector<8x128xf32>
    %172 = vector.broadcast %169 : vector<1x128xf32> to vector<8x128xf32>
    %173 = arith.addf %171, %172 : vector<8x128xf32>
    %174 = arith.addf %148, %173 : vector<8x128xf32>
    %c0_66 = arith.constant 0 : index
    %c0_67 = arith.constant 0 : index
    %175 = vector.load %arg15[%c0_66, %c0_67] : memref<1x128xf32, #tpu.memory_space<vmem>>, vector<1x128xf32>
    %c0_68 = arith.constant 0 : index
    %c0_69 = arith.constant 0 : index
    %176 = vector.load %arg16[%c0_68, %c0_69] : memref<1x128xf32, #tpu.memory_space<vmem>>, vector<1x128xf32>
    %cst_70 = arith.constant dense<0.000000e+00> : vector<8xf32>
    %177 = vector.multi_reduction <add>, %174, %cst_70 [1] : vector<8x128xf32> to vector<8xf32>
    %178 = vector.shape_cast %177 : vector<8xf32> to vector<8x1xf32>
    %cst_71 = arith.constant 1.280000e+02 : f32
    %179 = vector.broadcast %cst_71 : f32 to vector<8x1xf32>
    %180 = arith.divf %178, %179 : vector<8x1xf32>
    %181 = vector.broadcast %180 : vector<8x1xf32> to vector<8x128xf32>
    %182 = arith.subf %174, %181 : vector<8x128xf32>
    %183 = arith.mulf %182, %182 : vector<8x128xf32>
    %cst_72 = arith.constant dense<0.000000e+00> : vector<8xf32>
    %184 = vector.multi_reduction <add>, %183, %cst_72 [1] : vector<8x128xf32> to vector<8xf32>
    %185 = vector.shape_cast %184 : vector<8xf32> to vector<8x1xf32>
    %cst_73 = arith.constant 1.280000e+02 : f32
    %186 = vector.broadcast %cst_73 : f32 to vector<8x1xf32>
    %187 = arith.divf %185, %186 : vector<8x1xf32>
    %188 = vector.broadcast %180 : vector<8x1xf32> to vector<8x128xf32>
    %189 = arith.subf %174, %188 : vector<8x128xf32>
    %cst_74 = arith.constant 9.99999996E-13 : f32
    %190 = vector.broadcast %cst_74 : f32 to vector<8x1xf32>
    %191 = arith.addf %187, %190 : vector<8x1xf32>
    %192 = math.rsqrt %191 : vector<8x1xf32>
    %193 = vector.broadcast %192 : vector<8x1xf32> to vector<8x128xf32>
    %194 = arith.mulf %189, %193 : vector<8x128xf32>
    %195 = vector.broadcast %175 : vector<1x128xf32> to vector<8x128xf32>
    %196 = arith.mulf %194, %195 : vector<8x128xf32>
    %197 = vector.broadcast %176 : vector<1x128xf32> to vector<8x128xf32>
    %198 = arith.addf %196, %197 : vector<8x128xf32>
    %c0_75 = arith.constant 0 : index
    %c0_76 = arith.constant 0 : index
    %199 = vector.load %arg17[%c0_75, %c0_76] : memref<1x128xf32, #tpu.memory_space<vmem>>, vector<1x128xf32>
    %c0_77 = arith.constant 0 : index
    %c0_78 = arith.constant 0 : index
    %200 = vector.load %arg18[%c0_77, %c0_78] : memref<1x128xf32, #tpu.memory_space<vmem>>, vector<1x128xf32>
    %cst_79 = arith.constant dense<0.000000e+00> : vector<8xf32>
    %201 = vector.multi_reduction <add>, %198, %cst_79 [1] : vector<8x128xf32> to vector<8xf32>
    %202 = vector.shape_cast %201 : vector<8xf32> to vector<8x1xf32>
    %cst_80 = arith.constant 1.280000e+02 : f32
    %203 = vector.broadcast %cst_80 : f32 to vector<8x1xf32>
    %204 = arith.divf %202, %203 : vector<8x1xf32>
    %205 = vector.broadcast %204 : vector<8x1xf32> to vector<8x128xf32>
    %206 = arith.subf %198, %205 : vector<8x128xf32>
    %207 = arith.mulf %206, %206 : vector<8x128xf32>
    %cst_81 = arith.constant dense<0.000000e+00> : vector<8xf32>
    %208 = vector.multi_reduction <add>, %207, %cst_81 [1] : vector<8x128xf32> to vector<8xf32>
    %209 = vector.shape_cast %208 : vector<8xf32> to vector<8x1xf32>
    %cst_82 = arith.constant 1.280000e+02 : f32
    %210 = vector.broadcast %cst_82 : f32 to vector<8x1xf32>
    %211 = arith.divf %209, %210 : vector<8x1xf32>
    %212 = vector.broadcast %204 : vector<8x1xf32> to vector<8x128xf32>
    %213 = arith.subf %198, %212 : vector<8x128xf32>
    %cst_83 = arith.constant 9.99999996E-13 : f32
    %214 = vector.broadcast %cst_83 : f32 to vector<8x1xf32>
    %215 = arith.addf %211, %214 : vector<8x1xf32>
    %216 = math.rsqrt %215 : vector<8x1xf32>
    %217 = vector.broadcast %216 : vector<8x1xf32> to vector<8x128xf32>
    %218 = arith.mulf %213, %217 : vector<8x128xf32>
    %219 = vector.broadcast %199 : vector<1x128xf32> to vector<8x128xf32>
    %220 = arith.mulf %218, %219 : vector<8x128xf32>
    %221 = vector.broadcast %200 : vector<1x128xf32> to vector<8x128xf32>
    %222 = arith.addf %220, %221 : vector<8x128xf32>
    %223 = arith.truncf %222 : vector<8x128xf32> to vector<8x128xbf16>
    %c0_84 = arith.constant 0 : index
    %c0_85 = arith.constant 0 : index
    %c0_86 = arith.constant 0 : index
    %224 = vector.load %arg19[%c0_84, %c0_85, %c0_86] : memref<1x8x128xbf16, #tpu.memory_space<vmem>>, vector<1x8x128xbf16>
    %225 = vector.shape_cast %224 : vector<1x8x128xbf16> to vector<8x128xbf16>
    %226 = vector.shape_cast %223 : vector<8x128xbf16> to vector<1x8x128xbf16>
    tpu.vector_store %arg19[%c0_84, %c0_85, %c0_86], %226 {strides = array<i32>} : memref<1x8x128xbf16, #tpu.memory_space<vmem>>, vector<1x8x128xbf16>,
    return
  }
  func.func @transform_0(%arg0: i32) -> (i32, i32, i32) {
    %c0_i32 = arith.constant 0 : i32
    %c0_i32_0 = arith.constant 0 : i32
    %c0_i32_1 = arith.constant 0 : i32
    return %arg0, %c0_i32, %c0_i32_0 : i32, i32, i32
  }
  func.func @transform_1(%arg0: i32) -> (i32, i32, i32) {
    %c0_i32 = arith.constant 0 : i32
    %c0_i32_0 = arith.constant 0 : i32
    %c0_i32_1 = arith.constant 0 : i32
    %c0_i32_2 = arith.constant 0 : i32
    return %c0_i32, %c0_i32_0, %c0_i32_1 : i32, i32, i32
  }
  func.func @transform_2(%arg0: i32) -> (i32, i32) {
    %c0_i32 = arith.constant 0 : i32
    %c0_i32_0 = arith.constant 0 : i32
    %c0_i32_1 = arith.constant 0 : i32
    return %c0_i32, %c0_i32_0 : i32, i32
  }
  func.func @transform_3(%arg0: i32) -> (i32, i32) {
    %c0_i32 = arith.constant 0 : i32
    %c0_i32_0 = arith.constant 0 : i32
    %c0_i32_1 = arith.constant 0 : i32
    return %c0_i32, %c0_i32_0 : i32, i32
  }
  func.func @transform_4(%arg0: i32) -> (i32, i32) {
    %c0_i32 = arith.constant 0 : i32
    %c0_i32_0 = arith.constant 0 : i32
    %c0_i32_1 = arith.constant 0 : i32
    return %c0_i32, %c0_i32_0 : i32, i32
  }
  func.func @transform_5(%arg0: i32) -> (i32, i32) {
    %c0_i32 = arith.constant 0 : i32
    %c0_i32_0 = arith.constant 0 : i32
    %c0_i32_1 = arith.constant 0 : i32
    return %c0_i32, %c0_i32_0 : i32, i32
  }
  func.func @transform_6(%arg0: i32) -> (i32, i32) {
    %c0_i32 = arith.constant 0 : i32
    %c0_i32_0 = arith.constant 0 : i32
    %c0_i32_1 = arith.constant 0 : i32
    return %c0_i32, %c0_i32_0 : i32, i32
  }
  func.func @transform_7(%arg0: i32) -> (i32, i32) {
    %c0_i32 = arith.constant 0 : i32
    %c0_i32_0 = arith.constant 0 : i32
    %c0_i32_1 = arith.constant 0 : i32
    return %c0_i32, %c0_i32_0 : i32, i32
  }
  func.func @transform_8(%arg0: i32) -> (i32, i32) {
    %c0_i32 = arith.constant 0 : i32
    %c0_i32_0 = arith.constant 0 : i32
    %c0_i32_1 = arith.constant 0 : i32
    return %c0_i32, %c0_i32_0 : i32, i32
  }
  func.func @transform_9(%arg0: i32) -> (i32, i32) {
    %c0_i32 = arith.constant 0 : i32
    %c0_i32_0 = arith.constant 0 : i32
    %c0_i32_1 = arith.constant 0 : i32
    return %c0_i32, %c0_i32_0 : i32, i32
  }
  func.func @transform_10(%arg0: i32) -> (i32, i32) {
    %c0_i32 = arith.constant 0 : i32
    %c0_i32_0 = arith.constant 0 : i32
    %c0_i32_1 = arith.constant 0 : i32
    return %c0_i32, %c0_i32_0 : i32, i32
  }
  func.func @transform_11(%arg0: i32) -> (i32, i32) {
    %c0_i32 = arith.constant 0 : i32
    %c0_i32_0 = arith.constant 0 : i32
    %c0_i32_1 = arith.constant 0 : i32
    return %c0_i32, %c0_i32_0 : i32, i32
  }
  func.func @transform_12(%arg0: i32) -> (i32, i32) {
    %c0_i32 = arith.constant 0 : i32
    %c0_i32_0 = arith.constant 0 : i32
    %c0_i32_1 = arith.constant 0 : i32
    return %c0_i32, %c0_i32_0 : i32, i32
  }
  func.func @transform_13(%arg0: i32) -> (i32, i32) {
    %c0_i32 = arith.constant 0 : i32
    %c0_i32_0 = arith.constant 0 : i32
    %c0_i32_1 = arith.constant 0 : i32
    return %c0_i32, %c0_i32_0 : i32, i32
  }
  func.func @transform_14(%arg0: i32) -> (i32, i32) {
    %c0_i32 = arith.constant 0 : i32
    %c0_i32_0 = arith.constant 0 : i32
    %c0_i32_1 = arith.constant 0 : i32
    return %c0_i32, %c0_i32_0 : i32, i32
  }
  func.func @transform_15(%arg0: i32) -> (i32, i32) {
    %c0_i32 = arith.constant 0 : i32
    %c0_i32_0 = arith.constant 0 : i32
    %c0_i32_1 = arith.constant 0 : i32
    return %c0_i32, %c0_i32_0 : i32, i32
  }
  func.func @transform_16(%arg0: i32) -> (i32, i32) {
    %c0_i32 = arith.constant 0 : i32
    %c0_i32_0 = arith.constant 0 : i32
    %c0_i32_1 = arith.constant 0 : i32
    return %c0_i32, %c0_i32_0 : i32, i32
  }
  func.func @transform_17(%arg0: i32) -> (i32, i32) {
    %c0_i32 = arith.constant 0 : i32
    %c0_i32_0 = arith.constant 0 : i32
    %c0_i32_1 = arith.constant 0 : i32
    return %c0_i32, %c0_i32_0 : i32, i32
  }
  func.func @transform_18(%arg0: i32) -> (i32, i32, i32) {
    %c0_i32 = arith.constant 0 : i32
    %c0_i32_0 = arith.constant 0 : i32
    %c0_i32_1 = arith.constant 0 : i32
    return %arg0, %c0_i32, %c0_i32_0 : i32, i32, i32
  }
}

module attributes {stable_mosaic.version = 11 : i64} {
  func.func @_decoder_layer_kernel(%arg0: i32, %arg1: memref<1x8x128xbf16, #tpu.memory_space<vmem>>, %arg2: memref<1x8x128xbf16, #tpu.memory_space<vmem>>, %arg3: memref<1x1x8xf32, #tpu.memory_space<vmem>>, %arg4: memref<1x128xf32, #tpu.memory_space<vmem>>, %arg5: memref<1x128xf32, #tpu.memory_space<vmem>>, %arg6: memref<128x384xbf16, #tpu.memory_space<vmem>>, %arg7: memref<1x384xf32, #tpu.memory_space<vmem>>, %arg8: memref<128x128xbf16, #tpu.memory_space<vmem>>, %arg9: memref<1x128xf32, #tpu.memory_space<vmem>>, %arg10: memref<1x128xf32, #tpu.memory_space<vmem>>, %arg11: memref<1x128xf32, #tpu.memory_space<vmem>>, %arg12: memref<128x128xbf16, #tpu.memory_space<vmem>>, %arg13: memref<1x128xf32, #tpu.memory_space<vmem>>, %arg14: memref<128x256xbf16, #tpu.memory_space<vmem>>, %arg15: memref<1x256xf32, #tpu.memory_space<vmem>>, %arg16: memref<128x128xbf16, #tpu.memory_space<vmem>>, %arg17: memref<1x128xf32, #tpu.memory_space<vmem>>, %arg18: memref<1x128xf32, #tpu.memory_space<vmem>>, %arg19: memref<1x128xf32, #tpu.memory_space<vmem>>, %arg20: memref<128x256xbf16, #tpu.memory_space<vmem>>, %arg21: memref<1x256xf32, #tpu.memory_space<vmem>>, %arg22: memref<256x128xbf16, #tpu.memory_space<vmem>>, %arg23: memref<1x128xf32, #tpu.memory_space<vmem>>, %arg24: memref<1x128xf32, #tpu.memory_space<vmem>>, %arg25: memref<1x128xf32, #tpu.memory_space<vmem>>, %arg26: memref<1x8x128xbf16, #tpu.memory_space<vmem>>) attributes {dimension_semantics = [#tpu.dimension_semantics<parallel>], iteration_bounds = array<i64: 2>, scalar_prefetch = 0 : i64, scratch_operands = 0 : i64, tpu.core_type = #tpu.core_type<tc>, window_params = [{transform_indices = @transform_0, window_bounds = array<i64: 1, 8, 128>}, {transform_indices = @transform_1, window_bounds = array<i64: 1, 8, 128>}, {transform_indices = @transform_2, window_bounds = array<i64: 1, 1, 8>}, {pipeline_mode = #tpu.pipeline_mode<synchronous>, transform_indices = @transform_3, window_bounds = array<i64: 1, 128>}, {pipeline_mode = #tpu.pipeline_mode<synchronous>, transform_indices = @transform_4, window_bounds = array<i64: 1, 128>}, {pipeline_mode = #tpu.pipeline_mode<synchronous>, transform_indices = @transform_5, window_bounds = array<i64: 128, 384>}, {pipeline_mode = #tpu.pipeline_mode<synchronous>, transform_indices = @transform_6, window_bounds = array<i64: 1, 384>}, {pipeline_mode = #tpu.pipeline_mode<synchronous>, transform_indices = @transform_7, window_bounds = array<i64: 128, 128>}, {pipeline_mode = #tpu.pipeline_mode<synchronous>, transform_indices = @transform_8, window_bounds = array<i64: 1, 128>}, {pipeline_mode = #tpu.pipeline_mode<synchronous>, transform_indices = @transform_9, window_bounds = array<i64: 1, 128>}, {pipeline_mode = #tpu.pipeline_mode<synchronous>, transform_indices = @transform_10, window_bounds = array<i64: 1, 128>}, {pipeline_mode = #tpu.pipeline_mode<synchronous>, transform_indices = @transform_11, window_bounds = array<i64: 128, 128>}, {pipeline_mode = #tpu.pipeline_mode<synchronous>, transform_indices = @transform_12, window_bounds = array<i64: 1, 128>}, {pipeline_mode = #tpu.pipeline_mode<synchronous>, transform_indices = @transform_13, window_bounds = array<i64: 128, 256>}, {pipeline_mode = #tpu.pipeline_mode<synchronous>, transform_indices = @transform_14, window_bounds = array<i64: 1, 256>}, {pipeline_mode = #tpu.pipeline_mode<synchronous>, transform_indices = @transform_15, window_bounds = array<i64: 128, 128>}, {pipeline_mode = #tpu.pipeline_mode<synchronous>, transform_indices = @transform_16, window_bounds = array<i64: 1, 128>}, {pipeline_mode = #tpu.pipeline_mode<synchronous>, transform_indices = @transform_17, window_bounds = array<i64: 1, 128>}, {pipeline_mode = #tpu.pipeline_mode<synchronous>, transform_indices = @transform_18, window_bounds = array<i64: 1, 128>}, {pipeline_mode = #tpu.pipeline_mode<synchronous>, transform_indices = @transform_19, window_bounds = array<i64: 128, 256>}, {pipeline_mode = #tpu.pipeline_mode<synchronous>, transform_indices = @transform_20, window_bounds = array<i64: 1, 256>}, {pipeline_mode = #tpu.pipeline_mode<synchronous>, transform_indices = @transform_21, window_bounds = array<i64: 256, 128>}, {pipeline_mode = #tpu.pipeline_mode<synchronous>, transform_indices = @transform_22, window_bounds = array<i64: 1, 128>}, {pipeline_mode = #tpu.pipeline_mode<synchronous>, transform_indices = @transform_23, window_bounds = array<i64: 1, 128>}, {pipeline_mode = #tpu.pipeline_mode<synchronous>, transform_indices = @transform_24, window_bounds = array<i64: 1, 128>}, {transform_indices = @transform_25, window_bounds = array<i64: 1, 8, 128>}]} {
    %c0 = arith.constant 0 : index
    %c0_0 = arith.constant 0 : index
    %c0_1 = arith.constant 0 : index
    %0 = vector.load %arg1[%c0, %c0_0, %c0_1] : memref<1x8x128xbf16, #tpu.memory_space<vmem>>, vector<1x8x128xbf16>
    %1 = vector.shape_cast %0 : vector<1x8x128xbf16> to vector<8x128xbf16>
    %2 = arith.extf %1 : vector<8x128xbf16> to vector<8x128xf32>
    %c0_2 = arith.constant 0 : index
    %c0_3 = arith.constant 0 : index
    %c0_4 = arith.constant 0 : index
    %3 = vector.load %arg2[%c0_2, %c0_3, %c0_4] : memref<1x8x128xbf16, #tpu.memory_space<vmem>>, vector<1x8x128xbf16>
    %4 = vector.shape_cast %3 : vector<1x8x128xbf16> to vector<8x128xbf16>
    %c0_5 = arith.constant 0 : index
    %c0_6 = arith.constant 0 : index
    %5 = vector.load %arg4[%c0_5, %c0_6] : memref<1x128xf32, #tpu.memory_space<vmem>>, vector<1x128xf32>
    %c0_7 = arith.constant 0 : index
    %c0_8 = arith.constant 0 : index
    %6 = vector.load %arg5[%c0_7, %c0_8] : memref<1x128xf32, #tpu.memory_space<vmem>>, vector<1x128xf32>
    %cst = arith.constant dense<0.000000e+00> : vector<8xf32>
    %7 = vector.multi_reduction <add>, %2, %cst [1] : vector<8x128xf32> to vector<8xf32>
    %8 = vector.shape_cast %7 : vector<8xf32> to vector<8x1xf32>
    %cst_9 = arith.constant 1.280000e+02 : f32
    %9 = vector.broadcast %cst_9 : f32 to vector<8x1xf32>
    %10 = arith.divf %8, %9 : vector<8x1xf32>
    %11 = vector.broadcast %10 : vector<8x1xf32> to vector<8x128xf32>
    %12 = arith.subf %2, %11 : vector<8x128xf32>
    %13 = arith.mulf %12, %12 : vector<8x128xf32>
    %cst_10 = arith.constant dense<0.000000e+00> : vector<8xf32>
    %14 = vector.multi_reduction <add>, %13, %cst_10 [1] : vector<8x128xf32> to vector<8xf32>
    %15 = vector.shape_cast %14 : vector<8xf32> to vector<8x1xf32>
    %cst_11 = arith.constant 1.280000e+02 : f32
    %16 = vector.broadcast %cst_11 : f32 to vector<8x1xf32>
    %17 = arith.divf %15, %16 : vector<8x1xf32>
    %18 = vector.broadcast %10 : vector<8x1xf32> to vector<8x128xf32>
    %19 = arith.subf %2, %18 : vector<8x128xf32>
    %cst_12 = arith.constant 9.99999996E-13 : f32
    %20 = vector.broadcast %cst_12 : f32 to vector<8x1xf32>
    %21 = arith.addf %17, %20 : vector<8x1xf32>
    %22 = math.rsqrt %21 : vector<8x1xf32>
    %23 = vector.broadcast %22 : vector<8x1xf32> to vector<8x128xf32>
    %24 = arith.mulf %19, %23 : vector<8x128xf32>
    %25 = vector.broadcast %5 : vector<1x128xf32> to vector<8x128xf32>
    %26 = arith.mulf %24, %25 : vector<8x128xf32>
    %27 = vector.broadcast %6 : vector<1x128xf32> to vector<8x128xf32>
    %28 = arith.addf %26, %27 : vector<8x128xf32>
    %c0_13 = arith.constant 0 : index
    %c0_14 = arith.constant 0 : index
    %c0_15 = arith.constant 0 : index
    %29 = vector.load %arg3[%c0_13, %c0_14, %c0_15] : memref<1x1x8xf32, #tpu.memory_space<vmem>>, vector<1x1x8xf32>
    %30 = vector.shape_cast %29 : vector<1x1x8xf32> to vector<1x8xf32>
    %31 = tpu.iota {dimensions = array<i32: 0>} : vector<8x8xi32>
    %32 = tpu.iota {dimensions = array<i32: 1>} : vector<8x8xi32>
    %33 = arith.cmpi sge, %31, %32 : vector<8x8xi32>
    %cst_16 = arith.constant 0.000000e+00 : f32
    %34 = vector.shape_cast %30 : vector<1x8xf32> to vector<1x8xf32>
    %35 = vector.broadcast %34 : vector<1x8xf32> to vector<8x8xf32>
    %36 = vector.broadcast %cst_16 : f32 to vector<8x8xf32>
    %37 = arith.select %33, %35, %36 : vector<8x8xi1>, vector<8x8xf32>
    %cst_17 = arith.constant 1.000000e+00 : f32
    %38 = vector.broadcast %cst_17 : f32 to vector<8x8xf32>
    %39 = arith.subf %37, %38 : vector<8x8xf32>
    %cst_18 = arith.constant 1.000000e+09 : f32
    %40 = vector.broadcast %cst_18 : f32 to vector<8x8xf32>
    %41 = arith.mulf %39, %40 : vector<8x8xf32>
    %cst_19 = arith.constant -1.000000e+00 : f32
    %42 = vector.broadcast %cst_19 : f32 to vector<8x8xf32>
    %43 = arith.mulf %41, %42 : vector<8x8xf32>
    %c0_20 = arith.constant 0 : index
    %c0_21 = arith.constant 0 : index
    %44 = vector.load %arg6[%c0_20, %c0_21] : memref<128x384xbf16, #tpu.memory_space<vmem>>, vector<128x384xbf16>
    %c0_22 = arith.constant 0 : index
    %c0_23 = arith.constant 0 : index
    %45 = vector.load %arg7[%c0_22, %c0_23] : memref<1x384xf32, #tpu.memory_space<vmem>>, vector<1x384xf32>
    %46 = arith.truncf %28 : vector<8x128xf32> to vector<8x128xbf16>
    %cst_24 = arith.constant dense<0.000000e+00> : vector<8x384xf32>
    %47 = tpu.matmul %46, %44, %cst_24 {dimension_numbers = #tpu.dot_dimension_numbers<[1], [0], [0], [1], [0, 0, 1, 1], [], []>} : vector<8x128xbf16>, vector<128x384xbf16>, vector<8x384xf32> -> vector<8x384xf32>
    %48 = vector.broadcast %45 : vector<1x384xf32> to vector<8x384xf32>
    %49 = arith.addf %47, %48 : vector<8x384xf32>
    %50 = vector.extract_strided_slice %49 {offsets = [0, 0], sizes = [8, 128], strides = [1, 1]} : vector<8x384xf32> to vector<8x128xf32>
    %51 = vector.extract_strided_slice %49 {offsets = [0, 128], sizes = [8, 128], strides = [1, 1]} : vector<8x384xf32> to vector<8x128xf32>
    %52 = vector.extract_strided_slice %49 {offsets = [0, 256], sizes = [8, 128], strides = [1, 1]} : vector<8x384xf32> to vector<8x128xf32>
    %c0_25 = arith.constant 0 : index
    %c0_26 = arith.constant 0 : index
    %53 = vector.load %arg8[%c0_25, %c0_26] : memref<128x128xbf16, #tpu.memory_space<vmem>>, vector<128x128xbf16>
    %cst_27 = arith.constant 0.000000e+00 : f32
    %54 = vector.broadcast %cst_27 : f32 to vector<8x128xf32>
    %55 = vector.extract_strided_slice %50 {offsets = [0, 0], sizes = [8, 32], strides = [1, 1]} : vector<8x128xf32> to vector<8x32xf32>
    %56 = arith.truncf %55 : vector<8x32xf32> to vector<8x32xbf16>
    %57 = vector.extract_strided_slice %51 {offsets = [0, 0], sizes = [8, 32], strides = [1, 1]} : vector<8x128xf32> to vector<8x32xf32>
    %58 = arith.truncf %57 : vector<8x32xf32> to vector<8x32xbf16>
    %cst_28 = arith.constant dense<0.000000e+00> : vector<8x8xf32>
    %59 = tpu.matmul %56, %58, %cst_28 {dimension_numbers = #tpu.dot_dimension_numbers<[1], [1], [0], [0], [0, 0, 1, 0], [], []>} : vector<8x32xbf16>, vector<8x32xbf16>, vector<8x8xf32> -> vector<8x8xf32>
    %cst_29 = arith.constant 0.176776692 : f32
    %60 = vector.broadcast %cst_29 : f32 to vector<8x8xf32>
    %61 = arith.mulf %59, %60 : vector<8x8xf32>
    %62 = arith.addf %61, %43 : vector<8x8xf32>
    %cst_30 = arith.constant dense<0xFF800000> : vector<8xf32>
    %63 = vector.multi_reduction <maximumf>, %62, %cst_30 [1] : vector<8x8xf32> to vector<8xf32>
    %64 = vector.shape_cast %63 : vector<8xf32> to vector<8x1xf32>
    %65 = vector.broadcast %64 : vector<8x1xf32> to vector<8x8xf32>
    %66 = arith.subf %62, %65 : vector<8x8xf32>
    %67 = math.exp %66 : vector<8x8xf32>
    %cst_31 = arith.constant dense<0.000000e+00> : vector<8xf32>
    %68 = vector.multi_reduction <add>, %67, %cst_31 [1] : vector<8x8xf32> to vector<8xf32>
    %69 = vector.shape_cast %68 : vector<8xf32> to vector<8x1xf32>
    %70 = tpu.reciprocal %69 {approx = true} : vector<8x1xf32> -> vector<8x1xf32>
    %71 = vector.broadcast %70 : vector<8x1xf32> to vector<8x8xf32>
    %72 = arith.mulf %67, %71 : vector<8x8xf32>
    %73 = arith.truncf %72 : vector<8x8xf32> to vector<8x8xbf16>
    %74 = vector.extract_strided_slice %52 {offsets = [0, 0], sizes = [8, 32], strides = [1, 1]} : vector<8x128xf32> to vector<8x32xf32>
    %75 = arith.truncf %74 : vector<8x32xf32> to vector<8x32xbf16>
    %cst_32 = arith.constant dense<0.000000e+00> : vector<8x32xf32>
    %76 = tpu.matmul %73, %75, %cst_32 {dimension_numbers = #tpu.dot_dimension_numbers<[1], [0], [0], [1], [0, 0, 1, 1], [], []>} : vector<8x8xbf16>, vector<8x32xbf16>, vector<8x32xf32> -> vector<8x32xf32>
    %77 = arith.truncf %76 : vector<8x32xf32> to vector<8x32xbf16>
    %78 = vector.extract_strided_slice %53 {offsets = [0, 0], sizes = [32, 128], strides = [1, 1]} : vector<128x128xbf16> to vector<32x128xbf16>
    %cst_33 = arith.constant dense<0.000000e+00> : vector<8x128xf32>
    %79 = tpu.matmul %77, %78, %cst_33 {dimension_numbers = #tpu.dot_dimension_numbers<[1], [0], [0], [1], [0, 0, 1, 1], [], []>} : vector<8x32xbf16>, vector<32x128xbf16>, vector<8x128xf32> -> vector<8x128xf32>
    %80 = arith.addf %54, %79 : vector<8x128xf32>
    %81 = vector.extract_strided_slice %50 {offsets = [0, 32], sizes = [8, 32], strides = [1, 1]} : vector<8x128xf32> to vector<8x32xf32>
    %82 = arith.truncf %81 : vector<8x32xf32> to vector<8x32xbf16>
    %83 = vector.extract_strided_slice %51 {offsets = [0, 32], sizes = [8, 32], strides = [1, 1]} : vector<8x128xf32> to vector<8x32xf32>
    %84 = arith.truncf %83 : vector<8x32xf32> to vector<8x32xbf16>
    %cst_34 = arith.constant dense<0.000000e+00> : vector<8x8xf32>
    %85 = tpu.matmul %82, %84, %cst_34 {dimension_numbers = #tpu.dot_dimension_numbers<[1], [1], [0], [0], [0, 0, 1, 0], [], []>} : vector<8x32xbf16>, vector<8x32xbf16>, vector<8x8xf32> -> vector<8x8xf32>
    %cst_35 = arith.constant 0.176776692 : f32
    %86 = vector.broadcast %cst_35 : f32 to vector<8x8xf32>
    %87 = arith.mulf %85, %86 : vector<8x8xf32>
    %88 = arith.addf %87, %43 : vector<8x8xf32>
    %cst_36 = arith.constant dense<0xFF800000> : vector<8xf32>
    %89 = vector.multi_reduction <maximumf>, %88, %cst_36 [1] : vector<8x8xf32> to vector<8xf32>
    %90 = vector.shape_cast %89 : vector<8xf32> to vector<8x1xf32>
    %91 = vector.broadcast %90 : vector<8x1xf32> to vector<8x8xf32>
    %92 = arith.subf %88, %91 : vector<8x8xf32>
    %93 = math.exp %92 : vector<8x8xf32>
    %cst_37 = arith.constant dense<0.000000e+00> : vector<8xf32>
    %94 = vector.multi_reduction <add>, %93, %cst_37 [1] : vector<8x8xf32> to vector<8xf32>
    %95 = vector.shape_cast %94 : vector<8xf32> to vector<8x1xf32>
    %96 = tpu.reciprocal %95 {approx = true} : vector<8x1xf32> -> vector<8x1xf32>
    %97 = vector.broadcast %96 : vector<8x1xf32> to vector<8x8xf32>
    %98 = arith.mulf %93, %97 : vector<8x8xf32>
    %99 = arith.truncf %98 : vector<8x8xf32> to vector<8x8xbf16>
    %100 = vector.extract_strided_slice %52 {offsets = [0, 32], sizes = [8, 32], strides = [1, 1]} : vector<8x128xf32> to vector<8x32xf32>
    %101 = arith.truncf %100 : vector<8x32xf32> to vector<8x32xbf16>
    %cst_38 = arith.constant dense<0.000000e+00> : vector<8x32xf32>
    %102 = tpu.matmul %99, %101, %cst_38 {dimension_numbers = #tpu.dot_dimension_numbers<[1], [0], [0], [1], [0, 0, 1, 1], [], []>} : vector<8x8xbf16>, vector<8x32xbf16>, vector<8x32xf32> -> vector<8x32xf32>
    %103 = arith.truncf %102 : vector<8x32xf32> to vector<8x32xbf16>
    %104 = vector.extract_strided_slice %53 {offsets = [32, 0], sizes = [32, 128], strides = [1, 1]} : vector<128x128xbf16> to vector<32x128xbf16>
    %cst_39 = arith.constant dense<0.000000e+00> : vector<8x128xf32>
    %105 = tpu.matmul %103, %104, %cst_39 {dimension_numbers = #tpu.dot_dimension_numbers<[1], [0], [0], [1], [0, 0, 1, 1], [], []>} : vector<8x32xbf16>, vector<32x128xbf16>, vector<8x128xf32> -> vector<8x128xf32>
    %106 = arith.addf %80, %105 : vector<8x128xf32>
    %107 = vector.extract_strided_slice %50 {offsets = [0, 64], sizes = [8, 32], strides = [1, 1]} : vector<8x128xf32> to vector<8x32xf32>
    %108 = arith.truncf %107 : vector<8x32xf32> to vector<8x32xbf16>
    %109 = vector.extract_strided_slice %51 {offsets = [0, 64], sizes = [8, 32], strides = [1, 1]} : vector<8x128xf32> to vector<8x32xf32>
    %110 = arith.truncf %109 : vector<8x32xf32> to vector<8x32xbf16>
    %cst_40 = arith.constant dense<0.000000e+00> : vector<8x8xf32>
    %111 = tpu.matmul %108, %110, %cst_40 {dimension_numbers = #tpu.dot_dimension_numbers<[1], [1], [0], [0], [0, 0, 1, 0], [], []>} : vector<8x32xbf16>, vector<8x32xbf16>, vector<8x8xf32> -> vector<8x8xf32>
    %cst_41 = arith.constant 0.176776692 : f32
    %112 = vector.broadcast %cst_41 : f32 to vector<8x8xf32>
    %113 = arith.mulf %111, %112 : vector<8x8xf32>
    %114 = arith.addf %113, %43 : vector<8x8xf32>
    %cst_42 = arith.constant dense<0xFF800000> : vector<8xf32>
    %115 = vector.multi_reduction <maximumf>, %114, %cst_42 [1] : vector<8x8xf32> to vector<8xf32>
    %116 = vector.shape_cast %115 : vector<8xf32> to vector<8x1xf32>
    %117 = vector.broadcast %116 : vector<8x1xf32> to vector<8x8xf32>
    %118 = arith.subf %114, %117 : vector<8x8xf32>
    %119 = math.exp %118 : vector<8x8xf32>
    %cst_43 = arith.constant dense<0.000000e+00> : vector<8xf32>
    %120 = vector.multi_reduction <add>, %119, %cst_43 [1] : vector<8x8xf32> to vector<8xf32>
    %121 = vector.shape_cast %120 : vector<8xf32> to vector<8x1xf32>
    %122 = tpu.reciprocal %121 {approx = true} : vector<8x1xf32> -> vector<8x1xf32>
    %123 = vector.broadcast %122 : vector<8x1xf32> to vector<8x8xf32>
    %124 = arith.mulf %119, %123 : vector<8x8xf32>
    %125 = arith.truncf %124 : vector<8x8xf32> to vector<8x8xbf16>
    %126 = vector.extract_strided_slice %52 {offsets = [0, 64], sizes = [8, 32], strides = [1, 1]} : vector<8x128xf32> to vector<8x32xf32>
    %127 = arith.truncf %126 : vector<8x32xf32> to vector<8x32xbf16>
    %cst_44 = arith.constant dense<0.000000e+00> : vector<8x32xf32>
    %128 = tpu.matmul %125, %127, %cst_44 {dimension_numbers = #tpu.dot_dimension_numbers<[1], [0], [0], [1], [0, 0, 1, 1], [], []>} : vector<8x8xbf16>, vector<8x32xbf16>, vector<8x32xf32> -> vector<8x32xf32>
    %129 = arith.truncf %128 : vector<8x32xf32> to vector<8x32xbf16>
    %130 = vector.extract_strided_slice %53 {offsets = [64, 0], sizes = [32, 128], strides = [1, 1]} : vector<128x128xbf16> to vector<32x128xbf16>
    %cst_45 = arith.constant dense<0.000000e+00> : vector<8x128xf32>
    %131 = tpu.matmul %129, %130, %cst_45 {dimension_numbers = #tpu.dot_dimension_numbers<[1], [0], [0], [1], [0, 0, 1, 1], [], []>} : vector<8x32xbf16>, vector<32x128xbf16>, vector<8x128xf32> -> vector<8x128xf32>
    %132 = arith.addf %106, %131 : vector<8x128xf32>
    %133 = vector.extract_strided_slice %50 {offsets = [0, 96], sizes = [8, 32], strides = [1, 1]} : vector<8x128xf32> to vector<8x32xf32>
    %134 = arith.truncf %133 : vector<8x32xf32> to vector<8x32xbf16>
    %135 = vector.extract_strided_slice %51 {offsets = [0, 96], sizes = [8, 32], strides = [1, 1]} : vector<8x128xf32> to vector<8x32xf32>
    %136 = arith.truncf %135 : vector<8x32xf32> to vector<8x32xbf16>
    %cst_46 = arith.constant dense<0.000000e+00> : vector<8x8xf32>
    %137 = tpu.matmul %134, %136, %cst_46 {dimension_numbers = #tpu.dot_dimension_numbers<[1], [1], [0], [0], [0, 0, 1, 0], [], []>} : vector<8x32xbf16>, vector<8x32xbf16>, vector<8x8xf32> -> vector<8x8xf32>
    %cst_47 = arith.constant 0.176776692 : f32
    %138 = vector.broadcast %cst_47 : f32 to vector<8x8xf32>
    %139 = arith.mulf %137, %138 : vector<8x8xf32>
    %140 = arith.addf %139, %43 : vector<8x8xf32>
    %cst_48 = arith.constant dense<0xFF800000> : vector<8xf32>
    %141 = vector.multi_reduction <maximumf>, %140, %cst_48 [1] : vector<8x8xf32> to vector<8xf32>
    %142 = vector.shape_cast %141 : vector<8xf32> to vector<8x1xf32>
    %143 = vector.broadcast %142 : vector<8x1xf32> to vector<8x8xf32>
    %144 = arith.subf %140, %143 : vector<8x8xf32>
    %145 = math.exp %144 : vector<8x8xf32>
    %cst_49 = arith.constant dense<0.000000e+00> : vector<8xf32>
    %146 = vector.multi_reduction <add>, %145, %cst_49 [1] : vector<8x8xf32> to vector<8xf32>
    %147 = vector.shape_cast %146 : vector<8xf32> to vector<8x1xf32>
    %148 = tpu.reciprocal %147 {approx = true} : vector<8x1xf32> -> vector<8x1xf32>
    %149 = vector.broadcast %148 : vector<8x1xf32> to vector<8x8xf32>
    %150 = arith.mulf %145, %149 : vector<8x8xf32>
    %151 = arith.truncf %150 : vector<8x8xf32> to vector<8x8xbf16>
    %152 = vector.extract_strided_slice %52 {offsets = [0, 96], sizes = [8, 32], strides = [1, 1]} : vector<8x128xf32> to vector<8x32xf32>
    %153 = arith.truncf %152 : vector<8x32xf32> to vector<8x32xbf16>
    %cst_50 = arith.constant dense<0.000000e+00> : vector<8x32xf32>
    %154 = tpu.matmul %151, %153, %cst_50 {dimension_numbers = #tpu.dot_dimension_numbers<[1], [0], [0], [1], [0, 0, 1, 1], [], []>} : vector<8x8xbf16>, vector<8x32xbf16>, vector<8x32xf32> -> vector<8x32xf32>
    %155 = arith.truncf %154 : vector<8x32xf32> to vector<8x32xbf16>
    %156 = vector.extract_strided_slice %53 {offsets = [96, 0], sizes = [32, 128], strides = [1, 1]} : vector<128x128xbf16> to vector<32x128xbf16>
    %cst_51 = arith.constant dense<0.000000e+00> : vector<8x128xf32>
    %157 = tpu.matmul %155, %156, %cst_51 {dimension_numbers = #tpu.dot_dimension_numbers<[1], [0], [0], [1], [0, 0, 1, 1], [], []>} : vector<8x32xbf16>, vector<32x128xbf16>, vector<8x128xf32> -> vector<8x128xf32>
    %158 = arith.addf %132, %157 : vector<8x128xf32>
    %c0_52 = arith.constant 0 : index
    %c0_53 = arith.constant 0 : index
    %159 = vector.load %arg9[%c0_52, %c0_53] : memref<1x128xf32, #tpu.memory_space<vmem>>, vector<1x128xf32>
    %160 = vector.broadcast %159 : vector<1x128xf32> to vector<8x128xf32>
    %161 = arith.addf %158, %160 : vector<8x128xf32>
    %162 = arith.addf %28, %161 : vector<8x128xf32>
    %c0_54 = arith.constant 0 : index
    %c0_55 = arith.constant 0 : index
    %163 = vector.load %arg10[%c0_54, %c0_55] : memref<1x128xf32, #tpu.memory_space<vmem>>, vector<1x128xf32>
    %c0_56 = arith.constant 0 : index
    %c0_57 = arith.constant 0 : index
    %164 = vector.load %arg11[%c0_56, %c0_57] : memref<1x128xf32, #tpu.memory_space<vmem>>, vector<1x128xf32>
    %cst_58 = arith.constant dense<0.000000e+00> : vector<8xf32>
    %165 = vector.multi_reduction <add>, %162, %cst_58 [1] : vector<8x128xf32> to vector<8xf32>
    %166 = vector.shape_cast %165 : vector<8xf32> to vector<8x1xf32>
    %cst_59 = arith.constant 1.280000e+02 : f32
    %167 = vector.broadcast %cst_59 : f32 to vector<8x1xf32>
    %168 = arith.divf %166, %167 : vector<8x1xf32>
    %169 = vector.broadcast %168 : vector<8x1xf32> to vector<8x128xf32>
    %170 = arith.subf %162, %169 : vector<8x128xf32>
    %171 = arith.mulf %170, %170 : vector<8x128xf32>
    %cst_60 = arith.constant dense<0.000000e+00> : vector<8xf32>
    %172 = vector.multi_reduction <add>, %171, %cst_60 [1] : vector<8x128xf32> to vector<8xf32>
    %173 = vector.shape_cast %172 : vector<8xf32> to vector<8x1xf32>
    %cst_61 = arith.constant 1.280000e+02 : f32
    %174 = vector.broadcast %cst_61 : f32 to vector<8x1xf32>
    %175 = arith.divf %173, %174 : vector<8x1xf32>
    %176 = vector.broadcast %168 : vector<8x1xf32> to vector<8x128xf32>
    %177 = arith.subf %162, %176 : vector<8x128xf32>
    %cst_62 = arith.constant 9.99999996E-13 : f32
    %178 = vector.broadcast %cst_62 : f32 to vector<8x1xf32>
    %179 = arith.addf %175, %178 : vector<8x1xf32>
    %180 = math.rsqrt %179 : vector<8x1xf32>
    %181 = vector.broadcast %180 : vector<8x1xf32> to vector<8x128xf32>
    %182 = arith.mulf %177, %181 : vector<8x128xf32>
    %183 = vector.broadcast %163 : vector<1x128xf32> to vector<8x128xf32>
    %184 = arith.mulf %182, %183 : vector<8x128xf32>
    %185 = vector.broadcast %164 : vector<1x128xf32> to vector<8x128xf32>
    %186 = arith.addf %184, %185 : vector<8x128xf32>
    %c0_63 = arith.constant 0 : index
    %c0_64 = arith.constant 0 : index
    %187 = vector.load %arg12[%c0_63, %c0_64] : memref<128x128xbf16, #tpu.memory_space<vmem>>, vector<128x128xbf16>
    %c0_65 = arith.constant 0 : index
    %c0_66 = arith.constant 0 : index
    %188 = vector.load %arg13[%c0_65, %c0_66] : memref<1x128xf32, #tpu.memory_space<vmem>>, vector<1x128xf32>
    %189 = arith.truncf %186 : vector<8x128xf32> to vector<8x128xbf16>
    %cst_67 = arith.constant dense<0.000000e+00> : vector<8x128xf32>
    %190 = tpu.matmul %189, %187, %cst_67 {dimension_numbers = #tpu.dot_dimension_numbers<[1], [0], [0], [1], [0, 0, 1, 1], [], []>} : vector<8x128xbf16>, vector<128x128xbf16>, vector<8x128xf32> -> vector<8x128xf32>
    %191 = vector.broadcast %188 : vector<1x128xf32> to vector<8x128xf32>
    %192 = arith.addf %190, %191 : vector<8x128xf32>
    %c0_68 = arith.constant 0 : index
    %c0_69 = arith.constant 0 : index
    %193 = vector.load %arg14[%c0_68, %c0_69] : memref<128x256xbf16, #tpu.memory_space<vmem>>, vector<128x256xbf16>
    %cst_70 = arith.constant dense<0.000000e+00> : vector<8x256xf32>
    %194 = tpu.matmul %4, %193, %cst_70 {dimension_numbers = #tpu.dot_dimension_numbers<[1], [0], [0], [1], [0, 0, 1, 1], [], []>} : vector<8x128xbf16>, vector<128x256xbf16>, vector<8x256xf32> -> vector<8x256xf32>
    %c0_71 = arith.constant 0 : index
    %c0_72 = arith.constant 0 : index
    %195 = vector.load %arg15[%c0_71, %c0_72] : memref<1x256xf32, #tpu.memory_space<vmem>>, vector<1x256xf32>
    %196 = vector.broadcast %195 : vector<1x256xf32> to vector<8x256xf32>
    %197 = arith.addf %194, %196 : vector<8x256xf32>
    %198 = vector.extract_strided_slice %197 {offsets = [0, 0], sizes = [8, 128], strides = [1, 1]} : vector<8x256xf32> to vector<8x128xf32>
    %199 = vector.extract_strided_slice %197 {offsets = [0, 128], sizes = [8, 128], strides = [1, 1]} : vector<8x256xf32> to vector<8x128xf32>
    %c0_73 = arith.constant 0 : index
    %c0_74 = arith.constant 0 : index
    %200 = vector.load %arg16[%c0_73, %c0_74] : memref<128x128xbf16, #tpu.memory_space<vmem>>, vector<128x128xbf16>
    %cst_75 = arith.constant 0.000000e+00 : f32
    %201 = vector.broadcast %cst_75 : f32 to vector<8x128xf32>
    %202 = vector.extract_strided_slice %192 {offsets = [0, 0], sizes = [8, 32], strides = [1, 1]} : vector<8x128xf32> to vector<8x32xf32>
    %203 = arith.truncf %202 : vector<8x32xf32> to vector<8x32xbf16>
    %204 = vector.extract_strided_slice %198 {offsets = [0, 0], sizes = [8, 32], strides = [1, 1]} : vector<8x128xf32> to vector<8x32xf32>
    %205 = arith.truncf %204 : vector<8x32xf32> to vector<8x32xbf16>
    %cst_76 = arith.constant dense<0.000000e+00> : vector<8x8xf32>
    %206 = tpu.matmul %203, %205, %cst_76 {dimension_numbers = #tpu.dot_dimension_numbers<[1], [1], [0], [0], [0, 0, 1, 0], [], []>} : vector<8x32xbf16>, vector<8x32xbf16>, vector<8x8xf32> -> vector<8x8xf32>
    %cst_77 = arith.constant 0.176776692 : f32
    %207 = vector.broadcast %cst_77 : f32 to vector<8x8xf32>
    %208 = arith.mulf %206, %207 : vector<8x8xf32>
    %cst_78 = arith.constant dense<0xFF800000> : vector<8xf32>
    %209 = vector.multi_reduction <maximumf>, %208, %cst_78 [1] : vector<8x8xf32> to vector<8xf32>
    %210 = vector.shape_cast %209 : vector<8xf32> to vector<8x1xf32>
    %211 = vector.broadcast %210 : vector<8x1xf32> to vector<8x8xf32>
    %212 = arith.subf %208, %211 : vector<8x8xf32>
    %213 = math.exp %212 : vector<8x8xf32>
    %cst_79 = arith.constant dense<0.000000e+00> : vector<8xf32>
    %214 = vector.multi_reduction <add>, %213, %cst_79 [1] : vector<8x8xf32> to vector<8xf32>
    %215 = vector.shape_cast %214 : vector<8xf32> to vector<8x1xf32>
    %216 = tpu.reciprocal %215 {approx = true} : vector<8x1xf32> -> vector<8x1xf32>
    %217 = vector.broadcast %216 : vector<8x1xf32> to vector<8x8xf32>
    %218 = arith.mulf %213, %217 : vector<8x8xf32>
    %219 = arith.truncf %218 : vector<8x8xf32> to vector<8x8xbf16>
    %220 = vector.extract_strided_slice %199 {offsets = [0, 0], sizes = [8, 32], strides = [1, 1]} : vector<8x128xf32> to vector<8x32xf32>
    %221 = arith.truncf %220 : vector<8x32xf32> to vector<8x32xbf16>
    %cst_80 = arith.constant dense<0.000000e+00> : vector<8x32xf32>
    %222 = tpu.matmul %219, %221, %cst_80 {dimension_numbers = #tpu.dot_dimension_numbers<[1], [0], [0], [1], [0, 0, 1, 1], [], []>} : vector<8x8xbf16>, vector<8x32xbf16>, vector<8x32xf32> -> vector<8x32xf32>
    %223 = arith.truncf %222 : vector<8x32xf32> to vector<8x32xbf16>
    %224 = vector.extract_strided_slice %200 {offsets = [0, 0], sizes = [32, 128], strides = [1, 1]} : vector<128x128xbf16> to vector<32x128xbf16>
    %cst_81 = arith.constant dense<0.000000e+00> : vector<8x128xf32>
    %225 = tpu.matmul %223, %224, %cst_81 {dimension_numbers = #tpu.dot_dimension_numbers<[1], [0], [0], [1], [0, 0, 1, 1], [], []>} : vector<8x32xbf16>, vector<32x128xbf16>, vector<8x128xf32> -> vector<8x128xf32>
    %226 = arith.addf %201, %225 : vector<8x128xf32>
    %227 = vector.extract_strided_slice %192 {offsets = [0, 32], sizes = [8, 32], strides = [1, 1]} : vector<8x128xf32> to vector<8x32xf32>
    %228 = arith.truncf %227 : vector<8x32xf32> to vector<8x32xbf16>
    %229 = vector.extract_strided_slice %198 {offsets = [0, 32], sizes = [8, 32], strides = [1, 1]} : vector<8x128xf32> to vector<8x32xf32>
    %230 = arith.truncf %229 : vector<8x32xf32> to vector<8x32xbf16>
    %cst_82 = arith.constant dense<0.000000e+00> : vector<8x8xf32>
    %231 = tpu.matmul %228, %230, %cst_82 {dimension_numbers = #tpu.dot_dimension_numbers<[1], [1], [0], [0], [0, 0, 1, 0], [], []>} : vector<8x32xbf16>, vector<8x32xbf16>, vector<8x8xf32> -> vector<8x8xf32>
    %cst_83 = arith.constant 0.176776692 : f32
    %232 = vector.broadcast %cst_83 : f32 to vector<8x8xf32>
    %233 = arith.mulf %231, %232 : vector<8x8xf32>
    %cst_84 = arith.constant dense<0xFF800000> : vector<8xf32>
    %234 = vector.multi_reduction <maximumf>, %233, %cst_84 [1] : vector<8x8xf32> to vector<8xf32>
    %235 = vector.shape_cast %234 : vector<8xf32> to vector<8x1xf32>
    %236 = vector.broadcast %235 : vector<8x1xf32> to vector<8x8xf32>
    %237 = arith.subf %233, %236 : vector<8x8xf32>
    %238 = math.exp %237 : vector<8x8xf32>
    %cst_85 = arith.constant dense<0.000000e+00> : vector<8xf32>
    %239 = vector.multi_reduction <add>, %238, %cst_85 [1] : vector<8x8xf32> to vector<8xf32>
    %240 = vector.shape_cast %239 : vector<8xf32> to vector<8x1xf32>
    %241 = tpu.reciprocal %240 {approx = true} : vector<8x1xf32> -> vector<8x1xf32>
    %242 = vector.broadcast %241 : vector<8x1xf32> to vector<8x8xf32>
    %243 = arith.mulf %238, %242 : vector<8x8xf32>
    %244 = arith.truncf %243 : vector<8x8xf32> to vector<8x8xbf16>
    %245 = vector.extract_strided_slice %199 {offsets = [0, 32], sizes = [8, 32], strides = [1, 1]} : vector<8x128xf32> to vector<8x32xf32>
    %246 = arith.truncf %245 : vector<8x32xf32> to vector<8x32xbf16>
    %cst_86 = arith.constant dense<0.000000e+00> : vector<8x32xf32>
    %247 = tpu.matmul %244, %246, %cst_86 {dimension_numbers = #tpu.dot_dimension_numbers<[1], [0], [0], [1], [0, 0, 1, 1], [], []>} : vector<8x8xbf16>, vector<8x32xbf16>, vector<8x32xf32> -> vector<8x32xf32>
    %248 = arith.truncf %247 : vector<8x32xf32> to vector<8x32xbf16>
    %249 = vector.extract_strided_slice %200 {offsets = [32, 0], sizes = [32, 128], strides = [1, 1]} : vector<128x128xbf16> to vector<32x128xbf16>
    %cst_87 = arith.constant dense<0.000000e+00> : vector<8x128xf32>
    %250 = tpu.matmul %248, %249, %cst_87 {dimension_numbers = #tpu.dot_dimension_numbers<[1], [0], [0], [1], [0, 0, 1, 1], [], []>} : vector<8x32xbf16>, vector<32x128xbf16>, vector<8x128xf32> -> vector<8x128xf32>
    %251 = arith.addf %226, %250 : vector<8x128xf32>
    %252 = vector.extract_strided_slice %192 {offsets = [0, 64], sizes = [8, 32], strides = [1, 1]} : vector<8x128xf32> to vector<8x32xf32>
    %253 = arith.truncf %252 : vector<8x32xf32> to vector<8x32xbf16>
    %254 = vector.extract_strided_slice %198 {offsets = [0, 64], sizes = [8, 32], strides = [1, 1]} : vector<8x128xf32> to vector<8x32xf32>
    %255 = arith.truncf %254 : vector<8x32xf32> to vector<8x32xbf16>
    %cst_88 = arith.constant dense<0.000000e+00> : vector<8x8xf32>
    %256 = tpu.matmul %253, %255, %cst_88 {dimension_numbers = #tpu.dot_dimension_numbers<[1], [1], [0], [0], [0, 0, 1, 0], [], []>} : vector<8x32xbf16>, vector<8x32xbf16>, vector<8x8xf32> -> vector<8x8xf32>
    %cst_89 = arith.constant 0.176776692 : f32
    %257 = vector.broadcast %cst_89 : f32 to vector<8x8xf32>
    %258 = arith.mulf %256, %257 : vector<8x8xf32>
    %cst_90 = arith.constant dense<0xFF800000> : vector<8xf32>
    %259 = vector.multi_reduction <maximumf>, %258, %cst_90 [1] : vector<8x8xf32> to vector<8xf32>
    %260 = vector.shape_cast %259 : vector<8xf32> to vector<8x1xf32>
    %261 = vector.broadcast %260 : vector<8x1xf32> to vector<8x8xf32>
    %262 = arith.subf %258, %261 : vector<8x8xf32>
    %263 = math.exp %262 : vector<8x8xf32>
    %cst_91 = arith.constant dense<0.000000e+00> : vector<8xf32>
    %264 = vector.multi_reduction <add>, %263, %cst_91 [1] : vector<8x8xf32> to vector<8xf32>
    %265 = vector.shape_cast %264 : vector<8xf32> to vector<8x1xf32>
    %266 = tpu.reciprocal %265 {approx = true} : vector<8x1xf32> -> vector<8x1xf32>
    %267 = vector.broadcast %266 : vector<8x1xf32> to vector<8x8xf32>
    %268 = arith.mulf %263, %267 : vector<8x8xf32>
    %269 = arith.truncf %268 : vector<8x8xf32> to vector<8x8xbf16>
    %270 = vector.extract_strided_slice %199 {offsets = [0, 64], sizes = [8, 32], strides = [1, 1]} : vector<8x128xf32> to vector<8x32xf32>
    %271 = arith.truncf %270 : vector<8x32xf32> to vector<8x32xbf16>
    %cst_92 = arith.constant dense<0.000000e+00> : vector<8x32xf32>
    %272 = tpu.matmul %269, %271, %cst_92 {dimension_numbers = #tpu.dot_dimension_numbers<[1], [0], [0], [1], [0, 0, 1, 1], [], []>} : vector<8x8xbf16>, vector<8x32xbf16>, vector<8x32xf32> -> vector<8x32xf32>
    %273 = arith.truncf %272 : vector<8x32xf32> to vector<8x32xbf16>
    %274 = vector.extract_strided_slice %200 {offsets = [64, 0], sizes = [32, 128], strides = [1, 1]} : vector<128x128xbf16> to vector<32x128xbf16>
    %cst_93 = arith.constant dense<0.000000e+00> : vector<8x128xf32>
    %275 = tpu.matmul %273, %274, %cst_93 {dimension_numbers = #tpu.dot_dimension_numbers<[1], [0], [0], [1], [0, 0, 1, 1], [], []>} : vector<8x32xbf16>, vector<32x128xbf16>, vector<8x128xf32> -> vector<8x128xf32>
    %276 = arith.addf %251, %275 : vector<8x128xf32>
    %277 = vector.extract_strided_slice %192 {offsets = [0, 96], sizes = [8, 32], strides = [1, 1]} : vector<8x128xf32> to vector<8x32xf32>
    %278 = arith.truncf %277 : vector<8x32xf32> to vector<8x32xbf16>
    %279 = vector.extract_strided_slice %198 {offsets = [0, 96], sizes = [8, 32], strides = [1, 1]} : vector<8x128xf32> to vector<8x32xf32>
    %280 = arith.truncf %279 : vector<8x32xf32> to vector<8x32xbf16>
    %cst_94 = arith.constant dense<0.000000e+00> : vector<8x8xf32>
    %281 = tpu.matmul %278, %280, %cst_94 {dimension_numbers = #tpu.dot_dimension_numbers<[1], [1], [0], [0], [0, 0, 1, 0], [], []>} : vector<8x32xbf16>, vector<8x32xbf16>, vector<8x8xf32> -> vector<8x8xf32>
    %cst_95 = arith.constant 0.176776692 : f32
    %282 = vector.broadcast %cst_95 : f32 to vector<8x8xf32>
    %283 = arith.mulf %281, %282 : vector<8x8xf32>
    %cst_96 = arith.constant dense<0xFF800000> : vector<8xf32>
    %284 = vector.multi_reduction <maximumf>, %283, %cst_96 [1] : vector<8x8xf32> to vector<8xf32>
    %285 = vector.shape_cast %284 : vector<8xf32> to vector<8x1xf32>
    %286 = vector.broadcast %285 : vector<8x1xf32> to vector<8x8xf32>
    %287 = arith.subf %283, %286 : vector<8x8xf32>
    %288 = math.exp %287 : vector<8x8xf32>
    %cst_97 = arith.constant dense<0.000000e+00> : vector<8xf32>
    %289 = vector.multi_reduction <add>, %288, %cst_97 [1] : vector<8x8xf32> to vector<8xf32>
    %290 = vector.shape_cast %289 : vector<8xf32> to vector<8x1xf32>
    %291 = tpu.reciprocal %290 {approx = true} : vector<8x1xf32> -> vector<8x1xf32>
    %292 = vector.broadcast %291 : vector<8x1xf32> to vector<8x8xf32>
    %293 = arith.mulf %288, %292 : vector<8x8xf32>
    %294 = arith.truncf %293 : vector<8x8xf32> to vector<8x8xbf16>
    %295 = vector.extract_strided_slice %199 {offsets = [0, 96], sizes = [8, 32], strides = [1, 1]} : vector<8x128xf32> to vector<8x32xf32>
    %296 = arith.truncf %295 : vector<8x32xf32> to vector<8x32xbf16>
    %cst_98 = arith.constant dense<0.000000e+00> : vector<8x32xf32>
    %297 = tpu.matmul %294, %296, %cst_98 {dimension_numbers = #tpu.dot_dimension_numbers<[1], [0], [0], [1], [0, 0, 1, 1], [], []>} : vector<8x8xbf16>, vector<8x32xbf16>, vector<8x32xf32> -> vector<8x32xf32>
    %298 = arith.truncf %297 : vector<8x32xf32> to vector<8x32xbf16>
    %299 = vector.extract_strided_slice %200 {offsets = [96, 0], sizes = [32, 128], strides = [1, 1]} : vector<128x128xbf16> to vector<32x128xbf16>
    %cst_99 = arith.constant dense<0.000000e+00> : vector<8x128xf32>
    %300 = tpu.matmul %298, %299, %cst_99 {dimension_numbers = #tpu.dot_dimension_numbers<[1], [0], [0], [1], [0, 0, 1, 1], [], []>} : vector<8x32xbf16>, vector<32x128xbf16>, vector<8x128xf32> -> vector<8x128xf32>
    %301 = arith.addf %276, %300 : vector<8x128xf32>
    %c0_100 = arith.constant 0 : index
    %c0_101 = arith.constant 0 : index
    %302 = vector.load %arg17[%c0_100, %c0_101] : memref<1x128xf32, #tpu.memory_space<vmem>>, vector<1x128xf32>
    %303 = vector.broadcast %302 : vector<1x128xf32> to vector<8x128xf32>
    %304 = arith.addf %301, %303 : vector<8x128xf32>
    %305 = arith.addf %186, %304 : vector<8x128xf32>
    %c0_102 = arith.constant 0 : index
    %c0_103 = arith.constant 0 : index
    %306 = vector.load %arg18[%c0_102, %c0_103] : memref<1x128xf32, #tpu.memory_space<vmem>>, vector<1x128xf32>
    %c0_104 = arith.constant 0 : index
    %c0_105 = arith.constant 0 : index
    %307 = vector.load %arg19[%c0_104, %c0_105] : memref<1x128xf32, #tpu.memory_space<vmem>>, vector<1x128xf32>
    %cst_106 = arith.constant dense<0.000000e+00> : vector<8xf32>
    %308 = vector.multi_reduction <add>, %305, %cst_106 [1] : vector<8x128xf32> to vector<8xf32>
    %309 = vector.shape_cast %308 : vector<8xf32> to vector<8x1xf32>
    %cst_107 = arith.constant 1.280000e+02 : f32
    %310 = vector.broadcast %cst_107 : f32 to vector<8x1xf32>
    %311 = arith.divf %309, %310 : vector<8x1xf32>
    %312 = vector.broadcast %311 : vector<8x1xf32> to vector<8x128xf32>
    %313 = arith.subf %305, %312 : vector<8x128xf32>
    %314 = arith.mulf %313, %313 : vector<8x128xf32>
    %cst_108 = arith.constant dense<0.000000e+00> : vector<8xf32>
    %315 = vector.multi_reduction <add>, %314, %cst_108 [1] : vector<8x128xf32> to vector<8xf32>
    %316 = vector.shape_cast %315 : vector<8xf32> to vector<8x1xf32>
    %cst_109 = arith.constant 1.280000e+02 : f32
    %317 = vector.broadcast %cst_109 : f32 to vector<8x1xf32>
    %318 = arith.divf %316, %317 : vector<8x1xf32>
    %319 = vector.broadcast %311 : vector<8x1xf32> to vector<8x128xf32>
    %320 = arith.subf %305, %319 : vector<8x128xf32>
    %cst_110 = arith.constant 9.99999996E-13 : f32
    %321 = vector.broadcast %cst_110 : f32 to vector<8x1xf32>
    %322 = arith.addf %318, %321 : vector<8x1xf32>
    %323 = math.rsqrt %322 : vector<8x1xf32>
    %324 = vector.broadcast %323 : vector<8x1xf32> to vector<8x128xf32>
    %325 = arith.mulf %320, %324 : vector<8x128xf32>
    %326 = vector.broadcast %306 : vector<1x128xf32> to vector<8x128xf32>
    %327 = arith.mulf %325, %326 : vector<8x128xf32>
    %328 = vector.broadcast %307 : vector<1x128xf32> to vector<8x128xf32>
    %329 = arith.addf %327, %328 : vector<8x128xf32>
    %c0_111 = arith.constant 0 : index
    %c0_112 = arith.constant 0 : index
    %330 = vector.load %arg20[%c0_111, %c0_112] : memref<128x256xbf16, #tpu.memory_space<vmem>>, vector<128x256xbf16>
    %c0_113 = arith.constant 0 : index
    %c0_114 = arith.constant 0 : index
    %331 = vector.load %arg21[%c0_113, %c0_114] : memref<1x256xf32, #tpu.memory_space<vmem>>, vector<1x256xf32>
    %332 = arith.truncf %329 : vector<8x128xf32> to vector<8x128xbf16>
    %cst_115 = arith.constant dense<0.000000e+00> : vector<8x256xf32>
    %333 = tpu.matmul %332, %330, %cst_115 {dimension_numbers = #tpu.dot_dimension_numbers<[1], [0], [0], [1], [0, 0, 1, 1], [], []>} : vector<8x128xbf16>, vector<128x256xbf16>, vector<8x256xf32> -> vector<8x256xf32>
    %334 = vector.broadcast %331 : vector<1x256xf32> to vector<8x256xf32>
    %335 = arith.addf %333, %334 : vector<8x256xf32>
    %cst_116 = arith.constant 5.000000e-01 : f32
    %336 = vector.broadcast %cst_116 : f32 to vector<8x256xf32>
    %337 = arith.mulf %336, %335 : vector<8x256xf32>
    %cst_117 = arith.constant 4.471500e-02 : f32
    %338 = vector.broadcast %cst_117 : f32 to vector<8x256xf32>
    %339 = arith.mulf %338, %335 : vector<8x256xf32>
    %340 = arith.mulf %339, %335 : vector<8x256xf32>
    %341 = arith.mulf %340, %335 : vector<8x256xf32>
    %342 = arith.addf %335, %341 : vector<8x256xf32>
    %cst_118 = arith.constant 0.797884583 : f32
    %343 = vector.broadcast %cst_118 : f32 to vector<8x256xf32>
    %344 = arith.mulf %343, %342 : vector<8x256xf32>
    %345 = math.tanh %344 : vector<8x256xf32>
    %cst_119 = arith.constant 1.000000e+00 : f32
    %346 = vector.broadcast %cst_119 : f32 to vector<8x256xf32>
    %347 = arith.addf %346, %345 : vector<8x256xf32>
    %348 = arith.mulf %337, %347 : vector<8x256xf32>
    %c0_120 = arith.constant 0 : index
    %c0_121 = arith.constant 0 : index
    %349 = vector.load %arg22[%c0_120, %c0_121] : memref<256x128xbf16, #tpu.memory_space<vmem>>, vector<256x128xbf16>
    %c0_122 = arith.constant 0 : index
    %c0_123 = arith.constant 0 : index
    %350 = vector.load %arg23[%c0_122, %c0_123] : memref<1x128xf32, #tpu.memory_space<vmem>>, vector<1x128xf32>
    %351 = arith.truncf %348 : vector<8x256xf32> to vector<8x256xbf16>
    %cst_124 = arith.constant dense<0.000000e+00> : vector<8x128xf32>
    %352 = tpu.matmul %351, %349, %cst_124 {dimension_numbers = #tpu.dot_dimension_numbers<[1], [0], [0], [1], [0, 0, 1, 1], [], []>} : vector<8x256xbf16>, vector<256x128xbf16>, vector<8x128xf32> -> vector<8x128xf32>
    %353 = vector.broadcast %350 : vector<1x128xf32> to vector<8x128xf32>
    %354 = arith.addf %352, %353 : vector<8x128xf32>
    %355 = arith.addf %329, %354 : vector<8x128xf32>
    %c0_125 = arith.constant 0 : index
    %c0_126 = arith.constant 0 : index
    %356 = vector.load %arg24[%c0_125, %c0_126] : memref<1x128xf32, #tpu.memory_space<vmem>>, vector<1x128xf32>
    %c0_127 = arith.constant 0 : index
    %c0_128 = arith.constant 0 : index
    %357 = vector.load %arg25[%c0_127, %c0_128] : memref<1x128xf32, #tpu.memory_space<vmem>>, vector<1x128xf32>
    %cst_129 = arith.constant dense<0.000000e+00> : vector<8xf32>
    %358 = vector.multi_reduction <add>, %355, %cst_129 [1] : vector<8x128xf32> to vector<8xf32>
    %359 = vector.shape_cast %358 : vector<8xf32> to vector<8x1xf32>
    %cst_130 = arith.constant 1.280000e+02 : f32
    %360 = vector.broadcast %cst_130 : f32 to vector<8x1xf32>
    %361 = arith.divf %359, %360 : vector<8x1xf32>
    %362 = vector.broadcast %361 : vector<8x1xf32> to vector<8x128xf32>
    %363 = arith.subf %355, %362 : vector<8x128xf32>
    %364 = arith.mulf %363, %363 : vector<8x128xf32>
    %cst_131 = arith.constant dense<0.000000e+00> : vector<8xf32>
    %365 = vector.multi_reduction <add>, %364, %cst_131 [1] : vector<8x128xf32> to vector<8xf32>
    %366 = vector.shape_cast %365 : vector<8xf32> to vector<8x1xf32>
    %cst_132 = arith.constant 1.280000e+02 : f32
    %367 = vector.broadcast %cst_132 : f32 to vector<8x1xf32>
    %368 = arith.divf %366, %367 : vector<8x1xf32>
    %369 = vector.broadcast %361 : vector<8x1xf32> to vector<8x128xf32>
    %370 = arith.subf %355, %369 : vector<8x128xf32>
    %cst_133 = arith.constant 9.99999996E-13 : f32
    %371 = vector.broadcast %cst_133 : f32 to vector<8x1xf32>
    %372 = arith.addf %368, %371 : vector<8x1xf32>
    %373 = math.rsqrt %372 : vector<8x1xf32>
    %374 = vector.broadcast %373 : vector<8x1xf32> to vector<8x128xf32>
    %375 = arith.mulf %370, %374 : vector<8x128xf32>
    %376 = vector.broadcast %356 : vector<1x128xf32> to vector<8x128xf32>
    %377 = arith.mulf %375, %376 : vector<8x128xf32>
    %378 = vector.broadcast %357 : vector<1x128xf32> to vector<8x128xf32>
    %379 = arith.addf %377, %378 : vector<8x128xf32>
    %380 = arith.truncf %379 : vector<8x128xf32> to vector<8x128xbf16>
    %c0_134 = arith.constant 0 : index
    %c0_135 = arith.constant 0 : index
    %c0_136 = arith.constant 0 : index
    %381 = vector.load %arg26[%c0_134, %c0_135, %c0_136] : memref<1x8x128xbf16, #tpu.memory_space<vmem>>, vector<1x8x128xbf16>
    %382 = vector.shape_cast %381 : vector<1x8x128xbf16> to vector<8x128xbf16>
    %383 = vector.shape_cast %380 : vector<8x128xbf16> to vector<1x8x128xbf16>
    tpu.vector_store %arg26[%c0_134, %c0_135, %c0_136], %383 {strides = array<i32>} : memref<1x8x128xbf16, #tpu.memory_space<vmem>>, vector<1x8x128xbf16>,
    return
  }
  func.func @transform_0(%arg0: i32) -> (i32, i32, i32) {
    %c0_i32 = arith.constant 0 : i32
    %c0_i32_0 = arith.constant 0 : i32
    %c0_i32_1 = arith.constant 0 : i32
    return %arg0, %c0_i32, %c0_i32_0 : i32, i32, i32
  }
  func.func @transform_1(%arg0: i32) -> (i32, i32, i32) {
    %c0_i32 = arith.constant 0 : i32
    %c0_i32_0 = arith.constant 0 : i32
    %c0_i32_1 = arith.constant 0 : i32
    return %arg0, %c0_i32, %c0_i32_0 : i32, i32, i32
  }
  func.func @transform_2(%arg0: i32) -> (i32, i32, i32) {
    %c0_i32 = arith.constant 0 : i32
    %c0_i32_0 = arith.constant 0 : i32
    %c0_i32_1 = arith.constant 0 : i32
    return %arg0, %c0_i32, %c0_i32_0 : i32, i32, i32
  }
  func.func @transform_3(%arg0: i32) -> (i32, i32) {
    %c0_i32 = arith.constant 0 : i32
    %c0_i32_0 = arith.constant 0 : i32
    %c0_i32_1 = arith.constant 0 : i32
    return %c0_i32, %c0_i32_0 : i32, i32
  }
  func.func @transform_4(%arg0: i32) -> (i32, i32) {
    %c0_i32 = arith.constant 0 : i32
    %c0_i32_0 = arith.constant 0 : i32
    %c0_i32_1 = arith.constant 0 : i32
    return %c0_i32, %c0_i32_0 : i32, i32
  }
  func.func @transform_5(%arg0: i32) -> (i32, i32) {
    %c0_i32 = arith.constant 0 : i32
    %c0_i32_0 = arith.constant 0 : i32
    %c0_i32_1 = arith.constant 0 : i32
    return %c0_i32, %c0_i32_0 : i32, i32
  }
  func.func @transform_6(%arg0: i32) -> (i32, i32) {
    %c0_i32 = arith.constant 0 : i32
    %c0_i32_0 = arith.constant 0 : i32
    %c0_i32_1 = arith.constant 0 : i32
    return %c0_i32, %c0_i32_0 : i32, i32
  }
  func.func @transform_7(%arg0: i32) -> (i32, i32) {
    %c0_i32 = arith.constant 0 : i32
    %c0_i32_0 = arith.constant 0 : i32
    %c0_i32_1 = arith.constant 0 : i32
    return %c0_i32, %c0_i32_0 : i32, i32
  }
  func.func @transform_8(%arg0: i32) -> (i32, i32) {
    %c0_i32 = arith.constant 0 : i32
    %c0_i32_0 = arith.constant 0 : i32
    %c0_i32_1 = arith.constant 0 : i32
    return %c0_i32, %c0_i32_0 : i32, i32
  }
  func.func @transform_9(%arg0: i32) -> (i32, i32) {
    %c0_i32 = arith.constant 0 : i32
    %c0_i32_0 = arith.constant 0 : i32
    %c0_i32_1 = arith.constant 0 : i32
    return %c0_i32, %c0_i32_0 : i32, i32
  }
  func.func @transform_10(%arg0: i32) -> (i32, i32) {
    %c0_i32 = arith.constant 0 : i32
    %c0_i32_0 = arith.constant 0 : i32
    %c0_i32_1 = arith.constant 0 : i32
    return %c0_i32, %c0_i32_0 : i32, i32
  }
  func.func @transform_11(%arg0: i32) -> (i32, i32) {
    %c0_i32 = arith.constant 0 : i32
    %c0_i32_0 = arith.constant 0 : i32
    %c0_i32_1 = arith.constant 0 : i32
    return %c0_i32, %c0_i32_0 : i32, i32
  }
  func.func @transform_12(%arg0: i32) -> (i32, i32) {
    %c0_i32 = arith.constant 0 : i32
    %c0_i32_0 = arith.constant 0 : i32
    %c0_i32_1 = arith.constant 0 : i32
    return %c0_i32, %c0_i32_0 : i32, i32
  }
  func.func @transform_13(%arg0: i32) -> (i32, i32) {
    %c0_i32 = arith.constant 0 : i32
    %c0_i32_0 = arith.constant 0 : i32
    %c0_i32_1 = arith.constant 0 : i32
    return %c0_i32, %c0_i32_0 : i32, i32
  }
  func.func @transform_14(%arg0: i32) -> (i32, i32) {
    %c0_i32 = arith.constant 0 : i32
    %c0_i32_0 = arith.constant 0 : i32
    %c0_i32_1 = arith.constant 0 : i32
    return %c0_i32, %c0_i32_0 : i32, i32
  }
  func.func @transform_15(%arg0: i32) -> (i32, i32) {
    %c0_i32 = arith.constant 0 : i32
    %c0_i32_0 = arith.constant 0 : i32
    %c0_i32_1 = arith.constant 0 : i32
    return %c0_i32, %c0_i32_0 : i32, i32
  }
  func.func @transform_16(%arg0: i32) -> (i32, i32) {
    %c0_i32 = arith.constant 0 : i32
    %c0_i32_0 = arith.constant 0 : i32
    %c0_i32_1 = arith.constant 0 : i32
    return %c0_i32, %c0_i32_0 : i32, i32
  }
  func.func @transform_17(%arg0: i32) -> (i32, i32) {
    %c0_i32 = arith.constant 0 : i32
    %c0_i32_0 = arith.constant 0 : i32
    %c0_i32_1 = arith.constant 0 : i32
    return %c0_i32, %c0_i32_0 : i32, i32
  }
  func.func @transform_18(%arg0: i32) -> (i32, i32) {
    %c0_i32 = arith.constant 0 : i32
    %c0_i32_0 = arith.constant 0 : i32
    %c0_i32_1 = arith.constant 0 : i32
    return %c0_i32, %c0_i32_0 : i32, i32
  }
  func.func @transform_19(%arg0: i32) -> (i32, i32) {
    %c0_i32 = arith.constant 0 : i32
    %c0_i32_0 = arith.constant 0 : i32
    %c0_i32_1 = arith.constant 0 : i32
    return %c0_i32, %c0_i32_0 : i32, i32
  }
  func.func @transform_20(%arg0: i32) -> (i32, i32) {
    %c0_i32 = arith.constant 0 : i32
    %c0_i32_0 = arith.constant 0 : i32
    %c0_i32_1 = arith.constant 0 : i32
    return %c0_i32, %c0_i32_0 : i32, i32
  }
  func.func @transform_21(%arg0: i32) -> (i32, i32) {
    %c0_i32 = arith.constant 0 : i32
    %c0_i32_0 = arith.constant 0 : i32
    %c0_i32_1 = arith.constant 0 : i32
    return %c0_i32, %c0_i32_0 : i32, i32
  }
  func.func @transform_22(%arg0: i32) -> (i32, i32) {
    %c0_i32 = arith.constant 0 : i32
    %c0_i32_0 = arith.constant 0 : i32
    %c0_i32_1 = arith.constant 0 : i32
    return %c0_i32, %c0_i32_0 : i32, i32
  }
  func.func @transform_23(%arg0: i32) -> (i32, i32) {
    %c0_i32 = arith.constant 0 : i32
    %c0_i32_0 = arith.constant 0 : i32
    %c0_i32_1 = arith.constant 0 : i32
    return %c0_i32, %c0_i32_0 : i32, i32
  }
  func.func @transform_24(%arg0: i32) -> (i32, i32) {
    %c0_i32 = arith.constant 0 : i32
    %c0_i32_0 = arith.constant 0 : i32
    %c0_i32_1 = arith.constant 0 : i32
    return %c0_i32, %c0_i32_0 : i32, i32
  }
  func.func @transform_25(%arg0: i32) -> (i32, i32, i32) {
    %c0_i32 = arith.constant 0 : i32
    %c0_i32_0 = arith.constant 0 : i32
    %c0_i32_1 = arith.constant 0 : i32
    return %arg0, %c0_i32, %c0_i32_0 : i32, i32, i32
  }
}

module attributes {stable_mosaic.version = 11 : i64} {
  func.func @_lm_head_kernel(%arg0: i32, %arg1: memref<16x1xi32, #tpu.memory_space<vmem>>, %arg2: memref<16x128xbf16, #tpu.memory_space<vmem>>, %arg3: memref<128x128xbf16, #tpu.memory_space<vmem>>, %arg4: memref<1x128xf32, #tpu.memory_space<vmem>>, %arg5: memref<1x128xf32, #tpu.memory_space<vmem>>, %arg6: memref<1x128xf32, #tpu.memory_space<vmem>>, %arg7: memref<128x512xbf16, #tpu.memory_space<vmem>>, %arg8: memref<1x512xf32, #tpu.memory_space<vmem>>, %arg9: memref<16x512xf32, #tpu.memory_space<vmem>>, %arg10: memref<1x1xf32, #tpu.memory_space<vmem>>, %arg11: memref<16x128xbf16, #tpu.memory_space<vmem>>, %arg12: memref<16x1xf32, #tpu.memory_space<vmem>>, %arg13: memref<16x1xf32, #tpu.memory_space<vmem>>, %arg14: memref<16x1xf32, #tpu.memory_space<vmem>>) attributes {dimension_semantics = [#tpu.dimension_semantics<arbitrary>], iteration_bounds = array<i64: 1>, scalar_prefetch = 0 : i64, scratch_operands = 4 : i64, tpu.core_type = #tpu.core_type<tc>, window_params = [{pipeline_mode = #tpu.pipeline_mode<synchronous>, transform_indices = @transform_0, window_bounds = array<i64: 16, 1>}, {pipeline_mode = #tpu.pipeline_mode<synchronous>, transform_indices = @transform_1, window_bounds = array<i64: 16, 128>}, {pipeline_mode = #tpu.pipeline_mode<synchronous>, transform_indices = @transform_2, window_bounds = array<i64: 128, 128>}, {pipeline_mode = #tpu.pipeline_mode<synchronous>, transform_indices = @transform_3, window_bounds = array<i64: 1, 128>}, {pipeline_mode = #tpu.pipeline_mode<synchronous>, transform_indices = @transform_4, window_bounds = array<i64: 1, 128>}, {pipeline_mode = #tpu.pipeline_mode<synchronous>, transform_indices = @transform_5, window_bounds = array<i64: 1, 128>}, {transform_indices = @transform_6, window_bounds = array<i64: 128, 512>}, {transform_indices = @transform_7, window_bounds = array<i64: 1, 512>}, {transform_indices = @transform_8, window_bounds = array<i64: 16, 512>}, {pipeline_mode = #tpu.pipeline_mode<synchronous>, transform_indices = @transform_9, window_bounds = array<i64: 1, 1>}]} {
    %c0_i32 = arith.constant 0 : i32
    %0 = arith.cmpi eq, %arg0, %c0_i32 : i32
    %1 = arith.extui %0 : i1 to i32
    %c0_i32_0 = arith.constant 0 : i32
    %2 = arith.cmpi ne, %1, %c0_i32_0 : i32
    scf.if %2 {
      %c0_28 = arith.constant 0 : index
      %c0_29 = arith.constant 0 : index
      %43 = vector.load %arg2[%c0_28, %c0_29] : memref<16x128xbf16, #tpu.memory_space<vmem>>, vector<16x128xbf16>
      %c0_30 = arith.constant 0 : index
      %c0_31 = arith.constant 0 : index
      %44 = vector.load %arg3[%c0_30, %c0_31] : memref<128x128xbf16, #tpu.memory_space<vmem>>, vector<128x128xbf16>
      %cst_32 = arith.constant dense<0.000000e+00> : vector<16x128xf32>
      %45 = tpu.matmul %43, %44, %cst_32 {dimension_numbers = #tpu.dot_dimension_numbers<[1], [0], [0], [1], [0, 0, 1, 1], [], []>} : vector<16x128xbf16>, vector<128x128xbf16>, vector<16x128xf32> -> vector<16x128xf32>
      %c0_33 = arith.constant 0 : index
      %c0_34 = arith.constant 0 : index
      %46 = vector.load %arg4[%c0_33, %c0_34] : memref<1x128xf32, #tpu.memory_space<vmem>>, vector<1x128xf32>
      %47 = vector.broadcast %46 : vector<1x128xf32> to vector<16x128xf32>
      %48 = arith.addf %45, %47 : vector<16x128xf32>
      %cst_35 = arith.constant 5.000000e-01 : f32
      %49 = vector.broadcast %cst_35 : f32 to vector<16x128xf32>
      %50 = arith.mulf %49, %48 : vector<16x128xf32>
      %cst_36 = arith.constant 4.471500e-02 : f32
      %51 = vector.broadcast %cst_36 : f32 to vector<16x128xf32>
      %52 = arith.mulf %51, %48 : vector<16x128xf32>
      %53 = arith.mulf %52, %48 : vector<16x128xf32>
      %54 = arith.mulf %53, %48 : vector<16x128xf32>
      %55 = arith.addf %48, %54 : vector<16x128xf32>
      %cst_37 = arith.constant 0.797884583 : f32
      %56 = vector.broadcast %cst_37 : f32 to vector<16x128xf32>
      %57 = arith.mulf %56, %55 : vector<16x128xf32>
      %58 = math.tanh %57 : vector<16x128xf32>
      %cst_38 = arith.constant 1.000000e+00 : f32
      %59 = vector.broadcast %cst_38 : f32 to vector<16x128xf32>
      %60 = arith.addf %59, %58 : vector<16x128xf32>
      %61 = arith.mulf %50, %60 : vector<16x128xf32>
      %c0_39 = arith.constant 0 : index
      %c0_40 = arith.constant 0 : index
      %62 = vector.load %arg5[%c0_39, %c0_40] : memref<1x128xf32, #tpu.memory_space<vmem>>, vector<1x128xf32>
      %c0_41 = arith.constant 0 : index
      %c0_42 = arith.constant 0 : index
      %63 = vector.load %arg6[%c0_41, %c0_42] : memref<1x128xf32, #tpu.memory_space<vmem>>, vector<1x128xf32>
      %cst_43 = arith.constant dense<0.000000e+00> : vector<16xf32>
      %64 = vector.multi_reduction <add>, %61, %cst_43 [1] : vector<16x128xf32> to vector<16xf32>
      %65 = vector.shape_cast %64 : vector<16xf32> to vector<16x1xf32>
      %cst_44 = arith.constant 1.280000e+02 : f32
      %66 = vector.broadcast %cst_44 : f32 to vector<16x1xf32>
      %67 = arith.divf %65, %66 : vector<16x1xf32>
      %68 = vector.broadcast %67 : vector<16x1xf32> to vector<16x128xf32>
      %69 = arith.subf %61, %68 : vector<16x128xf32>
      %70 = arith.mulf %69, %69 : vector<16x128xf32>
      %cst_45 = arith.constant dense<0.000000e+00> : vector<16xf32>
      %71 = vector.multi_reduction <add>, %70, %cst_45 [1] : vector<16x128xf32> to vector<16xf32>
      %72 = vector.shape_cast %71 : vector<16xf32> to vector<16x1xf32>
      %cst_46 = arith.constant 1.280000e+02 : f32
      %73 = vector.broadcast %cst_46 : f32 to vector<16x1xf32>
      %74 = arith.divf %72, %73 : vector<16x1xf32>
      %75 = vector.broadcast %67 : vector<16x1xf32> to vector<16x128xf32>
      %76 = arith.subf %61, %75 : vector<16x128xf32>
      %cst_47 = arith.constant 9.99999996E-13 : f32
      %77 = vector.broadcast %cst_47 : f32 to vector<16x1xf32>
      %78 = arith.addf %74, %77 : vector<16x1xf32>
      %79 = math.rsqrt %78 : vector<16x1xf32>
      %80 = vector.broadcast %79 : vector<16x1xf32> to vector<16x128xf32>
      %81 = arith.mulf %76, %80 : vector<16x128xf32>
      %82 = vector.broadcast %62 : vector<1x128xf32> to vector<16x128xf32>
      %83 = arith.mulf %81, %82 : vector<16x128xf32>
      %84 = vector.broadcast %63 : vector<1x128xf32> to vector<16x128xf32>
      %85 = arith.addf %83, %84 : vector<16x128xf32>
      %86 = arith.truncf %85 : vector<16x128xf32> to vector<16x128xbf16>
      %c0_48 = arith.constant 0 : index
      %c0_49 = arith.constant 0 : index
      %87 = vector.load %arg11[%c0_48, %c0_49] : memref<16x128xbf16, #tpu.memory_space<vmem>>, vector<16x128xbf16>
      tpu.vector_store %arg11[%c0_48, %c0_49], %86 {strides = array<i32>} : memref<16x128xbf16, #tpu.memory_space<vmem>>, vector<16x128xbf16>,
      %cst_50 = arith.constant -1.000000e+30 : f32
      %88 = vector.broadcast %cst_50 : f32 to vector<16x1xf32>
      %c0_51 = arith.constant 0 : index
      %c0_52 = arith.constant 0 : index
      %89 = vector.load %arg12[%c0_51, %c0_52] : memref<16x1xf32, #tpu.memory_space<vmem>>, vector<16x1xf32>
      tpu.vector_store %arg12[%c0_51, %c0_52], %88 {strides = array<i32>} : memref<16x1xf32, #tpu.memory_space<vmem>>, vector<16x1xf32>,
      %cst_53 = arith.constant 0.000000e+00 : f32
      %90 = vector.broadcast %cst_53 : f32 to vector<16x1xf32>
      %c0_54 = arith.constant 0 : index
      %c0_55 = arith.constant 0 : index
      %91 = vector.load %arg13[%c0_54, %c0_55] : memref<16x1xf32, #tpu.memory_space<vmem>>, vector<16x1xf32>
      tpu.vector_store %arg13[%c0_54, %c0_55], %90 {strides = array<i32>} : memref<16x1xf32, #tpu.memory_space<vmem>>, vector<16x1xf32>,
      %cst_56 = arith.constant 0.000000e+00 : f32
      %92 = vector.broadcast %cst_56 : f32 to vector<16x1xf32>
      %c0_57 = arith.constant 0 : index
      %c0_58 = arith.constant 0 : index
      %93 = vector.load %arg14[%c0_57, %c0_58] : memref<16x1xf32, #tpu.memory_space<vmem>>, vector<16x1xf32>
      tpu.vector_store %arg14[%c0_57, %c0_58], %92 {strides = array<i32>} : memref<16x1xf32, #tpu.memory_space<vmem>>, vector<16x1xf32>,
    } else {
    }
    %c0 = arith.constant 0 : index
    %c0_1 = arith.constant 0 : index
    %3 = vector.load %arg11[%c0, %c0_1] : memref<16x128xbf16, #tpu.memory_space<vmem>>, vector<16x128xbf16>
    %c0_2 = arith.constant 0 : index
    %c0_3 = arith.constant 0 : index
    %4 = vector.load %arg7[%c0_2, %c0_3] : memref<128x512xbf16, #tpu.memory_space<vmem>>, vector<128x512xbf16>
    %cst = arith.constant dense<0.000000e+00> : vector<16x512xf32>
    %5 = tpu.matmul %3, %4, %cst {dimension_numbers = #tpu.dot_dimension_numbers<[1], [0], [0], [1], [0, 0, 1, 1], [], []>} : vector<16x128xbf16>, vector<128x512xbf16>, vector<16x512xf32> -> vector<16x512xf32>
    %c0_4 = arith.constant 0 : index
    %c0_5 = arith.constant 0 : index
    %6 = vector.load %arg8[%c0_4, %c0_5] : memref<1x512xf32, #tpu.memory_space<vmem>>, vector<1x512xf32>
    %7 = vector.broadcast %6 : vector<1x512xf32> to vector<16x512xf32>
    %8 = arith.addf %5, %7 : vector<16x512xf32>
    %c0_6 = arith.constant 0 : index
    %c0_7 = arith.constant 0 : index
    %9 = vector.load %arg9[%c0_6, %c0_7] : memref<16x512xf32, #tpu.memory_space<vmem>>, vector<16x512xf32>
    tpu.vector_store %arg9[%c0_6, %c0_7], %8 {strides = array<i32>} : memref<16x512xf32, #tpu.memory_space<vmem>>, vector<16x512xf32>,
    %c0_8 = arith.constant 0 : index
    %c0_9 = arith.constant 0 : index
    %10 = vector.load %arg1[%c0_8, %c0_9] : memref<16x1xi32, #tpu.memory_space<vmem>>, vector<16x1xi32>
    %c512_i32 = arith.constant 512 : i32
    %11 = arith.muli %arg0, %c512_i32 : i32
    %12 = tpu.iota {dimensions = array<i32: 1>} : vector<16x512xi32>
    %13 = vector.broadcast %11 : i32 to vector<16x512xi32>
    %14 = arith.addi %13, %12 : vector<16x512xi32>
    %c0_10 = arith.constant 0 : index
    %c0_11 = arith.constant 0 : index
    %15 = vector.load %arg12[%c0_10, %c0_11] : memref<16x1xf32, #tpu.memory_space<vmem>>, vector<16x1xf32>
    %cst_12 = arith.constant dense<0xFF800000> : vector<16xf32>
    %16 = vector.multi_reduction <maximumf>, %8, %cst_12 [1] : vector<16x512xf32> to vector<16xf32>
    %17 = vector.shape_cast %16 : vector<16xf32> to vector<16x1xf32>
    %18 = arith.maximumf %15, %17 : vector<16x1xf32>
    %c0_13 = arith.constant 0 : index
    %c0_14 = arith.constant 0 : index
    %19 = vector.load %arg13[%c0_13, %c0_14] : memref<16x1xf32, #tpu.memory_space<vmem>>, vector<16x1xf32>
    %20 = arith.subf %15, %18 : vector<16x1xf32>
    %21 = math.exp %20 : vector<16x1xf32>
    %22 = arith.mulf %19, %21 : vector<16x1xf32>
    %23 = vector.broadcast %18 : vector<16x1xf32> to vector<16x512xf32>
    %24 = arith.subf %8, %23 : vector<16x512xf32>
    %25 = math.exp %24 : vector<16x512xf32>
    %cst_15 = arith.constant dense<0.000000e+00> : vector<16xf32>
    %26 = vector.multi_reduction <add>, %25, %cst_15 [1] : vector<16x512xf32> to vector<16xf32>
    %27 = vector.shape_cast %26 : vector<16xf32> to vector<16x1xf32>
    %28 = arith.addf %22, %27 : vector<16x1xf32>
    %c0_16 = arith.constant 0 : index
    %c0_17 = arith.constant 0 : index
    %29 = vector.load %arg13[%c0_16, %c0_17] : memref<16x1xf32, #tpu.memory_space<vmem>>, vector<16x1xf32>
    tpu.vector_store %arg13[%c0_16, %c0_17], %28 {strides = array<i32>} : memref<16x1xf32, #tpu.memory_space<vmem>>, vector<16x1xf32>,
    %c0_18 = arith.constant 0 : index
    %c0_19 = arith.constant 0 : index
    %30 = vector.load %arg12[%c0_18, %c0_19] : memref<16x1xf32, #tpu.memory_space<vmem>>, vector<16x1xf32>
    tpu.vector_store %arg12[%c0_18, %c0_19], %18 {strides = array<i32>} : memref<16x1xf32, #tpu.memory_space<vmem>>, vector<16x1xf32>,
    %c0_20 = arith.constant 0 : index
    %c0_21 = arith.constant 0 : index
    %31 = vector.load %arg14[%c0_20, %c0_21] : memref<16x1xf32, #tpu.memory_space<vmem>>, vector<16x1xf32>
    %32 = vector.broadcast %10 : vector<16x1xi32> to vector<16x512xi32>
    %33 = arith.cmpi eq, %14, %32 : vector<16x512xi32>
    %cst_22 = arith.constant 0.000000e+00 : f32
    %34 = vector.broadcast %cst_22 : f32 to vector<16x512xf32>
    %35 = arith.select %33, %8, %34 : vector<16x512xi1>, vector<16x512xf32>
    %cst_23 = arith.constant dense<0.000000e+00> : vector<16xf32>
    %36 = vector.multi_reduction <add>, %35, %cst_23 [1] : vector<16x512xf32> to vector<16xf32>
    %37 = vector.shape_cast %36 : vector<16xf32> to vector<16x1xf32>
    %38 = arith.addf %31, %37 : vector<16x1xf32>
    %c0_24 = arith.constant 0 : index
    %c0_25 = arith.constant 0 : index
    %39 = vector.load %arg14[%c0_24, %c0_25] : memref<16x1xf32, #tpu.memory_space<vmem>>, vector<16x1xf32>
    tpu.vector_store %arg14[%c0_24, %c0_25], %38 {strides = array<i32>} : memref<16x1xf32, #tpu.memory_space<vmem>>, vector<16x1xf32>,
    %c0_i32_26 = arith.constant 0 : i32
    %40 = arith.cmpi eq, %arg0, %c0_i32_26 : i32
    %41 = arith.extui %40 : i1 to i32
    %c0_i32_27 = arith.constant 0 : i32
    %42 = arith.cmpi ne, %41, %c0_i32_27 : i32
    scf.if %42 {
      %c-100_i32 = arith.constant -100 : i32
      %43 = vector.broadcast %c-100_i32 : i32 to vector<16x1xi32>
      %44 = arith.cmpi ne, %10, %43 : vector<16x1xi32>
      %45 = arith.extui %44 : vector<16x1xi1> to vector<16x1xi32>
      %46 = arith.sitofp %45 : vector<16x1xi32> to vector<16x1xf32>
      %c0_28 = arith.constant 0 : index
      %c0_29 = arith.constant 0 : index
      %47 = vector.load %arg12[%c0_28, %c0_29] : memref<16x1xf32, #tpu.memory_space<vmem>>, vector<16x1xf32>
      %c0_30 = arith.constant 0 : index
      %c0_31 = arith.constant 0 : index
      %48 = vector.load %arg13[%c0_30, %c0_31] : memref<16x1xf32, #tpu.memory_space<vmem>>, vector<16x1xf32>
      %49 = math.log %48 : vector<16x1xf32>
      %50 = arith.addf %47, %49 : vector<16x1xf32>
      %c0_32 = arith.constant 0 : index
      %c0_33 = arith.constant 0 : index
      %51 = vector.load %arg14[%c0_32, %c0_33] : memref<16x1xf32, #tpu.memory_space<vmem>>, vector<16x1xf32>
      %52 = arith.subf %50, %51 : vector<16x1xf32>
      %53 = arith.mulf %52, %46 : vector<16x1xf32>
      %54 = vector.shape_cast %53 : vector<16x1xf32> to vector<1x16x1xf32>
      %cst_34 = arith.constant dense<0.000000e+00> : vector<1xf32>
      %55 = vector.multi_reduction <add>, %54, %cst_34 [1, 2] : vector<1x16x1xf32> to vector<1xf32>
      %56 = vector.shape_cast %55 : vector<1xf32> to vector<1x1x1xf32>
      %57 = vector.extract %56[0, 0, 0] : f32 from vector<1x1x1xf32>
      %58 = vector.shape_cast %46 : vector<16x1xf32> to vector<1x16x1xf32>
      %cst_35 = arith.constant dense<0.000000e+00> : vector<1xf32>
      %59 = vector.multi_reduction <add>, %58, %cst_35 [1, 2] : vector<1x16x1xf32> to vector<1xf32>
      %60 = vector.shape_cast %59 : vector<1xf32> to vector<1x1x1xf32>
      %61 = vector.extract %60[0, 0, 0] : f32 from vector<1x1x1xf32>
      %cst_36 = arith.constant 1.000000e+00 : f32
      %62 = arith.maximumf %61, %cst_36 : f32
      %63 = arith.divf %57, %62 : f32
      %64 = vector.broadcast %63 : f32 to vector<1x1xf32>
      %c0_37 = arith.constant 0 : index
      %c0_38 = arith.constant 0 : index
      %65 = vector.load %arg10[%c0_37, %c0_38] : memref<1x1xf32, #tpu.memory_space<vmem>>, vector<1x1xf32>
      tpu.vector_store %arg10[%c0_37, %c0_38], %64 {strides = array<i32>} : memref<1x1xf32, #tpu.memory_space<vmem>>, vector<1x1xf32>,
    } else {
    }
    return
  }
  func.func @transform_0(%arg0: i32) -> (i32, i32) {
    %c0_i32 = arith.constant 0 : i32
    %c0_i32_0 = arith.constant 0 : i32
    %c0_i32_1 = arith.constant 0 : i32
    return %c0_i32, %c0_i32_0 : i32, i32
  }
  func.func @transform_1(%arg0: i32) -> (i32, i32) {
    %c0_i32 = arith.constant 0 : i32
    %c0_i32_0 = arith.constant 0 : i32
    %c0_i32_1 = arith.constant 0 : i32
    return %c0_i32, %c0_i32_0 : i32, i32
  }
  func.func @transform_2(%arg0: i32) -> (i32, i32) {
    %c0_i32 = arith.constant 0 : i32
    %c0_i32_0 = arith.constant 0 : i32
    %c0_i32_1 = arith.constant 0 : i32
    return %c0_i32, %c0_i32_0 : i32, i32
  }
  func.func @transform_3(%arg0: i32) -> (i32, i32) {
    %c0_i32 = arith.constant 0 : i32
    %c0_i32_0 = arith.constant 0 : i32
    %c0_i32_1 = arith.constant 0 : i32
    return %c0_i32, %c0_i32_0 : i32, i32
  }
  func.func @transform_4(%arg0: i32) -> (i32, i32) {
    %c0_i32 = arith.constant 0 : i32
    %c0_i32_0 = arith.constant 0 : i32
    %c0_i32_1 = arith.constant 0 : i32
    return %c0_i32, %c0_i32_0 : i32, i32
  }
  func.func @transform_5(%arg0: i32) -> (i32, i32) {
    %c0_i32 = arith.constant 0 : i32
    %c0_i32_0 = arith.constant 0 : i32
    %c0_i32_1 = arith.constant 0 : i32
    return %c0_i32, %c0_i32_0 : i32, i32
  }
  func.func @transform_6(%arg0: i32) -> (i32, i32) {
    %c0_i32 = arith.constant 0 : i32
    %c0_i32_0 = arith.constant 0 : i32
    return %c0_i32, %arg0 : i32, i32
  }
  func.func @transform_7(%arg0: i32) -> (i32, i32) {
    %c0_i32 = arith.constant 0 : i32
    %c0_i32_0 = arith.constant 0 : i32
    return %c0_i32, %arg0 : i32, i32
  }
  func.func @transform_8(%arg0: i32) -> (i32, i32) {
    %c0_i32 = arith.constant 0 : i32
    %c0_i32_0 = arith.constant 0 : i32
    return %c0_i32, %arg0 : i32, i32
  }
  func.func @transform_9(%arg0: i32) -> (i32, i32) {
    %c0_i32 = arith.constant 0 : i32
    %c0_i32_0 = arith.constant 0 : i32
    %c0_i32_1 = arith.constant 0 : i32
    return %c0_i32, %c0_i32_0 : i32, i32
  }
}

</mosaic_0001>

<bundles_post_ra>
// kernel: _lambda_.9
= control target key start
LH: loop header
LB: loop body
LE: loop exit
PB: predicated region body
PF: predicated region fallthrough
CT: control target
= control target key end

     0   :  { %15 = vsyncpa [#allocation7], 0  ;;  %v1001_v1 = vmov 0.0   ;;  %vm1002_vm0 = vmmov 0   ;;  %s1330_s0 = inlined_call_operand.vmem [shape: s32[16,1], index: 0, kind: input, shape index: {}]   ;;  %s1331_s1 = inlined_call_operand.vmem [shape: bf16[16,128], index: 1, kind: input, shape index: {}]   ;;  %s1332_s2 = inlined_call_operand.vmem [shape: bf16[128,128], index: 2, kind: input, shape index: {}]   ;;  %s1333_s3 = inlined_call_operand.vmem [shape: f32[1,128], index: 3, kind: input, shape index: {}]   ;;  %s1334_s4 = inlined_call_operand.vmem [shape: f32[1,128], index: 4, kind: input, shape index: {}]   ;;  %s1335_s5 = inlined_call_operand.vmem [shape: f32[1,128], index: 5, kind: input, shape index: {}]   ;;  %s1336_s6 = inlined_call_operand.vmem [shape: bf16[128,512], index: 6, kind: input, shape index: {}]   ;;  %s1337_s7 = inlined_call_operand.vmem [shape: f32[1,512], index: 7, kind: input, shape index: {}]   ;;  %s1338_s8 = inlined_call_operand.hbm [shape: f32[16,512], index: 8, kind: output, shape index: {0}]   ;;  %s1339_s9 = inlined_call_operand.hbm [shape: f32[1,1], index: 9, kind: output, shape index: {1}]  }
   0x1   :  { %v865_v0 = vld [vmem:[%s1332_s2 + $0x38] sm:$0xff]   ;;  %828 = vmatprep.subr.bf16.mxu0 %v1001_v1  ;;  %v866_v2 = vld [vmem:[%s1332_s2 + $0x30] sm:$0xff]   ;;  %844 = vmatprep.mubr.msk.bf16.mxu0 %vm1002_vm0, %v1001_v1  ;;  %v867_v3 = vld [vmem:[%s1332_s2 + $0x28] sm:$0xff]  }
   0x2   :  { %829 = vmatpush3.bf16.msra.mxu0 %v865_v0  ;;  %v868_v4 = vld [vmem:[%s1332_s2 + $0x20] sm:$0xff]   ;;  %v869_v5 = vld [vmem:[%s1332_s2 + $0x18] sm:$0xff]   ;;  %v870_v6 = vld [vmem:[%s1332_s2 + $0x10] sm:$0xff]  }
   0x3   :  { %830 = vmatprep.subr.bf16.mxu0 %v1001_v1 }
   0x6   :  { %831 = vmatpush3.bf16.msra.mxu0 %v866_v2 }
   0x7   :  { %832 = vmatprep.subr.bf16.mxu0 %v1001_v1 }
   0xa   :  { %833 = vmatpush3.bf16.msra.mxu0 %v867_v3 }
   0xb   :  { %834 = vmatprep.subr.bf16.mxu0 %v1001_v1 }
   0xe   :  { %835 = vmatpush3.bf16.msra.mxu0 %v868_v4 }
   0xf   :  { %836 = vmatprep.subr.bf16.mxu0 %v1001_v1 }
  0x12   :  { %837 = vmatpush3.bf16.msra.mxu0 %v869_v5 }
  0x13   :  { %838 = vmatprep.subr.bf16.mxu0 %v1001_v1 }
  0x14   :  { %16 = vsyncpa [#allocation9], 0  ;;  %v871_v7 = vld [vmem:[%s1332_s2 + $0x8] sm:$0xff]   ;;  %v872_v8 = vld [vmem:[%s1332_s2] sm:$0xff]   ;;  %vm227_vm1 = vcmask 7168  }
  0x15   :  { %v873_v9 = vld [vmem:[%s1331_s1] sm:$0xff]   ;;  %v878_v44 = vld [vmem:[%s1336_s6 + $0xec] ss:$16 sps:$4 sm:$0xff]   ;;  %v876_v45 = vld [vmem:[%s1336_s6 + $0xe8] ss:$16 sps:$4 sm:$0xff]   ;;  %230 = vst.msk [vmem:[#allocation4] sm:$0xff] %vm227_vm1, %v1001_v1 }
  0x16   :  { %839 = vmatpush3.bf16.msra.mxu0 %v870_v6  ;;  %v763_v10 = vld [vmem:[%s1333_s3] ss:$0 sm:$0xff]  ;;  %v874_v43 = vld [vmem:[%s1336_s6 + $0xe4] ss:$16 sps:$4 sm:$0xff]   ;;  %v884_v48 = vld [vmem:[%s1336_s6 + $0xcc] ss:$16 sps:$4 sm:$0xff]  }
  0x17   :  { %840 = vmatprep.subr.bf16.mxu0 %v1001_v1  ;;  %v879_v46 = vld [vmem:[%s1336_s6 + $0xe0] ss:$16 sps:$4 sm:$0xff]   ;;  %456 = vmatprep.subr.bf16.mxu1 %v874_v43  ;;  %v880_v47 = vld [vmem:[%s1336_s6 + $0xc4] ss:$16 sps:$4 sm:$0xff]   ;;  %v882_v49 = vld [vmem:[%s1336_s6 + $0xc8] ss:$16 sps:$4 sm:$0xff]  }
  0x18   :  { %457 = vmatpush1.bf16.msra.mxu1 %v879_v46  ;;  %v885_v50 = vld [vmem:[%s1336_s6 + $0xc0] ss:$16 sps:$4 sm:$0xff]   ;;  %v886_v51 = vld [vmem:[%s1336_s6 + $0xa4] ss:$16 sps:$4 sm:$0xff]   ;;  %v890_v52 = vld [vmem:[%s1336_s6 + $0xac] ss:$16 sps:$4 sm:$0xff]  }
  0x19   :  { %458 = vmatprep.subr.bf16.mxu1 %v880_v47  ;;  %v888_v53 = vld [vmem:[%s1336_s6 + $0xa8] ss:$16 sps:$4 sm:$0xff]   ;;  %v891_v54 = vld [vmem:[%s1336_s6 + $0xa0] ss:$16 sps:$4 sm:$0xff]   ;;  %v892_v55 = vld [vmem:[%s1336_s6 + $0x84] ss:$16 sps:$4 sm:$0xff]  }
  0x1a   :  { %841 = vmatpush3.bf16.msra.mxu0 %v871_v7  ;;  %v896_v56 = vld [vmem:[%s1336_s6 + $0x8c] ss:$16 sps:$4 sm:$0xff]   ;;  %v894_v57 = vld [vmem:[%s1336_s6 + $0x88] ss:$16 sps:$4 sm:$0xff]   ;;  %v897_v58 = vld [vmem:[%s1336_s6 + $0x80] ss:$16 sps:$4 sm:$0xff]  }
  0x1b   :  { %842 = vmatprep.subr.bf16.mxu0 %v1001_v1  ;;  %v898_v59 = vld [vmem:[%s1336_s6 + $0x64] ss:$16 sps:$4 sm:$0xff]   ;;  %v902_v60 = vld [vmem:[%s1336_s6 + $0x6c] ss:$16 sps:$4 sm:$0xff]   ;;  %v900_v61 = vld [vmem:[%s1336_s6 + $0x68] ss:$16 sps:$4 sm:$0xff]  }
  0x1c   :  { %459 = vmatpush1.bf16.msra.mxu1 %v885_v50  ;;  %v903_v62 = vld [vmem:[%s1336_s6 + $0x60] ss:$16 sps:$4 sm:$0xff]   ;;  %v904_v63 = vld [vmem:[%s1336_s6 + $0x44] ss:$16 sps:$4 sm:$0xff]   ;;  %v908_v0 = vld [vmem:[%s1336_s6 + $0x4c] ss:$16 sps:$4 sm:$0xff]  }
  0x1d   :  { %460 = vmatprep.subr.bf16.mxu1 %v886_v51  ;;  %v906_v2 = vld [vmem:[%s1336_s6 + $0x48] ss:$16 sps:$4 sm:$0xff]   ;;  %v909_v3 = vld [vmem:[%s1336_s6 + $0x40] ss:$16 sps:$4 sm:$0xff]   ;;  %v910_v4 = vld [vmem:[%s1336_s6 + $0x24] ss:$16 sps:$4 sm:$0xff]  }
  0x1e   :  { %843 = vmatpush3.bf16.msra.mxu0 %v872_v8  ;;  %v914_v5 = vld [vmem:[%s1336_s6 + $0x2c] ss:$16 sps:$4 sm:$0xff]   ;;  %v912_v6 = vld [vmem:[%s1336_s6 + $0x28] ss:$16 sps:$4 sm:$0xff]   ;;  %v915_v7 = vld [vmem:[%s1336_s6 + $0x20] ss:$16 sps:$4 sm:$0xff]  }
  0x1f   :  { %499 = vmatprep.subr.bf16.mxu0 %v878_v44  ;;  %v916_v8 = vld [vmem:[%s1336_s6 + $0x4] ss:$16 sps:$4 sm:$0xff]   ;;  %231 = vst.msk [vmem:[#allocation4 + $0x8] sm:$0xff] %vm227_vm1, %v1001_v1  ;;  %232 = vst.msk [vmem:[#allocation5] sm:$0xff] %vm227_vm1, %v1001_v1 }
  0x20   :  { %461 = vmatpush1.bf16.msra.mxu1 %v891_v54  ;;  %233 = vst.msk [vmem:[#allocation5 + $0x8] sm:$0xff] %vm227_vm1, %v1001_v1 }
  0x21   :  { %845 = vmatmul.mubr.bf16.vlgmr.msra.gmra.mxu0 %v873_v9  ;;  %462 = vmatprep.subr.bf16.mxu1 %v892_v55  ;;  %v920_v9 = vld [vmem:[%s1336_s6 + $0xc] ss:$16 sps:$4 sm:$0xff]  }
  0x22   :  { %500 = vmatpush1.bf16.msra.mxu0 %v876_v45 }
  0x23   :  { %501 = vmatprep.subr.bf16.mxu0 %v884_v48 }
  0x24   :  { %463 = vmatpush1.bf16.msra.mxu1 %v897_v58 }
  0x25   :  { %464 = vmatprep.subr.bf16.mxu1 %v898_v59 }
  0x26   :  { %502 = vmatpush1.bf16.msra.mxu0 %v882_v49 }
  0x27   :  { %503 = vmatprep.subr.bf16.mxu0 %v890_v52 }
  0x28   :  { %465 = vmatpush1.bf16.msra.mxu1 %v903_v62 }
  0x29   :  { %466 = vmatprep.subr.bf16.mxu1 %v904_v63 }
  0x2a   :  { %504 = vmatpush1.bf16.msra.mxu0 %v888_v53 }
  0x2b   :  { %505 = vmatprep.subr.bf16.mxu0 %v896_v56 }
  0x2c   :  { %467 = vmatpush1.bf16.msra.mxu1 %v909_v3 }
  0x2d   :  { %468 = vmatprep.subr.bf16.mxu1 %v910_v4 }
  0x2e   :  { %506 = vmatpush1.bf16.msra.mxu0 %v894_v57 }
  0x2f   :  { %507 = vmatprep.subr.bf16.mxu0 %v902_v60 }
  0x30   :  { %469 = vmatpush1.bf16.msra.mxu1 %v915_v7 }
  0x31   :  { %470 = vmatprep.subr.bf16.mxu1 %v916_v8 }
  0x32   :  { %508 = vmatpush1.bf16.msra.mxu0 %v900_v61 }
  0x33   :  { %509 = vmatprep.subr.bf16.mxu0 %v908_v0 }
  0x36   :  { %510 = vmatpush1.bf16.msra.mxu0 %v906_v2 }
  0x37   :  { %511 = vmatprep.subr.bf16.mxu0 %v914_v5 }
  0x3a   :  { %512 = vmatpush1.bf16.msra.mxu0 %v912_v6 }
  0x3b   :  { %513 = vmatprep.subr.bf16.mxu0 %v920_v9 }
  0xe1   :  { %v151_v11 = vpop.f32.mrf.mxu0 }
  0xe2   :  { %v152_v12 = vadd.f32 %v763_v10, %v151_v11  ;;  %v921_v11 = vld [vmem:[%s1336_s6] ss:$16 sps:$4 sm:$0xff]  }
  0xe3   :  { %v846_v13 = vpop.f32.mrf.mxu0  ;;  %471 = vmatpush1.bf16.msra.mxu1 %v921_v11  ;;  %v1286_v11 = vld [vmem:[%s1330_s0 + $0x8] sm:$0xff] }
  0xe4   :  { %v160_v14 = vmul.f32 0.044715, %v152_v12  ;;  %v158_v28 = vmul.f32 0.5, %v152_v12  ;;  %vm680_vm11 = vcmp.ne.s32.totalorder %v1286_v11, 4294967196 }
  0xe5   :  { %v154_v15 = vpop.f32.mrf.mxu0 }
  0xe6   :  { %v155_v16 = vadd.f32 %v763_v10, %v154_v15  ;;  %v162_v17 = vmul.f32 %v160_v14, %v152_v12  ;;  %v918_v10 = vld [vmem:[%s1336_s6 + $0x8] ss:$16 sps:$4 sm:$0xff]  }
  0xe7   :  { %v847_v18 = vpop.f32.mrf.mxu0  ;;  %514 = vmatpush1.bf16.msra.mxu0 %v918_v10  ;;  %v1280_v10 = vld [vmem:[%s1330_s0] sm:$0xff]  ;;  %s1005_s0 = smov [#allocation6]  }
  0xe8   :  { %v161_v19 = vmul.f32 0.044715, %v155_v16  ;;  %v164_v20 = vmul.f32 %v162_v17, %v152_v12  ;;  %v159_v32 = vmul.f32 0.5, %v155_v16  ;;  %vm679_vm10 = vcmp.ne.s32.totalorder %v1280_v10, 4294967196  ;;  %s738_s27 = sshll.u32 %s1005_s0, 4  ;;  %s739_s27 = int_to_ptr.vmem [resolvable:$true] %s738_s27 }
  0xe9   :  { %s957_s28 = scalar_lea.vmem %s739_s27, 1024  ;;  %p962_p1 = scmp.lt.s32.totalorder %s739_s27, %s739_s27 }
  0xea   :  { %v166_v21 = vadd.f32 %v164_v20, %v152_v12  ;;  %v163_v22 = vmul.f32 %v161_v19, %v155_v16  ;;  %v1003_v12 = vmov 0   ;;  %p958_p0 = scmp.ne.s32.totalorder %s739_s27, %s957_s28  ;;  %p963_p2 = scmp.lt.s32.totalorder %s957_s28, %s957_s28 }
  0xeb   :  { %488 = vmatprep.mubr.bf16.mxu1 %v1003_v12  ;;  %531 = vmatprep.mubr.bf16.mxu0 %v1003_v12 }
  0xec   :  { %v168_v23 = vmul.f32 0.7978846, %v166_v21  ;;  %v165_v24 = vmul.f32 %v163_v22, %v155_v16  ;;  %863 = vset.pattern.permute.xlu0 %v1003_v12  ;;  %864 = vset.pattern.permute.xlu1 %v1003_v12  ;;  %v773_v21 = vld [vmem:[%s1334_s4] ss:$0 sm:$0xff]  ;;  %p964_p3 = por %p963_p2, %p962_p1 }
  0xee   :  { %923 = vtanh.f32 %v168_v23  ;;  %v167_v25 = vadd.f32 %v165_v24, %v155_v16  ;;  %p965_p4 = pnand %p964_p3, %p958_p0 }
  0xf0   :  { %v169_v26 = vmul.f32 0.7978846, %v167_v25  ;;  %v774_v25 = vld [vmem:[%s1335_s5] ss:$0 sm:$0xff] }
  0xf2   :  { %925 = vtanh.f32 %v169_v26 }
  0xfb   :  { %v924_v27 = vpop.eup %923 }
  0xfc   :  { %v172_v29 = vadd.f32 1.0, %v924_v27 }
  0xfe   :  { %v174_v30 = vmul.f32 %v172_v29, %v158_v28 }
  0xff   :  { %v926_v31 = vpop.eup %925 }
 0x100   :  { %178 = vadd.xlane.f32.xlu0 %v174_v30  ;;  %v173_v33 = vadd.f32 1.0, %v926_v31  ;;  %v1004_v31 = vmov -1e+30  }
 0x101   :  { %228 = vst.msk [vmem:[#allocation3] sm:$0xff] %vm227_vm1, %v1004_v31  ;;  %229 = vst.msk [vmem:[#allocation3 + $0x8] sm:$0xff] %vm227_vm1, %v1004_v31 }
 0x102   :  { %v175_v34 = vmul.f32 %v173_v33, %v159_v32  ;;  %v270_v32 = vlaneseq }
 0x104   :  { %180 = vadd.xlane.f32.xlu0 %v175_v34  ;;  %v271_v33 = vshrl.u32 %v270_v32, 7 }
 0x108   :  { %v1257_v2 = vld [vmem:[#allocation3] sm:$0xff]  ;;  %v1262_v5 = vld [vmem:[#allocation3 + $0x8] sm:$0xff] }
 0x189   :  { %v179_v35 = vpop.xlane.xlu0 %178 }
 0x18a   :  { %v183_v36 = vmul.f32 0.0078125, %v179_v35  ;;  %v280_v35 = vsub.s32 2, %v271_v33 }
 0x18c   :  { %v1099_v37 = vsub.f32 %v174_v30, %v183_v36  ;;  %v268_v36 = vld [vmem:[%s1337_s7] sm:$0xf] }
 0x18d   :  { %v181_v38 = vpop.xlane.xlu0 %180 }
 0x18e   :  { %v184_v39 = vmul.f32 0.0078125, %v181_v38  ;;  %v187_v40 = vmul.f32 %v1099_v37, %v1099_v37  ;;  %v284_v38 = vsub.s32 3, %v271_v33 }
 0x190   :  { %v1103_v41 = vsub.f32 %v175_v34, %v184_v39  ;;  %189 = vadd.xlane.f32.xlu1 %v187_v40  ;;  %v272_v34 = vsub.s32 0, %v271_v33  ;;  %v281_v40 = vrot.slane %v268_v36, %v280_v35 }
 0x192   :  { %v188_v42 = vmul.f32 %v1103_v41, %v1103_v41  ;;  %v273_v39 = vrot.slane %v268_v36, %v272_v34 }
 0x194   :  { %191 = vadd.xlane.f32.xlu1 %v188_v42  ;;  %v285_v42 = vrot.slane %v268_v36, %v284_v38 }
 0x219   :  { %v190_v13 = vpop.xlane.xlu1 %189 }
 0x21a   :  { %v193_v14 = vmul.f32 0.0078125, %v190_v13 }
 0x21c   :  { %v195_v15 = vadd.f32 1e-12, %v193_v14 }
 0x21d   :  { %v192_v16 = vpop.xlane.xlu1 %191 }
 0x21e   :  { %927 = vrsqrt.f32 %v195_v15  ;;  %v194_v17 = vmul.f32 0.0078125, %v192_v16 }
 0x220   :  { %v196_v18 = vadd.f32 1e-12, %v194_v17 }
 0x222   :  { %929 = vrsqrt.f32 %v196_v18 }
 0x22b   :  { %v928_v19 = vpop.eup %927 }
 0x22c   :  { %v199_v20 = vmul.f32 %v928_v19, %v1099_v37  ;;  %v276_v37 = vsub.s32 1, %v271_v33 }
 0x22e   :  { %v207_v23 = vmul.f32 %v773_v21, %v199_v20  ;;  %v554_v20 = vand.u32 127, %v270_v32 }
 0x22f   :  { %v930_v22 = vpop.eup %929 }
 0x230   :  { %v200_v24 = vmul.f32 %v930_v22, %v1103_v41  ;;  %v215_v27 = vadd.f32 %v774_v25, %v207_v23  ;;  %v277_v41 = vrot.slane %v268_v36, %v276_v37  ;;  %v556_v34 = vadd.s32 256, %v554_v20 }
 0x232   :  { %v208_v26 = vmul.f32 %v773_v21, %v200_v24 }
 0x234   :  { %v216_v28 = vadd.f32 %v774_v25, %v208_v26 }
 0x236   :  { %v817_v29 = vpack.c.bf16 %v216_v28, %v215_v27 }
 0x238   :  { %818 = vst [vmem:[#allocation2] sm:$0xff] %v817_v29  }
 0x23f   :  { %v922_v30 = vld [vmem:[#allocation2] sm:$0xff]  }
 0x240   :  { %489 = vmatmul.mubr.bf16.vlgmr.msra.gmra.mxu1 %v922_v30  ;;  %532 = vmatmul.mubr.bf16.vlgmr.msra.gmra.mxu0 %v922_v30  ;;  %v555_v30 = vadd.s32 128, %v554_v20 }
 0x300   :  { %v490_v43 = vpop.f32.mrf.mxu1  ;;  %v533_v44 = vpop.f32.mrf.mxu0 }
 0x301   :  { %v1225_v45 = vadd.f32 %v490_v43, %v273_v39  ;;  %v1227_v46 = vadd.f32 %v533_v44, %v281_v40 }
 0x302   :  { %v492_v47 = vpop.f32.mrf.mxu1  ;;  %v535_v48 = vpop.f32.mrf.mxu0 }
 0x303   :  { %542 = vst [vmem:[#allocation6] sm:$0xff] %v1225_v45  ;;  %544 = vst [vmem:[#allocation6 + $0x10] sm:$0xff] %v1227_v46  ;;  %v1231_v49 = vadd.f32 %v492_v47, %v277_v41  ;;  %v1233_v50 = vadd.f32 %v535_v48, %v285_v42  ;;  %v565_v55 = vmax.f32 %v1225_v45, %v1227_v46 }
 0x304   :  { %v494_v51 = vpop.f32.mrf.mxu1  ;;  %v537_v52 = vpop.f32.mrf.mxu0 }
 0x305   :  { %543 = vst [vmem:[#allocation6 + $0x8] sm:$0xff] %v1231_v49  ;;  %545 = vst [vmem:[#allocation6 + $0x18] sm:$0xff] %v1233_v50  ;;  %v1237_v53 = vadd.f32 %v494_v51, %v273_v39  ;;  %v1239_v54 = vadd.f32 %v537_v52, %v281_v40  ;;  %v566_v56 = vmax.f32 %v1231_v49, %v1233_v50  ;;  %v557_v39 = vadd.s32 384, %v554_v20 }
 0x306   :  { %v496_v57 = vpop.f32.mrf.mxu1  ;;  %v539_v58 = vpop.f32.mrf.mxu0 }
 0x307   :  { %546 = vst [vmem:[#allocation6 + $0x20] sm:$0xff] %v1237_v53  ;;  %548 = vst [vmem:[#allocation6 + $0x30] sm:$0xff] %v1239_v54  ;;  %v1247_v59 = vadd.f32 %v496_v57, %v277_v41  ;;  %v1249_v60 = vadd.f32 %v539_v58, %v285_v42  ;;  %v567_v61 = vmax.f32 %v565_v55, %v566_v56 }
 0x308   :  { %v570_v62 = vmax.f32 %v1237_v53, %v1239_v54 }
 0x309   :  { %547 = vst [vmem:[#allocation6 + $0x28] sm:$0xff] %v1247_v59  ;;  %549 = vst [vmem:[#allocation6 + $0x38] sm:$0xff] %v1249_v60  ;;  %568 = vmax.xlane.f32.xlu0 %v567_v61  ;;  %v571_v63 = vmax.f32 %v1247_v59, %v1249_v60 }
 0x30b   :  { %v572_v0 = vmax.f32 %v570_v62, %v571_v63 }
 0x30d   :  { %573 = vmax.xlane.f32.xlu1 %v572_v0 }
 0x392   :  { %v569_v3 = vpop.xlane.xlu0 %568 }
 0x393   :  { %v1260_v4 = vmax.f32 %v1257_v2, %v569_v3 }
 0x395   :  { %v579_v6 = vsub.f32 %v1257_v2, %v1260_v4  ;;  %636 = vst.msk [vmem:[#allocation3] sm:$0xff] %vm227_vm1, %v1260_v4  ;;  %589 = vperm.xlu0 %863, %v1260_v4  }
 0x396   :  { %v574_v7 = vpop.xlane.xlu1 %573 }
 0x397   :  { %v1270_v8 = vmax.f32 %v1262_v5, %v574_v7 }
 0x399   :  { %v580_v9 = vsub.f32 %v1262_v5, %v1270_v8  ;;  %637 = vst.msk [vmem:[#allocation3 + $0x8] sm:$0xff] %vm227_vm1, %v1270_v8  ;;  %594 = vperm.xlu1 %864, %v1270_v8  }
 0x39d   :  { %641 = vperm.xlu1 %864, %v1280_v10  }
 0x3a1   :  { %644 = vperm.xlu1 %864, %v1286_v11  }
 0x410   :  { %v590_v12 = vpop.permute.xlu0 %589 }
 0x411   :  { %v597_v13 = vsub.f32 %v1225_v45, %v590_v12  ;;  %v598_v14 = vsub.f32 %v1231_v49, %v590_v12  ;;  %v599_v15 = vsub.f32 %v1227_v46, %v590_v12  ;;  %v600_v16 = vsub.f32 %v1233_v50, %v590_v12 }
 0x412   :  { %v581_v12 = vmul.f32 1.442695, %v579_v6 }
 0x413   :  { %v605_v17 = vmul.f32 1.442695, %v597_v13  ;;  %v607_v18 = vmul.f32 1.442695, %v598_v14  ;;  %v609_v19 = vmul.f32 1.442695, %v599_v15 }
 0x414   :  { %v611_v21 = vmul.f32 1.442695, %v600_v16  ;;  %v595_v22 = vpop.permute.xlu1 %594  ;;  %v577_v13 = vld [vmem:[#allocation4] sm:$0xff] }
 0x415   :  { %931 = vpow2.f32 %v605_v17  ;;  %v601_v23 = vsub.f32 %v1237_v53, %v595_v22  ;;  %v602_v24 = vsub.f32 %v1247_v59, %v595_v22  ;;  %v603_v25 = vsub.f32 %v1239_v54, %v595_v22  ;;  %v578_v17 = vld [vmem:[#allocation4 + $0x8] sm:$0xff] }
 0x416   :  { %933 = vpow2.f32 %v607_v18  ;;  %v604_v26 = vsub.f32 %v1249_v60, %v595_v22 }
 0x417   :  { %935 = vpow2.f32 %v609_v19  ;;  %v613_v27 = vmul.f32 1.442695, %v601_v23  ;;  %v615_v28 = vmul.f32 1.442695, %v602_v24  ;;  %v617_v29 = vmul.f32 1.442695, %v603_v25 }
 0x418   :  { %937 = vpow2.f32 %v611_v21  ;;  %v642_v31 = vpop.permute.xlu1 %641  ;;  %v619_v32 = vmul.f32 1.442695, %v604_v26  ;;  %v639_v21 = vld [vmem:[#allocation5 + $0x8] sm:$0xff]  ;;  %v685_v25 = vld [vmem:[#allocation3] sm:$0xff] }
 0x419   :  { %939 = vpow2.f32 %v613_v27  ;;  %vm646_vm2 = vcmp.eq.s32.totalorder %v554_v20, %v642_v31  ;;  %vm647_vm3 = vcmp.eq.s32.totalorder %v555_v30, %v642_v31  ;;  %vm648_vm6 = vcmp.eq.s32.totalorder %v556_v34, %v642_v31 }
 0x41a   :  { %941 = vpow2.f32 %v615_v28  ;;  %v654_v35 = vsel %vm646_vm2, %v1225_v45, 0.0  ;;  %v655_v36 = vsel %vm647_vm3, %v1231_v49, 0.0  ;;  %v656_v45 = vsel %vm648_vm6, %v1227_v46, 0.0 }
 0x41b   :  { %943 = vpow2.f32 %v617_v29  ;;  %v662_v40 = vadd.f32 %v655_v36, %v654_v35  ;;  %vm649_vm7 = vcmp.eq.s32.totalorder %v557_v39, %v642_v31  ;;  %v810_v31 = vsel %vm679_vm10, 1.0, %v1001_v1 }
 0x41c   :  { %945 = vpow2.f32 %v619_v32  ;;  %v645_v33 = vpop.permute.xlu1 %644  ;;  %v657_v63 = vsel %vm649_vm7, %v1233_v50, 0.0  ;;  %v583_v50 = vmul.f32 1.442695, %v580_v9  ;;  %v686_v32 = vld [vmem:[#allocation3 + $0x8] sm:$0xff] }
 0x41d   :  { %vm650_vm4 = vcmp.eq.s32.totalorder %v554_v20, %v645_v33  ;;  %vm651_vm5 = vcmp.eq.s32.totalorder %v555_v30, %v645_v33  ;;  %v663_v49 = vadd.f32 %v662_v40, %v656_v45  ;;  %vm652_vm8 = vcmp.eq.s32.totalorder %v556_v34, %v645_v33 }
 0x41e   :  { %v658_v44 = vsel %vm650_vm4, %v1237_v53, 0.0  ;;  %v659_v47 = vsel %vm651_vm5, %v1247_v59, 0.0  ;;  %v660_v53 = vsel %vm652_vm8, %v1239_v54, 0.0  ;;  %vm653_vm9 = vcmp.eq.s32.totalorder %v557_v39, %v645_v33 }
 0x41f   :  { %v667_v57 = vadd.f32 %v659_v47, %v658_v44  ;;  %v664_v0 = vadd.f32 %v663_v49, %v657_v63  ;;  %v661_v46 = vsel %vm653_vm9, %v1249_v60, 0.0  ;;  %947 = vpow2.f32 %v581_v12  ;;  %v638_v60 = vld [vmem:[#allocation5] sm:$0xff] }
 0x420   :  { %949 = vpow2.f32 %v583_v50  ;;  %v811_v34 = vsel %vm680_vm11, 1.0, %v1001_v1  ;;  %v713_v40 = vsel %vm227_vm1, %v810_v31, 0.0 }
 0x421   :  { %v668_v3 = vadd.f32 %v667_v57, %v660_v53  ;;  %v714_v11 = vsel %vm227_vm1, %v811_v34, 0.0 }
 0x422   :  { %v932_v37 = vpop.eup %931 }
 0x423   :  { %v934_v38 = vpop.eup %933  ;;  %v669_v7 = vadd.f32 %v668_v3, %v661_v46 }
 0x424   :  { %v936_v41 = vpop.eup %935  ;;  %v621_v42 = vadd.f32 %v934_v38, %v932_v37 }
 0x425   :  { %v938_v43 = vpop.eup %937 }
 0x426   :  { %v940_v48 = vpop.eup %939  ;;  %v622_v51 = vadd.f32 %v936_v41, %v621_v42  ;;  %v715_v42 = vadd.f32 %v714_v11, %v713_v40 }
 0x427   :  { %v942_v52 = vpop.eup %941 }
 0x428   :  { %v623_v55 = vadd.f32 %v938_v43, %v622_v51  ;;  %v626_v56 = vadd.f32 %v942_v52, %v940_v48  ;;  %v944_v58 = vpop.eup %943 }
 0x429   :  { %v946_v62 = vpop.eup %945 }
 0x42a   :  { %624 = vadd.xlane.f32.xlu1 %v623_v55  ;;  %v627_v61 = vadd.f32 %v944_v58, %v626_v56 }
 0x42c   :  { %v628_v59 = vadd.f32 %v946_v62, %v627_v61  ;;  %v948_v54 = vpop.eup %947 }
 0x42d   :  { %v585_v14 = vmul.f32 %v948_v54, %v577_v13  ;;  %v950_v15 = vpop.eup %949 }
 0x42e   :  { %629 = vadd.xlane.f32.xlu0 %v628_v59  ;;  %665 = vadd.xlane.f32.xlu1 %v664_v0  ;;  %v586_v19 = vmul.f32 %v950_v15, %v578_v17 }
 0x432   :  { %670 = vadd.xlane.f32.xlu1 %v669_v7 }
 0x4b3   :  { %v625_v16 = vpop.xlane.xlu1 %624 }
 0x4b4   :  { %v631_v18 = vadd.f32 %v625_v16, %v585_v14 }
 0x4b6   :  { %634 = vst.msk [vmem:[#allocation4] sm:$0xff] %vm227_vm1, %v631_v18 }
 0x4b7   :  { %v666_v20 = vpop.xlane.xlu1 %665  ;;  %v630_v2 = vpop.xlane.xlu0 %629 }
 0x4b8   :  { %v672_v4 = vadd.f32 %v666_v20, %v638_v60  ;;  %v632_v6 = vadd.f32 %v630_v2, %v586_v19 }
 0x4ba   :  { %674 = vst.msk [vmem:[#allocation5] sm:$0xff] %vm227_vm1, %v672_v4  ;;  %635 = vst.msk [vmem:[#allocation4 + $0x8] sm:$0xff] %vm227_vm1, %v632_v6 }
 0x4bb   :  { %v671_v5 = vpop.xlane.xlu1 %670 }
 0x4bc   :  { %v673_v8 = vadd.f32 %v671_v5, %v639_v21 }
 0x4bd   :  { %v687_v9 = vld [vmem:[#allocation4] sm:$0xff] }
 0x4be   :  { %675 = vst.msk [vmem:[#allocation5 + $0x8] sm:$0xff] %vm227_vm1, %v673_v8  ;;  %951 = vlog2.f32 %v687_v9 }
 0x4c1   :  { %v688_v22 = vld [vmem:[#allocation4 + $0x8] sm:$0xff]  ;;  %v695_v28 = vld [vmem:[#allocation5] sm:$0xff] }
 0x4c2   :  { %953 = vlog2.f32 %v688_v22 }
 0x4c5   :  { %v696_v35 = vld [vmem:[#allocation5 + $0x8] sm:$0xff] }
 0x4cb   :  { %v952_v23 = vpop.eup %951 }
 0x4cc   :  { %v690_v24 = vmul.f32 0.6931472, %v952_v23 }
 0x4ce   :  { %v693_v26 = vadd.f32 %v690_v24, %v685_v25 }
 0x4cf   :  { %v954_v27 = vpop.eup %953 }
 0x4d0   :  { %v692_v29 = vmul.f32 0.6931472, %v954_v27  ;;  %v697_v30 = vsub.f32 %v693_v26, %v695_v28 }
 0x4d2   :  { %v694_v33 = vadd.f32 %v692_v29, %v686_v32  ;;  %v699_v37 = vmul.f32 %v810_v31, %v697_v30 }
 0x4d4   :  { %v698_v36 = vsub.f32 %v694_v33, %v696_v35  ;;  %v701_v39 = vsel %vm227_vm1, %v699_v37, 0.0 }
 0x4d6   :  { %v700_v38 = vmul.f32 %v811_v34, %v698_v36 }
 0x4d8   :  { %v702_v10 = vsel %vm227_vm1, %v700_v38, 0.0 }
 0x4d9   :  { %v703_v41 = vadd.f32 %v702_v10, %v701_v39 }
 0x4db   :  { %704 = vadd.xlane.f32.xlu1 %v703_v41 }
 0x4df   :  { %716 = vadd.xlane.f32.xlu1 %v715_v42 }
 0x564   :  { %v705_v43 = vpop.xlane.xlu1 %704 }
 0x565   :  { %v706_v44 = vrot.slane %v705_v43, 4 }
 0x567   :  { %v707_v47 = vadd.f32 %v706_v44, %v705_v43 }
 0x568   :  { %v717_v1 = vpop.xlane.xlu1 %716 }
 0x569   :  { %v708_v48 = vrot.slane %v707_v47, 2  ;;  %v718_v51 = vrot.slane %v717_v1, 4 }
 0x56b   :  { %v719_v45 = vadd.f32 %v718_v51, %v717_v1  ;;  %v709_v52 = vadd.f32 %v708_v48, %v707_v47 }
 0x56d   :  { %v720_v49 = vrot.slane %v719_v45, 2  ;;  %v710_v55 = vrot.slane %v709_v52, 1 }
 0x56e   :  { %968 = shalt.err (!%p965_p4)
}
 0x56f   :  { %s1006_s1 = smov 512   ;;  %s1007_s2 = smov 32   ;;  %v721_v56 = vadd.f32 %v720_v49, %v719_v45  ;;  %v711_v57 = vadd.f32 %v710_v55, %v709_v52  ;;  %vm731_vm12 = vcmask 0  }
 0x570   :  { %744 = dma.vmem_to_hbm [thread:$0]  %s739_s27, 1024, %s1338_s8, [#allocation7], %s1006_s1, %s1006_s1, %s1007_s2  }
 0x571   :  { %848 = vpush %v711_v57  ;;  %v722_v58 = vrot.slane %v721_v56, 1  ;;  %s1008_s11 = smov 1.0   ;;  %s1009_s13 = smov [#allocation8]  }
 0x572   :  { %s751_s14 = sshll.u32 %s1009_s13, 4  ;;  %s752_s14 = int_to_ptr.vmem [resolvable:$true] %s751_s14 }
 0x573   :  { %v723_v61 = vadd.f32 %v722_v58, %v721_v56  ;;  %s977_s8 = scalar_lea.vmem %s752_s14, 16  ;;  %s981_s17 = scalar_lea.vmem %s752_s14, 32 }
 0x574   :  { %p978_p5 = scmp.ne.s32.totalorder %s752_s14, %s977_s8  ;;  %p982_p6 = scmp.lt.s32.totalorder %s752_s14, %s752_s14 }
 0x575   :  { %850 = vpush %v723_v61  ;;  %p983_p7 = scmp.lt.s32.totalorder %s981_s17, %s977_s8 }
 0x577   :  { %p984_p8 = por %p983_p7, %p982_p6 }
 0x579   :  { %p985_p9 = pnand %p984_p8, %p978_p5 }
 0x5a2   :  { %s849_s30 = spop %848 }
 0x5a6   :  { %s851_s10 = spop %850 }
 0x5a7   :  { %s725_s12 = smax.f32 %s1008_s11, %s851_s10 }
 0x5a8   :  { %v726_v62 = vstv %s725_s12 }
 0x5a9   :  { %955 = vrcp.f32 %v726_v62 }
 0x5b6   :  { %v956_v63 = vpop.eup %955 }
 0x5b7   :  { %852 = vpush %v956_v63 }
 0x5e8   :  { %s853_s15 = spop %852 }
 0x5e9   :  { %s729_s16 = smul.f32 %s853_s15, %s849_s30 }
 0x5eb   :  { %v730_v53 = vstv %s729_s16 }
 0x5ec   :  { %732 = vst.msk [vmem:[#allocation8] sm:$0x1] %vm731_vm12, %v730_v53 }
 0x5ed   :  { %988 = shalt.err (!%p985_p9)
}
 0x5ee   :  { %754 = dma.vmem_to_hbm [thread:$0]  %s752_s14, 16, %s1339_s9, [#allocation9]  }
 0x5ef   :  { %997 = dma.done.wait [#allocation7], 1024  }
 0x5f0   :  { %998 = vsyncadd [#allocation7], 4294966272 }
 0x5f1   :  { %999 = dma.done.wait [#allocation9], 16  }
 0x5f2   :  { %1000 = vsyncadd [#allocation9], 4294967280 }
 0x5f3   :  { %761 = vsyncpa [#allocation7], 1 }
 0x5f4   :  { %762 = vsyncpa [#allocation9], 1 }

// kernel: _lambda_.5
= control target key start
LH: loop header
LB: loop body
LE: loop exit
PB: predicated region body
PF: predicated region fallthrough
CT: control target
= control target key end

     0   :  { %s2684_s27 = smov 0   ;;  %s3114_s0 = inlined_call_operand.vmem [shape: bf16[2,8,192], index: 0, kind: input, shape index: {}]   ;;  %s3115_s1 = inlined_call_operand.vmem [shape: f32[1,8,128], index: 1, kind: input, shape index: {}]   ;;  %s3116_s2 = inlined_call_operand.vmem [shape: bf16[192,128], index: 2, kind: input, shape index: {}]   ;;  %s3117_s3 = inlined_call_operand.vmem [shape: f32[1,128], index: 3, kind: input, shape index: {}]   ;;  %s3118_s4 = inlined_call_operand.vmem [shape: bf16[128,384], index: 4, kind: input, shape index: {}]   ;;  %s3119_s5 = inlined_call_operand.vmem [shape: f32[1,384], index: 5, kind: input, shape index: {}]   ;;  %s3120_s6 = inlined_call_operand.vmem [shape: bf16[128,128], index: 6, kind: input, shape index: {}]   ;;  %s3121_s7 = inlined_call_operand.vmem [shape: f32[1,128], index: 7, kind: input, shape index: {}]   ;;  %s3122_s8 = inlined_call_operand.vmem [shape: f32[1,128], index: 8, kind: input, shape index: {}]   ;;  %s3123_s9 = inlined_call_operand.vmem [shape: f32[1,128], index: 9, kind: input, shape index: {}]   ;;  %s3124_s10 = inlined_call_operand.vmem [shape: bf16[128,256], index: 10, kind: input, shape index: {}]   ;;  %s3125_s11 = inlined_call_operand.vmem [shape: f32[1,256], index: 11, kind: input, shape index: {}]   ;;  %s3126_s12 = inlined_call_operand.vmem [shape: bf16[256,128], index: 12, kind: input, shape index: {}]   ;;  %s3127_s13 = inlined_call_operand.vmem [shape: f32[1,128], index: 13, kind: input, shape index: {}]   ;;  %s3128_s14 = inlined_call_operand.vmem [shape: f32[1,128], index: 14, kind: input, shape index: {}]   ;;  %s3129_s15 = inlined_call_operand.vmem [shape: f32[1,128], index: 15, kind: input, shape index: {}]   ;;  %s3130_s16 = inlined_call_operand.vmem [shape: f32[1,128], index: 16, kind: input, shape index: {}]   ;;  %s3131_s17 = inlined_call_operand.vmem [shape: f32[1,128], index: 17, kind: input, shape index: {}]   ;;  %s3132_s18 = inlined_call_operand.vmem [shape: bf16[2,8,128], index: 18, kind: output, shape index: {}]  }
   0x1   :  { %3134 = sst [smem:[#allocation2_spill]] %s3114_s0 }
   0x2   :  { %3135 = sst [smem:[#allocation3_spill]] %s3115_s1 }
   0x3   :  { %3136 = sst [smem:[#allocation4_spill]] %s3116_s2 }
   0x4 LB: > { %s2171_s28 = sadd.s32 4294967295, %s2581_s27   ;;  %p2175_p0 = scmp.ge.s32.totalorder %s2581_s27, 1  ;;  %s2581_s27 = sphi %s2684_s27, %s28_s27  }
   0x5   : > { %p512_p1 = scmp.lt.s32.totalorder %s2581_s27, 3 }
   0x7   : > { %p513_p2 = pnand %p2175_p0, %p512_p1 }
   0x8   : > { %s3137_s0 = sld [smem:[#allocation4_spill]] (!%p513_p2)  ;;  %p565_p3 = scmp.lt.s32.totalorder (!%p513_p2), %s2171_s28, 1 }
   0x9   : > { %516 = sbr.rel (%p513_p2) target bundleno = 4470 (0x1176), region = 92  ;;  %s3138_s24 = sld [smem:[#allocation2_spill]] (!%p513_p2) }
   0xa   : > { %s3139_s21 = sld [smem:[#allocation3_spill]] (!%p513_p2)  ;;  %s2586_s29 = smov (!%p513_p2), 96  }
   0xb   : > { %s2587_s30 = smov (!%p513_p2), 64  }
   0xe   : > { %v2455_v0 = vld [vmem:[%s3137_s0 + $0x38] sm:$0xff]   ;;  %v2583_v1 = vmov 0   ;;  %v2456_v2 = vld [vmem:[%s3137_s0 + $0x30] sm:$0xff]   ;;  %s3141_s28 = smov (!%p565_p3, %s2171_s28), 1  ;;  %v2457_v3 = vld [vmem:[%s3137_s0 + $0x28] sm:$0xff]   ;;  %vm685_vm0 = vcmask 523264   ;;  %v766_v50 = vlaneseq }
   0xf   : > { %689 = vmatprep.subr.bf16.mxu0 %v2583_v1  ;;  %941 = vmatprep.mubr.bf16.mxu1 %v2583_v1  ;;  %s2281_s22 = sshll.u32 %s3141_s28, 3  ;;  %v2458_v4 = vld [vmem:[%s3137_s0 + $0x20] sm:$0xff]   ;;  %v2469_v7 = vld [vmem:[%s3118_s4 + $0xac] ss:$12 sps:$4 sm:$0xff]   ;;  %v2471_v8 = vld [vmem:[%s3118_s4 + $0xa8] ss:$12 sps:$4 sm:$0xff]  }
  0x10   : > { %690 = vmatpush1.bf16.msra.mxu0 %v2455_v0  ;;  %s569_s25 = scalar_lea.vmem %s3138_s24, %s2281_s22  ;;  %v2459_v9 = vld [vmem:[%s3137_s0 + $0x18] sm:$0xff]   ;;  %v2472_v10 = vld [vmem:[%s3118_s4 + $0x94] ss:$12 sps:$4 sm:$0xff]   ;;  %909 = vmatprep.subr.bf16.mxu1 %v2469_v7  ;;  %v2461_v14 = vld [vmem:[%s3137_s0 + $0x8] sm:$0xff]   ;;  %v2584_v32 = vmov 0.0   ;;  %vm2585_vm1 = vmmov 0  }
  0x11   : > { %691 = vmatprep.subr.bf16.mxu0 %v2583_v1  ;;  %v575_v5 = vld [vmem:[%s569_s25] sm:$0xff]  ;;  %910 = vmatpush1.bf16.msra.mxu1 %v2471_v8  ;;  %v2474_v11 = vld [vmem:[%s3118_s4 + $0x90] ss:$12 sps:$4 sm:$0xff]   ;;  %v2481_v19 = vld [vmem:[%s3118_s4 + $0x4c] ss:$12 sps:$4 sm:$0xff]   ;;  %v2845_v51 = vshrl.u32 %v766_v50, 7 }
  0x12   : > { %v2181_v6 = vcombine.high %v575_v5, %v575_v5  ;;  %v2460_v12 = vld [vmem:[%s3137_s0 + $0x10] sm:$0xff]   ;;  %911 = vmatprep.subr.bf16.mxu1 %v2472_v10  ;;  %v2475_v13 = vld [vmem:[%s3118_s4 + $0x7c] ss:$12 sps:$4 sm:$0xff]   ;;  %v2477_v15 = vld [vmem:[%s3118_s4 + $0x78] ss:$12 sps:$4 sm:$0xff]   ;;  %v2180_v29 = vcombine.low %v575_v5, %v575_v5  ;;  %vm1008_vm2 = vcmask 261120  }
  0x13   : > { %v2478_v16 = vld [vmem:[%s3118_s4 + $0x64] ss:$12 sps:$4 sm:$0xff]   ;;  %v2480_v17 = vld [vmem:[%s3118_s4 + $0x60] ss:$12 sps:$4 sm:$0xff]   ;;  %v2483_v20 = vld [vmem:[%s3118_s4 + $0x48] ss:$12 sps:$4 sm:$0xff]  }
  0x14   : > { %692 = vmatpush1.bf16.msra.mxu0 %v2456_v2  ;;  %2194 = vmatprep.mubr.msk.bf16.mxu0 %vm685_vm0, %v2181_v6  ;;  %v2462_v18 = vld [vmem:[%s3137_s0] sm:$0xff]   ;;  %v2463_v21 = vld [vmem:[%s3137_s0 + $0x58] sm:$0xff]   ;;  %v2464_v24 = vld [vmem:[%s3137_s0 + $0x50] sm:$0xff]   ;;  %v772_v52 = vsub.s32 1, %v2845_v51  ;;  %v768_v53 = vsub.s32 0, %v2845_v51  ;;  %vm1073_vm3 = vcmask 1043456  }
  0x15   : > { %693 = vmatprep.subr.bf16.mxu0 %v2583_v1  ;;  %912 = vmatpush1.bf16.msra.mxu1 %v2474_v11  ;;  %v2484_v22 = vld [vmem:[%s3118_s4 + $0x34] ss:$12 sps:$4 sm:$0xff]   ;;  %v2486_v23 = vld [vmem:[%s3118_s4 + $0x30] ss:$12 sps:$4 sm:$0xff]   ;;  %v2489_v26 = vld [vmem:[%s3118_s4 + $0x18] ss:$12 sps:$4 sm:$0xff]  }
  0x16   : > { %913 = vmatprep.subr.bf16.mxu1 %v2475_v13  ;;  %v2487_v25 = vld [vmem:[%s3118_s4 + $0x1c] ss:$12 sps:$4 sm:$0xff]   ;;  %v2466_v28 = vld [vmem:[%s3137_s0 + $0x40] sm:$0xff]   ;;  %vm1056_vm4 = vcmask 64512   ;;  %v2504_v50 = vld [vmem:[%s3120_s6 + $0x10] sm:$0xff]   ;;  %s2588_s25 = smov 32  }
  0x17   : > { %v2465_v27 = vld [vmem:[%s3137_s0 + $0x48] sm:$0xff]   ;;  %v2490_v30 = vld [vmem:[%s3118_s4 + $0x4] ss:$12 sps:$4 sm:$0xff]   ;;  %v2179_v33 = vld [vmem:[%s3117_s3] ss:$0 sm:$0xff] }
  0x18   : > { %694 = vmatpush1.bf16.msra.mxu0 %v2457_v3  ;;  %v2492_v31 = vld [vmem:[%s3118_s4] ss:$12 sps:$4 sm:$0xff]   ;;  %v2493_v40 = vld [vmem:[%s3118_s4 + $0xb0] ss:$12 sps:$4 sm:$0xff]   ;;  %v2494_v43 = vld [vmem:[%s3118_s4 + $0x98] ss:$12 sps:$4 sm:$0xff]  }
  0x19   : > { %695 = vmatprep.subr.bf16.mxu0 %v2583_v1  ;;  %914 = vmatpush1.bf16.msra.mxu1 %v2477_v15  ;;  %v729_v35 = vld [vmem:[%s3139_s21] sm:$0xff]  ;;  %v2496_v45 = vld [vmem:[%s3118_s4 + $0x68] ss:$12 sps:$4 sm:$0xff]   ;;  %v2497_v46 = vld [vmem:[%s3118_s4 + $0x50] ss:$12 sps:$4 sm:$0xff]   ;;  %v776_v3 = vsub.s32 2, %v2845_v51 }
  0x1a   : > { %915 = vmatprep.subr.bf16.mxu1 %v2478_v16  ;;  %v2495_v44 = vld [vmem:[%s3118_s4 + $0x80] ss:$12 sps:$4 sm:$0xff]   ;;  %v2498_v47 = vld [vmem:[%s3118_s4 + $0x38] ss:$12 sps:$4 sm:$0xff]   ;;  %v2500_v49 = vld [vmem:[%s3118_s4 + $0x8] ss:$12 sps:$4 sm:$0xff]  }
  0x1b   : > { %v2499_v48 = vld [vmem:[%s3118_s4 + $0x20] ss:$12 sps:$4 sm:$0xff]   ;;  %s2178_s21 = sshll.u32 %s3141_s28, 2 }
  0x1c   : > { %696 = vmatpush1.bf16.msra.mxu0 %v2458_v4  ;;  %v763_v54 = vld [vmem:[%s3119_s5] sm:$0x7]  ;;  %s573_s23 = scalar_lea.vmem %s3132_s18, %s2178_s21 }
  0x1d   : > { %697 = vmatprep.subr.bf16.mxu0 %v2583_v1  ;;  %916 = vmatpush1.bf16.msra.mxu1 %v2480_v17  ;;  %v773_v55 = vrot.slane %v763_v54, %v772_v52  ;;  %v769_v57 = vrot.slane %v763_v54, %v768_v53  ;;  %v777_v4 = vrot.slane %v763_v54, %v776_v3 }
  0x1e   : > { %917 = vmatprep.subr.bf16.mxu1 %v2481_v19 }
  0x20   : > { %698 = vmatpush1.bf16.msra.mxu0 %v2459_v9 }
  0x21   : > { %699 = vmatprep.subr.bf16.mxu0 %v2583_v1  ;;  %918 = vmatpush1.bf16.msra.mxu1 %v2483_v20 }
  0x22   : > { %919 = vmatprep.subr.bf16.mxu1 %v2484_v22 }
  0x24   : > { %700 = vmatpush1.bf16.msra.mxu0 %v2460_v12 }
  0x25   : > { %701 = vmatprep.subr.bf16.mxu0 %v2583_v1  ;;  %920 = vmatpush1.bf16.msra.mxu1 %v2486_v23 }
  0x26   : > { %921 = vmatprep.subr.bf16.mxu1 %v2487_v25 }
  0x28   : > { %702 = vmatpush1.bf16.msra.mxu0 %v2461_v14 }
  0x29   : > { %703 = vmatprep.subr.bf16.mxu0 %v2583_v1  ;;  %922 = vmatpush1.bf16.msra.mxu1 %v2489_v26 }
  0x2a   : > { %923 = vmatprep.subr.bf16.mxu1 %v2490_v30 }
  0x2c   : > { %704 = vmatpush1.bf16.msra.mxu0 %v2462_v18 }
  0x2d   : > { %713 = vmatprep.subr.bf16.mxu0 %v2583_v1  ;;  %924 = vmatpush1.bf16.msra.mxu1 %v2492_v31 }
  0x2e   : > { %2341 = vmatprep.subr.bf16.mxu1 %v2584_v32 }
  0x30   : > { %714 = vmatpush2.bf16.msra.mxu0 %v2463_v21 }
  0x31   : > { %715 = vmatprep.subr.bf16.mxu0 %v2583_v1 }
  0x34   : > { %716 = vmatpush2.bf16.msra.mxu0 %v2464_v24 }
  0x35   : > { %717 = vmatprep.subr.bf16.mxu0 %v2583_v1 }
  0x38   : > { %718 = vmatpush2.bf16.msra.mxu0 %v2465_v27 }
  0x39   : > { %719 = vmatprep.subr.bf16.mxu0 %v2583_v1 }
  0x3c   : > { %720 = vmatpush2.bf16.msra.mxu0 %v2466_v28 }
  0x3d   : > { %2361 = vmatprep.subr.bf16.mxu0 %v2584_v32 }
  0x3f   : > { %722 = vmatmul.mubr.bf16.vlgmr.msra.gmra.mxu0 %v2180_v29 }
  0x40   : > { %2363 = vmatprep.mubr.msk.bf16.mxu0 %vm2585_vm1, %v2584_v32 }
  0xff   : > { %v723_v34 = vpop.f32.mrf.mxu0 }
 0x100   : > { %v724_v36 = vadd.f32 %v2179_v33, %v723_v34 }
 0x101   : > { %v725_v37 = vpop.f32.mrf.mxu0 }
 0x102   : > { %v2805_v38 = vadd.f32 %v729_v35, %v724_v36 }
 0x103   : > { %v726_v39 = vpop.f32.mrf.mxu0 }
 0x104   : > { %v764_v41 = vpack.c.bf16 %v2805_v38, %v2805_v38 }
 0x105   : > { %v727_v42 = vpop.f32.mrf.mxu0 }
 0x106   : > { %942 = vmatmul.mubr.bf16.vlgmr.msra.gmra.mxu1 %v764_v41 }
 0x107   : > { %2342 = vmatpush3.bf16.msra.mxu1 %v2493_v40  ;;  %2357 = vmatprep.mubr.msk.bf16.mxu1 %vm2585_vm1, %v2584_v32 }
 0x108   : > { %2343 = vmatprep.subr.bf16.mxu1 %v2584_v32 }
 0x10b   : > { %2344 = vmatpush3.bf16.msra.mxu1 %v2494_v43 }
 0x10c   : > { %2345 = vmatprep.subr.bf16.mxu1 %v2584_v32 }
 0x10f   : > { %2346 = vmatpush3.bf16.msra.mxu1 %v2495_v44 }
 0x110   : > { %2347 = vmatprep.subr.bf16.mxu1 %v2584_v32 }
 0x113   : > { %2348 = vmatpush3.bf16.msra.mxu1 %v2496_v45 }
 0x114   : > { %2349 = vmatprep.subr.bf16.mxu1 %v2584_v32 }
 0x117   : > { %2350 = vmatpush3.bf16.msra.mxu1 %v2497_v46 }
 0x118   : > { %2351 = vmatprep.subr.bf16.mxu1 %v2584_v32 }
 0x11b   : > { %2352 = vmatpush3.bf16.msra.mxu1 %v2498_v47 }
 0x11c   : > { %2353 = vmatprep.subr.bf16.mxu1 %v2584_v32 }
 0x11f   : > { %2354 = vmatpush3.bf16.msra.mxu1 %v2499_v48 }
 0x120   : > { %2355 = vmatprep.subr.bf16.mxu1 %v2584_v32 }
 0x123   : > { %2356 = vmatpush3.bf16.msra.mxu1 %v2500_v49  ;;  %v2503_v49 = vld [vmem:[%s3120_s6 + $0x18] sm:$0xff]  }
 0x124   : > { %2379 = vmatprep.subr.bf16.mxu1 %v2584_v32 }
 0x126   : > { %2358 = vmatmul.mubr.bf16.vlgmr.msra.gmra.mxu1 %v764_v41 }
 0x127   : > { %2381 = vmatprep.mubr.msk.bf16.mxu1 %vm2585_vm1, %v2584_v32 }
 0x1c6   : > { %v943_v56 = vpop.f32.mrf.mxu1 }
 0x1c7   : > { %v944_v61 = vadd.f32 %v943_v56, %v769_v57  ;;  %v2501_v57 = vld [vmem:[%s3120_s6 + $0x8] sm:$0xff]  }
 0x1c8   : > { %v945_v58 = vpop.f32.mrf.mxu1 }
 0x1c9   : > { %v946_v59 = vadd.f32 %v945_v58, %v773_v55  ;;  %v2862_v2 = vpack.c.bf16 %v944_v61, %v944_v61 }
 0x1ca   : > { %v947_v60 = vpop.f32.mrf.mxu1 }
 0x1cb   : > { %v2856_v62 = vpack.c.bf16 %v946_v59, %v946_v59  ;;  %v2502_v59 = vld [vmem:[%s3120_s6] sm:$0xff]  }
 0x1cc   : > { %v948_v63 = vpop.f32.mrf.mxu1 }
 0x1cd   : > { %1122 = vrot.lane.b32.xlu1 %v2856_v62, %s2586_s29  ;;  %v1013_v0 = vsel %vm1008_vm2, %v2856_v62, 0 }
 0x1ce   : > { %2362 = vmatpush3.bf16.xpose.msra.mxu0 %v1013_v0 }
 0x1cf   : > { %2367 = vmatprep.subr.bf16.mxu0 %v2584_v32 }
 0x1d1   : > { %1119 = vrot.lane.b32.xlu1 %v2862_v2, %s2586_s29 }
 0x1d5   : > { %2364 = vmatmul.mubr.msk.bf16.vlgmr.msra.gmra.mxu0 %vm1008_vm2, %v2862_v2 }
 0x1d6   : > { %2369 = vmatprep.mubr.msk.bf16.mxu0 %vm2585_vm1, %v2584_v32 }
 0x1e6   : > { %v984_v5 = vpop.f32.mrf.mxu1 }
 0x1e7   : > { %v985_v6 = vadd.f32 %v984_v5, %v777_v4 }
 0x1e8   : > { %v2359_v7 = vpop.f32.mrf.mxu1 }
 0x1e9   : > { %v2872_v8 = vpack.c.bf16 %v985_v6, %v985_v6 }
 0x1ea   : > { %v987_v9 = vpop.f32.mrf.mxu1 }
 0x1eb   : > { %v1075_v10 = vsel %vm1073_vm3, %v2872_v8, 0 }
 0x1ec   : > { %v2360_v11 = vpop.f32.mrf.mxu1  ;;  %2368 = vmatpush3.bf16.msra.mxu0 %v1075_v10 }
 0x1ed   : > { %2373 = vmatprep.subr.bf16.mxu0 %v2584_v32 }
 0x23f   : > { %v1123_v26 = vpop.permute.xlu1 %1122 }
 0x240   : > { %v1128_v28 = vsel %vm1008_vm2, %v1123_v26, 0 }
 0x243   : > { %v1120_v29 = vpop.permute.xlu1 %1119 }
 0x295   : > { %v1049_v12 = vpop.f32.mrf.mxu0 }
 0x296   : > { %v1055_v13 = vmul.f32 0.17677669, %v1049_v12 }
 0x297   : > { %v2365_v14 = vpop.f32.mrf.mxu0 }
 0x298   : > { %v1057_v15 = vsel %vm1056_vm4, %v1055_v13, -inf }
 0x299   : > { %1058 = vmax.xlane.f32.xlu0 %v1057_v15  ;;  %v1052_v16 = vpop.f32.mrf.mxu0 }
 0x29b   : > { %v2366_v17 = vpop.f32.mrf.mxu0 }
 0x322   : > { %v1059_v18 = vpop.xlane.xlu0 %1058 }
 0x323   : > { %v1060_v19 = vsub.f32 %v1055_v13, %v1059_v18 }
 0x325   : > { %v1061_v20 = vmul.f32 1.442695, %v1060_v19 }
 0x327   : > { %2549 = vpow2.f32 %v1061_v20 }
 0x334   : > { %v2550_v21 = vpop.eup %2549 }
 0x335   : > { %v1063_v22 = vsel %vm1056_vm4, %v2550_v21, 0.0 }
 0x336   : > { %1064 = vadd.xlane.f32.xlu0 %v1063_v22 }
 0x3bf   : > { %v1065_v23 = vpop.xlane.xlu0 %1064 }
 0x3c0   : > { %2551 = vrcp.f32 %v1065_v23 }
 0x3cd   : > { %v2552_v24 = vpop.eup %2551 }
 0x3ce   : > { %v1067_v25 = vmul.f32 %v2552_v24, %v2550_v21 }
 0x3d0   : > { %v1068_v27 = vpack.c.bf16 %v1067_v25, %v1067_v25 }
 0x3d2   : > { %2370 = vmatmul.mubr.msk.bf16.vlgmr.msra.gmra.mxu0 %vm1056_vm4, %v1068_v27 }
 0x3d3   : > { %2374 = vmatpush3.bf16.xpose.msra.mxu0 %v1128_v28  ;;  %2375 = vmatprep.mubr.msk.bf16.mxu0 %vm2585_vm1, %v2584_v32 }
 0x3d4   : > { %2385 = vmatprep.subr.bf16.mxu0 %v2584_v32 }
 0x3da   : > { %2376 = vmatmul.mubr.msk.bf16.vlgmr.msra.gmra.mxu0 %vm1008_vm2, %v1120_v29 }
 0x3db   : > { %2389 = vmatprep.mubr.msk.bf16.mxu0 %vm2585_vm1, %v2584_v32  ;;  %2386 = vmatpush3.bf16.msra.mxu0 %v2503_v49 }
 0x3dc   : > { %2387 = vmatprep.subr.bf16.mxu0 %v2584_v32 }
 0x3df   : > { %2388 = vmatpush3.bf16.msra.mxu0 %v2504_v50 }
 0x3e0   : > { %2401 = vmatprep.subr.bf16.mxu0 %v2584_v32 }
 0x492   : > { %v1111_v30 = vpop.f32.mrf.mxu0 }
 0x493   : > { %v1117_v61 = vpack.c.bf16 %v1111_v30, %v1111_v30  ;;  %v2505_v30 = vld [vmem:[%s3120_s6 + $0x28] sm:$0xff]  }
 0x494   : > { %v2371_v31 = vpop.f32.mrf.mxu0 }
 0x496   : > { %v1114_v33 = vpop.f32.mrf.mxu0 }
 0x498   : > { %v2372_v34 = vpop.f32.mrf.mxu0 }
 0x49a   : > { %v1164_v35 = vpop.f32.mrf.mxu0 }
 0x49b   : > { %v1170_v36 = vmul.f32 0.17677669, %v1164_v35 }
 0x49c   : > { %v2377_v37 = vpop.f32.mrf.mxu0 }
 0x49d   : > { %v1171_v39 = vsel %vm1056_vm4, %v1170_v36, -inf }
 0x49e   : > { %1172 = vmax.xlane.f32.xlu0 %v1171_v39  ;;  %v1167_v40 = vpop.f32.mrf.mxu0 }
 0x4a0   : > { %v2378_v41 = vpop.f32.mrf.mxu0 }
 0x4b4   : > { %1184 = vrot.lane.b32.xlu0 %v2872_v8, %s2586_s29 }
 0x4b8   : > { %1345 = vrot.lane.b32.xlu0 %v2856_v62, %s2587_s30 }
 0x4bc   : > { %1343 = vrot.lane.b32.xlu0 %v2862_v2, %s2587_s30 }
 0x527   : > { %v1173_v42 = vpop.xlane.xlu0 %1172 }
 0x528   : > { %v1174_v43 = vsub.f32 %v1170_v36, %v1173_v42 }
 0x52a   : > { %v1175_v44 = vmul.f32 1.442695, %v1174_v43 }
 0x52b   : > { %v1185_v45 = vpop.permute.xlu0 %1184 }
 0x52c   : > { %2553 = vpow2.f32 %v1175_v44  ;;  %v1190_v46 = vsel %vm1073_vm3, %v1185_v45, 0 }
 0x52d   : > { %2380 = vmatpush3.bf16.msra.mxu1 %v1190_v46 }
 0x52e   : > { %2393 = vmatprep.subr.bf16.mxu1 %v2584_v32 }
 0x52f   : > { %v1346_v0 = vpop.permute.xlu0 %1345 }
 0x530   : > { %v1351_v6 = vsel %vm1008_vm2, %v1346_v0, 0 }
 0x533   : > { %v1344_v11 = vpop.permute.xlu0 %1343 }
 0x539   : > { %v2554_v47 = vpop.eup %2553 }
 0x53a   : > { %v1177_v48 = vsel %vm1056_vm4, %v2554_v47, 0.0 }
 0x53b   : > { %1178 = vadd.xlane.f32.xlu1 %v1177_v48 }
 0x54c   : > { %1406 = vrot.lane.b32.xlu1 %v2872_v8, %s2587_s30 }
 0x5c4   : > { %v1179_v54 = vpop.xlane.xlu1 %1178 }
 0x5c5   : > { %2555 = vrcp.f32 %v1179_v54 }
 0x5c8   : > { %v1407_v60 = vpop.permute.xlu1 %1406 }
 0x5c9   : > { %v1412_v63 = vsel %vm1073_vm3, %v1407_v60, 0 }
 0x5d2   : > { %v2556_v55 = vpop.eup %2555 }
 0x5d3   : > { %v1181_v56 = vmul.f32 %v2556_v55, %v2554_v47 }
 0x5d5   : > { %v1182_v58 = vpack.c.bf16 %v1181_v56, %v1181_v56 }
 0x5d7   : > { %2382 = vmatmul.mubr.msk.bf16.vlgmr.msra.gmra.mxu1 %vm1056_vm4, %v1182_v58 }
 0x5d8   : > { %2394 = vmatpush3.bf16.msra.mxu1 %v2501_v57  ;;  %2397 = vmatprep.mubr.msk.bf16.mxu1 %vm2585_vm1, %v2584_v32 }
 0x5d9   : > { %2395 = vmatprep.subr.bf16.mxu1 %v2584_v32 }
 0x5dc   : > { %2396 = vmatpush3.bf16.msra.mxu1 %v2502_v59 }
 0x5dd   : > { %2407 = vmatprep.subr.bf16.mxu1 %v2584_v32 }
 0x5df   : > { %2398 = vmatmul.mubr.msk.bf16.vlgmr.msra.gmra.mxu1 %vm1008_vm2, %v1117_v61 }
 0x5e0   : > { %2408 = vmatpush3.bf16.msra.mxu1 %v1412_v63  ;;  %2409 = vmatprep.mubr.msk.bf16.mxu1 %vm2585_vm1, %v2584_v32 }
 0x5e1   : > { %2421 = vmatprep.subr.bf16.mxu1 %v2584_v32 }
 0x697   : > { %v1226_v3 = vpop.f32.mrf.mxu1 }
 0x698   : > { %v1232_v4 = vpack.c.bf16 %v1226_v3, %v1226_v3 }
 0x699   : > { %v2383_v5 = vpop.f32.mrf.mxu1 }
 0x69a   : > { %2390 = vmatmul.mubr.msk.bf16.vlgmr.msra.gmra.mxu0 %vm1008_vm2, %v1232_v4 }
 0x69b   : > { %2402 = vmatpush3.bf16.xpose.msra.mxu0 %v1351_v6  ;;  %v1229_v7 = vpop.f32.mrf.mxu1  ;;  %2403 = vmatprep.mubr.msk.bf16.mxu0 %vm2585_vm1, %v2584_v32 }
 0x69c   : > { %2413 = vmatprep.subr.bf16.mxu0 %v2584_v32 }
 0x69d   : > { %v2384_v9 = vpop.f32.mrf.mxu1 }
 0x69f   : > { %v2925_v10 = vpop.f32.mrf.mxu1 }
 0x6a1   : > { %v2399_v12 = vpop.f32.mrf.mxu1 }
 0x6a2   : > { %2404 = vmatmul.mubr.msk.bf16.vlgmr.msra.gmra.mxu0 %vm1008_vm2, %v1344_v11 }
 0x6a3   : > { %v1340_v13 = vpop.f32.mrf.mxu1  ;;  %2417 = vmatprep.mubr.msk.bf16.mxu0 %vm2585_vm1, %v2584_v32  ;;  %2414 = vmatpush3.bf16.msra.mxu0 %v2505_v30  ;;  %v2515_v30 = vld [vmem:[%s3124_s10 + $0x50] ss:$8 sps:$4 sm:$0xff]  }
 0x6a4   : > { %2415 = vmatprep.subr.bf16.mxu0 %v2584_v32 }
 0x6a5   : > { %v2400_v14 = vpop.f32.mrf.mxu1 }
 0x75a   : > { %v2930_v15 = vpop.f32.mrf.mxu0 }
 0x75b   : > { %v1338_v60 = vadd.f32 %v2925_v10, %v2930_v15  ;;  %v2508_v10 = vld [vmem:[%s3120_s6 + $0x30] sm:$0xff]  }
 0x75c   : > { %v2391_v16 = vpop.f32.mrf.mxu0 }
 0x75d   : > { %v2239_v16 = vld [vmem:[%s3121_s7] ss:$0 sm:$0xff] }
 0x75e   : > { %v1285_v17 = vpop.f32.mrf.mxu0 }
 0x760   : > { %v2392_v18 = vpop.f32.mrf.mxu0 }
 0x762   : > { %v1387_v19 = vpop.f32.mrf.mxu0 }
 0x763   : > { %v1393_v20 = vmul.f32 0.17677669, %v1387_v19 }
 0x764   : > { %v2405_v21 = vpop.f32.mrf.mxu0 }
 0x765   : > { %v1394_v22 = vsel %vm1056_vm4, %v1393_v20, -inf }
 0x766   : > { %1395 = vmax.xlane.f32.xlu0 %v1394_v22  ;;  %v1390_v23 = vpop.f32.mrf.mxu0  ;;  %v2509_v22 = vld [vmem:[%s3124_s10 + $0x70] ss:$8 sps:$4 sm:$0xff]  }
 0x767   : > { %v2511_v23 = vld [vmem:[%s3124_s10 + $0x74] ss:$8 sps:$4 sm:$0xff]  }
 0x768   : > { %v2406_v24 = vpop.f32.mrf.mxu0 }
 0x769   : > { %v2514_v24 = vld [vmem:[%s3124_s10 + $0x64] ss:$8 sps:$4 sm:$0xff]  }
 0x7ef   : > { %v1396_v25 = vpop.xlane.xlu0 %1395 }
 0x7f0   : > { %v1397_v26 = vsub.f32 %v1393_v20, %v1396_v25 }
 0x7f2   : > { %v1398_v27 = vmul.f32 1.442695, %v1397_v26 }
 0x7f4   : > { %2557 = vpow2.f32 %v1398_v27 }
 0x801   : > { %v2558_v28 = vpop.eup %2557 }
 0x802   : > { %v1400_v29 = vsel %vm1056_vm4, %v2558_v28, 0.0 }
 0x803   : > { %1401 = vadd.xlane.f32.xlu1 %v1400_v29  ;;  %v2517_v29 = vld [vmem:[%s3124_s10 + $0x54] ss:$8 sps:$4 sm:$0xff]  }
 0x814   : > { %1513 = vrot.lane.b32.xlu1 %v2856_v62, %s2588_s25 }
 0x818   : > { %1511 = vrot.lane.b32.xlu1 %v2862_v2, %s2588_s25  ;;  %v2506_v2 = vld [vmem:[%s3120_s6 + $0x20] sm:$0xff]  }
 0x819   : > { %2416 = vmatpush3.bf16.msra.mxu0 %v2506_v2  ;;  %v2527_v2 = vld [vmem:[%s3124_s10 + $0x10] ss:$8 sps:$4 sm:$0xff]  }
 0x81a   : > { %2427 = vmatprep.subr.bf16.mxu0 %v2584_v32 }
 0x88c   : > { %v1402_v31 = vpop.xlane.xlu1 %1401 }
 0x88d   : > { %2559 = vrcp.f32 %v1402_v31  ;;  %v2518_v31 = vld [vmem:[%s3124_s10 + $0x40] ss:$8 sps:$4 sm:$0xff]  }
 0x890   : > { %v1514_v35 = vpop.permute.xlu1 %1513 }
 0x891   : > { %v1519_v37 = vsel %vm1008_vm2, %v1514_v35, 0  ;;  %v2521_v35 = vld [vmem:[%s3124_s10 + $0x30] ss:$8 sps:$4 sm:$0xff]  }
 0x894   : > { %v1512_v62 = vpop.permute.xlu1 %1511 }
 0x89a   : > { %v2560_v33 = vpop.eup %2559 }
 0x89b   : > { %v1404_v34 = vmul.f32 %v2560_v33, %v2558_v28  ;;  %v2520_v33 = vld [vmem:[%s3124_s10 + $0x44] ss:$8 sps:$4 sm:$0xff]  }
 0x89d   : > { %v1405_v36 = vpack.c.bf16 %v1404_v34, %v1404_v34  ;;  %v2523_v34 = vld [vmem:[%s3124_s10 + $0x34] ss:$8 sps:$4 sm:$0xff]  }
 0x89f   : > { %2410 = vmatmul.mubr.msk.bf16.vlgmr.msra.gmra.mxu1 %vm1056_vm4, %v1405_v36  ;;  %v2526_v36 = vld [vmem:[%s3124_s10 + $0x24] ss:$8 sps:$4 sm:$0xff]  }
 0x8a0   : > { %2422 = vmatpush3.bf16.xpose.msra.mxu1 %v1519_v37  ;;  %2423 = vmatprep.mubr.msk.bf16.mxu1 %vm2585_vm1, %v2584_v32  ;;  %v2524_v37 = vld [vmem:[%s3124_s10 + $0x20] ss:$8 sps:$4 sm:$0xff]  }
 0x8a1   : > { %2433 = vmatprep.subr.bf16.mxu1 %v2584_v32 }
 0x8a7   : > { %2424 = vmatmul.mubr.msk.bf16.vlgmr.msra.gmra.mxu1 %vm1008_vm2, %v1512_v62  ;;  %v2529_v62 = vld [vmem:[%s3124_s10 + $0x14] ss:$8 sps:$4 sm:$0xff]  }
 0x8a8   : > { %2437 = vmatprep.mubr.msk.bf16.mxu1 %vm2585_vm1, %v2584_v32 }
 0x95f   : > { %v1448_v39 = vpop.f32.mrf.mxu1 }
 0x960   : > { %v1454_v40 = vpack.c.bf16 %v1448_v39, %v1448_v39  ;;  %v2532_v39 = vld [vmem:[%s3124_s10 + $0x4] ss:$8 sps:$4 sm:$0xff]  }
 0x961   : > { %v2411_v41 = vpop.f32.mrf.mxu1 }
 0x962   : > { %2418 = vmatmul.mubr.msk.bf16.vlgmr.msra.gmra.mxu0 %vm1008_vm2, %v1454_v40  ;;  %v2530_v40 = vld [vmem:[%s3124_s10] ss:$8 sps:$4 sm:$0xff]  }
 0x963   : > { %v1451_v42 = vpop.f32.mrf.mxu1  ;;  %2429 = vmatprep.mubr.msk.bf16.mxu0 %vm2585_vm1, %v2584_v32 }
 0x965   : > { %v2412_v43 = vpop.f32.mrf.mxu1 }
 0x967   : > { %v1555_v44 = vpop.f32.mrf.mxu1 }
 0x968   : > { %v1561_v45 = vmul.f32 0.17677669, %v1555_v44 }
 0x969   : > { %v2425_v46 = vpop.f32.mrf.mxu1 }
 0x96a   : > { %v1562_v47 = vsel %vm1056_vm4, %v1561_v45, -inf }
 0x96b   : > { %1563 = vmax.xlane.f32.xlu0 %v1562_v47  ;;  %v1558_v48 = vpop.f32.mrf.mxu1  ;;  %v2241_v47 = vld [vmem:[%s3123_s9] ss:$0 sm:$0xff] }
 0x96d   : > { %v2426_v49 = vpop.f32.mrf.mxu1 }
 0x981   : > { %1574 = vrot.lane.b32.xlu0 %v2872_v8, %s2588_s25  ;;  %v2507_v8 = vld [vmem:[%s3120_s6 + $0x38] sm:$0xff]  }
 0x982   : > { %2434 = vmatpush3.bf16.msra.mxu1 %v2507_v8  ;;  %v2543_v8 = vld [vmem:[%s3126_s12 + $0x50] sm:$0xff]  }
 0x983   : > { %2435 = vmatprep.subr.bf16.mxu1 %v2584_v32 }
 0x986   : > { %2436 = vmatpush3.bf16.msra.mxu1 %v2508_v10 }
 0x9f4   : > { %v1564_v50 = vpop.xlane.xlu0 %1563 }
 0x9f5   : > { %v1565_v54 = vsub.f32 %v1561_v45, %v1564_v50  ;;  %v2240_v45 = vld [vmem:[%s3122_s8] ss:$0 sm:$0xff] }
 0x9f7   : > { %v1566_v55 = vmul.f32 1.442695, %v1565_v54  ;;  %v2533_v54 = vld [vmem:[%s3126_s12 + $0x78] sm:$0xff]  }
 0x9f8   : > { %v1575_v56 = vpop.permute.xlu0 %1574  ;;  %2319 = vmatprep.subr.bf16.mxu1 %v2533_v54 }
 0x9f9   : > { %2561 = vpow2.f32 %v1566_v55  ;;  %v1580_v57 = vsel %vm1073_vm3, %v1575_v56, 0  ;;  %v2534_v55 = vld [vmem:[%s3126_s12 + $0x38] sm:$0xff]   ;;  %v2535_v56 = vld [vmem:[%s3126_s12 + $0x70] sm:$0xff]  }
 0x9fa   : > { %2428 = vmatpush3.bf16.msra.mxu0 %v1580_v57  ;;  %v2536_v57 = vld [vmem:[%s3126_s12 + $0x30] sm:$0xff]  }
 0x9fb   : > { %1825 = vmatprep.subr.bf16.mxu0 %v2511_v23 }
 0xa06   : > { %v2562_v58 = vpop.eup %2561 }
 0xa07   : > { %v1568_v59 = vsel %vm1056_vm4, %v2562_v58, 0.0 }
 0xa08   : > { %1569 = vadd.xlane.f32.xlu1 %v1568_v59  ;;  %v2538_v59 = vld [vmem:[%s3126_s12 + $0x28] sm:$0xff]  }
 0xa22   : > { %v1504_v61 = vpop.f32.mrf.mxu0 }
 0xa23   : > { %v1510_v63 = vadd.f32 %v1504_v61, %v1338_v60  ;;  %v2539_v60 = vld [vmem:[%s3126_s12 + $0x60] sm:$0xff]  }
 0xa24   : > { %v2419_v0 = vpop.f32.mrf.mxu0  ;;  %v2540_v61 = vld [vmem:[%s3126_s12 + $0x20] sm:$0xff]  }
 0xa25   : > { %v2542_v0 = vld [vmem:[%s3126_s12 + $0x18] sm:$0xff]  }
 0xa26   : > { %v1507_v3 = vpop.f32.mrf.mxu0 }
 0xa27   : > { %v2544_v3 = vld [vmem:[%s3126_s12 + $0x10] sm:$0xff]  }
 0xa28   : > { %v2420_v4 = vpop.f32.mrf.mxu0 }
 0xa29   : > { %v2545_v4 = vld [vmem:[%s3126_s12 + $0x48] sm:$0xff]  }
 0xa91   : > { %v1570_v5 = vpop.xlane.xlu1 %1569 }
 0xa92   : > { %2563 = vrcp.f32 %v1570_v5  ;;  %v2546_v5 = vld [vmem:[%s3126_s12 + $0x8] sm:$0xff]  }
 0xa9f   : > { %v2564_v6 = vpop.eup %2563 }
 0xaa0   : > { %v1572_v7 = vmul.f32 %v2564_v6, %v2562_v58  ;;  %v2537_v58 = vld [vmem:[%s3126_s12 + $0x68] sm:$0xff]   ;;  %v2547_v6 = vld [vmem:[%s3126_s12 + $0x40] sm:$0xff]  }
 0xaa2   : > { %v1573_v9 = vpack.c.bf16 %v1572_v7, %v1572_v7  ;;  %v2548_v7 = vld [vmem:[%s3126_s12] sm:$0xff]  }
 0xaa4   : > { %2430 = vmatmul.mubr.msk.bf16.vlgmr.msra.gmra.mxu0 %vm1056_vm4, %v1573_v9  ;;  %v1732_v9 = vld [vmem:[%s3125_s11] sm:$0x3] }
 0xaa5   : > { %1857 = vmatprep.mubr.bf16.mxu0 %v2583_v1  ;;  %1826 = vmatpush1.bf16.msra.mxu0 %v2509_v22  ;;  %v1738_v10 = vrot.slane %v1732_v9, %v768_v53 }
 0xaa6   : > { %1827 = vmatprep.subr.bf16.mxu0 %v2514_v24 }
 0xb64   : > { %v1616_v11 = vpop.f32.mrf.mxu0 }
 0xb65   : > { %v1622_v12 = vpack.c.bf16 %v1616_v11, %v1616_v11  ;;  %v1742_v11 = vrot.slane %v1732_v9, %v772_v52 }
 0xb66   : > { %v2431_v13 = vpop.f32.mrf.mxu0 }
 0xb67   : > { %2438 = vmatmul.mubr.msk.bf16.vlgmr.msra.gmra.mxu1 %vm1008_vm2, %v1622_v12 }
 0xb68   : > { %v1619_v32 = vpop.f32.mrf.mxu0  ;;  %2320 = vmatpush3.bf16.msra.mxu1 %v2534_v55 }
 0xb69   : > { %2321 = vmatprep.subr.bf16.mxu1 %v2535_v56 }
 0xb6a   : > { %v2432_v14 = vpop.f32.mrf.mxu0 }
 0xb6c   : > { %2322 = vmatpush3.bf16.msra.mxu1 %v2536_v57 }
 0xb6d   : > { %2323 = vmatprep.subr.bf16.mxu1 %v2537_v58 }
 0xb70   : > { %2324 = vmatpush3.bf16.msra.mxu1 %v2538_v59 }
 0xb71   : > { %2325 = vmatprep.subr.bf16.mxu1 %v2539_v60 }
 0xb74   : > { %2326 = vmatpush3.bf16.msra.mxu1 %v2540_v61 }
 0xc27   : > { %v1672_v15 = vpop.f32.mrf.mxu1 }
 0xc28   : > { %v1678_v17 = vadd.f32 %v1672_v15, %v1510_v63  ;;  %v2541_v63 = vld [vmem:[%s3126_s12 + $0x58] sm:$0xff]  }
 0xc29   : > { %v2439_v18 = vpop.f32.mrf.mxu1  ;;  %2327 = vmatprep.subr.bf16.mxu1 %v2541_v63 }
 0xc2a   : > { %v1686_v1 = vadd.f32 %v2239_v16, %v1678_v17  ;;  %2328 = vmatpush3.bf16.msra.mxu1 %v2542_v0 }
 0xc2b   : > { %v1675_v19 = vpop.f32.mrf.mxu1  ;;  %2329 = vmatprep.subr.bf16.mxu1 %v2543_v8  ;;  %v2277_v8 = vld [vmem:[%s3130_s16] ss:$0 sm:$0xff] }
 0xc2c   : > { %v1687_v20 = vadd.f32 %v1686_v1, %v2805_v38  ;;  %v2512_v38 = vld [vmem:[%s3124_s10 + $0x60] ss:$8 sps:$4 sm:$0xff]  }
 0xc2d   : > { %v2440_v21 = vpop.f32.mrf.mxu1  ;;  %1828 = vmatpush1.bf16.msra.mxu0 %v2512_v38 }
 0xc2e   : > { %1690 = vadd.xlane.f32.xlu0 %v1687_v20  ;;  %1829 = vmatprep.subr.bf16.mxu0 %v2517_v29 }
 0xc2f   : > { %2330 = vmatpush3.bf16.msra.mxu1 %v2544_v3 }
 0xc30   : > { %2331 = vmatprep.subr.bf16.mxu1 %v2545_v4  ;;  %v2278_v4 = vld [vmem:[%s3131_s17] ss:$0 sm:$0xff] }
 0xc31   : > { %1830 = vmatpush1.bf16.msra.mxu0 %v2515_v30 }
 0xc32   : > { %1831 = vmatprep.subr.bf16.mxu0 %v2520_v33 }
 0xc33   : > { %2332 = vmatpush3.bf16.msra.mxu1 %v2546_v5 }
 0xc34   : > { %2333 = vmatprep.subr.bf16.mxu1 %v2547_v6 }
 0xc35   : > { %1832 = vmatpush1.bf16.msra.mxu0 %v2518_v31 }
 0xc36   : > { %1833 = vmatprep.subr.bf16.mxu0 %v2523_v34  ;;  %v2258_v34 = vld [vmem:[%s3127_s13] ss:$0 sm:$0xff] }
 0xc37   : > { %2334 = vmatpush3.bf16.msra.mxu1 %v2548_v7 }
 0xc39   : > { %1834 = vmatpush1.bf16.msra.mxu0 %v2521_v35 }
 0xc3a   : > { %1835 = vmatprep.subr.bf16.mxu0 %v2526_v36 }
 0xc3d   : > { %1836 = vmatpush1.bf16.msra.mxu0 %v2524_v37 }
 0xc3e   : > { %1837 = vmatprep.subr.bf16.mxu0 %v2529_v62 }
 0xc41   : > { %1838 = vmatpush1.bf16.msra.mxu0 %v2527_v2 }
 0xc42   : > { %1839 = vmatprep.subr.bf16.mxu0 %v2532_v39 }
 0xc45   : > { %1840 = vmatpush1.bf16.msra.mxu0 %v2530_v40 }
 0xcb7   : > { %v1691_v25 = vpop.xlane.xlu0 %1690 }
 0xcb8   : > { %v1693_v26 = vmul.f32 0.0078125, %v1691_v25 }
 0xcba   : > { %v1694_v27 = vsub.f32 %v1687_v20, %v1693_v26 }
 0xcbc   : > { %v1695_v28 = vmul.f32 %v1694_v27, %v1694_v27 }
 0xcbe   : > { %1696 = vadd.xlane.f32.xlu1 %v1695_v28 }
 0xd47   : > { %v1697_v41 = vpop.xlane.xlu1 %1696 }
 0xd48   : > { %v1698_v42 = vmul.f32 0.0078125, %v1697_v41 }
 0xd4a   : > { %v1699_v43 = vadd.f32 1e-12, %v1698_v42 }
 0xd4c   : > { %2565 = vrsqrt.f32 %v1699_v43 }
 0xd59   : > { %v2566_v44 = vpop.eup %2565 }
 0xd5a   : > { %v1701_v46 = vmul.f32 %v2566_v44, %v1694_v27 }
 0xd5c   : > { %v1708_v48 = vmul.f32 %v2240_v45, %v1701_v46 }
 0xd5e   : > { %v3032_v49 = vadd.f32 %v2241_v47, %v1708_v48  ;;  %v2275_v48 = vld [vmem:[%s3128_s14] ss:$0 sm:$0xff] }
 0xd60   : > { %v1733_v50 = vpack.c.bf16 %v3032_v49, %v3032_v49 }
 0xd62   : > { %1858 = vmatmul.mubr.bf16.vlgmr.msra.gmra.mxu0 %v1733_v50 }
 0xe22   : > { %v1859_v12 = vpop.f32.mrf.mxu0 }
 0xe23   : > { %v1860_v13 = vadd.f32 %v1859_v12, %v1738_v10 }
 0xe24   : > { %v1861_v32 = vpop.f32.mrf.mxu0 }
 0xe25   : > { %v1868_v14 = vmul.f32 0.044715, %v1860_v13  ;;  %v1862_v15 = vadd.f32 %v1861_v32, %v1742_v11  ;;  %v1866_v25 = vmul.f32 0.5, %v1860_v13 }
 0xe26   : > { %v1863_v16 = vpop.f32.mrf.mxu0 }
 0xe27   : > { %v1870_v17 = vmul.f32 %v1868_v14, %v1860_v13  ;;  %v1869_v18 = vmul.f32 0.044715, %v1862_v15  ;;  %v1867_v26 = vmul.f32 0.5, %v1862_v15 }
 0xe28   : > { %v1864_v1 = vpop.f32.mrf.mxu0 }
 0xe29   : > { %v1872_v19 = vmul.f32 %v1870_v17, %v1860_v13  ;;  %v1871_v20 = vmul.f32 %v1869_v18, %v1862_v15 }
 0xe2b   : > { %v1874_v21 = vadd.f32 %v1872_v19, %v1860_v13  ;;  %v1873_v22 = vmul.f32 %v1871_v20, %v1862_v15 }
 0xe2d   : > { %v1876_v23 = vmul.f32 0.7978846, %v1874_v21  ;;  %v1875_v24 = vadd.f32 %v1873_v22, %v1862_v15 }
 0xe2f   : > { %v1877_v38 = vmul.f32 0.7978846, %v1875_v24  ;;  %2567 = vtanh.f32 %v1876_v23 }
 0xe31   : > { %2569 = vtanh.f32 %v1877_v38 }
 0xe3c   : > { %v2568_v51 = vpop.eup %2567 }
 0xe3d   : > { %v1880_v52 = vadd.f32 1.0, %v2568_v51 }
 0xe3e   : > { %v2570_v53 = vpop.eup %2569 }
 0xe3f   : > { %v1881_v27 = vadd.f32 1.0, %v2570_v53  ;;  %v1882_v28 = vmul.f32 %v1880_v52, %v1866_v25 }
 0xe41   : > { %v1883_v29 = vmul.f32 %v1881_v27, %v1867_v26  ;;  %v1917_v31 = vpack.c.bf16 %v1882_v28, %v1882_v28 }
 0xe43   : > { %v1918_v30 = vpack.c.bf16 %v1883_v29, %v1883_v29 }
 0xe45   : > { %2053 = vmatprep.mubr.bf16.mxu1 %v1918_v30 }
 0xe46   : > { %2054 = vmatmul.mubr.bf16.vlgmr.msra.gmra.mxu1 %v1917_v31 }
 0xf06   : > { %v2335_v33 = vpop.f32.mrf.mxu1 }
 0xf08   : > { %v2336_v35 = vpop.f32.mrf.mxu1 }
 0xf09   : > { %v2337_v36 = vadd.f32 %v2336_v35, %v2335_v33 }
 0xf0a   : > { %v2338_v37 = vpop.f32.mrf.mxu1 }
 0xf0b   : > { %v2056_v62 = vadd.f32 %v2337_v36, %v2258_v34 }
 0xf0c   : > { %v2339_v2 = vpop.f32.mrf.mxu1 }
 0xf0d   : > { %v2061_v39 = vadd.f32 %v2056_v62, %v3032_v49  ;;  %v2276_v49 = vld [vmem:[%s3129_s15] ss:$0 sm:$0xff] }
 0xf0f   : > { %2064 = vadd.xlane.f32.xlu1 %v2061_v39 }
 0xf98   : > { %v2065_v40 = vpop.xlane.xlu1 %2064 }
 0xf99   : > { %v2066_v41 = vmul.f32 0.0078125, %v2065_v40 }
 0xf9b   : > { %v2067_v42 = vsub.f32 %v2061_v39, %v2066_v41 }
 0xf9d   : > { %v2068_v43 = vmul.f32 %v2067_v42, %v2067_v42 }
 0xf9f   : > { %2069 = vadd.xlane.f32.xlu1 %v2068_v43 }
0x1028   : > { %v2070_v44 = vpop.xlane.xlu1 %2069 }
0x1029   : > { %v2071_v45 = vmul.f32 0.0078125, %v2070_v44 }
0x102b   : > { %v2072_v46 = vadd.f32 1e-12, %v2071_v45 }
0x102d   : > { %2571 = vrsqrt.f32 %v2072_v46 }
0x103a   : > { %v2572_v47 = vpop.eup %2571 }
0x103b   : > { %v2074_v50 = vmul.f32 %v2572_v47, %v2067_v42 }
0x103d   : > { %v2081_v54 = vmul.f32 %v2275_v48, %v2074_v50 }
0x103f   : > { %v2088_v55 = vadd.f32 %v2276_v49, %v2081_v54 }
0x1041   : > { %2091 = vadd.xlane.f32.xlu1 %v2088_v55 }
0x10ca   : > { %v2092_v56 = vpop.xlane.xlu1 %2091 }
0x10cb   : > { %v2093_v57 = vmul.f32 0.0078125, %v2092_v56 }
0x10cd   : > { %v2094_v58 = vsub.f32 %v2088_v55, %v2093_v57 }
0x10cf   : > { %v2095_v59 = vmul.f32 %v2094_v58, %v2094_v58 }
0x10d1   : > { %2096 = vadd.xlane.f32.xlu1 %v2095_v59 }
0x115a   : > { %v2097_v60 = vpop.xlane.xlu1 %2096 }
0x115b   : > { %v2098_v61 = vmul.f32 0.0078125, %v2097_v60 }
0x115d   : > { %v2099_v63 = vadd.f32 1e-12, %v2098_v61 }
0x115f   : > { %2573 = vrsqrt.f32 %v2099_v63 }
0x116c   : > { %v2574_v0 = vpop.eup %2573 }
0x116d   : > { %v2101_v3 = vmul.f32 %v2574_v0, %v2094_v58 }
0x116f   : > { %v2108_v5 = vmul.f32 %v2277_v8, %v2101_v3 }
0x1171   : > { %v2115_v6 = vadd.f32 %v2278_v4, %v2108_v5 }
0x1173   : > { %v2116_v7 = vpack.c.bf16 %v2115_v6, %v2115_v6 }
0x1175   : > { %2117 = vst [vmem:[%s573_s23] sm:$0xf] %v2116_v7 }
0x1176 PF: > { %s28_s27 = sadd.s32 1, %s2581_s27  }
0x1177   : > { %p25_p4 = scmp.ge.s32.totalorder %s28_s27, 4  }
0x1179   :  { %27 = sbr.rel (!%p25_p4) target bundleno = 4 (0x4), region = 122 }

// kernel: _lambda_.7
= control target key start
LH: loop header
LB: loop body
LE: loop exit
PB: predicated region body
PF: predicated region fallthrough
CT: control target
= control target key end

     0   :  { %s4550_s0 = inlined_call_operand.vmem [shape: bf16[2,8,128], index: 0, kind: input, shape index: {}]   ;;  %s4551_s1 = inlined_call_operand.vmem [shape: bf16[2,8,128], index: 1, kind: input, shape index: {}]   ;;  %s4552_s2 = inlined_call_operand.vmem [shape: f32[2,1,8], index: 2, kind: input, shape index: {}]   ;;  %s4553_s3 = inlined_call_operand.vmem [shape: bf16[128,384], index: 3, kind: input, shape index: {}]   ;;  %s4554_s4 = inlined_call_operand.vmem [shape: f32[1,384], index: 4, kind: input, shape index: {}]   ;;  %s4555_s5 = inlined_call_operand.vmem [shape: bf16[128,128], index: 5, kind: input, shape index: {}]   ;;  %s4556_s6 = inlined_call_operand.vmem [shape: f32[1,128], index: 6, kind: input, shape index: {}]   ;;  %s4557_s7 = inlined_call_operand.vmem [shape: f32[1,128], index: 7, kind: input, shape index: {}]   ;;  %s4558_s8 = inlined_call_operand.vmem [shape: f32[1,128], index: 8, kind: input, shape index: {}]   ;;  %s4559_s9 = inlined_call_operand.vmem [shape: bf16[128,128], index: 9, kind: input, shape index: {}]   ;;  %s4560_s10 = inlined_call_operand.vmem [shape: f32[1,128], index: 10, kind: input, shape index: {}]   ;;  %s4561_s11 = inlined_call_operand.vmem [shape: bf16[128,256], index: 11, kind: input, shape index: {}]   ;;  %s4562_s12 = inlined_call_operand.vmem [shape: f32[1,256], index: 12, kind: input, shape index: {}]   ;;  %s4563_s13 = inlined_call_operand.vmem [shape: bf16[128,128], index: 13, kind: input, shape index: {}]   ;;  %s4564_s14 = inlined_call_operand.vmem [shape: f32[1,128], index: 14, kind: input, shape index: {}]   ;;  %s4565_s15 = inlined_call_operand.vmem [shape: f32[1,128], index: 15, kind: input, shape index: {}]   ;;  %s4566_s16 = inlined_call_operand.vmem [shape: f32[1,128], index: 16, kind: input, shape index: {}]   ;;  %s4567_s17 = inlined_call_operand.vmem [shape: bf16[128,256], index: 17, kind: input, shape index: {}]   ;;  %s4568_s18 = inlined_call_operand.vmem [shape: f32[1,256], index: 18, kind: input, shape index: {}]   ;;  %s4569_s19 = inlined_call_operand.vmem [shape: bf16[256,128], index: 19, kind: input, shape index: {}]   ;;  %s4570_s20 = inlined_call_operand.vmem [shape: f32[1,128], index: 20, kind: input, shape index: {}]   ;;  %s4571_s21 = inlined_call_operand.vmem [shape: f32[1,128], index: 21, kind: input, shape index: {}]   ;;  %s4572_s22 = inlined_call_operand.vmem [shape: f32[1,128], index: 22, kind: input, shape index: {}]   ;;  %s4573_s23 = inlined_call_operand.vmem [shape: bf16[2,8,128], index: 23, kind: output, shape index: {}]  }
   0x1   :  { %4580 = sst [smem:[#allocation2_spill]] %s4550_s0 }
   0x2   :  { %4581 = sst [smem:[#allocation3_spill]] %s4551_s1 }
   0x3   :  { %4582 = sst [smem:[#allocation4_spill]] %s4552_s2 }
   0x4   :  { %4583 = sst [smem:[#allocation5_spill]] %s4553_s3 }
   0x5   :  { %4584 = sst [smem:[#allocation6_spill]] %s4554_s4  ;;  %s3925_s4 = smov 0  }
   0x6   :  { %4585 = sst [smem:[#allocation7_spill]] %s4555_s5 }
   0x7   :  { %4586 = sst [smem:[#allocation8_spill]] %s4556_s6 }
   0x8   :  { %4587 = sst [smem:[#allocation9_spill]] %s4557_s7 }
   0x9 LB: > { %s3177_s30 = sadd.s32 4294967295, %s3797_s4   ;;  %p3181_p0 = scmp.ge.s32.totalorder %s3797_s4, 1  ;;  %s3797_s4 = sphi %s3925_s4, %s33_s4  }
   0xa   : > { %p653_p1 = scmp.lt.s32.totalorder %s3797_s4, 3 }
   0xc   : > { %p654_p2 = pnand %p3181_p0, %p653_p1 }
   0xd   : > { %s4588_s5 = sld [smem:[#allocation5_spill]] (!%p654_p2)  ;;  %p722_p3 = scmp.lt.s32.totalorder (!%p654_p2), %s3177_s30, 1 }
   0xe   : > { %657 = sbr.rel (%p654_p2) target bundleno = 6310 (0x18a6), region = 112  ;;  %s4589_s2 = sld [smem:[#allocation4_spill]] (!%p654_p2) }
   0xf   : > { %s4590_s26 = sld [smem:[#allocation2_spill]] (!%p654_p2)  ;;  %s3802_s7 = smov (!%p654_p2), 96  }
  0x10   : > { %s4578_s1 = smov (!%p654_p2), 64   ;;  %s4576_s25 = smov (!%p654_p2), 32  }
  0x11   : > { %s4593_s27 = sld [smem:[#allocation8_spill]] (!%p654_p2)  ;;  %s4596_s28 = smov (!%p654_p2), 64  }
  0x12   : > { %s4594_s29 = sld [smem:[#allocation3_spill]] (!%p654_p2) }
  0x13   : > { %v3629_v0 = vld [vmem:[%s4588_s5 + $0xac] ss:$12 sps:$4 sm:$0xff]   ;;  %v3631_v1 = vld [vmem:[%s4588_s5 + $0xa8] ss:$12 sps:$4 sm:$0xff]   ;;  %v3799_v2 = vmov 0   ;;  %v742_v5 = vlaneseq  ;;  %s4599_s30 = smov (!%p722_p3, %s3177_s30), 1 }
  0x14   : > { %966 = vmatprep.mubr.bf16.mxu0 %v3799_v2  ;;  %934 = vmatprep.subr.bf16.mxu0 %v3629_v0  ;;  %v3632_v3 = vld [vmem:[%s4588_s5 + $0x94] ss:$12 sps:$4 sm:$0xff]   ;;  %v3634_v4 = vld [vmem:[%s4588_s5 + $0x90] ss:$12 sps:$4 sm:$0xff]   ;;  %v3637_v8 = vld [vmem:[%s4588_s5 + $0x78] ss:$12 sps:$4 sm:$0xff]   ;;  %s732_s6 = scalar_lea.vmem %s4589_s2, %s4599_s30 }
  0x15   : > { %935 = vmatpush1.bf16.msra.mxu0 %v3631_v1  ;;  %v3635_v6 = vld [vmem:[%s4588_s5 + $0x7c] ss:$12 sps:$4 sm:$0xff]   ;;  %v745_v7 = vand.u32 127, %v742_v5  ;;  %v3952_v9 = vshrl.u32 %v742_v5, 7  ;;  %v3638_v10 = vld [vmem:[%s4588_s5 + $0x64] ss:$12 sps:$4 sm:$0xff]  }
  0x16   : > { %936 = vmatprep.subr.bf16.mxu0 %v3632_v3  ;;  %v3640_v11 = vld [vmem:[%s4588_s5 + $0x60] ss:$12 sps:$4 sm:$0xff]   ;;  %v3643_v15 = vld [vmem:[%s4588_s5 + $0x48] ss:$12 sps:$4 sm:$0xff]   ;;  %v3646_v17 = vld [vmem:[%s4588_s5 + $0x30] ss:$12 sps:$4 sm:$0xff]  }
  0x17   : > { %vm746_vm0 = vcmp.ge.s32.totalorder %v3952_v9, %v745_v7  ;;  %v3641_v12 = vld [vmem:[%s4588_s5 + $0x4c] ss:$12 sps:$4 sm:$0xff]   ;;  %v3185_v13 = vld [vmem:[%s732_s6] ss:$0 sm:$0xff]  ;;  %v3647_v18 = vld [vmem:[%s4588_s5 + $0x1c] ss:$12 sps:$4 sm:$0xff]  }
  0x18   : > { %v3967_v14 = vsel %vm746_vm0, %v3185_v13, 0.0  ;;  %v3644_v16 = vld [vmem:[%s4588_s5 + $0x34] ss:$12 sps:$4 sm:$0xff]   ;;  %v3649_v19 = vld [vmem:[%s4588_s5 + $0x18] ss:$12 sps:$4 sm:$0xff]   ;;  %s3987_s3 = sshll.u32 %s4599_s30, 2 }
  0x19   : > { %937 = vmatpush1.bf16.msra.mxu0 %v3634_v4  ;;  %v3650_v20 = vld [vmem:[%s4588_s5 + $0x4] ss:$12 sps:$4 sm:$0xff]   ;;  %v3652_v21 = vld [vmem:[%s4588_s5] ss:$12 sps:$4 sm:$0xff]   ;;  %s725_s2 = scalar_lea.vmem %s4590_s26, %s3987_s3  ;;  %v3800_v23 = vmov 0.0   ;;  %vm3801_vm1 = vmmov 0   ;;  %s729_s0 = scalar_lea.vmem %s4594_s29, %s3987_s3 }
  0x1a   : > { %938 = vmatprep.subr.bf16.mxu0 %v3635_v6  ;;  %v3996_v22 = vld [vmem:[%s725_s2] sm:$0xf]  ;;  %3415 = vmatprep.subr.bf16.mxu1 %v3800_v23  ;;  %v4006_v24 = vsub.s32 1, %v3952_v9  ;;  %v4009_v25 = vsub.s32 0, %v3952_v9  ;;  %s4591_s6 = sld [smem:[#allocation6_spill]]  ;;  %vm1033_vm2 = vcmask 261120  }
  0x1b   : > { %3431 = vmatprep.mubr.msk.bf16.mxu1 %vm3801_vm1, %v3800_v23  ;;  %v3653_v38 = vld [vmem:[%s4588_s5 + $0xb0] ss:$12 sps:$4 sm:$0xff]   ;;  %v3654_v39 = vld [vmem:[%s4588_s5 + $0x98] ss:$12 sps:$4 sm:$0xff]   ;;  %v3655_v40 = vld [vmem:[%s4588_s5 + $0x80] ss:$12 sps:$4 sm:$0xff]  }
  0x1c   : > { %3416 = vmatpush3.bf16.msra.mxu1 %v3653_v38  ;;  %v3656_v41 = vld [vmem:[%s4588_s5 + $0x68] ss:$12 sps:$4 sm:$0xff]   ;;  %v3657_v42 = vld [vmem:[%s4588_s5 + $0x50] ss:$12 sps:$4 sm:$0xff]   ;;  %v3658_v43 = vld [vmem:[%s4588_s5 + $0x38] ss:$12 sps:$4 sm:$0xff]  }
  0x1d   : > { %939 = vmatpush1.bf16.msra.mxu0 %v3637_v8  ;;  %3417 = vmatprep.subr.bf16.mxu1 %v3800_v23  ;;  %v3659_v44 = vld [vmem:[%s4588_s5 + $0x20] ss:$12 sps:$4 sm:$0xff]   ;;  %v3660_v45 = vld [vmem:[%s4588_s5 + $0x8] ss:$12 sps:$4 sm:$0xff]   ;;  %v3186_v49 = vadd.f32 -1.0, %v3967_v14  ;;  %vm1082_vm3 = vcmask 64512  }
  0x1e   : > { %940 = vmatprep.subr.bf16.mxu0 %v3638_v10  ;;  %v801_v13 = vsub.s32 2, %v3952_v9  ;;  %vm1099_vm4 = vcmask 1043456   ;;  %s4592_s30 = sld [smem:[#allocation7_spill]] }
  0x1f   : > { %v755_v50 = vmul.f32 1e+09, %v3186_v49  ;;  %s4595_s24 = sld [smem:[#allocation9_spill]] }
  0x20   : > { %v4014_v26 = vld [vmem:[%s4591_s6] sm:$0x7]  ;;  %3418 = vmatpush3.bf16.msra.mxu1 %v3654_v39  ;;  %s736_s6 = scalar_lea.vmem %s4573_s23, %s3987_s3 }
  0x21   : > { %941 = vmatpush1.bf16.msra.mxu0 %v3640_v11  ;;  %v798_v27 = vrot.slane %v4014_v26, %v4006_v24  ;;  %v794_v29 = vrot.slane %v4014_v26, %v4009_v25  ;;  %3419 = vmatprep.subr.bf16.mxu1 %v3800_v23  ;;  %v4076_v51 = vmul.f32 -1.0, %v755_v50  ;;  %v802_v14 = vrot.slane %v4014_v26, %v801_v13 }
  0x22   : > { %942 = vmatprep.subr.bf16.mxu0 %v3641_v12 }
  0x24   : > { %3420 = vmatpush3.bf16.msra.mxu1 %v3655_v40  ;;  %v3661_v39 = vld [vmem:[%s4592_s30 + $0x8] sm:$0xff]  }
  0x25   : > { %943 = vmatpush1.bf16.msra.mxu0 %v3643_v15  ;;  %3421 = vmatprep.subr.bf16.mxu1 %v3800_v23 }
  0x26   : > { %944 = vmatprep.subr.bf16.mxu0 %v3644_v16 }
  0x28   : > { %3422 = vmatpush3.bf16.msra.mxu1 %v3656_v41  ;;  %v3662_v41 = vld [vmem:[%s4592_s30] sm:$0xff]  }
  0x29   : > { %945 = vmatpush1.bf16.msra.mxu0 %v3646_v17  ;;  %3423 = vmatprep.subr.bf16.mxu1 %v3800_v23 }
  0x2a   : > { %946 = vmatprep.subr.bf16.mxu0 %v3647_v18 }
  0x2c   : > { %3424 = vmatpush3.bf16.msra.mxu1 %v3657_v42 }
  0x2d   : > { %947 = vmatpush1.bf16.msra.mxu0 %v3649_v19  ;;  %3425 = vmatprep.subr.bf16.mxu1 %v3800_v23 }
  0x2e   : > { %948 = vmatprep.subr.bf16.mxu0 %v3650_v20 }
  0x30   : > { %3426 = vmatpush3.bf16.msra.mxu1 %v3658_v43 }
  0x31   : > { %949 = vmatpush1.bf16.msra.mxu0 %v3652_v21  ;;  %3427 = vmatprep.subr.bf16.mxu1 %v3800_v23 }
  0x32   : > { %3435 = vmatprep.subr.bf16.mxu0 %v3800_v23 }
  0x34   : > { %967 = vmatmul.mubr.bf16.vlgmr.msra.gmra.mxu0 %v3996_v22  ;;  %3428 = vmatpush3.bf16.msra.mxu1 %v3659_v44 }
  0x35   : > { %3437 = vmatprep.mubr.msk.bf16.mxu0 %vm3801_vm1, %v3800_v23  ;;  %3429 = vmatprep.subr.bf16.mxu1 %v3800_v23 }
  0x38   : > { %3430 = vmatpush3.bf16.msra.mxu1 %v3660_v45 }
  0x39   : > { %3441 = vmatprep.subr.bf16.mxu1 %v3800_v23 }
  0x3b   : > { %3432 = vmatmul.mubr.bf16.vlgmr.msra.gmra.mxu1 %v3996_v22 }
  0x3c   : > { %3443 = vmatprep.mubr.msk.bf16.mxu1 %vm3801_vm1, %v3800_v23 }
  0xf4   : > { %v968_v28 = vpop.f32.mrf.mxu0 }
  0xf5   : > { %v969_v33 = vadd.f32 %v968_v28, %v794_v29 }
  0xf6   : > { %v970_v30 = vpop.f32.mrf.mxu0 }
  0xf7   : > { %v971_v31 = vadd.f32 %v970_v30, %v798_v27  ;;  %v4026_v37 = vpack.c.bf16 %v969_v33, %v969_v33  ;;  %v3663_v30 = vld [vmem:[%s4592_s30 + $0x18] sm:$0xff]  }
  0xf8   : > { %v972_v32 = vpop.f32.mrf.mxu0 }
  0xf9   : > { %v4020_v34 = vpack.c.bf16 %v971_v31, %v971_v31  ;;  %v3664_v31 = vld [vmem:[%s4592_s30 + $0x10] sm:$0xff]  }
  0xfa   : > { %v973_v35 = vpop.f32.mrf.mxu0 }
  0xfb   : > { %1148 = vrot.lane.b32.xlu0 %v4020_v34, %s3802_s7  ;;  %v1038_v36 = vsel %vm1033_vm2, %v4020_v34, 0  ;;  %v1009_v6 = vpop.f32.mrf.mxu1 }
  0xfc   : > { %3436 = vmatpush3.bf16.xpose.msra.mxu0 %v1038_v36  ;;  %v1010_v15 = vadd.f32 %v1009_v6, %v802_v14 }
  0xfd   : > { %3447 = vmatprep.subr.bf16.mxu0 %v3800_v23  ;;  %v3433_v7 = vpop.f32.mrf.mxu1 }
  0xfe   : > { %v4085_v16 = vpack.c.bf16 %v1010_v15, %v1010_v15 }
  0xff   : > { %1145 = vrot.lane.b32.xlu0 %v4026_v37, %s3802_s7  ;;  %v1012_v8 = vpop.f32.mrf.mxu1 }
 0x100   : > { %v1101_v17 = vsel %vm1099_vm4, %v4085_v16, 0 }
 0x101   : > { %v3434_v10 = vpop.f32.mrf.mxu1  ;;  %3442 = vmatpush3.bf16.msra.mxu1 %v1101_v17  ;;  %v3665_v17 = vld [vmem:[%s4592_s30 + $0x28] sm:$0xff]  }
 0x102   : > { %3453 = vmatprep.subr.bf16.mxu1 %v3800_v23 }
 0x103   : > { %3438 = vmatmul.mubr.msk.bf16.vlgmr.msra.gmra.mxu0 %vm1033_vm2, %v4026_v37 }
 0x104   : > { %3449 = vmatprep.mubr.msk.bf16.mxu0 %vm3801_vm1, %v3800_v23 }
 0x16d   : > { %v1149_v46 = vpop.permute.xlu0 %1148 }
 0x16e   : > { %v1154_v47 = vsel %vm1033_vm2, %v1149_v46, 0 }
 0x16f   : > { %3448 = vmatpush3.bf16.xpose.msra.mxu0 %v1154_v47 }
 0x170   : > { %3459 = vmatprep.subr.bf16.mxu0 %v3800_v23 }
 0x171   : > { %v1146_v48 = vpop.permute.xlu0 %1145 }
 0x176   : > { %3450 = vmatmul.mubr.msk.bf16.vlgmr.msra.gmra.mxu0 %vm1033_vm2, %v1146_v48 }
 0x177   : > { %3463 = vmatprep.mubr.msk.bf16.mxu0 %vm3801_vm1, %v3800_v23  ;;  %3460 = vmatpush3.bf16.msra.mxu0 %v3663_v30 }
 0x178   : > { %3461 = vmatprep.subr.bf16.mxu0 %v3800_v23 }
 0x17b   : > { %3462 = vmatpush3.bf16.msra.mxu0 %v3664_v31 }
 0x17c   : > { %3475 = vmatprep.subr.bf16.mxu0 %v3800_v23 }
 0x1c3   : > { %v1074_v52 = vpop.f32.mrf.mxu0 }
 0x1c4   : > { %v1080_v53 = vmul.f32 0.17677669, %v1074_v52 }
 0x1c5   : > { %v3439_v54 = vpop.f32.mrf.mxu0 }
 0x1c6   : > { %v1081_v55 = vadd.f32 %v1080_v53, %v4076_v51 }
 0x1c7   : > { %v1077_v56 = vpop.f32.mrf.mxu0 }
 0x1c8   : > { %v1083_v57 = vsel %vm1082_vm3, %v1081_v55, -inf }
 0x1c9   : > { %1084 = vmax.xlane.f32.xlu1 %v1083_v57  ;;  %v3440_v58 = vpop.f32.mrf.mxu0 }
 0x236   : > { %v1190_v59 = vpop.f32.mrf.mxu0 }
 0x237   : > { %v1196_v60 = vmul.f32 0.17677669, %v1190_v59 }
 0x238   : > { %v3451_v61 = vpop.f32.mrf.mxu0 }
 0x239   : > { %v1197_v62 = vadd.f32 %v1196_v60, %v4076_v51 }
 0x23a   : > { %v1193_v63 = vpop.f32.mrf.mxu0 }
 0x23b   : > { %v1198_v0 = vsel %vm1082_vm3, %v1197_v62, -inf }
 0x23c   : > { %1199 = vmax.xlane.f32.xlu1 %v1198_v0  ;;  %v3452_v1 = vpop.f32.mrf.mxu0 }
 0x252   : > { %v1085_v3 = vpop.xlane.xlu1 %1084 }
 0x253   : > { %v1086_v4 = vsub.f32 %v1081_v55, %v1085_v3 }
 0x255   : > { %v1087_v5 = vmul.f32 1.442695, %v1086_v4 }
 0x257   : > { %3749 = vpow2.f32 %v1087_v5 }
 0x264   : > { %v3750_v11 = vpop.eup %3749 }
 0x265   : > { %v1089_v12 = vsel %vm1082_vm3, %v3750_v11, 0.0 }
 0x266   : > { %1090 = vadd.xlane.f32.xlu0 %v1089_v12 }
 0x27c   : > { %1434 = vrot.lane.b32.xlu0 %v4085_v16, %s4578_s1 }
 0x2c5   : > { %v1200_v18 = vpop.xlane.xlu1 %1199 }
 0x2c6   : > { %v1201_v19 = vsub.f32 %v1197_v62, %v1200_v18 }
 0x2c8   : > { %v1202_v9 = vmul.f32 1.442695, %v1201_v19 }
 0x2ca   : > { %3751 = vpow2.f32 %v1202_v9 }
 0x2d7   : > { %v3752_v20 = vpop.eup %3751 }
 0x2d8   : > { %v1204_v21 = vsel %vm1082_vm3, %v3752_v20, 0.0 }
 0x2d9   : > { %1205 = vadd.xlane.f32.xlu1 %v1204_v21 }
 0x2ea   : > { %1211 = vrot.lane.b32.xlu1 %v4085_v16, %s3802_s7 }
 0x2ee   : > { %1372 = vrot.lane.b32.xlu1 %v4020_v34, %s4578_s1 }
 0x2ef   : > { %v1091_v26 = vpop.xlane.xlu0 %1090 }
 0x2f0   : > { %3753 = vrcp.f32 %v1091_v26 }
 0x2f2   : > { %1370 = vrot.lane.b32.xlu1 %v4026_v37, %s4578_s1 }
 0x2f3   : > { %v1435_v42 = vpop.permute.xlu0 %1434 }
 0x2f4   : > { %v1440_v46 = vsel %vm1099_vm4, %v1435_v42, 0 }
 0x2fd   : > { %v3754_v27 = vpop.eup %3753 }
 0x2fe   : > { %v1093_v28 = vmul.f32 %v3754_v27, %v3750_v11 }
 0x300   : > { %v1094_v29 = vpack.c.bf16 %v1093_v28, %v1093_v28 }
 0x302   : > { %3444 = vmatmul.mubr.msk.bf16.vlgmr.msra.gmra.mxu1 %vm1082_vm3, %v1094_v29 }
 0x303   : > { %3455 = vmatprep.mubr.msk.bf16.mxu1 %vm3801_vm1, %v3800_v23 }
 0x362   : > { %v1206_v32 = vpop.xlane.xlu1 %1205 }
 0x363   : > { %3755 = vrcp.f32 %v1206_v32 }
 0x366   : > { %v1212_v33 = vpop.permute.xlu1 %1211 }
 0x367   : > { %v1217_v35 = vsel %vm1099_vm4, %v1212_v33, 0 }
 0x368   : > { %3454 = vmatpush3.bf16.msra.mxu1 %v1217_v35 }
 0x369   : > { %3467 = vmatprep.subr.bf16.mxu1 %v3800_v23 }
 0x36a   : > { %v1373_v49 = vpop.permute.xlu1 %1372 }
 0x36b   : > { %v1378_v54 = vsel %vm1033_vm2, %v1373_v49, 0 }
 0x36e   : > { %v1371_v57 = vpop.permute.xlu1 %1370 }
 0x370   : > { %v3756_v36 = vpop.eup %3755 }
 0x371   : > { %v1208_v38 = vmul.f32 %v3756_v36, %v3752_v20 }
 0x373   : > { %v1209_v40 = vpack.c.bf16 %v1208_v38, %v1208_v38 }
 0x375   : > { %3456 = vmatmul.mubr.msk.bf16.vlgmr.msra.gmra.mxu1 %vm1082_vm3, %v1209_v40 }
 0x376   : > { %3468 = vmatpush3.bf16.msra.mxu1 %v3661_v39  ;;  %3471 = vmatprep.mubr.msk.bf16.mxu1 %vm3801_vm1, %v3800_v23 }
 0x377   : > { %3469 = vmatprep.subr.bf16.mxu1 %v3800_v23 }
 0x37a   : > { %3470 = vmatpush3.bf16.msra.mxu1 %v3662_v41 }
 0x37b   : > { %3481 = vmatprep.subr.bf16.mxu1 %v3800_v23 }
 0x3c2   : > { %v1137_v43 = vpop.f32.mrf.mxu1 }
 0x3c3   : > { %v1143_v44 = vpack.c.bf16 %v1137_v43, %v1137_v43 }
 0x3c4   : > { %v3445_v45 = vpop.f32.mrf.mxu1 }
 0x3c5   : > { %3472 = vmatmul.mubr.msk.bf16.vlgmr.msra.gmra.mxu1 %vm1033_vm2, %v1143_v44 }
 0x3c6   : > { %3482 = vmatpush3.bf16.msra.mxu1 %v1440_v46  ;;  %v1140_v47 = vpop.f32.mrf.mxu1  ;;  %3483 = vmatprep.mubr.msk.bf16.mxu1 %vm3801_vm1, %v3800_v23 }
 0x3c7   : > { %3495 = vmatprep.subr.bf16.mxu1 %v3800_v23 }
 0x3c8   : > { %v3446_v48 = vpop.f32.mrf.mxu1 }
 0x435   : > { %v1253_v50 = vpop.f32.mrf.mxu1 }
 0x436   : > { %v1259_v52 = vpack.c.bf16 %v1253_v50, %v1253_v50  ;;  %v3667_v50 = vld [vmem:[%s4592_s30 + $0x38] sm:$0xff]  }
 0x437   : > { %v3457_v53 = vpop.f32.mrf.mxu1 }
 0x438   : > { %3464 = vmatmul.mubr.msk.bf16.vlgmr.msra.gmra.mxu0 %vm1033_vm2, %v1259_v52 }
 0x439   : > { %3476 = vmatpush3.bf16.xpose.msra.mxu0 %v1378_v54  ;;  %v1256_v55 = vpop.f32.mrf.mxu1  ;;  %3477 = vmatprep.mubr.msk.bf16.mxu0 %vm3801_vm1, %v3800_v23 }
 0x43a   : > { %3487 = vmatprep.subr.bf16.mxu0 %v3800_v23 }
 0x43b   : > { %v3458_v56 = vpop.f32.mrf.mxu1 }
 0x440   : > { %3478 = vmatmul.mubr.msk.bf16.vlgmr.msra.gmra.mxu0 %vm1033_vm2, %v1371_v57 }
 0x441   : > { %3491 = vmatprep.mubr.msk.bf16.mxu0 %vm3801_vm1, %v3800_v23  ;;  %3488 = vmatpush3.bf16.msra.mxu0 %v3665_v17  ;;  %v3685_v17 = vld [vmem:[%s4559_s9 + $0x30] sm:$0xff]  }
 0x442   : > { %3489 = vmatprep.subr.bf16.mxu0 %v3800_v23 }
 0x485   : > { %v4136_v58 = vpop.f32.mrf.mxu1 }
 0x487   : > { %v3473_v59 = vpop.f32.mrf.mxu1 }
 0x489   : > { %v1367_v60 = vpop.f32.mrf.mxu1 }
 0x48b   : > { %v3474_v61 = vpop.f32.mrf.mxu1 }
 0x4f8   : > { %v4138_v62 = vpop.f32.mrf.mxu0 }
 0x4f9   : > { %v1365_v46 = vadd.f32 %v4136_v58, %v4138_v62  ;;  %v3668_v58 = vld [vmem:[%s4592_s30 + $0x30] sm:$0xff]  }
 0x4fa   : > { %v3465_v63 = vpop.f32.mrf.mxu0 }
 0x4fc   : > { %v1312_v0 = vpop.f32.mrf.mxu0 }
 0x4fe   : > { %v3466_v1 = vpop.f32.mrf.mxu0 }
 0x4ff   : > { %v3231_v1 = vld [vmem:[%s4593_s27] ss:$0 sm:$0xff]  ;;  %s4597_s27 = smov 32  }
 0x500   : > { %v1414_v3 = vpop.f32.mrf.mxu0 }
 0x501   : > { %v1420_v4 = vmul.f32 0.17677669, %v1414_v3 }
 0x502   : > { %v3479_v5 = vpop.f32.mrf.mxu0 }
 0x503   : > { %v1421_v6 = vadd.f32 %v1420_v4, %v4076_v51  ;;  %v739_v4 = vunpack.c.l.bf16 %v3996_v22  ;;  %v3681_v22 = vld [vmem:[%s4559_s9 + $0x38] sm:$0xff]  }
 0x504   : > { %v1417_v7 = vpop.f32.mrf.mxu0 }
 0x505   : > { %v1422_v8 = vsel %vm1082_vm3, %v1421_v6, -inf }
 0x506   : > { %1423 = vmax.xlane.f32.xlu1 %v1422_v8  ;;  %v3480_v10 = vpop.f32.mrf.mxu0 }
 0x58f   : > { %v1424_v11 = vpop.xlane.xlu1 %1423 }
 0x590   : > { %v1425_v12 = vsub.f32 %v1421_v6, %v1424_v11  ;;  %v3669_v11 = vld [vmem:[%s4561_s11 + $0x70] ss:$8 sps:$4 sm:$0xff]  }
 0x592   : > { %v1426_v13 = vmul.f32 1.442695, %v1425_v12  ;;  %v3671_v12 = vld [vmem:[%s4561_s11 + $0x74] ss:$8 sps:$4 sm:$0xff]  }
 0x594   : > { %3757 = vpow2.f32 %v1426_v13  ;;  %v3674_v13 = vld [vmem:[%s4561_s11 + $0x64] ss:$8 sps:$4 sm:$0xff]  }
 0x5a1   : > { %v3758_v14 = vpop.eup %3757 }
 0x5a2   : > { %v1428_v15 = vsel %vm1082_vm3, %v3758_v14, 0.0 }
 0x5a3   : > { %1429 = vadd.xlane.f32.xlu0 %v1428_v15  ;;  %v3677_v15 = vld [vmem:[%s4561_s11 + $0x54] ss:$8 sps:$4 sm:$0xff]  }
 0x5b9   : > { %1541 = vrot.lane.b32.xlu0 %v4020_v34, %s4576_s25 }
 0x5bd   : > { %1539 = vrot.lane.b32.xlu0 %v4026_v37, %s4576_s25  ;;  %v3666_v37 = vld [vmem:[%s4592_s30 + $0x20] sm:$0xff]  }
 0x5be   : > { %3490 = vmatpush3.bf16.msra.mxu0 %v3666_v37 }
 0x5bf   : > { %3501 = vmatprep.subr.bf16.mxu0 %v3800_v23 }
 0x62c   : > { %v1430_v18 = vpop.xlane.xlu0 %1429 }
 0x62d   : > { %3759 = vrcp.f32 %v1430_v18  ;;  %v3675_v18 = vld [vmem:[%s4561_s11 + $0x50] ss:$8 sps:$4 sm:$0xff]  }
 0x630   : > { %v1542_v20 = vpop.permute.xlu0 %1541 }
 0x631   : > { %v1547_v26 = vsel %vm1033_vm2, %v1542_v20, 0  ;;  %v3684_v20 = vld [vmem:[%s4561_s11 + $0x34] ss:$8 sps:$4 sm:$0xff]  }
 0x634   : > { %v1540_v34 = vpop.permute.xlu0 %1539 }
 0x63a   : > { %v3760_v19 = vpop.eup %3759 }
 0x63b   : > { %v1432_v9 = vmul.f32 %v3760_v19, %v3758_v14  ;;  %v3672_v14 = vld [vmem:[%s4561_s11 + $0x60] ss:$8 sps:$4 sm:$0xff]   ;;  %v3680_v19 = vld [vmem:[%s4561_s11 + $0x44] ss:$8 sps:$4 sm:$0xff]  }
 0x63d   : > { %v1433_v21 = vpack.c.bf16 %v1432_v9, %v1432_v9  ;;  %v3678_v9 = vld [vmem:[%s4561_s11 + $0x40] ss:$8 sps:$4 sm:$0xff]  }
 0x63f   : > { %3484 = vmatmul.mubr.msk.bf16.vlgmr.msra.gmra.mxu1 %vm1082_vm3, %v1433_v21  ;;  %v3682_v21 = vld [vmem:[%s4561_s11 + $0x30] ss:$8 sps:$4 sm:$0xff]  }
 0x640   : > { %3496 = vmatpush3.bf16.xpose.msra.mxu1 %v1547_v26  ;;  %3497 = vmatprep.mubr.msk.bf16.mxu1 %vm3801_vm1, %v3800_v23 }
 0x641   : > { %3507 = vmatprep.subr.bf16.mxu1 %v3800_v23 }
 0x647   : > { %3498 = vmatmul.mubr.msk.bf16.vlgmr.msra.gmra.mxu1 %vm1033_vm2, %v1540_v34 }
 0x648   : > { %3511 = vmatprep.mubr.msk.bf16.mxu1 %vm3801_vm1, %v3800_v23  ;;  %3508 = vmatpush3.bf16.msra.mxu1 %v3667_v50 }
 0x649   : > { %3509 = vmatprep.subr.bf16.mxu1 %v3800_v23 }
 0x64c   : > { %3510 = vmatpush3.bf16.msra.mxu1 %v3668_v58 }
 0x64d   : > { %1965 = vmatprep.subr.bf16.mxu1 %v3671_v12 }
 0x6ff   : > { %v1476_v27 = vpop.f32.mrf.mxu1 }
 0x700   : > { %v1482_v28 = vpack.c.bf16 %v1476_v27, %v1476_v27 }
 0x701   : > { %v3485_v29 = vpop.f32.mrf.mxu1 }
 0x702   : > { %3492 = vmatmul.mubr.msk.bf16.vlgmr.msra.gmra.mxu0 %vm1033_vm2, %v1482_v28  ;;  %v3688_v28 = vld [vmem:[%s4561_s11 + $0x24] ss:$8 sps:$4 sm:$0xff]   ;;  %v3686_v29 = vld [vmem:[%s4561_s11 + $0x20] ss:$8 sps:$4 sm:$0xff]  }
 0x703   : > { %v1479_v30 = vpop.f32.mrf.mxu1  ;;  %3503 = vmatprep.mubr.msk.bf16.mxu0 %vm3801_vm1, %v3800_v23 }
 0x704   : > { %v3689_v30 = vld [vmem:[%s4559_s9 + $0x28] sm:$0xff]  }
 0x705   : > { %v3486_v31 = vpop.f32.mrf.mxu1 }
 0x706   : > { %v3692_v31 = vld [vmem:[%s4561_s11 + $0x14] ss:$8 sps:$4 sm:$0xff]  }
 0x707   : > { %v1583_v32 = vpop.f32.mrf.mxu1 }
 0x708   : > { %v1589_v33 = vmul.f32 0.17677669, %v1583_v32  ;;  %v3690_v32 = vld [vmem:[%s4561_s11 + $0x10] ss:$8 sps:$4 sm:$0xff]  }
 0x709   : > { %v3499_v35 = vpop.f32.mrf.mxu1 }
 0x70a   : > { %v1590_v36 = vadd.f32 %v1589_v33, %v4076_v51  ;;  %v3693_v33 = vld [vmem:[%s4559_s9 + $0x20] sm:$0xff]  }
 0x70b   : > { %v1586_v38 = vpop.f32.mrf.mxu1  ;;  %v3696_v35 = vld [vmem:[%s4561_s11 + $0x4] ss:$8 sps:$4 sm:$0xff]  }
 0x70c   : > { %v1591_v39 = vsel %vm1082_vm3, %v1590_v36, -inf  ;;  %v3697_v38 = vld [vmem:[%s4559_s9 + $0x18] sm:$0xff]  }
 0x70d   : > { %1592 = vmax.xlane.f32.xlu0 %v1591_v39  ;;  %v3500_v40 = vpop.f32.mrf.mxu1  ;;  %v740_v39 = vld [vmem:[%s729_s0] sm:$0xf] }
 0x70e   : > { %v3698_v40 = vld [vmem:[%s4559_s9 + $0x10] sm:$0xff]  }
 0x796   : > { %v1593_v41 = vpop.xlane.xlu0 %1592 }
 0x797   : > { %v1594_v42 = vsub.f32 %v1590_v36, %v1593_v41  ;;  %v3694_v36 = vld [vmem:[%s4561_s11] ss:$8 sps:$4 sm:$0xff]  }
 0x798   : > { %v3699_v41 = vld [vmem:[%s4559_s9 + $0x8] sm:$0xff]  }
 0x799   : > { %v1595_v43 = vmul.f32 1.442695, %v1594_v42  ;;  %v3700_v42 = vld [vmem:[%s4559_s9] sm:$0xff]  }
 0x79b   : > { %3761 = vpow2.f32 %v1595_v43 }
 0x7a8   : > { %v3762_v44 = vpop.eup %3761 }
 0x7a9   : > { %v1597_v45 = vsel %vm1082_vm3, %v3762_v44, 0.0 }
 0x7aa   : > { %1598 = vadd.xlane.f32.xlu1 %v1597_v45 }
 0x7bb   : > { %1603 = vrot.lane.b32.xlu1 %v4085_v16, %s4576_s25 }
 0x7c2   : > { %v1532_v51 = vpop.f32.mrf.mxu0 }
 0x7c3   : > { %v1538_v47 = vadd.f32 %v1532_v51, %v1365_v46  ;;  %v3232_v51 = vld [vmem:[%s4595_s24] ss:$0 sm:$0xff] }
 0x7c4   : > { %v3493_v48 = vpop.f32.mrf.mxu0 }
 0x7c5   : > { %v3233_v48 = vld [vmem:[%s4558_s8] ss:$0 sm:$0xff] }
 0x7c6   : > { %v1535_v49 = vpop.f32.mrf.mxu0 }
 0x7c8   : > { %v3494_v52 = vpop.f32.mrf.mxu0 }
 0x833   : > { %v1599_v53 = vpop.xlane.xlu1 %1598 }
 0x834   : > { %3763 = vrcp.f32 %v1599_v53  ;;  %v1873_v53 = vld [vmem:[%s4562_s12] sm:$0x3] }
 0x837   : > { %v1604_v54 = vpop.permute.xlu1 %1603 }
 0x838   : > { %v1609_v16 = vsel %vm1099_vm4, %v1604_v54, 0  ;;  %v1878_v54 = vrot.slane %v1873_v53, %v4009_v25 }
 0x839   : > { %3502 = vmatpush3.bf16.msra.mxu0 %v1609_v16  ;;  %v1882_v16 = vrot.slane %v1873_v53, %v4006_v24 }
 0x83a   : > { %3515 = vmatprep.subr.bf16.mxu0 %v3800_v23 }
 0x841   : > { %v3764_v55 = vpop.eup %3763 }
 0x842   : > { %v1601_v56 = vmul.f32 %v3764_v55, %v3762_v44 }
 0x844   : > { %v1602_v57 = vpack.c.bf16 %v1601_v56, %v1601_v56 }
 0x846   : > { %3504 = vmatmul.mubr.msk.bf16.vlgmr.msra.gmra.mxu0 %vm1082_vm3, %v1602_v57 }
 0x847   : > { %3531 = vmatprep.mubr.msk.bf16.mxu0 %vm3801_vm1, %v3800_v23  ;;  %3516 = vmatpush3.bf16.msra.mxu0 %v3681_v22 }
 0x848   : > { %3517 = vmatprep.subr.bf16.mxu0 %v3800_v23 }
 0x84b   : > { %3518 = vmatpush3.bf16.msra.mxu0 %v3685_v17 }
 0x84c   : > { %3519 = vmatprep.subr.bf16.mxu0 %v3800_v23 }
 0x84f   : > { %3520 = vmatpush3.bf16.msra.mxu0 %v3689_v30 }
 0x850   : > { %3521 = vmatprep.subr.bf16.mxu0 %v3800_v23 }
 0x853   : > { %3522 = vmatpush3.bf16.msra.mxu0 %v3693_v33 }
 0x854   : > { %3523 = vmatprep.subr.bf16.mxu0 %v3800_v23 }
 0x857   : > { %3524 = vmatpush3.bf16.msra.mxu0 %v3697_v38 }
 0x858   : > { %3525 = vmatprep.subr.bf16.mxu0 %v3800_v23 }
 0x85b   : > { %3526 = vmatpush3.bf16.msra.mxu0 %v3698_v40 }
 0x85c   : > { %3527 = vmatprep.subr.bf16.mxu0 %v3800_v23 }
 0x85f   : > { %3528 = vmatpush3.bf16.msra.mxu0 %v3699_v41 }
 0x860   : > { %3529 = vmatprep.subr.bf16.mxu0 %v3800_v23 }
 0x863   : > { %3530 = vmatpush3.bf16.msra.mxu0 %v3700_v42  ;;  %v3703_v42 = vld [vmem:[%s4563_s13 + $0x18] sm:$0xff]  }
 0x864   : > { %3535 = vmatprep.subr.bf16.mxu0 %v3800_v23 }
 0x906   : > { %v1645_v59 = vpop.f32.mrf.mxu0 }
 0x907   : > { %v1651_v60 = vpack.c.bf16 %v1645_v59, %v1645_v59 }
 0x908   : > { %v3505_v61 = vpop.f32.mrf.mxu0 }
 0x909   : > { %3512 = vmatmul.mubr.msk.bf16.vlgmr.msra.gmra.mxu1 %vm1033_vm2, %v1651_v60 }
 0x90a   : > { %v1648_v62 = vpop.f32.mrf.mxu0  ;;  %1997 = vmatprep.mubr.bf16.mxu1 %v3799_v2  ;;  %1966 = vmatpush1.bf16.msra.mxu1 %v3669_v11 }
 0x90b   : > { %1967 = vmatprep.subr.bf16.mxu1 %v3674_v13 }
 0x90c   : > { %v3506_v63 = vpop.f32.mrf.mxu0 }
 0x90e   : > { %1968 = vmatpush1.bf16.msra.mxu1 %v3672_v14 }
 0x90f   : > { %1969 = vmatprep.subr.bf16.mxu1 %v3677_v15 }
 0x912   : > { %1970 = vmatpush1.bf16.msra.mxu1 %v3675_v18 }
 0x913   : > { %1971 = vmatprep.subr.bf16.mxu1 %v3680_v19 }
 0x916   : > { %1972 = vmatpush1.bf16.msra.mxu1 %v3678_v9 }
 0x917   : > { %1973 = vmatprep.subr.bf16.mxu1 %v3684_v20 }
 0x91a   : > { %1974 = vmatpush1.bf16.msra.mxu1 %v3682_v21 }
 0x91b   : > { %1975 = vmatprep.subr.bf16.mxu1 %v3688_v28 }
 0x91e   : > { %1976 = vmatpush1.bf16.msra.mxu1 %v3686_v29 }
 0x91f   : > { %1977 = vmatprep.subr.bf16.mxu1 %v3692_v31 }
 0x922   : > { %1978 = vmatpush1.bf16.msra.mxu1 %v3690_v32 }
 0x923   : > { %1979 = vmatprep.subr.bf16.mxu1 %v3696_v35 }
 0x926   : > { %1980 = vmatpush1.bf16.msra.mxu1 %v3694_v36 }
 0x927   : > { %3541 = vmatprep.subr.bf16.mxu1 %v3800_v23 }
 0x929   : > { %1998 = vmatmul.mubr.bf16.vlgmr.msra.gmra.mxu1 %v740_v39 }
 0x92a   : > { %3543 = vmatprep.mubr.msk.bf16.mxu1 %vm3801_vm1, %v3800_v23 }
 0x9c9   : > { %v1701_v0 = vpop.f32.mrf.mxu1 }
 0x9ca   : > { %v1707_v3 = vadd.f32 %v1701_v0, %v1538_v47 }
 0x9cb   : > { %v3513_v5 = vpop.f32.mrf.mxu1 }
 0x9cc   : > { %v1715_v6 = vadd.f32 %v3231_v1, %v1707_v3  ;;  %v3234_v1 = vld [vmem:[%s4560_s10] ss:$0 sm:$0xff] }
 0x9cd   : > { %v1704_v7 = vpop.f32.mrf.mxu1 }
 0x9ce   : > { %v1716_v8 = vadd.f32 %v1715_v6, %v739_v4 }
 0x9cf   : > { %v3514_v10 = vpop.f32.mrf.mxu1 }
 0x9d0   : > { %1719 = vadd.xlane.f32.xlu1 %v1716_v8 }
 0x9e9   : > { %v1999_v55 = vpop.f32.mrf.mxu1 }
 0x9ea   : > { %v2000_v56 = vadd.f32 %v1999_v55, %v1878_v54 }
 0x9eb   : > { %v2001_v57 = vpop.f32.mrf.mxu1 }
 0x9ec   : > { %v4295_v58 = vpack.c.bf16 %v2000_v56, %v2000_v56  ;;  %v2002_v59 = vadd.f32 %v2001_v57, %v1882_v16 }
 0x9ed   : > { %v2003_v60 = vpop.f32.mrf.mxu1 }
 0x9ee   : > { %v4297_v61 = vpack.c.bf16 %v2002_v59, %v2002_v59  ;;  %v2028_v62 = vsel %vm1033_vm2, %v4295_v58, 0 }
 0x9ef   : > { %v2004_v63 = vpop.f32.mrf.mxu1 }
 0x9f0   : > { %v2088_v0 = vsel %vm1099_vm4, %v4297_v61, 0 }
 0x9f1   : > { %3542 = vmatpush3.bf16.msra.mxu1 %v2088_v0 }
 0x9f2   : > { %3553 = vmatprep.subr.bf16.mxu1 %v3800_v23 }
 0xa59   : > { %v1720_v26 = vpop.xlane.xlu1 %1719 }
 0xa5a   : > { %v1722_v34 = vmul.f32 0.0078125, %v1720_v26 }
 0xa5c   : > { %v1723_v37 = vsub.f32 %v1716_v8, %v1722_v34 }
 0xa5e   : > { %v1724_v27 = vmul.f32 %v1723_v37, %v1723_v37 }
 0xa60   : > { %1725 = vadd.xlane.f32.xlu0 %v1724_v27 }
 0xa76   : > { %2135 = vrot.lane.b32.xlu0 %v4295_v58, %s3802_s7 }
 0xae9   : > { %v1726_v43 = vpop.xlane.xlu0 %1725 }
 0xaea   : > { %v1727_v44 = vmul.f32 0.0078125, %v1726_v43  ;;  %v3704_v43 = vld [vmem:[%s4563_s13 + $0x10] sm:$0xff]  }
 0xaec   : > { %v1728_v45 = vadd.f32 1e-12, %v1727_v44 }
 0xaed   : > { %v2136_v4 = vpop.permute.xlu0 %2135 }
 0xaee   : > { %3765 = vrsqrt.f32 %v1728_v45  ;;  %v2141_v8 = vsel %vm1033_vm2, %v2136_v4, 0 }
 0xafb   : > { %v3766_v46 = vpop.eup %3765 }
 0xafc   : > { %v1730_v47 = vmul.f32 %v3766_v46, %v1723_v37 }
 0xafe   : > { %v1737_v49 = vmul.f32 %v3232_v51, %v1730_v47 }
 0xb00   : > { %v4284_v50 = vadd.f32 %v3233_v48, %v1737_v49  ;;  %v3701_v48 = vld [vmem:[%s4563_s13 + $0x8] sm:$0xff]  }
 0xb02   : > { %v1762_v52 = vpack.c.bf16 %v4284_v50, %v4284_v50 }
 0xb04   : > { %3532 = vmatmul.mubr.bf16.vlgmr.msra.gmra.mxu0 %v1762_v52  ;;  %v3702_v52 = vld [vmem:[%s4563_s13] sm:$0xff]  }
 0xb05   : > { %3537 = vmatprep.mubr.msk.bf16.mxu0 %vm3801_vm1, %v3800_v23  ;;  %3536 = vmatpush3.bf16.xpose.msra.mxu0 %v2028_v62 }
 0xb06   : > { %3547 = vmatprep.subr.bf16.mxu0 %v3800_v23 }
 0xbc4   : > { %v1851_v3 = vpop.f32.mrf.mxu0 }
 0xbc5   : > { %v1852_v5 = vadd.f32 %v3234_v1, %v1851_v3 }
 0xbc6   : > { %v3533_v6 = vpop.f32.mrf.mxu0 }
 0xbc7   : > { %v4310_v7 = vpack.c.bf16 %v1852_v5, %v1852_v5 }
 0xbc8   : > { %v1854_v10 = vpop.f32.mrf.mxu0 }
 0xbc9   : > { %2132 = vrot.lane.b32.xlu0 %v4310_v7, %s3802_s7  ;;  %3538 = vmatmul.mubr.msk.bf16.vlgmr.msra.gmra.mxu0 %vm1033_vm2, %v4310_v7 }
 0xbca   : > { %v3534_v11 = vpop.f32.mrf.mxu0  ;;  %3548 = vmatpush3.bf16.xpose.msra.mxu0 %v2141_v8  ;;  %3549 = vmatprep.mubr.msk.bf16.mxu0 %vm3801_vm1, %v3800_v23 }
 0xbcb   : > { %3559 = vmatprep.subr.bf16.mxu0 %v3800_v23 }
 0xc3b   : > { %v2133_v12 = vpop.permute.xlu0 %2132 }
 0xc3c   : > { %3550 = vmatmul.mubr.msk.bf16.vlgmr.msra.gmra.mxu0 %vm1033_vm2, %v2133_v12 }
 0xc3d   : > { %3563 = vmatprep.mubr.msk.bf16.mxu0 %vm3801_vm1, %v3800_v23  ;;  %3560 = vmatpush3.bf16.msra.mxu0 %v3703_v42 }
 0xc3e   : > { %3561 = vmatprep.subr.bf16.mxu0 %v3800_v23 }
 0xc41   : > { %3562 = vmatpush3.bf16.msra.mxu0 %v3704_v43 }
 0xc42   : > { %3575 = vmatprep.subr.bf16.mxu0 %v3800_v23 }
 0xc89   : > { %v2064_v13 = vpop.f32.mrf.mxu0 }
 0xc8a   : > { %v2070_v22 = vmul.f32 0.17677669, %v2064_v13 }
 0xc8b   : > { %v3539_v14 = vpop.f32.mrf.mxu0 }
 0xc8c   : > { %v2071_v15 = vsel %vm1082_vm3, %v2070_v22, -inf }
 0xc8d   : > { %2072 = vmax.xlane.f32.xlu1 %v2071_v15  ;;  %v2067_v17 = vpop.f32.mrf.mxu0 }
 0xc8f   : > { %v3540_v18 = vpop.f32.mrf.mxu0 }
 0xcfc   : > { %v2177_v19 = vpop.f32.mrf.mxu0 }
 0xcfd   : > { %v2183_v9 = vmul.f32 0.17677669, %v2177_v19 }
 0xcfe   : > { %v3551_v20 = vpop.f32.mrf.mxu0 }
 0xcff   : > { %v2184_v21 = vsel %vm1082_vm3, %v2183_v9, -inf }
 0xd00   : > { %2185 = vmax.xlane.f32.xlu0 %v2184_v21  ;;  %v2180_v26 = vpop.f32.mrf.mxu0 }
 0xd02   : > { %v3552_v34 = vpop.f32.mrf.mxu0 }
 0xd16   : > { %v2073_v37 = vpop.xlane.xlu1 %2072 }
 0xd17   : > { %v2074_v27 = vsub.f32 %v2070_v22, %v2073_v37 }
 0xd19   : > { %v2075_v28 = vmul.f32 1.442695, %v2074_v27 }
 0xd1b   : > { %3767 = vpow2.f32 %v2075_v28 }
 0xd28   : > { %v3768_v29 = vpop.eup %3767 }
 0xd29   : > { %v2077_v30 = vsel %vm1082_vm3, %v3768_v29, 0.0 }
 0xd2a   : > { %2078 = vadd.xlane.f32.xlu1 %v2077_v30 }
 0xd89   : > { %v2186_v31 = vpop.xlane.xlu0 %2185 }
 0xd8a   : > { %v2187_v32 = vsub.f32 %v2183_v9, %v2186_v31 }
 0xd8c   : > { %v2188_v33 = vmul.f32 1.442695, %v2187_v32 }
 0xd8e   : > { %3769 = vpow2.f32 %v2188_v33 }
 0xd9b   : > { %v3770_v35 = vpop.eup %3769 }
 0xd9c   : > { %v2190_v36 = vsel %vm1082_vm3, %v3770_v35, 0.0 }
 0xd9d   : > { %2191 = vadd.xlane.f32.xlu1 %v2190_v36 }
 0xdae   : > { %2197 = vrot.lane.b32.xlu1 %v4297_v61, %s3802_s7 }
 0xdb2   : > { %2358 = vrot.lane.b32.xlu1 %v4295_v58, %s4596_s28 }
 0xdb3   : > { %v2079_v38 = vpop.xlane.xlu1 %2078 }
 0xdb4   : > { %3771 = vrcp.f32 %v2079_v38 }
 0xdb6   : > { %2356 = vrot.lane.b32.xlu1 %v4310_v7, %s4596_s28 }
 0xdc1   : > { %v3772_v39 = vpop.eup %3771 }
 0xdc2   : > { %v2081_v40 = vmul.f32 %v3772_v39, %v3768_v29 }
 0xdc4   : > { %v2082_v41 = vpack.c.bf16 %v2081_v40, %v2081_v40 }
 0xdc6   : > { %3544 = vmatmul.mubr.msk.bf16.vlgmr.msra.gmra.mxu1 %vm1082_vm3, %v2082_v41 }
 0xdc7   : > { %3555 = vmatprep.mubr.msk.bf16.mxu1 %vm3801_vm1, %v3800_v23 }
 0xe26   : > { %v2192_v44 = vpop.xlane.xlu1 %2191 }
 0xe27   : > { %3773 = vrcp.f32 %v2192_v44 }
 0xe2a   : > { %v2198_v45 = vpop.permute.xlu1 %2197 }
 0xe2b   : > { %v2203_v46 = vsel %vm1099_vm4, %v2198_v45, 0 }
 0xe2c   : > { %3554 = vmatpush3.bf16.msra.mxu1 %v2203_v46 }
 0xe2d   : > { %3567 = vmatprep.subr.bf16.mxu1 %v3800_v23 }
 0xe2e   : > { %v2359_v57 = vpop.permute.xlu1 %2358 }
 0xe2f   : > { %v2364_v63 = vsel %vm1033_vm2, %v2359_v57, 0  ;;  %v3707_v57 = vld [vmem:[%s4563_s13 + $0x38] sm:$0xff]  }
 0xe32   : > { %v2357_v3 = vpop.permute.xlu1 %2356 }
 0xe34   : > { %v3774_v51 = vpop.eup %3773 }
 0xe35   : > { %v2194_v47 = vmul.f32 %v3774_v51, %v3770_v35  ;;  %v3706_v35 = vld [vmem:[%s4563_s13 + $0x20] sm:$0xff]  }
 0xe37   : > { %v2195_v49 = vpack.c.bf16 %v2194_v47, %v2194_v47 }
 0xe39   : > { %3556 = vmatmul.mubr.msk.bf16.vlgmr.msra.gmra.mxu1 %vm1082_vm3, %v2195_v49 }
 0xe3a   : > { %3568 = vmatpush3.bf16.msra.mxu1 %v3701_v48  ;;  %3571 = vmatprep.mubr.msk.bf16.mxu1 %vm3801_vm1, %v3800_v23 }
 0xe3b   : > { %3569 = vmatprep.subr.bf16.mxu1 %v3800_v23 }
 0xe3e   : > { %3570 = vmatpush3.bf16.msra.mxu1 %v3702_v52 }
 0xe3f   : > { %3581 = vmatprep.subr.bf16.mxu1 %v3800_v23 }
 0xe86   : > { %v2124_v53 = vpop.f32.mrf.mxu1 }
 0xe87   : > { %v2130_v54 = vpack.c.bf16 %v2124_v53, %v2124_v53 }
 0xe88   : > { %v3545_v16 = vpop.f32.mrf.mxu1 }
 0xe89   : > { %3572 = vmatmul.mubr.msk.bf16.vlgmr.msra.gmra.mxu1 %vm1033_vm2, %v2130_v54 }
 0xe8a   : > { %v2127_v55 = vpop.f32.mrf.mxu1  ;;  %3583 = vmatprep.mubr.msk.bf16.mxu1 %vm3801_vm1, %v3800_v23 }
 0xe8c   : > { %v3546_v56 = vpop.f32.mrf.mxu1 }
 0xef9   : > { %v2239_v59 = vpop.f32.mrf.mxu1 }
 0xefa   : > { %v2245_v60 = vpack.c.bf16 %v2239_v59, %v2239_v59 }
 0xefb   : > { %v3557_v62 = vpop.f32.mrf.mxu1 }
 0xefc   : > { %3564 = vmatmul.mubr.msk.bf16.vlgmr.msra.gmra.mxu0 %vm1033_vm2, %v2245_v60 }
 0xefd   : > { %3576 = vmatpush3.bf16.xpose.msra.mxu0 %v2364_v63  ;;  %v2242_v0 = vpop.f32.mrf.mxu1  ;;  %3577 = vmatprep.mubr.msk.bf16.mxu0 %vm3801_vm1, %v3800_v23 }
 0xefe   : > { %3587 = vmatprep.subr.bf16.mxu0 %v3800_v23 }
 0xeff   : > { %v3558_v1 = vpop.f32.mrf.mxu1 }
 0xf04   : > { %3578 = vmatmul.mubr.msk.bf16.vlgmr.msra.gmra.mxu0 %vm1033_vm2, %v2357_v3 }
 0xf05   : > { %3591 = vmatprep.mubr.msk.bf16.mxu0 %vm3801_vm1, %v3800_v23 }
 0xf49   : > { %v4368_v4 = vpop.f32.mrf.mxu1 }
 0xf4b   : > { %v3573_v5 = vpop.f32.mrf.mxu1 }
 0xf4d   : > { %v2353_v6 = vpop.f32.mrf.mxu1 }
 0xf4f   : > { %v3574_v8 = vpop.f32.mrf.mxu1 }
 0xfbc   : > { %v4370_v10 = vpop.f32.mrf.mxu0 }
 0xfbd   : > { %v2351_v54 = vadd.f32 %v4368_v4, %v4370_v10  ;;  %v3708_v4 = vld [vmem:[%s4563_s13 + $0x30] sm:$0xff]  }
 0xfbe   : > { %v3565_v11 = vpop.f32.mrf.mxu0 }
 0xfc0   : > { %v2298_v12 = vpop.f32.mrf.mxu0 }
 0xfc1   : > { %v3279_v12 = vld [vmem:[%s4564_s14] ss:$0 sm:$0xff] }
 0xfc2   : > { %v3566_v13 = vpop.f32.mrf.mxu0 }
 0xfc4   : > { %v2400_v22 = vpop.f32.mrf.mxu0 }
 0xfc5   : > { %v2406_v14 = vmul.f32 0.17677669, %v2400_v22 }
 0xfc6   : > { %v3579_v15 = vpop.f32.mrf.mxu0 }
 0xfc7   : > { %v2407_v17 = vsel %vm1082_vm3, %v2406_v14, -inf }
 0xfc8   : > { %2408 = vmax.xlane.f32.xlu0 %v2407_v17  ;;  %v2403_v18 = vpop.f32.mrf.mxu0 }
 0xfc9   : > { %v3709_v18 = vld [vmem:[%s4567_s17 + $0x70] ss:$8 sps:$4 sm:$0xff]  }
 0xfca   : > { %v3580_v19 = vpop.f32.mrf.mxu0 }
 0xfcb   : > { %v3711_v19 = vld [vmem:[%s4567_s17 + $0x74] ss:$8 sps:$4 sm:$0xff]  }
 0xfde   : > { %2419 = vrot.lane.b32.xlu0 %v4297_v61, %s4596_s28 }
 0xfe2   : > { %2526 = vrot.lane.b32.xlu0 %v4295_v58, %s4597_s27  ;;  %v3705_v58 = vld [vmem:[%s4563_s13 + $0x28] sm:$0xff]  }
 0xfe3   : > { %3588 = vmatpush3.bf16.msra.mxu0 %v3705_v58  ;;  %v3718_v58 = vld [vmem:[%s4567_s17 + $0x40] ss:$8 sps:$4 sm:$0xff]  }
 0xfe4   : > { %3589 = vmatprep.subr.bf16.mxu0 %v3800_v23 }
 0xfe6   : > { %2524 = vrot.lane.b32.xlu0 %v4310_v7, %s4597_s27 }
 0xfe7   : > { %3590 = vmatpush3.bf16.msra.mxu0 %v3706_v35  ;;  %v3732_v35 = vld [vmem:[%s4567_s17 + $0x4] ss:$8 sps:$4 sm:$0xff]  }
 0xfe8   : > { %3601 = vmatprep.subr.bf16.mxu0 %v3800_v23 }
0x1051   : > { %v2409_v9 = vpop.xlane.xlu0 %2408 }
0x1052   : > { %v2410_v20 = vsub.f32 %v2406_v14, %v2409_v9  ;;  %v3714_v9 = vld [vmem:[%s4567_s17 + $0x64] ss:$8 sps:$4 sm:$0xff]  }
0x1054   : > { %v2411_v21 = vmul.f32 1.442695, %v2410_v20 }
0x1055   : > { %v2420_v26 = vpop.permute.xlu0 %2419 }
0x1056   : > { %3775 = vpow2.f32 %v2411_v21  ;;  %v2425_v34 = vsel %vm1099_vm4, %v2420_v26, 0 }
0x1057   : > { %3582 = vmatpush3.bf16.msra.mxu1 %v2425_v34 }
0x1058   : > { %3595 = vmatprep.subr.bf16.mxu1 %v3800_v23 }
0x1059   : > { %v2527_v30 = vpop.permute.xlu0 %2526 }
0x105a   : > { %v2532_v32 = vsel %vm1033_vm2, %v2527_v30, 0  ;;  %v3726_v30 = vld [vmem:[%s4567_s17 + $0x24] ss:$8 sps:$4 sm:$0xff]  }
0x105d   : > { %v2525_v33 = vpop.permute.xlu0 %2524 }
0x1063   : > { %v3776_v37 = vpop.eup %3775 }
0x1064   : > { %v2413_v27 = vsel %vm1082_vm3, %v3776_v37, 0.0 }
0x1065   : > { %2414 = vadd.xlane.f32.xlu1 %v2413_v27  ;;  %v3715_v27 = vld [vmem:[%s4567_s17 + $0x50] ss:$8 sps:$4 sm:$0xff]  }
0x10ee   : > { %v2415_v7 = vpop.xlane.xlu1 %2414 }
0x10ef   : > { %3777 = vrcp.f32 %v2415_v7  ;;  %v3720_v7 = vld [vmem:[%s4567_s17 + $0x44] ss:$8 sps:$4 sm:$0xff]  }
0x10fc   : > { %v3778_v28 = vpop.eup %3777 }
0x10fd   : > { %v2417_v29 = vmul.f32 %v3778_v28, %v3776_v37  ;;  %v3717_v37 = vld [vmem:[%s4567_s17 + $0x54] ss:$8 sps:$4 sm:$0xff]  }
0x10fe   : > { %v3723_v28 = vld [vmem:[%s4567_s17 + $0x34] ss:$8 sps:$4 sm:$0xff]  }
0x10ff   : > { %v2418_v31 = vpack.c.bf16 %v2417_v29, %v2417_v29  ;;  %v3721_v29 = vld [vmem:[%s4567_s17 + $0x30] ss:$8 sps:$4 sm:$0xff]  }
0x1101   : > { %3584 = vmatmul.mubr.msk.bf16.vlgmr.msra.gmra.mxu1 %vm1082_vm3, %v2418_v31  ;;  %v3724_v31 = vld [vmem:[%s4567_s17 + $0x20] ss:$8 sps:$4 sm:$0xff]  }
0x1102   : > { %3596 = vmatpush3.bf16.xpose.msra.mxu1 %v2532_v32  ;;  %3597 = vmatprep.mubr.msk.bf16.mxu1 %vm3801_vm1, %v3800_v23  ;;  %v3729_v32 = vld [vmem:[%s4567_s17 + $0x14] ss:$8 sps:$4 sm:$0xff]  }
0x1103   : > { %3607 = vmatprep.subr.bf16.mxu1 %v3800_v23 }
0x1109   : > { %3598 = vmatmul.mubr.msk.bf16.vlgmr.msra.gmra.mxu1 %vm1033_vm2, %v2525_v33  ;;  %v3727_v33 = vld [vmem:[%s4567_s17 + $0x10] ss:$8 sps:$4 sm:$0xff]  }
0x110a   : > { %3611 = vmatprep.mubr.msk.bf16.mxu1 %vm3801_vm1, %v3800_v23  ;;  %3608 = vmatpush3.bf16.msra.mxu1 %v3707_v57  ;;  %v3742_v57 = vld [vmem:[%s4569_s19 + $0x18] sm:$0xff]  }
0x110b   : > { %3609 = vmatprep.subr.bf16.mxu1 %v3800_v23 }
0x110e   : > { %3610 = vmatpush3.bf16.msra.mxu1 %v3708_v4 }
0x11c1   : > { %v2461_v36 = vpop.f32.mrf.mxu1 }
0x11c2   : > { %v2467_v38 = vpack.c.bf16 %v2461_v36, %v2461_v36  ;;  %v3730_v36 = vld [vmem:[%s4567_s17] ss:$8 sps:$4 sm:$0xff]  }
0x11c3   : > { %v3585_v39 = vpop.f32.mrf.mxu1 }
0x11c4   : > { %3592 = vmatmul.mubr.msk.bf16.vlgmr.msra.gmra.mxu0 %vm1033_vm2, %v2467_v38 }
0x11c5   : > { %v2464_v40 = vpop.f32.mrf.mxu1  ;;  %3603 = vmatprep.mubr.msk.bf16.mxu0 %vm3801_vm1, %v3800_v23 }
0x11c7   : > { %v3586_v41 = vpop.f32.mrf.mxu1 }
0x11c9   : > { %v2568_v42 = vpop.f32.mrf.mxu1 }
0x11ca   : > { %v2574_v43 = vmul.f32 0.17677669, %v2568_v42  ;;  %v3280_v42 = vld [vmem:[%s4565_s15] ss:$0 sm:$0xff] }
0x11cb   : > { %v3599_v44 = vpop.f32.mrf.mxu1 }
0x11cc   : > { %v2575_v45 = vsel %vm1082_vm3, %v2574_v43, -inf  ;;  %v3281_v44 = vld [vmem:[%s4566_s16] ss:$0 sm:$0xff] }
0x11cd   : > { %2576 = vmax.xlane.f32.xlu0 %v2575_v45  ;;  %v2571_v46 = vpop.f32.mrf.mxu1 }
0x11cf   : > { %v3600_v51 = vpop.f32.mrf.mxu1 }
0x1256   : > { %v2577_v47 = vpop.xlane.xlu0 %2576 }
0x1257   : > { %v2578_v48 = vsub.f32 %v2574_v43, %v2577_v47  ;;  %v3733_v47 = vld [vmem:[%s4569_s19 + $0x78] sm:$0xff]  }
0x1258   : > { %3393 = vmatprep.subr.bf16.mxu1 %v3733_v47 }
0x1259   : > { %v2579_v49 = vmul.f32 1.442695, %v2578_v48  ;;  %v3734_v48 = vld [vmem:[%s4569_s19 + $0x38] sm:$0xff]  }
0x125b   : > { %3779 = vpow2.f32 %v2579_v49  ;;  %v3735_v49 = vld [vmem:[%s4569_s19 + $0x70] sm:$0xff]  }
0x1268   : > { %v3780_v52 = vpop.eup %3779 }
0x1269   : > { %v2581_v53 = vsel %vm1082_vm3, %v3780_v52, 0.0 }
0x126a   : > { %2582 = vadd.xlane.f32.xlu1 %v2581_v53  ;;  %v3737_v53 = vld [vmem:[%s4569_s19 + $0x68] sm:$0xff]  }
0x127b   : > { %2587 = vrot.lane.b32.xlu1 %v4297_v61, %s4597_s27 }
0x1284   : > { %v2517_v16 = vpop.f32.mrf.mxu0 }
0x1285   : > { %v2523_v55 = vadd.f32 %v2517_v16, %v2351_v54  ;;  %v3738_v54 = vld [vmem:[%s4569_s19 + $0x28] sm:$0xff]   ;;  %v3739_v16 = vld [vmem:[%s4569_s19 + $0x60] sm:$0xff]  }
0x1286   : > { %v3593_v56 = vpop.f32.mrf.mxu0 }
0x1287   : > { %v3741_v56 = vld [vmem:[%s4569_s19 + $0x58] sm:$0xff]  }
0x1288   : > { %v2520_v59 = vpop.f32.mrf.mxu0 }
0x1289   : > { %v3743_v59 = vld [vmem:[%s4569_s19 + $0x50] sm:$0xff]  }
0x128a   : > { %v3594_v60 = vpop.f32.mrf.mxu0 }
0x128b   : > { %v3744_v60 = vld [vmem:[%s4569_s19 + $0x10] sm:$0xff]  }
0x12f3   : > { %v2583_v62 = vpop.xlane.xlu1 %2582 }
0x12f4   : > { %3781 = vrcp.f32 %v2583_v62  ;;  %v3745_v62 = vld [vmem:[%s4569_s19 + $0x48] sm:$0xff]  }
0x12f7   : > { %v2588_v63 = vpop.permute.xlu1 %2587 }
0x12f8   : > { %v2593_v61 = vsel %vm1099_vm4, %v2588_v63, 0  ;;  %v3746_v63 = vld [vmem:[%s4569_s19 + $0x8] sm:$0xff]  }
0x12f9   : > { %3602 = vmatpush3.bf16.msra.mxu0 %v2593_v61  ;;  %v3747_v61 = vld [vmem:[%s4569_s19 + $0x40] sm:$0xff]  }
0x12fa   : > { %2837 = vmatprep.subr.bf16.mxu0 %v3711_v19 }
0x1301   : > { %v3782_v0 = vpop.eup %3781 }
0x1302   : > { %v2585_v1 = vmul.f32 %v3782_v0, %v3780_v52  ;;  %v3736_v52 = vld [vmem:[%s4569_s19 + $0x30] sm:$0xff]   ;;  %v3748_v0 = vld [vmem:[%s4569_s19] sm:$0xff]  }
0x1304   : > { %v2586_v3 = vpack.c.bf16 %v2585_v1, %v2585_v1  ;;  %v2744_v1 = vld [vmem:[%s4568_s18] sm:$0x3] }
0x1305   : > { %v2754_v4 = vrot.slane %v2744_v1, %v4006_v24 }
0x1306   : > { %3604 = vmatmul.mubr.msk.bf16.vlgmr.msra.gmra.mxu0 %vm1082_vm3, %v2586_v3  ;;  %v2750_v3 = vrot.slane %v2744_v1, %v4009_v25 }
0x1307   : > { %2869 = vmatprep.mubr.bf16.mxu0 %v3799_v2  ;;  %2838 = vmatpush1.bf16.msra.mxu0 %v3709_v18 }
0x1308   : > { %2839 = vmatprep.subr.bf16.mxu0 %v3714_v9 }
0x13c6   : > { %v2629_v23 = vpop.f32.mrf.mxu0 }
0x13c7   : > { %v2635_v5 = vpack.c.bf16 %v2629_v23, %v2629_v23 }
0x13c8   : > { %v3605_v6 = vpop.f32.mrf.mxu0 }
0x13c9   : > { %3612 = vmatmul.mubr.msk.bf16.vlgmr.msra.gmra.mxu1 %vm1033_vm2, %v2635_v5 }
0x13ca   : > { %v2632_v8 = vpop.f32.mrf.mxu0  ;;  %3394 = vmatpush3.bf16.msra.mxu1 %v3734_v48 }
0x13cb   : > { %3395 = vmatprep.subr.bf16.mxu1 %v3735_v49 }
0x13cc   : > { %v3606_v10 = vpop.f32.mrf.mxu0 }
0x13ce   : > { %3396 = vmatpush3.bf16.msra.mxu1 %v3736_v52 }
0x13cf   : > { %3397 = vmatprep.subr.bf16.mxu1 %v3737_v53 }
0x13d2   : > { %3398 = vmatpush3.bf16.msra.mxu1 %v3738_v54 }
0x13d3   : > { %3399 = vmatprep.subr.bf16.mxu1 %v3739_v16 }
0x1489   : > { %v2685_v11 = vpop.f32.mrf.mxu1 }
0x148a   : > { %v2691_v13 = vadd.f32 %v2685_v11, %v2523_v55  ;;  %v3740_v55 = vld [vmem:[%s4569_s19 + $0x20] sm:$0xff]  }
0x148b   : > { %v3613_v22 = vpop.f32.mrf.mxu1  ;;  %3400 = vmatpush3.bf16.msra.mxu1 %v3740_v55 }
0x148c   : > { %v2699_v2 = vadd.f32 %v3279_v12, %v2691_v13  ;;  %3401 = vmatprep.subr.bf16.mxu1 %v3741_v56 }
0x148d   : > { %v2688_v14 = vpop.f32.mrf.mxu1 }
0x148e   : > { %v2700_v15 = vadd.f32 %v2699_v2, %v4284_v50  ;;  %v3712_v50 = vld [vmem:[%s4567_s17 + $0x60] ss:$8 sps:$4 sm:$0xff]  }
0x148f   : > { %v3614_v17 = vpop.f32.mrf.mxu1  ;;  %2840 = vmatpush1.bf16.msra.mxu0 %v3712_v50  ;;  %3402 = vmatpush3.bf16.msra.mxu1 %v3742_v57 }
0x1490   : > { %2703 = vadd.xlane.f32.xlu1 %v2700_v15  ;;  %2841 = vmatprep.subr.bf16.mxu0 %v3717_v37 }
0x1491   : > { %3403 = vmatprep.subr.bf16.mxu1 %v3743_v59 }
0x1493   : > { %2842 = vmatpush1.bf16.msra.mxu0 %v3715_v27  ;;  %3404 = vmatpush3.bf16.msra.mxu1 %v3744_v60 }
0x1494   : > { %2843 = vmatprep.subr.bf16.mxu0 %v3720_v7  ;;  %3405 = vmatprep.subr.bf16.mxu1 %v3745_v62 }
0x1497   : > { %2844 = vmatpush1.bf16.msra.mxu0 %v3718_v58  ;;  %3406 = vmatpush3.bf16.msra.mxu1 %v3746_v63 }
0x1498   : > { %2845 = vmatprep.subr.bf16.mxu0 %v3723_v28  ;;  %3407 = vmatprep.subr.bf16.mxu1 %v3747_v61  ;;  %v3298_v28 = vld [vmem:[%s4570_s20] ss:$0 sm:$0xff] }
0x149b   : > { %2846 = vmatpush1.bf16.msra.mxu0 %v3721_v29  ;;  %3408 = vmatpush3.bf16.msra.mxu1 %v3748_v0 }
0x149c   : > { %2847 = vmatprep.subr.bf16.mxu0 %v3726_v30 }
0x149f   : > { %2848 = vmatpush1.bf16.msra.mxu0 %v3724_v31 }
0x14a0   : > { %2849 = vmatprep.subr.bf16.mxu0 %v3729_v32 }
0x14a3   : > { %2850 = vmatpush1.bf16.msra.mxu0 %v3727_v33 }
0x14a4   : > { %2851 = vmatprep.subr.bf16.mxu0 %v3732_v35 }
0x14a7   : > { %2852 = vmatpush1.bf16.msra.mxu0 %v3730_v36 }
0x1519   : > { %v2704_v20 = vpop.xlane.xlu1 %2703 }
0x151a   : > { %v2705_v21 = vmul.f32 0.0078125, %v2704_v20 }
0x151c   : > { %v2706_v26 = vsub.f32 %v2700_v15, %v2705_v21 }
0x151e   : > { %v2707_v34 = vmul.f32 %v2706_v26, %v2706_v26 }
0x1520   : > { %2708 = vadd.xlane.f32.xlu0 %v2707_v34 }
0x15a9   : > { %v2709_v38 = vpop.xlane.xlu0 %2708 }
0x15aa   : > { %v2710_v39 = vmul.f32 0.0078125, %v2709_v38 }
0x15ac   : > { %v2711_v40 = vadd.f32 1e-12, %v2710_v39 }
0x15ae   : > { %3783 = vrsqrt.f32 %v2711_v40 }
0x15bb   : > { %v3784_v41 = vpop.eup %3783 }
0x15bc   : > { %v2713_v43 = vmul.f32 %v3784_v41, %v2706_v26 }
0x15be   : > { %v2720_v45 = vmul.f32 %v3280_v42, %v2713_v43 }
0x15c0   : > { %v4476_v46 = vadd.f32 %v3281_v44, %v2720_v45  ;;  %v3315_v45 = vld [vmem:[%s4571_s21] ss:$0 sm:$0xff] }
0x15c2   : > { %v2745_v51 = vpack.c.bf16 %v4476_v46, %v4476_v46 }
0x15c4   : > { %2870 = vmatmul.mubr.bf16.vlgmr.msra.gmra.mxu0 %v2745_v51 }
0x1684   : > { %v2871_v23 = vpop.f32.mrf.mxu0 }
0x1685   : > { %v2872_v5 = vadd.f32 %v2871_v23, %v2750_v3 }
0x1686   : > { %v2873_v6 = vpop.f32.mrf.mxu0 }
0x1687   : > { %v2880_v8 = vmul.f32 0.044715, %v2872_v5  ;;  %v2874_v10 = vadd.f32 %v2873_v6, %v2754_v4  ;;  %v2878_v20 = vmul.f32 0.5, %v2872_v5 }
0x1688   : > { %v2875_v11 = vpop.f32.mrf.mxu0 }
0x1689   : > { %v2882_v12 = vmul.f32 %v2880_v8, %v2872_v5  ;;  %v2881_v13 = vmul.f32 0.044715, %v2874_v10  ;;  %v2879_v21 = vmul.f32 0.5, %v2874_v10 }
0x168a   : > { %v2876_v22 = vpop.f32.mrf.mxu0 }
0x168b   : > { %v2884_v2 = vmul.f32 %v2882_v12, %v2872_v5  ;;  %v2883_v14 = vmul.f32 %v2881_v13, %v2874_v10 }
0x168d   : > { %v2886_v15 = vadd.f32 %v2884_v2, %v2872_v5  ;;  %v2885_v17 = vmul.f32 %v2883_v14, %v2874_v10 }
0x168f   : > { %v2888_v18 = vmul.f32 0.7978846, %v2886_v15  ;;  %v2887_v19 = vadd.f32 %v2885_v17, %v2874_v10 }
0x1691   : > { %v2889_v9 = vmul.f32 0.7978846, %v2887_v19  ;;  %3785 = vtanh.f32 %v2888_v18 }
0x1693   : > { %3787 = vtanh.f32 %v2889_v9 }
0x169e   : > { %v3786_v25 = vpop.eup %3785 }
0x169f   : > { %v2892_v24 = vadd.f32 1.0, %v3786_v25 }
0x16a0   : > { %v3788_v50 = vpop.eup %3787 }
0x16a1   : > { %v2893_v26 = vadd.f32 1.0, %v3788_v50  ;;  %v2894_v34 = vmul.f32 %v2892_v24, %v2878_v20 }
0x16a3   : > { %v2895_v37 = vmul.f32 %v2893_v26, %v2879_v21  ;;  %v2929_v58 = vpack.c.bf16 %v2894_v34, %v2894_v34 }
0x16a5   : > { %v2930_v27 = vpack.c.bf16 %v2895_v37, %v2895_v37 }
0x16a7   : > { %3065 = vmatprep.mubr.bf16.mxu1 %v2930_v27 }
0x16a8   : > { %3066 = vmatmul.mubr.bf16.vlgmr.msra.gmra.mxu1 %v2929_v58 }
0x1768   : > { %v3409_v7 = vpop.f32.mrf.mxu1 }
0x176a   : > { %v3410_v29 = vpop.f32.mrf.mxu1 }
0x176b   : > { %v3411_v30 = vadd.f32 %v3410_v29, %v3409_v7 }
0x176c   : > { %v3412_v31 = vpop.f32.mrf.mxu1 }
0x176d   : > { %v3068_v32 = vadd.f32 %v3411_v30, %v3298_v28 }
0x176e   : > { %v3413_v33 = vpop.f32.mrf.mxu1 }
0x176f   : > { %v3073_v35 = vadd.f32 %v3068_v32, %v4476_v46  ;;  %v3316_v46 = vld [vmem:[%s4572_s22] ss:$0 sm:$0xff] }
0x1771   : > { %3076 = vadd.xlane.f32.xlu0 %v3073_v35 }
0x17fa   : > { %v3077_v36 = vpop.xlane.xlu0 %3076 }
0x17fb   : > { %v3078_v38 = vmul.f32 0.0078125, %v3077_v36 }
0x17fd   : > { %v3079_v39 = vsub.f32 %v3073_v35, %v3078_v38 }
0x17ff   : > { %v3080_v40 = vmul.f32 %v3079_v39, %v3079_v39 }
0x1801   : > { %3081 = vadd.xlane.f32.xlu0 %v3080_v40 }
0x188a   : > { %v3082_v41 = vpop.xlane.xlu0 %3081 }
0x188b   : > { %v3083_v42 = vmul.f32 0.0078125, %v3082_v41 }
0x188d   : > { %v3084_v43 = vadd.f32 1e-12, %v3083_v42 }
0x188f   : > { %3789 = vrsqrt.f32 %v3084_v43 }
0x189c   : > { %v3790_v44 = vpop.eup %3789 }
0x189d   : > { %v3086_v51 = vmul.f32 %v3790_v44, %v3079_v39 }
0x189f   : > { %v3093_v47 = vmul.f32 %v3315_v45, %v3086_v51 }
0x18a1   : > { %v3100_v48 = vadd.f32 %v3316_v46, %v3093_v47 }
0x18a3   : > { %v3101_v49 = vpack.c.bf16 %v3100_v48, %v3100_v48 }
0x18a5   : > { %3102 = vst [vmem:[%s736_s6] sm:$0xf] %v3101_v49 }
0x18a6 PF: > { %s33_s4 = sadd.s32 1, %s3797_s4  }
0x18a7   : > { %p30_p4 = scmp.ge.s32.totalorder %s33_s4, 4  }
0x18a9   :  { %32 = sbr.rel (!%p30_p4) target bundleno = 9 (0x9), region = 148 }

// kernel: _lambda_.6
= control target key start
LH: loop header
LB: loop body
LE: loop exit
PB: predicated region body
PF: predicated region fallthrough
CT: control target
= control target key end

     0   :  { %s4021_s29 = smov 0   ;;  %s4647_s0 = inlined_call_operand.vmem [shape: bf16[2,8,128], index: 0, kind: input, shape index: {}]   ;;  %s4648_s1 = inlined_call_operand.vmem [shape: bf16[2,8,128], index: 1, kind: input, shape index: {}]   ;;  %s4649_s2 = inlined_call_operand.vmem [shape: f32[2,1,8], index: 2, kind: input, shape index: {}]   ;;  %s4650_s3 = inlined_call_operand.vmem [shape: f32[1,128], index: 3, kind: input, shape index: {}]   ;;  %s4651_s4 = inlined_call_operand.vmem [shape: f32[1,128], index: 4, kind: input, shape index: {}]   ;;  %s4652_s5 = inlined_call_operand.vmem [shape: bf16[128,384], index: 5, kind: input, shape index: {}]   ;;  %s4653_s6 = inlined_call_operand.vmem [shape: f32[1,384], index: 6, kind: input, shape index: {}]   ;;  %s4654_s7 = inlined_call_operand.vmem [shape: bf16[128,128], index: 7, kind: input, shape index: {}]   ;;  %s4655_s8 = inlined_call_operand.vmem [shape: f32[1,128], index: 8, kind: input, shape index: {}]   ;;  %s4656_s9 = inlined_call_operand.vmem [shape: f32[1,128], index: 9, kind: input, shape index: {}]   ;;  %s4657_s10 = inlined_call_operand.vmem [shape: f32[1,128], index: 10, kind: input, shape index: {}]   ;;  %s4658_s11 = inlined_call_operand.vmem [shape: bf16[128,128], index: 11, kind: input, shape index: {}]   ;;  %s4659_s12 = inlined_call_operand.vmem [shape: f32[1,128], index: 12, kind: input, shape index: {}]   ;;  %s4660_s13 = inlined_call_operand.vmem [shape: bf16[128,256], index: 13, kind: input, shape index: {}]   ;;  %s4661_s14 = inlined_call_operand.vmem [shape: f32[1,256], index: 14, kind: input, shape index: {}]   ;;  %s4662_s15 = inlined_call_operand.vmem [shape: bf16[128,128], index: 15, kind: input, shape index: {}]   ;;  %s4663_s16 = inlined_call_operand.vmem [shape: f32[1,128], index: 16, kind: input, shape index: {}]   ;;  %s4664_s17 = inlined_call_operand.vmem [shape: f32[1,128], index: 17, kind: input, shape index: {}]   ;;  %s4665_s18 = inlined_call_operand.vmem [shape: f32[1,128], index: 18, kind: input, shape index: {}]   ;;  %s4666_s19 = inlined_call_operand.vmem [shape: bf16[128,256], index: 19, kind: input, shape index: {}]   ;;  %s4667_s20 = inlined_call_operand.vmem [shape: f32[1,256], index: 20, kind: input, shape index: {}]   ;;  %s4668_s21 = inlined_call_operand.vmem [shape: bf16[256,128], index: 21, kind: input, shape index: {}]   ;;  %s4669_s22 = inlined_call_operand.vmem [shape: f32[1,128], index: 22, kind: input, shape index: {}]   ;;  %s4670_s23 = inlined_call_operand.vmem [shape: f32[1,128], index: 23, kind: input, shape index: {}]   ;;  %s4671_s24 = inlined_call_operand.vmem [shape: f32[1,128], index: 24, kind: input, shape index: {}]   ;;  %s4672_s25 = inlined_call_operand.vmem [shape: bf16[2,8,128], index: 25, kind: output, shape index: {}]  }
   0x1   :  { %4679 = sst [smem:[#allocation2_spill]] %s4647_s0 }
   0x2   :  { %4680 = sst [smem:[#allocation3_spill]] %s4648_s1 }
   0x3   :  { %4681 = sst [smem:[#allocation4_spill]] %s4649_s2 }
   0x4   :  { %4682 = sst [smem:[#allocation5_spill]] %s4650_s3 }
   0x5   :  { %4683 = sst [smem:[#allocation6_spill]] %s4651_s4 }
   0x6   :  { %4684 = sst [smem:[#allocation7_spill]] %s4652_s5 }
   0x7   :  { %4685 = sst [smem:[#allocation8_spill]] %s4653_s6 }
   0x8   :  { %4686 = sst [smem:[#allocation9_spill]] %s4654_s7 }
   0x9   :  { %4687 = sst [smem:[#allocation10_spill]] %s4655_s8 }
   0xa   :  { %4688 = sst [smem:[#allocation11_spill]] %s4656_s9 }
   0xb LB: > { %s3259_s2 = sadd.s32 4294967295, %s3883_s29   ;;  %p3263_p0 = scmp.ge.s32.totalorder %s3883_s29, 1  ;;  %s3883_s29 = sphi %s4021_s29, %s35_s29  }
   0xc   : > { %p703_p1 = scmp.lt.s32.totalorder %s3883_s29, 3 }
   0xe   : > { %p704_p2 = pnand %p3263_p0, %p703_p1 }
   0xf   : > { %p776_p3 = scmp.lt.s32.totalorder (!%p704_p2), %s3259_s2, 1  ;;  %s4689_s3 = sld [smem:[#allocation4_spill]] (!%p704_p2) }
  0x10   : > { %707 = sbr.rel (%p704_p2) target bundleno = 6593 (0x19c1), region = 120  ;;  %s4690_s27 = sld [smem:[#allocation2_spill]] (!%p704_p2) }
  0x11   : > { %s4691_s5 = sld [smem:[#allocation7_spill]] (!%p704_p2)  ;;  %s3888_s8 = smov (!%p704_p2), 96  }
  0x12   : > { %s4692_s0 = sld [smem:[#allocation5_spill]] (!%p704_p2) }
  0x13   : > { %s4693_s7 = sld [smem:[#allocation6_spill]] (!%p704_p2) }
  0x14   : > { %s4694_s1 = sld [smem:[#allocation8_spill]] (!%p704_p2) }
  0x15   : > { %v824_v0 = vlaneseq  ;;  %s4702_s2 = smov (!%p776_p3, %s3259_s2), 1  ;;  %v3885_v9 = vmov 0.0   ;;  %v3886_v28 = vmov 0   ;;  %vm3887_vm1 = vmmov 0   ;;  %s4695_s9 = sld [smem:[#allocation9_spill]] }
  0x16   : > { %s4031_s6 = sshll.u32 %s4702_s2, 2  ;;  %s786_s26 = scalar_lea.vmem %s4689_s3, %s4702_s2  ;;  %3499 = vmatprep.subr.bf16.mxu1 %v3885_v9  ;;  %1049 = vmatprep.mubr.bf16.mxu0 %v3886_v28  ;;  %vm1182_vm2 = vcmask 1043456   ;;  %vm1116_vm3 = vcmask 261120   ;;  %vm1165_vm4 = vcmask 64512  }
  0x17   : > { %v4029_v1 = vshrl.u32 %v824_v0, 7  ;;  %v827_v2 = vand.u32 127, %v824_v0  ;;  %s779_s4 = scalar_lea.vmem %s4690_s27, %s4031_s6  ;;  %v3269_v3 = vld [vmem:[%s786_s26] ss:$0 sm:$0xff]  ;;  %v3713_v7 = vld [vmem:[%s4691_s5 + $0xac] ss:$12 sps:$4 sm:$0xff]   ;;  %3515 = vmatprep.mubr.msk.bf16.mxu1 %vm3887_vm1, %v3885_v9  ;;  %s790_s30 = scalar_lea.vmem %s4672_s25, %s4031_s6 }
  0x18   : > { %v792_v4 = vld [vmem:[%s779_s4] sm:$0xf]  ;;  %v3715_v8 = vld [vmem:[%s4691_s5 + $0xa8] ss:$12 sps:$4 sm:$0xff]   ;;  %v3716_v10 = vld [vmem:[%s4691_s5 + $0xb0] ss:$12 sps:$4 sm:$0xff]   ;;  %1017 = vmatprep.subr.bf16.mxu0 %v3713_v7 }
  0x19   : > { %vm828_vm0 = vcmp.ge.s32.totalorder %v4029_v1, %v827_v2  ;;  %v793_v6 = vunpack.c.l.bf16 %v792_v4  ;;  %v3717_v11 = vld [vmem:[%s4691_s5 + $0x94] ss:$12 sps:$4 sm:$0xff]   ;;  %v3719_v12 = vld [vmem:[%s4691_s5 + $0x90] ss:$12 sps:$4 sm:$0xff]   ;;  %v3720_v13 = vld [vmem:[%s4691_s5 + $0x98] ss:$12 sps:$4 sm:$0xff]   ;;  %1018 = vmatpush1.bf16.msra.mxu0 %v3715_v8  ;;  %3500 = vmatpush3.bf16.msra.mxu1 %v3716_v10 }
  0x1a   : > { %v4041_v5 = vsel %vm828_vm0, %v3269_v3, 0.0  ;;  %1019 = vmatprep.subr.bf16.mxu0 %v3717_v11  ;;  %3501 = vmatprep.subr.bf16.mxu1 %v3885_v9  ;;  %v3721_v18 = vld [vmem:[%s4691_s5 + $0x7c] ss:$12 sps:$4 sm:$0xff]   ;;  %v3723_v19 = vld [vmem:[%s4691_s5 + $0x78] ss:$12 sps:$4 sm:$0xff]   ;;  %v884_v47 = vsub.s32 2, %v4029_v1 }
  0x1b   : > { %797 = vadd.xlane.f32.xlu0 %v793_v6  ;;  %v3724_v20 = vld [vmem:[%s4691_s5 + $0x80] ss:$12 sps:$4 sm:$0xff]   ;;  %v3725_v21 = vld [vmem:[%s4691_s5 + $0x64] ss:$12 sps:$4 sm:$0xff]   ;;  %v3728_v23 = vld [vmem:[%s4691_s5 + $0x68] ss:$12 sps:$4 sm:$0xff]  }
  0x1c   : > { %v3727_v22 = vld [vmem:[%s4691_s5 + $0x60] ss:$12 sps:$4 sm:$0xff]   ;;  %v3731_v25 = vld [vmem:[%s4691_s5 + $0x48] ss:$12 sps:$4 sm:$0xff]   ;;  %v3732_v26 = vld [vmem:[%s4691_s5 + $0x50] ss:$12 sps:$4 sm:$0xff]  }
  0x1d   : > { %1020 = vmatpush1.bf16.msra.mxu0 %v3719_v12  ;;  %3502 = vmatpush3.bf16.msra.mxu1 %v3720_v13  ;;  %v3729_v24 = vld [vmem:[%s4691_s5 + $0x4c] ss:$12 sps:$4 sm:$0xff]   ;;  %v3733_v27 = vld [vmem:[%s4691_s5 + $0x34] ss:$12 sps:$4 sm:$0xff]   ;;  %v3735_v29 = vld [vmem:[%s4691_s5 + $0x30] ss:$12 sps:$4 sm:$0xff]  }
  0x1e   : > { %3503 = vmatprep.subr.bf16.mxu1 %v3885_v9  ;;  %1021 = vmatprep.subr.bf16.mxu0 %v3721_v18  ;;  %v3736_v30 = vld [vmem:[%s4691_s5 + $0x38] ss:$12 sps:$4 sm:$0xff]   ;;  %v3737_v31 = vld [vmem:[%s4691_s5 + $0x1c] ss:$12 sps:$4 sm:$0xff]   ;;  %v3740_v33 = vld [vmem:[%s4691_s5 + $0x20] ss:$12 sps:$4 sm:$0xff]  }
  0x1f   : > { %v3739_v32 = vld [vmem:[%s4691_s5 + $0x18] ss:$12 sps:$4 sm:$0xff]   ;;  %v3743_v35 = vld [vmem:[%s4691_s5] ss:$12 sps:$4 sm:$0xff]   ;;  %v3744_v36 = vld [vmem:[%s4691_s5 + $0x8] ss:$12 sps:$4 sm:$0xff]  }
  0x20   : > { %v3741_v34 = vld [vmem:[%s4691_s5 + $0x4] ss:$12 sps:$4 sm:$0xff]   ;;  %v3267_v41 = vld [vmem:[%s4692_s0] ss:$0 sm:$0xff]  ;;  %v4147_v49 = vsub.s32 1, %v4029_v1  ;;  %v4150_v50 = vsub.s32 0, %v4029_v1 }
  0x21   : > { %1022 = vmatpush1.bf16.msra.mxu0 %v3723_v19  ;;  %3504 = vmatpush3.bf16.msra.mxu1 %v3724_v20  ;;  %v3268_v43 = vld [vmem:[%s4693_s7] ss:$0 sm:$0xff]  ;;  %v3270_v11 = vadd.f32 -1.0, %v4041_v5  ;;  %s4677_s27 = smov 64   ;;  %s4696_s0 = sld [smem:[#allocation10_spill]] }
  0x22   : > { %3505 = vmatprep.subr.bf16.mxu1 %v3885_v9  ;;  %1023 = vmatprep.subr.bf16.mxu0 %v3725_v21  ;;  %v871_v48 = vld [vmem:[%s4694_s1] sm:$0x7]  ;;  %s4675_s1 = smov 32   ;;  %s4697_s7 = sld [smem:[#allocation3_spill]] }
  0x23   : > { %v885_v51 = vrot.slane %v871_v48, %v884_v47  ;;  %v881_v52 = vrot.slane %v871_v48, %v4147_v49  ;;  %v877_v55 = vrot.slane %v871_v48, %v4150_v50  ;;  %v837_v12 = vmul.f32 1e+09, %v3270_v11  ;;  %s4699_s2 = smov 64  }
  0x25   : > { %1024 = vmatpush1.bf16.msra.mxu0 %v3727_v22  ;;  %3506 = vmatpush3.bf16.msra.mxu1 %v3728_v23  ;;  %v4180_v13 = vmul.f32 -1.0, %v837_v12 }
  0x26   : > { %1025 = vmatprep.subr.bf16.mxu0 %v3729_v24  ;;  %3507 = vmatprep.subr.bf16.mxu1 %v3885_v9 }
  0x28   : > { %s783_s3 = scalar_lea.vmem %s4697_s7, %s4031_s6 }
  0x29   : > { %1026 = vmatpush1.bf16.msra.mxu0 %v3731_v25  ;;  %3508 = vmatpush3.bf16.msra.mxu1 %v3732_v26 }
  0x2a   : > { %1027 = vmatprep.subr.bf16.mxu0 %v3733_v27  ;;  %3509 = vmatprep.subr.bf16.mxu1 %v3885_v9 }
  0x2d   : > { %1028 = vmatpush1.bf16.msra.mxu0 %v3735_v29  ;;  %3510 = vmatpush3.bf16.msra.mxu1 %v3736_v30 }
  0x2e   : > { %1029 = vmatprep.subr.bf16.mxu0 %v3737_v31  ;;  %3511 = vmatprep.subr.bf16.mxu1 %v3885_v9 }
  0x31   : > { %1030 = vmatpush1.bf16.msra.mxu0 %v3739_v32  ;;  %3512 = vmatpush3.bf16.msra.mxu1 %v3740_v33 }
  0x32   : > { %1031 = vmatprep.subr.bf16.mxu0 %v3741_v34  ;;  %3513 = vmatprep.subr.bf16.mxu1 %v3885_v9 }
  0x35   : > { %1032 = vmatpush1.bf16.msra.mxu0 %v3743_v35  ;;  %3514 = vmatpush3.bf16.msra.mxu1 %v3744_v36 }
  0x36   : > { %3525 = vmatprep.subr.bf16.mxu1 %v3885_v9  ;;  %3519 = vmatprep.subr.bf16.mxu0 %v3885_v9 }
  0xa4   : > { %v798_v14 = vpop.xlane.xlu0 %797 }
  0xa5   : > { %v800_v15 = vmul.f32 0.0078125, %v798_v14 }
  0xa7   : > { %v801_v16 = vsub.f32 %v793_v6, %v800_v15 }
  0xa9   : > { %v802_v17 = vmul.f32 %v801_v16, %v801_v16 }
  0xab   : > { %803 = vadd.xlane.f32.xlu0 %v802_v17 }
 0x134   : > { %v804_v37 = vpop.xlane.xlu0 %803 }
 0x135   : > { %v805_v38 = vmul.f32 0.0078125, %v804_v37 }
 0x137   : > { %v806_v39 = vadd.f32 1e-12, %v805_v38 }
 0x139   : > { %3833 = vrsqrt.f32 %v806_v39 }
 0x146   : > { %v3834_v40 = vpop.eup %3833 }
 0x147   : > { %v808_v42 = vmul.f32 %v3834_v40, %v801_v16 }
 0x149   : > { %v815_v44 = vmul.f32 %v3267_v41, %v808_v42  ;;  %v3747_v42 = vld [vmem:[%s4695_s9 + $0x18] sm:$0xff]  }
 0x14b   : > { %v4134_v45 = vadd.f32 %v3268_v43, %v815_v44  ;;  %v3748_v43 = vld [vmem:[%s4695_s9 + $0x10] sm:$0xff]  }
 0x14d   : > { %v872_v46 = vpack.c.bf16 %v4134_v45, %v4134_v45 }
 0x14f   : > { %1050 = vmatmul.mubr.bf16.vlgmr.msra.gmra.mxu0 %v872_v46  ;;  %3516 = vmatmul.mubr.bf16.vlgmr.msra.gmra.mxu1 %v872_v46 }
 0x150   : > { %3521 = vmatprep.mubr.msk.bf16.mxu0 %vm3887_vm1, %v3885_v9  ;;  %3527 = vmatprep.mubr.msk.bf16.mxu1 %vm3887_vm1, %v3885_v9 }
 0x20f   : > { %v1051_v53 = vpop.f32.mrf.mxu0  ;;  %v1092_v54 = vpop.f32.mrf.mxu1 }
 0x210   : > { %v1093_v56 = vadd.f32 %v1092_v54, %v885_v51  ;;  %v1052_v63 = vadd.f32 %v1051_v53, %v877_v55  ;;  %v3746_v54 = vld [vmem:[%s4695_s9] sm:$0xff]  }
 0x211   : > { %v1053_v57 = vpop.f32.mrf.mxu0  ;;  %v3517_v58 = vpop.f32.mrf.mxu1 }
 0x212   : > { %v4154_v59 = vpack.c.bf16 %v1093_v56, %v1093_v56  ;;  %v1054_v60 = vadd.f32 %v1053_v57, %v881_v52  ;;  %v4165_v6 = vpack.c.bf16 %v1052_v63, %v1052_v63  ;;  %v3745_v52 = vld [vmem:[%s4695_s9 + $0x8] sm:$0xff]  }
 0x213   : > { %v1055_v61 = vpop.f32.mrf.mxu0  ;;  %v1095_v62 = vpop.f32.mrf.mxu1 }
 0x214   : > { %v4156_v0 = vpack.c.bf16 %v1054_v60, %v1054_v60  ;;  %v1184_v1 = vsel %vm1182_vm2, %v4154_v59, 0 }
 0x215   : > { %v1056_v2 = vpop.f32.mrf.mxu0  ;;  %v3518_v3 = vpop.f32.mrf.mxu1  ;;  %3526 = vmatpush3.bf16.msra.mxu1 %v1184_v1 }
 0x216   : > { %1231 = vrot.lane.b32.xlu1 %v4156_v0, %s3888_s8  ;;  %v1121_v4 = vsel %vm1116_vm3, %v4156_v0, 0  ;;  %3537 = vmatprep.subr.bf16.mxu1 %v3885_v9 }
 0x217   : > { %3520 = vmatpush3.bf16.xpose.msra.mxu0 %v1121_v4 }
 0x218   : > { %3531 = vmatprep.subr.bf16.mxu0 %v3885_v9 }
 0x21a   : > { %1228 = vrot.lane.b32.xlu1 %v4165_v6, %s3888_s8 }
 0x21e   : > { %3522 = vmatmul.mubr.msk.bf16.vlgmr.msra.gmra.mxu0 %vm1116_vm3, %v4165_v6 }
 0x21f   : > { %3533 = vmatprep.mubr.msk.bf16.mxu0 %vm3887_vm1, %v3885_v9 }
 0x288   : > { %v1232_v7 = vpop.permute.xlu1 %1231 }
 0x289   : > { %v1237_v8 = vsel %vm1116_vm3, %v1232_v7, 0 }
 0x28a   : > { %3532 = vmatpush3.bf16.xpose.msra.mxu0 %v1237_v8 }
 0x28b   : > { %3543 = vmatprep.subr.bf16.mxu0 %v3885_v9 }
 0x28c   : > { %v1229_v10 = vpop.permute.xlu1 %1228 }
 0x291   : > { %3534 = vmatmul.mubr.msk.bf16.vlgmr.msra.gmra.mxu0 %vm1116_vm3, %v1229_v10 }
 0x292   : > { %3547 = vmatprep.mubr.msk.bf16.mxu0 %vm3887_vm1, %v3885_v9  ;;  %3544 = vmatpush3.bf16.msra.mxu0 %v3747_v42 }
 0x293   : > { %3545 = vmatprep.subr.bf16.mxu0 %v3885_v9 }
 0x296   : > { %3546 = vmatpush3.bf16.msra.mxu0 %v3748_v43 }
 0x297   : > { %3559 = vmatprep.subr.bf16.mxu0 %v3885_v9 }
 0x2de   : > { %v1157_v14 = vpop.f32.mrf.mxu0 }
 0x2df   : > { %v1163_v15 = vmul.f32 0.17677669, %v1157_v14 }
 0x2e0   : > { %v3523_v16 = vpop.f32.mrf.mxu0 }
 0x2e1   : > { %v1164_v17 = vadd.f32 %v1163_v15, %v4180_v13 }
 0x2e2   : > { %v1160_v18 = vpop.f32.mrf.mxu0 }
 0x2e3   : > { %v1166_v19 = vsel %vm1165_vm4, %v1164_v17, -inf }
 0x2e4   : > { %1167 = vmax.xlane.f32.xlu0 %v1166_v19  ;;  %v3524_v20 = vpop.f32.mrf.mxu0 }
 0x351   : > { %v1273_v21 = vpop.f32.mrf.mxu0 }
 0x352   : > { %v1279_v22 = vmul.f32 0.17677669, %v1273_v21 }
 0x353   : > { %v3535_v23 = vpop.f32.mrf.mxu0 }
 0x354   : > { %v1280_v24 = vadd.f32 %v1279_v22, %v4180_v13 }
 0x355   : > { %v1276_v5 = vpop.f32.mrf.mxu0 }
 0x356   : > { %v1281_v25 = vsel %vm1165_vm4, %v1280_v24, -inf }
 0x357   : > { %1282 = vmax.xlane.f32.xlu1 %v1281_v25  ;;  %v3536_v26 = vpop.f32.mrf.mxu0 }
 0x368   : > { %1453 = vrot.lane.b32.xlu1 %v4165_v6, %s4677_s27 }
 0x36d   : > { %v1168_v27 = vpop.xlane.xlu0 %1167 }
 0x36e   : > { %v1169_v29 = vsub.f32 %v1164_v17, %v1168_v27 }
 0x370   : > { %v1170_v30 = vmul.f32 1.442695, %v1169_v29 }
 0x372   : > { %3835 = vpow2.f32 %v1170_v30 }
 0x37f   : > { %v3836_v31 = vpop.eup %3835 }
 0x380   : > { %v1172_v32 = vsel %vm1165_vm4, %v3836_v31, 0.0 }
 0x381   : > { %1173 = vadd.xlane.f32.xlu0 %v1172_v32 }
 0x3e0   : > { %v1283_v33 = vpop.xlane.xlu1 %1282 }
 0x3e1   : > { %v1284_v34 = vsub.f32 %v1280_v24, %v1283_v33 }
 0x3e3   : > { %v1285_v35 = vmul.f32 1.442695, %v1284_v34 }
 0x3e4   : > { %v1454_v7 = vpop.permute.xlu1 %1453 }
 0x3e5   : > { %3837 = vpow2.f32 %v1285_v35 }
 0x3f2   : > { %v3838_v36 = vpop.eup %3837 }
 0x3f3   : > { %v1287_v37 = vsel %vm1165_vm4, %v3838_v36, 0.0 }
 0x3f4   : > { %1288 = vadd.xlane.f32.xlu0 %v1287_v37 }
 0x40a   : > { %v1174_v38 = vpop.xlane.xlu0 %1173  ;;  %1294 = vrot.lane.b32.xlu0 %v4154_v59, %s3888_s8 }
 0x40b   : > { %3839 = vrcp.f32 %v1174_v38  ;;  %v3750_v38 = vld [vmem:[%s4695_s9 + $0x20] sm:$0xff]  }
 0x40e   : > { %1455 = vrot.lane.b32.xlu0 %v4156_v0, %s4677_s27 }
 0x418   : > { %v3840_v39 = vpop.eup %3839 }
 0x419   : > { %v1176_v40 = vmul.f32 %v3840_v39, %v3836_v31 }
 0x41b   : > { %v1177_v41 = vpack.c.bf16 %v1176_v40, %v1176_v40 }
 0x41d   : > { %3528 = vmatmul.mubr.msk.bf16.vlgmr.msra.gmra.mxu1 %vm1165_vm4, %v1177_v41 }
 0x41e   : > { %3539 = vmatprep.mubr.msk.bf16.mxu1 %vm3887_vm1, %v3885_v9 }
 0x47d   : > { %v1289_v44 = vpop.xlane.xlu0 %1288 }
 0x47e   : > { %3841 = vrcp.f32 %v1289_v44 }
 0x481   : > { %v1295_v46 = vpop.permute.xlu0 %1294 }
 0x482   : > { %v1300_v47 = vsel %vm1182_vm2, %v1295_v46, 0 }
 0x483   : > { %3538 = vmatpush3.bf16.msra.mxu1 %v1300_v47 }
 0x484   : > { %3551 = vmatprep.subr.bf16.mxu1 %v3885_v9 }
 0x485   : > { %v1456_v61 = vpop.permute.xlu0 %1455 }
 0x486   : > { %v1461_v2 = vsel %vm1116_vm3, %v1456_v61, 0 }
 0x48b   : > { %v3842_v48 = vpop.eup %3841 }
 0x48c   : > { %v1291_v51 = vmul.f32 %v3842_v48, %v3838_v36 }
 0x48e   : > { %v1292_v53 = vpack.c.bf16 %v1291_v51, %v1291_v51 }
 0x490   : > { %3540 = vmatmul.mubr.msk.bf16.vlgmr.msra.gmra.mxu1 %vm1165_vm4, %v1292_v53 }
 0x491   : > { %3552 = vmatpush3.bf16.msra.mxu1 %v3745_v52  ;;  %3555 = vmatprep.mubr.msk.bf16.mxu1 %vm3887_vm1, %v3885_v9 }
 0x492   : > { %3553 = vmatprep.subr.bf16.mxu1 %v3885_v9 }
 0x495   : > { %3554 = vmatpush3.bf16.msra.mxu1 %v3746_v54 }
 0x496   : > { %3565 = vmatprep.subr.bf16.mxu1 %v3885_v9 }
 0x4dd   : > { %v1220_v55 = vpop.f32.mrf.mxu1 }
 0x4de   : > { %v1226_v56 = vpack.c.bf16 %v1220_v55, %v1220_v55 }
 0x4df   : > { %v3529_v57 = vpop.f32.mrf.mxu1 }
 0x4e0   : > { %3556 = vmatmul.mubr.msk.bf16.vlgmr.msra.gmra.mxu1 %vm1116_vm3, %v1226_v56 }
 0x4e1   : > { %v1223_v58 = vpop.f32.mrf.mxu1  ;;  %3567 = vmatprep.mubr.msk.bf16.mxu1 %vm3887_vm1, %v3885_v9 }
 0x4e3   : > { %v3530_v60 = vpop.f32.mrf.mxu1 }
 0x550   : > { %v1336_v62 = vpop.f32.mrf.mxu1 }
 0x551   : > { %v1342_v63 = vpack.c.bf16 %v1336_v62, %v1336_v62 }
 0x552   : > { %v3541_v1 = vpop.f32.mrf.mxu1 }
 0x553   : > { %3548 = vmatmul.mubr.msk.bf16.vlgmr.msra.gmra.mxu0 %vm1116_vm3, %v1342_v63 }
 0x554   : > { %3560 = vmatpush3.bf16.xpose.msra.mxu0 %v1461_v2  ;;  %v1339_v3 = vpop.f32.mrf.mxu1  ;;  %3561 = vmatprep.mubr.msk.bf16.mxu0 %vm3887_vm1, %v3885_v9  ;;  %v3751_v2 = vld [vmem:[%s4695_s9 + $0x38] sm:$0xff]  }
 0x555   : > { %3571 = vmatprep.subr.bf16.mxu0 %v3885_v9 }
 0x556   : > { %v3542_v4 = vpop.f32.mrf.mxu1 }
 0x55b   : > { %3562 = vmatmul.mubr.msk.bf16.vlgmr.msra.gmra.mxu0 %vm1116_vm3, %v1454_v7 }
 0x55c   : > { %3575 = vmatprep.mubr.msk.bf16.mxu0 %vm3887_vm1, %v3885_v9 }
 0x5a0   : > { %v4229_v8 = vpop.f32.mrf.mxu1 }
 0x5a2   : > { %v3557_v10 = vpop.f32.mrf.mxu1 }
 0x5a4   : > { %v1450_v11 = vpop.f32.mrf.mxu1 }
 0x5a6   : > { %v3558_v12 = vpop.f32.mrf.mxu1 }
 0x613   : > { %v4231_v14 = vpop.f32.mrf.mxu0 }
 0x614   : > { %v1448_v61 = vadd.f32 %v4229_v8, %v4231_v14  ;;  %v3752_v8 = vld [vmem:[%s4695_s9 + $0x30] sm:$0xff]  }
 0x615   : > { %v3549_v15 = vpop.f32.mrf.mxu0 }
 0x617   : > { %v1395_v16 = vpop.f32.mrf.mxu0 }
 0x619   : > { %v3550_v17 = vpop.f32.mrf.mxu0 }
 0x61b   : > { %v1497_v18 = vpop.f32.mrf.mxu0 }
 0x61c   : > { %v1503_v19 = vmul.f32 0.17677669, %v1497_v18 }
 0x61d   : > { %v3563_v20 = vpop.f32.mrf.mxu0 }
 0x61e   : > { %v1504_v21 = vadd.f32 %v1503_v19, %v4180_v13  ;;  %v3315_v19 = vld [vmem:[%s4696_s0] ss:$0 sm:$0xff]  ;;  %s4700_s0 = smov 32  }
 0x61f   : > { %v1500_v22 = vpop.f32.mrf.mxu0 }
 0x620   : > { %v1505_v23 = vsel %vm1165_vm4, %v1504_v21, -inf }
 0x621   : > { %1506 = vmax.xlane.f32.xlu0 %v1505_v23  ;;  %v3564_v24 = vpop.f32.mrf.mxu0 }
 0x637   : > { %1517 = vrot.lane.b32.xlu0 %v4154_v59, %s4677_s27 }
 0x63b   : > { %1622 = vrot.lane.b32.xlu0 %v4165_v6, %s4675_s1  ;;  %v3749_v6 = vld [vmem:[%s4695_s9 + $0x28] sm:$0xff]  }
 0x63c   : > { %3572 = vmatpush3.bf16.msra.mxu0 %v3749_v6  ;;  %v3759_v6 = vld [vmem:[%s4660_s13 + $0x50] ss:$8 sps:$4 sm:$0xff]  }
 0x63d   : > { %3573 = vmatprep.subr.bf16.mxu0 %v3885_v9 }
 0x640   : > { %3574 = vmatpush3.bf16.msra.mxu0 %v3750_v38 }
 0x641   : > { %3585 = vmatprep.subr.bf16.mxu0 %v3885_v9 }
 0x6aa   : > { %v1507_v5 = vpop.xlane.xlu0 %1506 }
 0x6ab   : > { %v1508_v25 = vsub.f32 %v1504_v21, %v1507_v5 }
 0x6ad   : > { %v1509_v26 = vmul.f32 1.442695, %v1508_v25  ;;  %v3753_v25 = vld [vmem:[%s4660_s13 + $0x70] ss:$8 sps:$4 sm:$0xff]  }
 0x6ae   : > { %v1518_v27 = vpop.permute.xlu0 %1517 }
 0x6af   : > { %3843 = vpow2.f32 %v1509_v26  ;;  %v1523_v29 = vsel %vm1182_vm2, %v1518_v27, 0  ;;  %v3755_v26 = vld [vmem:[%s4660_s13 + $0x74] ss:$8 sps:$4 sm:$0xff]   ;;  %v3758_v27 = vld [vmem:[%s4660_s13 + $0x64] ss:$8 sps:$4 sm:$0xff]  }
 0x6b0   : > { %3566 = vmatpush3.bf16.msra.mxu1 %v1523_v29  ;;  %v3765_v29 = vld [vmem:[%s4658_s11 + $0x38] sm:$0xff]  }
 0x6b1   : > { %3579 = vmatprep.subr.bf16.mxu1 %v3885_v9 }
 0x6bc   : > { %v3844_v30 = vpop.eup %3843 }
 0x6bd   : > { %v1511_v31 = vsel %vm1165_vm4, %v3844_v30, 0.0 }
 0x6be   : > { %1512 = vadd.xlane.f32.xlu1 %v1511_v31  ;;  %v3769_v31 = vld [vmem:[%s4658_s11 + $0x30] sm:$0xff]  }
 0x6cf   : > { %1624 = vrot.lane.b32.xlu1 %v4156_v0, %s4675_s1  ;;  %v1623_v0 = vpop.permute.xlu0 %1622 }
 0x747   : > { %v1513_v32 = vpop.xlane.xlu1 %1512 }
 0x748   : > { %3845 = vrcp.f32 %v1513_v32  ;;  %v3764_v32 = vld [vmem:[%s4660_s13 + $0x44] ss:$8 sps:$4 sm:$0xff]  }
 0x74b   : > { %v1625_v35 = vpop.permute.xlu1 %1624 }
 0x74c   : > { %v1630_v37 = vsel %vm1116_vm3, %v1625_v35, 0  ;;  %v3766_v35 = vld [vmem:[%s4660_s13 + $0x30] ss:$8 sps:$4 sm:$0xff]  }
 0x755   : > { %v3846_v33 = vpop.eup %3845 }
 0x756   : > { %v1515_v34 = vmul.f32 %v3846_v33, %v3844_v30  ;;  %v3761_v30 = vld [vmem:[%s4660_s13 + $0x54] ss:$8 sps:$4 sm:$0xff]   ;;  %v3762_v33 = vld [vmem:[%s4660_s13 + $0x40] ss:$8 sps:$4 sm:$0xff]  }
 0x758   : > { %v1516_v36 = vpack.c.bf16 %v1515_v34, %v1515_v34  ;;  %v3768_v34 = vld [vmem:[%s4660_s13 + $0x34] ss:$8 sps:$4 sm:$0xff]  }
 0x75a   : > { %3568 = vmatmul.mubr.msk.bf16.vlgmr.msra.gmra.mxu1 %vm1165_vm4, %v1516_v36 }
 0x75b   : > { %3580 = vmatpush3.bf16.xpose.msra.mxu1 %v1630_v37  ;;  %3581 = vmatprep.mubr.msk.bf16.mxu1 %vm3887_vm1, %v3885_v9 }
 0x75c   : > { %3591 = vmatprep.subr.bf16.mxu1 %v3885_v9 }
 0x762   : > { %3582 = vmatmul.mubr.msk.bf16.vlgmr.msra.gmra.mxu1 %vm1116_vm3, %v1623_v0 }
 0x763   : > { %3595 = vmatprep.mubr.msk.bf16.mxu1 %vm3887_vm1, %v3885_v9  ;;  %3592 = vmatpush3.bf16.msra.mxu1 %v3751_v2 }
 0x764   : > { %3593 = vmatprep.subr.bf16.mxu1 %v3885_v9 }
 0x767   : > { %3594 = vmatpush3.bf16.msra.mxu1 %v3752_v8 }
 0x768   : > { %2047 = vmatprep.subr.bf16.mxu1 %v3755_v26 }
 0x81a   : > { %v1559_v39 = vpop.f32.mrf.mxu1 }
 0x81b   : > { %v1565_v40 = vpack.c.bf16 %v1559_v39, %v1559_v39  ;;  %v3772_v39 = vld [vmem:[%s4660_s13 + $0x24] ss:$8 sps:$4 sm:$0xff]  }
 0x81c   : > { %v3569_v41 = vpop.f32.mrf.mxu1 }
 0x81d   : > { %3576 = vmatmul.mubr.msk.bf16.vlgmr.msra.gmra.mxu0 %vm1116_vm3, %v1565_v40  ;;  %v3770_v40 = vld [vmem:[%s4660_s13 + $0x20] ss:$8 sps:$4 sm:$0xff]  }
 0x81e   : > { %v1562_v42 = vpop.f32.mrf.mxu1  ;;  %3587 = vmatprep.mubr.msk.bf16.mxu0 %vm3887_vm1, %v3885_v9  ;;  %v3773_v41 = vld [vmem:[%s4658_s11 + $0x28] sm:$0xff]  }
 0x81f   : > { %v3776_v42 = vld [vmem:[%s4660_s13 + $0x14] ss:$8 sps:$4 sm:$0xff]  }
 0x820   : > { %v3570_v43 = vpop.f32.mrf.mxu1 }
 0x821   : > { %v3774_v43 = vld [vmem:[%s4660_s13 + $0x10] ss:$8 sps:$4 sm:$0xff]  }
 0x822   : > { %v1666_v44 = vpop.f32.mrf.mxu1 }
 0x823   : > { %v1672_v46 = vmul.f32 0.17677669, %v1666_v44  ;;  %v3777_v44 = vld [vmem:[%s4658_s11 + $0x20] sm:$0xff]  }
 0x824   : > { %v3583_v47 = vpop.f32.mrf.mxu1 }
 0x825   : > { %v1673_v48 = vadd.f32 %v1672_v46, %v4180_v13  ;;  %v3780_v46 = vld [vmem:[%s4660_s13 + $0x4] ss:$8 sps:$4 sm:$0xff]   ;;  %v3778_v47 = vld [vmem:[%s4660_s13] ss:$8 sps:$4 sm:$0xff]  }
 0x826   : > { %v1669_v51 = vpop.f32.mrf.mxu1 }
 0x827   : > { %v1674_v52 = vsel %vm1165_vm4, %v1673_v48, -inf  ;;  %v794_v51 = vld [vmem:[%s783_s3] sm:$0xf] }
 0x828   : > { %1675 = vmax.xlane.f32.xlu0 %v1674_v52  ;;  %v3584_v53 = vpop.f32.mrf.mxu1  ;;  %v3782_v52 = vld [vmem:[%s4658_s11 + $0x10] sm:$0xff]  }
 0x829   : > { %v3783_v53 = vld [vmem:[%s4658_s11 + $0x8] sm:$0xff]  }
 0x83e   : > { %1686 = vrot.lane.b32.xlu0 %v4154_v59, %s4675_s1  ;;  %s4698_s1 = sld [smem:[#allocation11_spill]] }
 0x8b1   : > { %v1676_v54 = vpop.xlane.xlu0 %1675 }
 0x8b2   : > { %v1677_v55 = vsub.f32 %v1673_v48, %v1676_v54  ;;  %v3781_v48 = vld [vmem:[%s4658_s11 + $0x18] sm:$0xff]   ;;  %v3784_v54 = vld [vmem:[%s4658_s11] sm:$0xff]  }
 0x8b4   : > { %v1678_v56 = vmul.f32 1.442695, %v1677_v55 }
 0x8b5   : > { %v1687_v57 = vpop.permute.xlu0 %1686 }
 0x8b6   : > { %3847 = vpow2.f32 %v1678_v56  ;;  %v1692_v58 = vsel %vm1182_vm2, %v1687_v57, 0 }
 0x8b7   : > { %3586 = vmatpush3.bf16.msra.mxu0 %v1692_v58 }
 0x8b8   : > { %3599 = vmatprep.subr.bf16.mxu0 %v3885_v9 }
 0x8c3   : > { %v3848_v60 = vpop.eup %3847 }
 0x8c4   : > { %v1680_v13 = vsel %vm1165_vm4, %v3848_v60, 0.0 }
 0x8c5   : > { %1681 = vadd.xlane.f32.xlu1 %v1680_v13 }
 0x8dd   : > { %v1615_v62 = vpop.f32.mrf.mxu0 }
 0x8de   : > { %v1621_v63 = vadd.f32 %v1615_v62, %v1448_v61  ;;  %v3317_v61 = vld [vmem:[%s4657_s10] ss:$0 sm:$0xff] }
 0x8df   : > { %v3577_v59 = vpop.f32.mrf.mxu0 }
 0x8e1   : > { %v1618_v1 = vpop.f32.mrf.mxu0 }
 0x8e2   : > { %v1955_v1 = vld [vmem:[%s4661_s14] sm:$0x3] }
 0x8e3   : > { %v3578_v3 = vpop.f32.mrf.mxu0  ;;  %v1960_v2 = vrot.slane %v1955_v1, %v4150_v50 }
 0x8e4   : > { %v1964_v3 = vrot.slane %v1955_v1, %v4147_v49 }
 0x94e   : > { %v1682_v4 = vpop.xlane.xlu1 %1681 }
 0x94f   : > { %3849 = vrcp.f32 %v1682_v4 }
 0x95c   : > { %v3850_v7 = vpop.eup %3849 }
 0x95d   : > { %v1684_v10 = vmul.f32 %v3850_v7, %v3848_v60  ;;  %v3316_v60 = vld [vmem:[%s4698_s1] ss:$0 sm:$0xff] }
 0x95f   : > { %v1685_v11 = vpack.c.bf16 %v1684_v10, %v1684_v10 }
 0x961   : > { %3588 = vmatmul.mubr.msk.bf16.vlgmr.msra.gmra.mxu0 %vm1165_vm4, %v1685_v11 }
 0x962   : > { %3615 = vmatprep.mubr.msk.bf16.mxu0 %vm3887_vm1, %v3885_v9  ;;  %3600 = vmatpush3.bf16.msra.mxu0 %v3765_v29 }
 0x963   : > { %3601 = vmatprep.subr.bf16.mxu0 %v3885_v9 }
 0x966   : > { %3602 = vmatpush3.bf16.msra.mxu0 %v3769_v31 }
 0x967   : > { %3603 = vmatprep.subr.bf16.mxu0 %v3885_v9 }
 0x96a   : > { %3604 = vmatpush3.bf16.msra.mxu0 %v3773_v41 }
 0x96b   : > { %3605 = vmatprep.subr.bf16.mxu0 %v3885_v9 }
 0x96e   : > { %3606 = vmatpush3.bf16.msra.mxu0 %v3777_v44 }
 0x96f   : > { %3607 = vmatprep.subr.bf16.mxu0 %v3885_v9 }
 0x972   : > { %3608 = vmatpush3.bf16.msra.mxu0 %v3781_v48 }
 0x973   : > { %3609 = vmatprep.subr.bf16.mxu0 %v3885_v9 }
 0x976   : > { %3610 = vmatpush3.bf16.msra.mxu0 %v3782_v52 }
 0x977   : > { %3611 = vmatprep.subr.bf16.mxu0 %v3885_v9 }
 0x97a   : > { %3612 = vmatpush3.bf16.msra.mxu0 %v3783_v53 }
 0x97b   : > { %3613 = vmatprep.subr.bf16.mxu0 %v3885_v9 }
 0x97e   : > { %3614 = vmatpush3.bf16.msra.mxu0 %v3784_v54  ;;  %v3787_v54 = vld [vmem:[%s4662_s15 + $0x18] sm:$0xff]  }
 0x97f   : > { %3619 = vmatprep.subr.bf16.mxu0 %v3885_v9 }
 0xa21   : > { %v1728_v12 = vpop.f32.mrf.mxu0 }
 0xa22   : > { %v1734_v14 = vpack.c.bf16 %v1728_v12, %v1728_v12 }
 0xa23   : > { %v3589_v15 = vpop.f32.mrf.mxu0 }
 0xa24   : > { %3596 = vmatmul.mubr.msk.bf16.vlgmr.msra.gmra.mxu1 %vm1116_vm3, %v1734_v14 }
 0xa25   : > { %v1731_v16 = vpop.f32.mrf.mxu0  ;;  %2079 = vmatprep.mubr.bf16.mxu1 %v3886_v28  ;;  %2048 = vmatpush1.bf16.msra.mxu1 %v3753_v25 }
 0xa26   : > { %2049 = vmatprep.subr.bf16.mxu1 %v3758_v27 }
 0xa27   : > { %v3590_v17 = vpop.f32.mrf.mxu0 }
 0xae4   : > { %v1784_v18 = vpop.f32.mrf.mxu1 }
 0xae5   : > { %v1790_v20 = vadd.f32 %v1784_v18, %v1621_v63  ;;  %v3318_v18 = vld [vmem:[%s4659_s12] ss:$0 sm:$0xff] }
 0xae6   : > { %v3597_v21 = vpop.f32.mrf.mxu1 }
 0xae7   : > { %v1798_v22 = vadd.f32 %v3315_v19, %v1790_v20 }
 0xae8   : > { %v1787_v23 = vpop.f32.mrf.mxu1 }
 0xae9   : > { %v1799_v24 = vadd.f32 %v1798_v22, %v4134_v45  ;;  %v3756_v45 = vld [vmem:[%s4660_s13 + $0x60] ss:$8 sps:$4 sm:$0xff]  }
 0xaea   : > { %v3598_v5 = vpop.f32.mrf.mxu1  ;;  %2050 = vmatpush1.bf16.msra.mxu1 %v3756_v45 }
 0xaeb   : > { %1802 = vadd.xlane.f32.xlu1 %v1799_v24  ;;  %2051 = vmatprep.subr.bf16.mxu1 %v3761_v30 }
 0xaee   : > { %2052 = vmatpush1.bf16.msra.mxu1 %v3759_v6 }
 0xaef   : > { %2053 = vmatprep.subr.bf16.mxu1 %v3764_v32 }
 0xaf2   : > { %2054 = vmatpush1.bf16.msra.mxu1 %v3762_v33 }
 0xaf3   : > { %2055 = vmatprep.subr.bf16.mxu1 %v3768_v34 }
 0xaf6   : > { %2056 = vmatpush1.bf16.msra.mxu1 %v3766_v35 }
 0xaf7   : > { %2057 = vmatprep.subr.bf16.mxu1 %v3772_v39 }
 0xafa   : > { %2058 = vmatpush1.bf16.msra.mxu1 %v3770_v40 }
 0xafb   : > { %2059 = vmatprep.subr.bf16.mxu1 %v3776_v42 }
 0xafe   : > { %2060 = vmatpush1.bf16.msra.mxu1 %v3774_v43 }
 0xaff   : > { %2061 = vmatprep.subr.bf16.mxu1 %v3780_v46 }
 0xb02   : > { %2062 = vmatpush1.bf16.msra.mxu1 %v3778_v47 }
 0xb03   : > { %3625 = vmatprep.subr.bf16.mxu1 %v3885_v9 }
 0xb05   : > { %2080 = vmatmul.mubr.bf16.vlgmr.msra.gmra.mxu1 %v794_v51 }
 0xb06   : > { %3627 = vmatprep.mubr.msk.bf16.mxu1 %vm3887_vm1, %v3885_v9 }
 0xb74   : > { %v1803_v36 = vpop.xlane.xlu1 %1802 }
 0xb75   : > { %v1804_v37 = vmul.f32 0.0078125, %v1803_v36 }
 0xb77   : > { %v1805_v0 = vsub.f32 %v1799_v24, %v1804_v37 }
 0xb79   : > { %v1806_v38 = vmul.f32 %v1805_v0, %v1805_v0 }
 0xb7b   : > { %1807 = vadd.xlane.f32.xlu1 %v1806_v38 }
 0xbc5   : > { %v2081_v4 = vpop.f32.mrf.mxu1 }
 0xbc6   : > { %v2082_v7 = vadd.f32 %v2081_v4, %v1960_v2 }
 0xbc7   : > { %v2083_v10 = vpop.f32.mrf.mxu1 }
 0xbc8   : > { %v4392_v11 = vpack.c.bf16 %v2082_v7, %v2082_v7  ;;  %v2084_v8 = vadd.f32 %v2083_v10, %v1964_v3 }
 0xbc9   : > { %v2085_v12 = vpop.f32.mrf.mxu1 }
 0xbca   : > { %v4394_v14 = vpack.c.bf16 %v2084_v8, %v2084_v8  ;;  %2217 = vrot.lane.b32.xlu0 %v4392_v11, %s3888_s8  ;;  %v2110_v15 = vsel %vm1116_vm3, %v4392_v11, 0 }
 0xbcb   : > { %v2086_v16 = vpop.f32.mrf.mxu1 }
 0xbcc   : > { %v2170_v17 = vsel %vm1182_vm2, %v4394_v14, 0 }
 0xbcd   : > { %3626 = vmatpush3.bf16.msra.mxu1 %v2170_v17 }
 0xbce   : > { %3637 = vmatprep.subr.bf16.mxu1 %v3885_v9 }
 0xc04   : > { %v1808_v55 = vpop.xlane.xlu1 %1807 }
 0xc05   : > { %v1809_v56 = vmul.f32 0.0078125, %v1808_v55  ;;  %v3788_v55 = vld [vmem:[%s4662_s15 + $0x10] sm:$0xff]  }
 0xc07   : > { %v1810_v57 = vadd.f32 1e-12, %v1809_v56 }
 0xc09   : > { %3851 = vrsqrt.f32 %v1810_v57 }
 0xc16   : > { %v3852_v58 = vpop.eup %3851 }
 0xc17   : > { %v1812_v13 = vmul.f32 %v3852_v58, %v1805_v0 }
 0xc19   : > { %v1819_v62 = vmul.f32 %v3316_v60, %v1812_v13 }
 0xc1b   : > { %v4381_v63 = vadd.f32 %v3317_v61, %v1819_v62  ;;  %v3785_v61 = vld [vmem:[%s4662_s15 + $0x8] sm:$0xff]  }
 0xc1d   : > { %v1844_v59 = vpack.c.bf16 %v4381_v63, %v4381_v63 }
 0xc1f   : > { %3616 = vmatmul.mubr.bf16.vlgmr.msra.gmra.mxu0 %v1844_v59  ;;  %v3786_v59 = vld [vmem:[%s4662_s15] sm:$0xff]  }
 0xc20   : > { %3621 = vmatprep.mubr.msk.bf16.mxu0 %vm3887_vm1, %v3885_v9  ;;  %3620 = vmatpush3.bf16.xpose.msra.mxu0 %v2110_v15 }
 0xc21   : > { %3631 = vmatprep.subr.bf16.mxu0 %v3885_v9 }
 0xc3c   : > { %v2218_v20 = vpop.permute.xlu0 %2217 }
 0xc3d   : > { %v2223_v24 = vsel %vm1116_vm3, %v2218_v20, 0 }
 0xcdf   : > { %v1933_v19 = vpop.f32.mrf.mxu0 }
 0xce0   : > { %v1934_v21 = vadd.f32 %v3318_v18, %v1933_v19 }
 0xce1   : > { %v3617_v22 = vpop.f32.mrf.mxu0 }
 0xce2   : > { %v4407_v23 = vpack.c.bf16 %v1934_v21, %v1934_v21 }
 0xce3   : > { %v1936_v5 = vpop.f32.mrf.mxu0 }
 0xce4   : > { %2214 = vrot.lane.b32.xlu1 %v4407_v23, %s3888_s8  ;;  %3622 = vmatmul.mubr.msk.bf16.vlgmr.msra.gmra.mxu0 %vm1116_vm3, %v4407_v23 }
 0xce5   : > { %v3618_v25 = vpop.f32.mrf.mxu0  ;;  %3632 = vmatpush3.bf16.xpose.msra.mxu0 %v2223_v24  ;;  %3633 = vmatprep.mubr.msk.bf16.mxu0 %vm3887_vm1, %v3885_v9 }
 0xce6   : > { %3643 = vmatprep.subr.bf16.mxu0 %v3885_v9 }
 0xd56   : > { %v2215_v26 = vpop.permute.xlu1 %2214 }
 0xd57   : > { %3634 = vmatmul.mubr.msk.bf16.vlgmr.msra.gmra.mxu0 %vm1116_vm3, %v2215_v26 }
 0xd58   : > { %3647 = vmatprep.mubr.msk.bf16.mxu0 %vm3887_vm1, %v3885_v9  ;;  %3644 = vmatpush3.bf16.msra.mxu0 %v3787_v54 }
 0xd59   : > { %3645 = vmatprep.subr.bf16.mxu0 %v3885_v9 }
 0xd5c   : > { %3646 = vmatpush3.bf16.msra.mxu0 %v3788_v55 }
 0xd5d   : > { %3659 = vmatprep.subr.bf16.mxu0 %v3885_v9 }
 0xda4   : > { %v2146_v27 = vpop.f32.mrf.mxu0 }
 0xda5   : > { %v2152_v29 = vmul.f32 0.17677669, %v2146_v27 }
 0xda6   : > { %v3623_v45 = vpop.f32.mrf.mxu0 }
 0xda7   : > { %v2153_v30 = vsel %vm1165_vm4, %v2152_v29, -inf }
 0xda8   : > { %2154 = vmax.xlane.f32.xlu0 %v2153_v30  ;;  %v2149_v31 = vpop.f32.mrf.mxu0 }
 0xdaa   : > { %v3624_v6 = vpop.f32.mrf.mxu0 }
 0xe17   : > { %v2259_v32 = vpop.f32.mrf.mxu0 }
 0xe18   : > { %v2265_v33 = vmul.f32 0.17677669, %v2259_v32 }
 0xe19   : > { %v3635_v34 = vpop.f32.mrf.mxu0 }
 0xe1a   : > { %v2266_v35 = vsel %vm1165_vm4, %v2265_v33, -inf }
 0xe1b   : > { %2267 = vmax.xlane.f32.xlu1 %v2266_v35  ;;  %v2262_v36 = vpop.f32.mrf.mxu0 }
 0xe1d   : > { %v3636_v37 = vpop.f32.mrf.mxu0 }
 0xe2c   : > { %2440 = vrot.lane.b32.xlu1 %v4392_v11, %s4699_s2 }
 0xe31   : > { %v2155_v0 = vpop.xlane.xlu0 %2154 }
 0xe32   : > { %v2156_v38 = vsub.f32 %v2152_v29, %v2155_v0 }
 0xe34   : > { %v2157_v39 = vmul.f32 1.442695, %v2156_v38 }
 0xe36   : > { %3853 = vpow2.f32 %v2157_v39 }
 0xe43   : > { %v3854_v40 = vpop.eup %3853 }
 0xe44   : > { %v2159_v41 = vsel %vm1165_vm4, %v3854_v40, 0.0 }
 0xe45   : > { %2160 = vadd.xlane.f32.xlu0 %v2159_v41 }
 0xea4   : > { %v2268_v42 = vpop.xlane.xlu1 %2267 }
 0xea5   : > { %v2269_v43 = vsub.f32 %v2265_v33, %v2268_v42 }
 0xea7   : > { %v2270_v44 = vmul.f32 1.442695, %v2269_v43 }
 0xea8   : > { %v2441_v10 = vpop.permute.xlu1 %2440 }
 0xea9   : > { %3855 = vpow2.f32 %v2270_v44  ;;  %v2446_v16 = vsel %vm1116_vm3, %v2441_v10, 0  ;;  %v3791_v10 = vld [vmem:[%s4662_s15 + $0x38] sm:$0xff]  }
 0xeb6   : > { %v3856_v46 = vpop.eup %3855 }
 0xeb7   : > { %v2272_v47 = vsel %vm1165_vm4, %v3856_v46, 0.0 }
 0xeb8   : > { %2273 = vadd.xlane.f32.xlu0 %v2272_v47 }
 0xece   : > { %v2161_v48 = vpop.xlane.xlu0 %2160  ;;  %2279 = vrot.lane.b32.xlu0 %v4394_v14, %s3888_s8 }
 0xecf   : > { %3857 = vrcp.f32 %v2161_v48 }
 0xed2   : > { %2438 = vrot.lane.b32.xlu0 %v4407_v23, %s4699_s2 }
 0xedc   : > { %v3858_v51 = vpop.eup %3857 }
 0xedd   : > { %v2163_v52 = vmul.f32 %v3858_v51, %v3854_v40 }
 0xedf   : > { %v2164_v53 = vpack.c.bf16 %v2163_v52, %v2163_v52 }
 0xee1   : > { %3628 = vmatmul.mubr.msk.bf16.vlgmr.msra.gmra.mxu1 %vm1165_vm4, %v2164_v53 }
 0xee2   : > { %3639 = vmatprep.mubr.msk.bf16.mxu1 %vm3887_vm1, %v3885_v9 }
 0xf41   : > { %v2274_v56 = vpop.xlane.xlu0 %2273 }
 0xf42   : > { %3859 = vrcp.f32 %v2274_v56 }
 0xf45   : > { %v2280_v57 = vpop.permute.xlu0 %2279 }
 0xf46   : > { %v2285_v58 = vsel %vm1182_vm2, %v2280_v57, 0 }
 0xf47   : > { %3638 = vmatpush3.bf16.msra.mxu1 %v2285_v58 }
 0xf48   : > { %3651 = vmatprep.subr.bf16.mxu1 %v3885_v9 }
 0xf49   : > { %v2439_v19 = vpop.permute.xlu0 %2438 }
 0xf4f   : > { %v3860_v60 = vpop.eup %3859 }
 0xf50   : > { %v2276_v13 = vmul.f32 %v3860_v60, %v3856_v46  ;;  %v3790_v46 = vld [vmem:[%s4662_s15 + $0x20] sm:$0xff]  }
 0xf52   : > { %v2277_v62 = vpack.c.bf16 %v2276_v13, %v2276_v13 }
 0xf54   : > { %3640 = vmatmul.mubr.msk.bf16.vlgmr.msra.gmra.mxu1 %vm1165_vm4, %v2277_v62 }
 0xf55   : > { %3652 = vmatpush3.bf16.msra.mxu1 %v3785_v61  ;;  %3655 = vmatprep.mubr.msk.bf16.mxu1 %vm3887_vm1, %v3885_v9 }
 0xf56   : > { %3653 = vmatprep.subr.bf16.mxu1 %v3885_v9 }
 0xf59   : > { %3654 = vmatpush3.bf16.msra.mxu1 %v3786_v59 }
 0xf5a   : > { %3665 = vmatprep.subr.bf16.mxu1 %v3885_v9 }
 0xfa1   : > { %v2206_v1 = vpop.f32.mrf.mxu1 }
 0xfa2   : > { %v2212_v2 = vpack.c.bf16 %v2206_v1, %v2206_v1 }
 0xfa3   : > { %v3629_v3 = vpop.f32.mrf.mxu1 }
 0xfa4   : > { %3656 = vmatmul.mubr.msk.bf16.vlgmr.msra.gmra.mxu1 %vm1116_vm3, %v2212_v2 }
 0xfa5   : > { %v2209_v4 = vpop.f32.mrf.mxu1  ;;  %3667 = vmatprep.mubr.msk.bf16.mxu1 %vm3887_vm1, %v3885_v9 }
 0xfa7   : > { %v3630_v7 = vpop.f32.mrf.mxu1 }
0x1014   : > { %v2321_v8 = vpop.f32.mrf.mxu1 }
0x1015   : > { %v2327_v12 = vpack.c.bf16 %v2321_v8, %v2321_v8 }
0x1016   : > { %v3641_v15 = vpop.f32.mrf.mxu1 }
0x1017   : > { %3648 = vmatmul.mubr.msk.bf16.vlgmr.msra.gmra.mxu0 %vm1116_vm3, %v2327_v12 }
0x1018   : > { %3660 = vmatpush3.bf16.xpose.msra.mxu0 %v2446_v16  ;;  %v2324_v17 = vpop.f32.mrf.mxu1  ;;  %3661 = vmatprep.mubr.msk.bf16.mxu0 %vm3887_vm1, %v3885_v9 }
0x1019   : > { %3671 = vmatprep.subr.bf16.mxu0 %v3885_v9 }
0x101a   : > { %v3642_v18 = vpop.f32.mrf.mxu1 }
0x101f   : > { %3662 = vmatmul.mubr.msk.bf16.vlgmr.msra.gmra.mxu0 %vm1116_vm3, %v2439_v19 }
0x1020   : > { %3675 = vmatprep.mubr.msk.bf16.mxu0 %vm3887_vm1, %v3885_v9 }
0x1064   : > { %v4465_v20 = vpop.f32.mrf.mxu1 }
0x1066   : > { %v3657_v21 = vpop.f32.mrf.mxu1 }
0x1068   : > { %v2435_v22 = vpop.f32.mrf.mxu1 }
0x106a   : > { %v3658_v24 = vpop.f32.mrf.mxu1 }
0x10d7   : > { %v4467_v5 = vpop.f32.mrf.mxu0 }
0x10d8   : > { %v2433_v2 = vadd.f32 %v4465_v20, %v4467_v5  ;;  %v3792_v20 = vld [vmem:[%s4662_s15 + $0x30] sm:$0xff]  }
0x10d9   : > { %v3649_v25 = vpop.f32.mrf.mxu0 }
0x10db   : > { %v2380_v26 = vpop.f32.mrf.mxu0 }
0x10dc   : > { %v3363_v26 = vld [vmem:[%s4663_s16] ss:$0 sm:$0xff] }
0x10dd   : > { %v3650_v27 = vpop.f32.mrf.mxu0 }
0x10df   : > { %v2482_v29 = vpop.f32.mrf.mxu0 }
0x10e0   : > { %v2488_v45 = vmul.f32 0.17677669, %v2482_v29 }
0x10e1   : > { %v3663_v30 = vpop.f32.mrf.mxu0 }
0x10e2   : > { %v2489_v31 = vsel %vm1165_vm4, %v2488_v45, -inf }
0x10e3   : > { %2490 = vmax.xlane.f32.xlu0 %v2489_v31  ;;  %v2485_v6 = vpop.f32.mrf.mxu0 }
0x10e4   : > { %v3793_v6 = vld [vmem:[%s4666_s19 + $0x70] ss:$8 sps:$4 sm:$0xff]  }
0x10e5   : > { %v3664_v32 = vpop.f32.mrf.mxu0 }
0x10e6   : > { %v3795_v32 = vld [vmem:[%s4666_s19 + $0x74] ss:$8 sps:$4 sm:$0xff]  }
0x10f9   : > { %2501 = vrot.lane.b32.xlu0 %v4394_v14, %s4699_s2 }
0x10fd   : > { %2606 = vrot.lane.b32.xlu0 %v4407_v23, %s4700_s0  ;;  %v3789_v23 = vld [vmem:[%s4662_s15 + $0x28] sm:$0xff]  }
0x10fe   : > { %3672 = vmatpush3.bf16.msra.mxu0 %v3789_v23  ;;  %v3802_v23 = vld [vmem:[%s4666_s19 + $0x40] ss:$8 sps:$4 sm:$0xff]  }
0x10ff   : > { %3673 = vmatprep.subr.bf16.mxu0 %v3885_v9 }
0x1102   : > { %3674 = vmatpush3.bf16.msra.mxu0 %v3790_v46  ;;  %v3816_v46 = vld [vmem:[%s4666_s19 + $0x4] ss:$8 sps:$4 sm:$0xff]  }
0x1103   : > { %3685 = vmatprep.subr.bf16.mxu0 %v3885_v9 }
0x116c   : > { %v2491_v33 = vpop.xlane.xlu0 %2490 }
0x116d   : > { %v2492_v34 = vsub.f32 %v2488_v45, %v2491_v33  ;;  %v3798_v33 = vld [vmem:[%s4666_s19 + $0x64] ss:$8 sps:$4 sm:$0xff]  }
0x116f   : > { %v2493_v35 = vmul.f32 1.442695, %v2492_v34 }
0x1170   : > { %v2502_v36 = vpop.permute.xlu0 %2501 }
0x1171   : > { %3861 = vpow2.f32 %v2493_v35  ;;  %v2507_v37 = vsel %vm1182_vm2, %v2502_v36, 0 }
0x1172   : > { %3666 = vmatpush3.bf16.msra.mxu1 %v2507_v37 }
0x1173   : > { %3679 = vmatprep.subr.bf16.mxu1 %v3885_v9 }
0x117e   : > { %v3862_v0 = vpop.eup %3861 }
0x117f   : > { %v2495_v38 = vsel %vm1165_vm4, %v3862_v0, 0.0 }
0x1180   : > { %2496 = vadd.xlane.f32.xlu1 %v2495_v38  ;;  %v3799_v38 = vld [vmem:[%s4666_s19 + $0x50] ss:$8 sps:$4 sm:$0xff]  }
0x1191   : > { %2608 = vrot.lane.b32.xlu1 %v4392_v11, %s4700_s0  ;;  %v2607_v11 = vpop.permute.xlu0 %2606 }
0x1209   : > { %v2497_v39 = vpop.xlane.xlu1 %2496 }
0x120a   : > { %3863 = vrcp.f32 %v2497_v39  ;;  %v3804_v39 = vld [vmem:[%s4666_s19 + $0x44] ss:$8 sps:$4 sm:$0xff]  }
0x120d   : > { %v2609_v42 = vpop.permute.xlu1 %2608 }
0x120e   : > { %v2614_v44 = vsel %vm1116_vm3, %v2609_v42, 0  ;;  %v3810_v42 = vld [vmem:[%s4666_s19 + $0x24] ss:$8 sps:$4 sm:$0xff]  }
0x1217   : > { %v3864_v40 = vpop.eup %3863 }
0x1218   : > { %v2499_v41 = vmul.f32 %v3864_v40, %v3862_v0  ;;  %v3801_v0 = vld [vmem:[%s4666_s19 + $0x54] ss:$8 sps:$4 sm:$0xff]  }
0x1219   : > { %v3807_v40 = vld [vmem:[%s4666_s19 + $0x34] ss:$8 sps:$4 sm:$0xff]  }
0x121a   : > { %v2500_v43 = vpack.c.bf16 %v2499_v41, %v2499_v41  ;;  %v3805_v41 = vld [vmem:[%s4666_s19 + $0x30] ss:$8 sps:$4 sm:$0xff]  }
0x121c   : > { %3668 = vmatmul.mubr.msk.bf16.vlgmr.msra.gmra.mxu1 %vm1165_vm4, %v2500_v43  ;;  %v3808_v43 = vld [vmem:[%s4666_s19 + $0x20] ss:$8 sps:$4 sm:$0xff]  }
0x121d   : > { %3680 = vmatpush3.bf16.xpose.msra.mxu1 %v2614_v44  ;;  %3681 = vmatprep.mubr.msk.bf16.mxu1 %vm3887_vm1, %v3885_v9  ;;  %v3813_v44 = vld [vmem:[%s4666_s19 + $0x14] ss:$8 sps:$4 sm:$0xff]  }
0x121e   : > { %3691 = vmatprep.subr.bf16.mxu1 %v3885_v9 }
0x1224   : > { %3682 = vmatmul.mubr.msk.bf16.vlgmr.msra.gmra.mxu1 %vm1116_vm3, %v2607_v11  ;;  %v3811_v11 = vld [vmem:[%s4666_s19 + $0x10] ss:$8 sps:$4 sm:$0xff]  }
0x1225   : > { %3695 = vmatprep.mubr.msk.bf16.mxu1 %vm3887_vm1, %v3885_v9  ;;  %3692 = vmatpush3.bf16.msra.mxu1 %v3791_v10  ;;  %v3826_v10 = vld [vmem:[%s4668_s21 + $0x18] sm:$0xff]  }
0x1226   : > { %3693 = vmatprep.subr.bf16.mxu1 %v3885_v9 }
0x1229   : > { %3694 = vmatpush3.bf16.msra.mxu1 %v3792_v20 }
0x12dc   : > { %v2543_v47 = vpop.f32.mrf.mxu1 }
0x12dd   : > { %v2549_v48 = vpack.c.bf16 %v2543_v47, %v2543_v47  ;;  %v3814_v47 = vld [vmem:[%s4666_s19] ss:$8 sps:$4 sm:$0xff]  }
0x12de   : > { %v3669_v51 = vpop.f32.mrf.mxu1 }
0x12df   : > { %3676 = vmatmul.mubr.msk.bf16.vlgmr.msra.gmra.mxu0 %vm1116_vm3, %v2549_v48 }
0x12e0   : > { %v2546_v52 = vpop.f32.mrf.mxu1  ;;  %3687 = vmatprep.mubr.msk.bf16.mxu0 %vm3887_vm1, %v3885_v9 }
0x12e2   : > { %v3670_v53 = vpop.f32.mrf.mxu1 }
0x12e4   : > { %v2650_v54 = vpop.f32.mrf.mxu1 }
0x12e5   : > { %v2656_v55 = vmul.f32 0.17677669, %v2650_v54  ;;  %v3364_v54 = vld [vmem:[%s4664_s17] ss:$0 sm:$0xff] }
0x12e6   : > { %v3683_v56 = vpop.f32.mrf.mxu1 }
0x12e7   : > { %v2657_v57 = vsel %vm1165_vm4, %v2656_v55, -inf  ;;  %v3365_v56 = vld [vmem:[%s4665_s18] ss:$0 sm:$0xff] }
0x12e8   : > { %2658 = vmax.xlane.f32.xlu1 %v2657_v57  ;;  %v2653_v58 = vpop.f32.mrf.mxu1 }
0x12ea   : > { %v3684_v60 = vpop.f32.mrf.mxu1 }
0x1371   : > { %v2659_v13 = vpop.xlane.xlu1 %2658 }
0x1372   : > { %v2660_v61 = vsub.f32 %v2656_v55, %v2659_v13  ;;  %v3817_v13 = vld [vmem:[%s4668_s21 + $0x78] sm:$0xff]  }
0x1373   : > { %3477 = vmatprep.subr.bf16.mxu1 %v3817_v13 }
0x1374   : > { %v2661_v62 = vmul.f32 1.442695, %v2660_v61  ;;  %v3818_v61 = vld [vmem:[%s4668_s21 + $0x38] sm:$0xff]  }
0x1376   : > { %3865 = vpow2.f32 %v2661_v62  ;;  %v3819_v62 = vld [vmem:[%s4668_s21 + $0x70] sm:$0xff]  }
0x1383   : > { %v3866_v59 = vpop.eup %3865 }
0x1384   : > { %v2663_v1 = vsel %vm1165_vm4, %v3866_v59, 0.0 }
0x1385   : > { %2664 = vadd.xlane.f32.xlu0 %v2663_v1  ;;  %v3821_v1 = vld [vmem:[%s4668_s21 + $0x68] sm:$0xff]  }
0x139b   : > { %2669 = vrot.lane.b32.xlu0 %v4394_v14, %s4700_s0 }
0x139f   : > { %v2599_v3 = vpop.f32.mrf.mxu0 }
0x13a0   : > { %v2605_v4 = vadd.f32 %v2599_v3, %v2433_v2  ;;  %v3822_v2 = vld [vmem:[%s4668_s21 + $0x28] sm:$0xff]   ;;  %v3823_v3 = vld [vmem:[%s4668_s21 + $0x60] sm:$0xff]  }
0x13a1   : > { %v3677_v7 = vpop.f32.mrf.mxu0 }
0x13a2   : > { %v3825_v7 = vld [vmem:[%s4668_s21 + $0x58] sm:$0xff]  }
0x13a3   : > { %v2602_v8 = vpop.f32.mrf.mxu0 }
0x13a4   : > { %v3827_v8 = vld [vmem:[%s4668_s21 + $0x50] sm:$0xff]  }
0x13a5   : > { %v3678_v12 = vpop.f32.mrf.mxu0 }
0x13a6   : > { %v3828_v12 = vld [vmem:[%s4668_s21 + $0x10] sm:$0xff]  }
0x140e   : > { %v2665_v15 = vpop.xlane.xlu0 %2664 }
0x140f   : > { %3867 = vrcp.f32 %v2665_v15  ;;  %v3829_v15 = vld [vmem:[%s4668_s21 + $0x48] sm:$0xff]  }
0x1412   : > { %v2670_v16 = vpop.permute.xlu0 %2669 }
0x1413   : > { %v2675_v14 = vsel %vm1182_vm2, %v2670_v16, 0  ;;  %v3830_v16 = vld [vmem:[%s4668_s21 + $0x8] sm:$0xff]  }
0x1414   : > { %3686 = vmatpush3.bf16.msra.mxu0 %v2675_v14  ;;  %v3831_v14 = vld [vmem:[%s4668_s21 + $0x40] sm:$0xff]  }
0x1415   : > { %2919 = vmatprep.subr.bf16.mxu0 %v3795_v32 }
0x141c   : > { %v3868_v17 = vpop.eup %3867 }
0x141d   : > { %v2667_v18 = vmul.f32 %v3868_v17, %v3866_v59  ;;  %v3820_v59 = vld [vmem:[%s4668_s21 + $0x30] sm:$0xff]   ;;  %v3832_v17 = vld [vmem:[%s4668_s21] sm:$0xff]  }
0x141f   : > { %v2668_v19 = vpack.c.bf16 %v2667_v18, %v2667_v18  ;;  %v2826_v18 = vld [vmem:[%s4667_s20] sm:$0x3] }
0x1420   : > { %v2836_v20 = vrot.slane %v2826_v18, %v4147_v49 }
0x1421   : > { %3688 = vmatmul.mubr.msk.bf16.vlgmr.msra.gmra.mxu0 %vm1165_vm4, %v2668_v19  ;;  %v2832_v19 = vrot.slane %v2826_v18, %v4150_v50 }
0x1422   : > { %2951 = vmatprep.mubr.bf16.mxu0 %v3886_v28  ;;  %2920 = vmatpush1.bf16.msra.mxu0 %v3793_v6 }
0x1423   : > { %2921 = vmatprep.subr.bf16.mxu0 %v3798_v33 }
0x14e1   : > { %v2711_v9 = vpop.f32.mrf.mxu0 }
0x14e2   : > { %v2717_v21 = vpack.c.bf16 %v2711_v9, %v2711_v9 }
0x14e3   : > { %v3689_v22 = vpop.f32.mrf.mxu0 }
0x14e4   : > { %3696 = vmatmul.mubr.msk.bf16.vlgmr.msra.gmra.mxu1 %vm1116_vm3, %v2717_v21 }
0x14e5   : > { %v2714_v24 = vpop.f32.mrf.mxu0  ;;  %3478 = vmatpush3.bf16.msra.mxu1 %v3818_v61 }
0x14e6   : > { %3479 = vmatprep.subr.bf16.mxu1 %v3819_v62 }
0x14e7   : > { %v3690_v5 = vpop.f32.mrf.mxu0 }
0x14e9   : > { %3480 = vmatpush3.bf16.msra.mxu1 %v3820_v59 }
0x14ea   : > { %3481 = vmatprep.subr.bf16.mxu1 %v3821_v1 }
0x14ed   : > { %3482 = vmatpush3.bf16.msra.mxu1 %v3822_v2 }
0x14ee   : > { %3483 = vmatprep.subr.bf16.mxu1 %v3823_v3 }
0x15a4   : > { %v2767_v25 = vpop.f32.mrf.mxu1 }
0x15a5   : > { %v2773_v27 = vadd.f32 %v2767_v25, %v2605_v4  ;;  %v3824_v4 = vld [vmem:[%s4668_s21 + $0x20] sm:$0xff]  }
0x15a6   : > { %v3697_v29 = vpop.f32.mrf.mxu1  ;;  %3484 = vmatpush3.bf16.msra.mxu1 %v3824_v4 }
0x15a7   : > { %v2781_v28 = vadd.f32 %v3363_v26, %v2773_v27  ;;  %3485 = vmatprep.subr.bf16.mxu1 %v3825_v7 }
0x15a8   : > { %v2770_v45 = vpop.f32.mrf.mxu1 }
0x15a9   : > { %v2782_v30 = vadd.f32 %v2781_v28, %v4381_v63  ;;  %v3796_v63 = vld [vmem:[%s4666_s19 + $0x60] ss:$8 sps:$4 sm:$0xff]  }
0x15aa   : > { %v3698_v31 = vpop.f32.mrf.mxu1  ;;  %2922 = vmatpush1.bf16.msra.mxu0 %v3796_v63  ;;  %3486 = vmatpush3.bf16.msra.mxu1 %v3826_v10 }
0x15ab   : > { %2785 = vadd.xlane.f32.xlu1 %v2782_v30  ;;  %2923 = vmatprep.subr.bf16.mxu0 %v3801_v0 }
0x15ac   : > { %3487 = vmatprep.subr.bf16.mxu1 %v3827_v8 }
0x15ae   : > { %2924 = vmatpush1.bf16.msra.mxu0 %v3799_v38  ;;  %3488 = vmatpush3.bf16.msra.mxu1 %v3828_v12 }
0x15af   : > { %2925 = vmatprep.subr.bf16.mxu0 %v3804_v39  ;;  %3489 = vmatprep.subr.bf16.mxu1 %v3829_v15 }
0x15b2   : > { %2926 = vmatpush1.bf16.msra.mxu0 %v3802_v23  ;;  %3490 = vmatpush3.bf16.msra.mxu1 %v3830_v16 }
0x15b3   : > { %2927 = vmatprep.subr.bf16.mxu0 %v3807_v40  ;;  %3491 = vmatprep.subr.bf16.mxu1 %v3831_v14  ;;  %v3382_v40 = vld [vmem:[%s4669_s22] ss:$0 sm:$0xff] }
0x15b6   : > { %2928 = vmatpush1.bf16.msra.mxu0 %v3805_v41  ;;  %3492 = vmatpush3.bf16.msra.mxu1 %v3832_v17 }
0x15b7   : > { %2929 = vmatprep.subr.bf16.mxu0 %v3810_v42 }
0x15ba   : > { %2930 = vmatpush1.bf16.msra.mxu0 %v3808_v43 }
0x15bb   : > { %2931 = vmatprep.subr.bf16.mxu0 %v3813_v44 }
0x15be   : > { %2932 = vmatpush1.bf16.msra.mxu0 %v3811_v11 }
0x15bf   : > { %2933 = vmatprep.subr.bf16.mxu0 %v3816_v46 }
0x15c2   : > { %2934 = vmatpush1.bf16.msra.mxu0 %v3814_v47 }
0x1634   : > { %v2786_v34 = vpop.xlane.xlu1 %2785 }
0x1635   : > { %v2787_v35 = vmul.f32 0.0078125, %v2786_v34 }
0x1637   : > { %v2788_v36 = vsub.f32 %v2782_v30, %v2787_v35 }
0x1639   : > { %v2789_v37 = vmul.f32 %v2788_v36, %v2788_v36 }
0x163b   : > { %2790 = vadd.xlane.f32.xlu1 %v2789_v37 }
0x16c4   : > { %v2791_v48 = vpop.xlane.xlu1 %2790 }
0x16c5   : > { %v2792_v51 = vmul.f32 0.0078125, %v2791_v48 }
0x16c7   : > { %v2793_v52 = vadd.f32 1e-12, %v2792_v51 }
0x16c9   : > { %3869 = vrsqrt.f32 %v2793_v52 }
0x16d6   : > { %v3870_v53 = vpop.eup %3869 }
0x16d7   : > { %v2795_v55 = vmul.f32 %v3870_v53, %v2788_v36 }
0x16d9   : > { %v2802_v57 = vmul.f32 %v3364_v54, %v2795_v55 }
0x16db   : > { %v4573_v58 = vadd.f32 %v3365_v56, %v2802_v57  ;;  %v3399_v57 = vld [vmem:[%s4670_s23] ss:$0 sm:$0xff] }
0x16dd   : > { %v2827_v60 = vpack.c.bf16 %v4573_v58, %v4573_v58 }
0x16df   : > { %2952 = vmatmul.mubr.bf16.vlgmr.msra.gmra.mxu0 %v2827_v60 }
0x179f   : > { %v2953_v9 = vpop.f32.mrf.mxu0 }
0x17a0   : > { %v2954_v21 = vadd.f32 %v2953_v9, %v2832_v19 }
0x17a1   : > { %v2955_v22 = vpop.f32.mrf.mxu0 }
0x17a2   : > { %v2962_v24 = vmul.f32 0.044715, %v2954_v21  ;;  %v2956_v5 = vadd.f32 %v2955_v22, %v2836_v20  ;;  %v2960_v34 = vmul.f32 0.5, %v2954_v21 }
0x17a3   : > { %v2957_v25 = vpop.f32.mrf.mxu0 }
0x17a4   : > { %v2964_v26 = vmul.f32 %v2962_v24, %v2954_v21  ;;  %v2963_v27 = vmul.f32 0.044715, %v2956_v5  ;;  %v2961_v35 = vmul.f32 0.5, %v2956_v5 }
0x17a5   : > { %v2958_v29 = vpop.f32.mrf.mxu0 }
0x17a6   : > { %v2966_v28 = vmul.f32 %v2964_v26, %v2954_v21  ;;  %v2965_v45 = vmul.f32 %v2963_v27, %v2956_v5 }
0x17a8   : > { %v2968_v30 = vadd.f32 %v2966_v28, %v2954_v21  ;;  %v2967_v31 = vmul.f32 %v2965_v45, %v2956_v5 }
0x17aa   : > { %v2970_v6 = vmul.f32 0.7978846, %v2968_v30  ;;  %v2969_v32 = vadd.f32 %v2967_v31, %v2956_v5 }
0x17ac   : > { %v2971_v33 = vmul.f32 0.7978846, %v2969_v32  ;;  %3871 = vtanh.f32 %v2970_v6 }
0x17ae   : > { %3873 = vtanh.f32 %v2971_v33 }
0x17b9   : > { %v3872_v50 = vpop.eup %3871 }
0x17ba   : > { %v2974_v49 = vadd.f32 1.0, %v3872_v50 }
0x17bb   : > { %v3874_v63 = vpop.eup %3873 }
0x17bc   : > { %v2975_v36 = vadd.f32 1.0, %v3874_v63  ;;  %v2976_v37 = vmul.f32 %v2974_v49, %v2960_v34 }
0x17be   : > { %v2977_v0 = vmul.f32 %v2975_v36, %v2961_v35  ;;  %v3011_v23 = vpack.c.bf16 %v2976_v37, %v2976_v37 }
0x17c0   : > { %v3012_v38 = vpack.c.bf16 %v2977_v0, %v2977_v0 }
0x17c2   : > { %3147 = vmatprep.mubr.bf16.mxu1 %v3012_v38 }
0x17c3   : > { %3148 = vmatmul.mubr.bf16.vlgmr.msra.gmra.mxu1 %v3011_v23 }
0x1883   : > { %v3493_v39 = vpop.f32.mrf.mxu1 }
0x1885   : > { %v3494_v41 = vpop.f32.mrf.mxu1 }
0x1886   : > { %v3495_v42 = vadd.f32 %v3494_v41, %v3493_v39 }
0x1887   : > { %v3496_v43 = vpop.f32.mrf.mxu1 }
0x1888   : > { %v3150_v44 = vadd.f32 %v3495_v42, %v3382_v40 }
0x1889   : > { %v3497_v11 = vpop.f32.mrf.mxu1 }
0x188a   : > { %v3155_v46 = vadd.f32 %v3150_v44, %v4573_v58  ;;  %v3400_v58 = vld [vmem:[%s4671_s24] ss:$0 sm:$0xff] }
0x188c   : > { %3158 = vadd.xlane.f32.xlu1 %v3155_v46 }
0x1915   : > { %v3159_v47 = vpop.xlane.xlu1 %3158 }
0x1916   : > { %v3160_v48 = vmul.f32 0.0078125, %v3159_v47 }
0x1918   : > { %v3161_v51 = vsub.f32 %v3155_v46, %v3160_v48 }
0x191a   : > { %v3162_v52 = vmul.f32 %v3161_v51, %v3161_v51 }
0x191c   : > { %3163 = vadd.xlane.f32.xlu1 %v3162_v52 }
0x19a5   : > { %v3164_v53 = vpop.xlane.xlu1 %3163 }
0x19a6   : > { %v3165_v54 = vmul.f32 0.0078125, %v3164_v53 }
0x19a8   : > { %v3166_v55 = vadd.f32 1e-12, %v3165_v54 }
0x19aa   : > { %3875 = vrsqrt.f32 %v3166_v55 }
0x19b7   : > { %v3876_v56 = vpop.eup %3875 }
0x19b8   : > { %v3168_v60 = vmul.f32 %v3876_v56, %v3161_v51 }
0x19ba   : > { %v3175_v13 = vmul.f32 %v3399_v57, %v3168_v60 }
0x19bc   : > { %v3182_v61 = vadd.f32 %v3400_v58, %v3175_v13 }
0x19be   : > { %v3183_v62 = vpack.c.bf16 %v3182_v61, %v3182_v61 }
0x19c0   : > { %3184 = vst [vmem:[%s790_s30] sm:$0xf] %v3183_v62 }
0x19c1 PF: > { %s35_s29 = sadd.s32 1, %s3883_s29  }
0x19c2   : > { %p32_p4 = scmp.ge.s32.totalorder %s35_s29, 4  }
0x19c4   :  { %34 = sbr.rel (!%p32_p4) target bundleno = 11 (0xb), region = 156 }

</bundles_post_ra>
